<compile_context>
chip_gen: v7x
topology: tpu7x:2x2x1
jax: 0.10.0
libtpu: 0.0.40
codegen_flags: <defaults>
</compile_context>

<pallas_src>
import jax
import jax.numpy as jnp
from jax.experimental import pallas as pl
from jax.experimental.pallas import tpu as pltpu

_MIB = 1024 * 1024


def _vmem_targets():
    """(per-step working-set budget, vmem_limit cap) by TPU generation."""
    try:
        kind = jax.devices()[0].device_kind.lower()
    except Exception:
        kind = ""
    if "v5" in kind or "v6" in kind:          # 128 MiB VMEM parts
        return 24 * _MIB, 64 * _MIB
    return 10 * _MIB, 32 * _MIB               # v7x (64 MiB VMEM) / unknown: conservative


def _pick_batch_block(n, c, c_out, k, k_out, itemsize, vmem_budget):
    """Largest batch-group Nb that divides N, keeps the 2-D blocks
    sublane-aligned, leaves >= min(N, 8) grid steps, and fits a VMEM budget
    that counts the x block, out block (double-buffered) and the sel constant."""
    sub = {4: 8, 2: 16, 1: 32}.get(itemsize, 8)        # sublane tile per dtype
    kp = pl.cdiv(k, 128) * 128                         # lane-padded widths
    kop = pl.cdiv(k_out, 128) * 128
    sel_bytes = k * kop * itemsize * 2                 # constant, 2 pipeline bufs
    per_image = (c * kp + c_out * kop) * itemsize * 2  # x + out, double-buffered
    budget = max(vmem_budget - sel_bytes, vmem_budget // 4)
    cap = max(1, budget // per_image)
    cap = min(cap, max(1, n // min(n, 8)))             # >= min(N, 8) grid steps
    cap = min(cap, 64)                                 # bound kernel unroll size
    cap = min(cap, n)

    def ok(nb):
        return n % nb == 0 and (nb * c) % sub == 0 and (nb * c_out) % sub == 0

    for nb in range(int(cap), 0, -1):
        if ok(nb):
            return nb
    # No aligned divisor under the budget: take the smallest aligned divisor
    # above it (closest to the budget) instead of jumping to the whole batch.
    for nb in range(int(cap) + 1, n):
        if ok(nb):
            return nb
    return n  # whole batch: block dims == array dims is always legal


def _make_shortcut_kernel(nb, c, c_out, pad, k_out):
    def kernel(x_ref, sel_ref, o_ref):
        # x_ref  : (Nb*C,     H*W)     lane-dense batch-group of flattened images
        # sel_ref: (H*W,      Ho*Wo)   0/1 column selection == x[..., ::2, ::2]
        # o_ref  : (Nb*C_out, Ho*Wo)
        v = jnp.dot(x_ref[...], sel_ref[...],
                    preferred_element_type=jnp.float32,
                    precision=jax.lax.Precision.HIGHEST)   # exact f32 gather
        v = v.astype(o_ref.dtype)
        zpad = jnp.zeros((pad, k_out), dtype=o_ref.dtype) if pad > 0 else None
        for b in range(nb):                  # static unroll over images in block
            r0 = b * c_out
            if pad > 0:
                o_ref[r0:r0 + pad, :] = zpad                    # leading zero chans
            o_ref[r0 + pad:r0 + pad + c, :] = v[b * c:(b + 1) * c, :]
            if pad > 0:
                o_ref[r0 + pad + c:r0 + c_out, :] = zpad        # trailing zero chans
    return kernel


def lambda_layer(x_nchw, planes):
    """Option-'A' shortcut: F.pad(x[:, :, ::2, ::2], (0,0,0,0,planes//4,planes//4))."""
    n, c, h, w = x_nchw.shape
    pad = planes // 4
    c_out = c + 2 * pad
    h_out = (h + 1) // 2
    w_out = (w + 1) // 2
    k = h * w
    k_out = h_out * w_out
    dtype = x_nchw.dtype
    itemsize = jnp.dtype(dtype).itemsize

    vmem_budget, vmem_cap = _vmem_targets()
    nb = _pick_batch_block(n, c, c_out, k, k_out, itemsize, vmem_budget)
    grid = (n // nb,)

    # vmem_limit derived from actual block sizes (+ headroom), not a blanket.
    kp = pl.cdiv(k, 128) * 128
    kop = pl.cdiv(k_out, 128) * 128
    ws = (nb * c * kp + nb * c_out * kop) * itemsize * 2 + k * kop * itemsize * 2
    vmem_limit = int(min(vmem_cap, max(16 * _MIB, int(1.5 * ws) + 4 * _MIB)))

    # Free row-major reshape: NCHW -> (N*C, H*W).  No transpose anywhere.
    x2 = x_nchw.reshape(n * c, k)

    # 0/1 selection matrix S: output column j = ho*Wo + wo picks input element
    # l = (2*ho)*W + 2*wo  ==  x[..., ::2, ::2] flattened.  0/1 entries are
    # exact in any dtype, so the matmul is an exact gather under HIGHEST.
    jo = jnp.arange(k_out, dtype=jnp.int32)
    src = (2 * (jo // w_out)) * w + 2 * (jo % w_out)
    sel = (jnp.arange(k, dtype=jnp.int32)[:, None] == src[None, :]).astype(dtype)

    kernel = _make_shortcut_kernel(nb, c, c_out, pad, k_out)

    out2 = pl.pallas_call(
        kernel,
        out_shape=jax.ShapeDtypeStruct((n * c_out, k_out), dtype),
        grid_spec=pltpu.PrefetchScalarGridSpec(
            num_scalar_prefetch=0,
            grid=grid,
            in_specs=[
                pl.BlockSpec((nb * c, k), lambda i: (i, 0)),
                pl.BlockSpec((k, k_out), lambda i: (0, 0)),   # constant block
            ],
            out_specs=pl.BlockSpec((nb * c_out, k_out), lambda i: (i, 0)),
        ),
        compiler_params=pltpu.CompilerParams(
            dimension_semantics=("parallel",),
            vmem_limit_bytes=vmem_limit,
        ),
    )(x2, sel)

    # Free row-major reshape back: (N*C_out, Ho*Wo) -> NCHW.
    return out2.reshape(n, c_out, h_out, w_out)


if __name__ == "__main__":
    key = jax.random.PRNGKey(0)
    # Stage-1 CIFAR-ResNet option-'A' shortcut shape: (N,16,32,32) -> (N,32,16,16)
    x = jax.random.normal(key, (4, 16, 32, 32), dtype=jnp.float32)  # NCHW
    planes = 32                       # pad = planes // 4 = 8 zero channels per side

    out = jax.block_until_ready(lambda_layer(x, planes))

    # Pure-JAX reference of the PyTorch lambda:
    #   F.pad(x[:, :, ::2, ::2], (0,0,0,0,planes//4,planes//4), "constant", 0)
    p = planes // 4
    ref = jnp.pad(x[:, :, ::2, ::2], ((0, 0), (p, p), (0, 0), (0, 0)))

    assert out.shape == (4, 16 + 2 * p, 16, 16), out.shape
    assert out.dtype == x.dtype
    assert jnp.allclose(out, ref), "mismatch vs reference"
    print("KERNEL_OK")
</pallas_src>

<mosaic_0001>
module attributes {stable_mosaic.version = 11 : i64} {
  func.func @kernel(%arg0: i32, %arg1: memref<16x1024xf32, #tpu.memory_space<vmem>>, %arg2: memref<1024x256xf32, #tpu.memory_space<vmem>>, %arg3: memref<32x256xf32, #tpu.memory_space<vmem>>) attributes {dimension_semantics = [#tpu.dimension_semantics<parallel>], iteration_bounds = array<i64: 4>, scalar_prefetch = 0 : i64, scratch_operands = 0 : i64, tpu.core_type = #tpu.core_type<tc>, window_params = [{transform_indices = @transform_0, window_bounds = array<i64: 16, 1024>}, {pipeline_mode = #tpu.pipeline_mode<synchronous>, transform_indices = @transform_1, window_bounds = array<i64: 1024, 256>}, {transform_indices = @transform_2, window_bounds = array<i64: 32, 256>}]} {
    %c0 = arith.constant 0 : index
    %c0_0 = arith.constant 0 : index
    %0 = vector.load %arg1[%c0, %c0_0] : memref<16x1024xf32, #tpu.memory_space<vmem>>, vector<16x1024xf32>
    %c0_1 = arith.constant 0 : index
    %c0_2 = arith.constant 0 : index
    %1 = vector.load %arg2[%c0_1, %c0_2] : memref<1024x256xf32, #tpu.memory_space<vmem>>, vector<1024x256xf32>
    %cst = arith.constant dense<0.000000e+00> : vector<16x256xf32>
    %2 = tpu.matmul %0, %1, %cst {dimension_numbers = #tpu.dot_dimension_numbers<[1], [0], [0], [1], [0, 0, 1, 1], [], []>, precision = #tpu.contract_precision<fp32>} : vector<16x1024xf32>, vector<1024x256xf32>, vector<16x256xf32> -> vector<16x256xf32>
    %cst_3 = arith.constant 0.000000e+00 : f32
    %3 = vector.broadcast %cst_3 : f32 to vector<8x256xf32>
    %c0_4 = arith.constant 0 : index
    %c0_5 = arith.constant 0 : index
    %4 = vector.load %arg3[%c0_4, %c0_5] : memref<32x256xf32, #tpu.memory_space<vmem>>, vector<8x256xf32>
    tpu.vector_store %arg3[%c0_4, %c0_5], %3 {strides = array<i32>} : memref<32x256xf32, #tpu.memory_space<vmem>>, vector<8x256xf32>,
    %c8 = arith.constant 8 : index
    %c0_6 = arith.constant 0 : index
    %5 = vector.load %arg3[%c8, %c0_6] : memref<32x256xf32, #tpu.memory_space<vmem>>, vector<16x256xf32>
    tpu.vector_store %arg3[%c8, %c0_6], %2 {strides = array<i32>} : memref<32x256xf32, #tpu.memory_space<vmem>>, vector<16x256xf32>,
    %c24 = arith.constant 24 : index
    %c0_7 = arith.constant 0 : index
    %6 = vector.load %arg3[%c24, %c0_7] : memref<32x256xf32, #tpu.memory_space<vmem>>, vector<8x256xf32>
    tpu.vector_store %arg3[%c24, %c0_7], %3 {strides = array<i32>} : memref<32x256xf32, #tpu.memory_space<vmem>>, vector<8x256xf32>,
    return
  }
  func.func @transform_0(%arg0: i32) -> (i32, i32) {
    %c0_i32 = arith.constant 0 : i32
    %c0_i32_0 = arith.constant 0 : i32
    return %arg0, %c0_i32 : i32, i32
  }
  func.func @transform_1(%arg0: i32) -> (i32, i32) {
    %c0_i32 = arith.constant 0 : i32
    %c0_i32_0 = arith.constant 0 : i32
    %c0_i32_1 = arith.constant 0 : i32
    return %c0_i32, %c0_i32_0 : i32, i32
  }
  func.func @transform_2(%arg0: i32) -> (i32, i32) {
    %c0_i32 = arith.constant 0 : i32
    %c0_i32_0 = arith.constant 0 : i32
    return %arg0, %c0_i32 : i32, i32
  }
}

</mosaic_0001>

<bundles_post_ra>
// kernel: tpu_custom_call.1
= control target key start
LH: loop header
LB: loop body
LE: loop exit
PB: predicated region body
PF: predicated region fallthrough
CT: control target
= control target key end

     0   :  { %7 = vsyncpa [#allocation3], 0  ;;  %s11669_s0 = inlined_call_operand.hbm [shape: f32[64,1024], index: 0, kind: input, shape index: {}]   ;;  %s11670_s1 = inlined_call_operand.hbm [shape: f32[1024,256], index: 1, kind: input, shape index: {}]   ;;  %s11671_s2 = inlined_call_operand.hbm [shape: f32[128,256], index: 2, kind: output, shape index: {}]  }
   0x1   :  { %9 = vsyncpa [#allocation3 + $0x1], 0 }
   0x2   :  { %10 = vsyncpa [#allocation6], 0 }
   0x3   :  { %11 = vsyncpa [#allocation4], 0 }
   0x4   :  { %13 = vsyncpa [#allocation4 + $0x1], 0  ;;  %s7811_s9 = smov 0   ;;  %s7813_s10 = smov 0  }
   0x5   :  { %s7815_s11 = smov 0   ;;  %s7817_s12 = smov 0  }
   0x6 LB: > { %s7832_s13 = sadd.s32 4294967295, %s7784_s12   ;;  %s5942_s14 = sadd.s32 4294967294, %s7784_s12   ;;  %s7784_s12 = sphi %s7817_s12, %s14402_s12   ;;  %s7780_s11 = sphi %s7815_s11, %s14401_s11   ;;  %s7776_s10 = sphi %s7813_s10, %s14400_s10   ;;  %s7772_s9 = sphi %s7811_s9, %s14399_s9  }
   0x7   : > { %p39_p0 = scmp.ne.s32.totalorder %s7776_s10, %s7772_s9  ;;  %p11672_p1 = scmp.eq.s32.totalorder %s7832_s13, 0 }
   0x8   : > { %p90_p3 = scmp.eq.s32.totalorder %s5942_s14, 3  ;;  %p5943_p5 = scmp.ge.s32.totalorder %s7784_s12, 1 }
   0x9   : > { %p7841_p4 = por %p11672_p1, %p39_p0  ;;  %p97_p7 = scmp.lt.s32.totalorder %s7784_s12, 5 }
   0xa   : > { %p7846_p6 = por %p90_p3, %p39_p0  ;;  %s7786_s18 = smov [#allocation5]  }
   0xb   : > { %s12581_s15 = scalar_select %p7841_p4, 1, 0 }
   0xc   : > { %s12582_s16 = scalar_select %p7846_p6, 1, 0 }
   0xd   : > { %p7851_p8 = pnand %p5943_p5, %p97_p7  ;;  %s109_s19 = sshll.u32 %s7786_s18, 4  ;;  %s110_s19 = int_to_ptr.vmem [resolvable:$true] %s109_s19 }
   0xe   : > { %s7864_s21 = sadd.s32 1, %s7784_s12   ;;  %s26_s22 = sadd.s32 1, %s7780_s11 }
   0xf   : > { %s12583_s17 = scalar_select %p7851_p8, 1, 0 }
  0x10   : > { %p7600_p9 = pneg %p7851_p8  ;;  %s23_s23 = ssub.s32 %s7784_s12, %s7864_s21 }
  0x11   : > { %s7656_s26 = scalar_lea.hbm %s11670_s1, 32768 }
  0x12   : > { %p7859_p10 = pnand %p7600_p9, %p11672_p1  ;;  %p7657_p11 = scmp.ne.s32.totalorder %s11670_s1, %s7656_s26 }
  0x13   : > { %p7663_p3 = scmp.lt.u32.totalorder %s7656_s26, %s11670_s1 }
  0x14   : > { %p7658_p12 = pneg %p7859_p10 }
  0x16   : > { %p7659_p13 = pnand %p7658_p12, %p7657_p11 }
  0x18   : > { %p7660_p0 = pneg %p7659_p13 }
  0x1a   : > { %p7665_p5 = pnand %p7663_p3, %p7660_p0 }
  0x1c   : > { %7668 = shalt.err (!%p7665_p5)
}
  0x1d   : > { %s7669_s3 = scalar_lea.vmem %s110_s19, 32768  ;;  %p7677_p2 = scmp.lt.s32.totalorder %s110_s19, %s110_s19 }
  0x1e   : > { %p7670_p7 = scmp.ne.s32.totalorder %s110_s19, %s7669_s3  ;;  %p7678_p6 = scmp.lt.s32.totalorder %s7669_s3, %s7669_s3 }
  0x20   : > { %p7672_p9 = pnand %p7670_p7, %p7658_p12  ;;  %p7679_p4 = por %p7678_p6, %p7677_p2 }
  0x22   : > { %p7673_p1 = pneg %p7672_p9 }
  0x24   : > { %p7680_p8 = pnand %p7679_p4, %p7673_p1 }
  0x26   : > { %7683 = shalt.err (!%p7680_p8)
}
  0x27   : > { %s7787_s4 = smov 256   ;;  %s7788_s5 = smov 16  }
  0x28   : > { %7603 = dma.hbm_to_vmem [thread:$0]  (!%p7859_p10), %s11670_s1, 32768, %s110_s19, [#allocation6], %s7787_s4, %s7787_s4, %s7788_s5  }
  0x29   : > { %p24_p11 = scmp.eq.s32.totalorder %s23_s23, 0  ;;  %p33_p2 = scmp.ne.s32.totalorder %s7780_s11, %s7776_s10 }
  0x2a   : > { %p34_p1 = scmp.eq.s32.totalorder %s7784_s12, 0  ;;  %p7613_p4 = scmp.lt.s32.totalorder %s7784_s12, 4 }
  0x2b   : > { %s7890_s8 = scalar_select %p24_p11, %s7780_s11, %s26_s22  }
  0x2c   : > { %p35_p6 = por %p34_p1, %p33_p2  ;;  %p12585_p8 = scmp.eq.s32.totalorder %s7832_s13, 3 }
  0x2d   : > { %s123_s18 = sand.u32 1, %s7780_s11   ;;  %s5961_s24 = sshll.u32 %s7784_s12, 11 }
  0x2e   : > { %p7894_p12 = por %p12585_p8, %p33_p2  ;;  %s5946_s25 = sshll.u32 %s123_s18, 7 }
  0x2f   : > { %s7903_s27 = scalar_lea.hbm %s11669_s0, %s5961_s24  ;;  %s127_s19 = scalar_lea.vmem [#allocation2], %s5946_s25 }
  0x30   : > { %s135_s22 = sshll.u32 %s127_s19, 4  ;;  %p7905_p10 = pnand %p7613_p4, %p35_p6  ;;  %s7909_s22 = int_to_ptr.vmem [resolvable:$true] %s135_s22 }
  0x31   : > { %s7911_s28 = scalar_lea.sflag [#allocation3], %s123_s18  ;;  %s7684_s29 = scalar_lea.hbm %s7903_s27, 2048 }
  0x32   : > { %p7685_p13 = scmp.ne.s32.totalorder %s7903_s27, %s7684_s29  ;;  %p7686_p0 = pneg %p7905_p10 }
  0x33   : > { %s7689_s4 = scalar_lea.hbm %s11669_s0, 8192  ;;  %p7690_p7 = scmp.lt.u32.totalorder %s7903_s27, %s11669_s0 }
  0x34   : > { %p7687_p3 = pnand %p7686_p0, %p7685_p13  ;;  %p7691_p9 = scmp.lt.u32.totalorder %s7689_s4, %s7684_s29 }
  0x35   : > { %p7693_p2 = scmp.lt.u32.totalorder %s7684_s29, %s7903_s27 }
  0x36   : > { %p7688_p5 = pneg %p7687_p3  ;;  %p7692_p11 = por %p7691_p9, %p7690_p7 }
  0x38   : > { %p7694_p1 = por %p7693_p2, %p7692_p11 }
  0x3a   : > { %p7695_p4 = pnand %p7694_p1, %p7688_p5 }
  0x3c   : > { %7698 = shalt.err (!%p7695_p4)
}
  0x3d   : > { %s7699_s7 = scalar_lea.vmem %s7909_s22, 2048  ;;  %s7789_s18 = smov [#allocation2]  }
  0x3e   : > { %p7700_p6 = scmp.ne.s32.totalorder %s7909_s22, %s7699_s7  ;;  %s7704_s24 = sshll.u32 %s7789_s18, 4  ;;  %s7705_s24 = int_to_ptr.vmem [resolvable:$false] %s7704_s24 }
  0x3f   : > { %s7706_s25 = scalar_lea.vmem %s7705_s24, 4096  ;;  %p7707_p3 = scmp.lt.s32.totalorder %s7909_s22, %s7705_s24 }
  0x40   : > { %p7702_p8 = pnand %p7700_p6, %p7686_p0  ;;  %p7708_p7 = scmp.lt.s32.totalorder %s7706_s25, %s7699_s7 }
  0x42   : > { %p7703_p13 = pneg %p7702_p8  ;;  %p7709_p9 = por %p7708_p7, %p7707_p3 }
  0x44   : > { %p7710_p11 = pnand %p7709_p9, %p7703_p13 }
  0x46   : > { %7713 = shalt.err (!%p7710_p11)
}
  0x47   : > { %s7790_s20 = smov 1024   ;;  %s7791_s26 = smov 64  }
  0x48   : > { %7607 = dma.hbm_to_vmem [thread:$0]  (!%p7905_p10), %s7903_s27, 2048, %s7909_s22, %s7911_s28, %s7790_s20, %s7790_s20, %s7791_s26  }
  0x49   : > { %p12588_p0 = scmp.ne.s32.totalorder %s12583_s17, 0 }
  0x4b   : > { %147 = sbr.rel (%p12588_p0) target bundleno = 1216 (0x4c0), region = 28 }
  0x52   : > { %s7942_s19 = sand.u32 1, %s7776_s10   ;;  %p12589_p5 = scmp.ne.s32.totalorder %s12581_s15, 0 }
  0x53   : > { %s5951_s29 = sshll.u32 %s7942_s19, 7  ;;  %s150_s30 = scalar_lea.sflag [#allocation3], %s7942_s19 }
  0x54   : > { %s7946_s3 = scalar_lea.vmem [#allocation2], %s5951_s29 }
  0x55   : > { %7759 = dma.done.wait (%p12589_p5), %s150_s30, 2048  }
  0x56   : > { %7761 = vsyncadd (%p12589_p5), %s150_s30, 4294965248  ;;  %p12590_p10 = scmp.eq.s32.totalorder %s7832_s13, 0 }
  0x58   : > { %7763 = dma.done.wait (%p12590_p10), [#allocation6], 32768   ;;  %p12591_p2 = pmov %p12590_p10 }
  0x59   : > { %v197_v0 = vld [vmem:[#allocation5 + $0x8] sm:$0xff]  ;;  %v199_v1 = vld [vmem:[#allocation5 + $0x18] sm:$0xff]  ;;  %v196_v7 = vld [vmem:[#allocation5] sm:$0xff]  ;;  %s5953_s15 = sshll.u32 %s7942_s19, 6  ;;  %s5963_s22 = sshll.u32 %s7832_s13, 10 }
  0x5a   : > { %7765 = vsyncadd (%p12591_p2), [#allocation6], 4294934528  ;;  %v325_v2 = vld [vmem:[#allocation5 + $0x408] sm:$0xff]  ;;  %v452_v3 = vand.u32 4294901760, %v197_v0  ;;  %v456_v4 = vand.u32 4294901760, %v199_v1  ;;  %v327_v5 = vld [vmem:[#allocation5 + $0x418] sm:$0xff]  ;;  %s11626_s4 = scalar_lea.hbm %s11671_s2, %s5963_s22 }
  0x5b   : > { %v3144_v6 = vand.u32 4294901760, %v325_v2  ;;  %v198_v8 = vld [vmem:[#allocation5 + $0x10] sm:$0xff]  ;;  %v3148_v9 = vand.u32 4294901760, %v327_v5  ;;  %v454_v10 = vand.u32 4294901760, %v196_v7  ;;  %v324_v12 = vld [vmem:[#allocation5 + $0x400] sm:$0xff]  ;;  %v201_v14 = vld [vmem:[#allocation5 + $0x28] sm:$0xff] }
  0x5c   : > { %v458_v11 = vand.u32 4294901760, %v198_v8  ;;  %v326_v13 = vld [vmem:[#allocation5 + $0x410] sm:$0xff]  ;;  %v7956_v15 = vpack.c.bf16 %v456_v4, %v452_v3  ;;  %v7958_v16 = vsub.f32 %v197_v0, %v452_v3  ;;  %v7960_v17 = vsub.f32 %v199_v1, %v456_v4  ;;  %v203_v19 = vld [vmem:[#allocation5 + $0x38] sm:$0xff]  ;;  %v329_v20 = vld [vmem:[#allocation5 + $0x428] sm:$0xff]  ;;  %s177_s17 = scalar_lea.vmem [#allocation7], %s5953_s15  ;;  %s5845_s5 = scalar_lea.sflag [#allocation4], %s7942_s19 }
  0x5d   : > { %v7962_v18 = vsub.f32 %v325_v2, %v3144_v6  ;;  %v331_v21 = vld [vmem:[#allocation5 + $0x438] sm:$0xff]  ;;  %v7964_v22 = vpack.c.bf16 %v3148_v9, %v3144_v6  ;;  %v7966_v23 = vsub.f32 %v327_v5, %v3148_v9  ;;  %v7970_v25 = vsub.f32 %v196_v7, %v454_v10  ;;  %v200_v26 = vld [vmem:[#allocation5 + $0x20] sm:$0xff]  ;;  %v202_v31 = vld [vmem:[#allocation5 + $0x30] sm:$0xff]  ;;  %s5859_s27 = sshll.u32 %s177_s17, 4  ;;  %s7793_s6 = smov [#allocation7]   ;;  %s11621_s27 = int_to_ptr.vmem [resolvable:$true] %s5859_s27 }
  0x5e   : > { %12592 = vst [vmem:[#allocation11_spill] sm:$0xff] %v7956_v15  ;;  %12593 = vst [vmem:[#allocation12_spill] sm:$0xff] %v7958_v16  ;;  %v7968_v24 = vpack.c.bf16 %v458_v11, %v454_v10  ;;  %5965 = vmatprep.subr.bf16.mxu1 %v7956_v15  ;;  %v7973_v27 = vsub.f32 %v198_v8, %v458_v11  ;;  %v3146_v28 = vand.u32 4294901760, %v324_v12  ;;  %v3150_v29 = vand.u32 4294901760, %v326_v13  ;;  %v328_v36 = vld [vmem:[#allocation5 + $0x420] sm:$0xff]  ;;  %v330_v37 = vld [vmem:[#allocation5 + $0x430] sm:$0xff] }
  0x5f   : > { %12594 = vst [vmem:[#allocation13_spill] sm:$0xff] %v7960_v17  ;;  %12595 = vst [vmem:[#allocation14_spill] sm:$0xff] %v7962_v18  ;;  %v460_v30 = vand.u32 4294901760, %v201_v14  ;;  %6733 = vmatprep.subr.bf16.mxu0 %v7964_v22  ;;  %v464_v32 = vand.u32 4294901760, %v203_v19  ;;  %v3152_v33 = vand.u32 4294901760, %v329_v20  ;;  %v3156_v34 = vand.u32 4294901760, %v331_v21 }
  0x60   : > { %12596 = vst [vmem:[#allocation15_spill] sm:$0xff] %v7964_v22  ;;  %12597 = vst [vmem:[#allocation16_spill] sm:$0xff] %v7966_v23  ;;  %5967 = vmatpush1.bf16.msra.mxu1 %v7968_v24  ;;  %v462_v35 = vand.u32 4294901760, %v200_v26  ;;  %v7977_v38 = vpack.c.bf16 %v3150_v29, %v3146_v28  ;;  %v7979_v39 = vsub.f32 %v324_v12, %v3146_v28  ;;  %v205_v42 = vld [vmem:[#allocation5 + $0x48] sm:$0xff]  ;;  %v207_v43 = vld [vmem:[#allocation5 + $0x58] sm:$0xff]  ;;  %v466_v51 = vand.u32 4294901760, %v202_v31 }
  0x61   : > { %12598 = vst [vmem:[#allocation17_spill] sm:$0xff] %v7968_v24  ;;  %12599 = vst [vmem:[#allocation18_spill] sm:$0xff] %v7970_v25  ;;  %v7981_v40 = vsub.f32 %v326_v13, %v3150_v29  ;;  %v7983_v41 = vsub.f32 %v201_v14, %v460_v30  ;;  %v333_v44 = vld [vmem:[#allocation5 + $0x448] sm:$0xff]  ;;  %v7985_v45 = vpack.c.bf16 %v464_v32, %v460_v30  ;;  %v335_v49 = vld [vmem:[#allocation5 + $0x458] sm:$0xff]  ;;  %v3154_v53 = vand.u32 4294901760, %v328_v36  ;;  %s7714_s13 = scalar_lea.vmem %s11621_s27, 1024 }
  0x62   : > { %12600 = vst [vmem:[#allocation19_spill] sm:$0xff] %v7973_v27  ;;  %12601 = vst [vmem:[#allocation20_spill] sm:$0xff] %v7977_v38  ;;  %v7987_v46 = vsub.f32 %v203_v19, %v464_v32  ;;  %v7989_v47 = vpack.c.bf16 %v3156_v34, %v3152_v33  ;;  %v7991_v48 = vsub.f32 %v329_v20, %v3152_v33  ;;  %6735 = vmatpush1.bf16.msra.mxu0 %v7977_v38  ;;  %v204_v58 = vld [vmem:[#allocation5 + $0x40] sm:$0xff]  ;;  %v206_v59 = vld [vmem:[#allocation5 + $0x50] sm:$0xff]  ;;  %p7715_p1 = scmp.ne.s32.totalorder %s11621_s27, %s7714_s13  ;;  %s7718_s7 = sshll.u32 %s7793_s6, 4  ;;  %s7719_s7 = int_to_ptr.vmem [resolvable:$false] %s7718_s7 }
  0x63   : > { %12602 = vst [vmem:[#allocation21_spill] sm:$0xff] %v7979_v39  ;;  %12603 = vst [vmem:[#allocation22_spill] sm:$0xff] %v7981_v40  ;;  %v7994_v50 = vsub.f32 %v331_v21, %v3156_v34  ;;  %v7996_v52 = vsub.f32 %v200_v26, %v462_v35  ;;  %5969 = vmatprep.subr.bf16.mxu1 %v7985_v45  ;;  %v3158_v54 = vand.u32 4294901760, %v330_v37  ;;  %v468_v55 = vand.u32 4294901760, %v205_v42  ;;  %v332_v0 = vld [vmem:[#allocation5 + $0x440] sm:$0xff]  ;;  %v334_v1 = vld [vmem:[#allocation5 + $0x450] sm:$0xff]  ;;  %p7721_p8 = scmp.lt.s32.totalorder %s11621_s27, %s7719_s7 }
  0x64   : > { %12604 = vst [vmem:[#allocation23_spill] sm:$0xff] %v7983_v41  ;;  %12605 = vst [vmem:[#allocation24_spill] sm:$0xff] %v7985_v45  ;;  %6737 = vmatprep.subr.bf16.mxu0 %v7989_v47  ;;  %v472_v56 = vand.u32 4294901760, %v207_v43  ;;  %v3160_v57 = vand.u32 4294901760, %v333_v44  ;;  %v8000_v60 = vpack.c.bf16 %v466_v51, %v462_v35  ;;  %v8002_v61 = vsub.f32 %v202_v31, %v466_v51  ;;  %v209_v2 = vld [vmem:[#allocation5 + $0x68] sm:$0xff]  ;;  %v211_v7 = vld [vmem:[#allocation5 + $0x78] sm:$0xff]  ;;  %p7716_p4 = pnand %p7715_p1, %p7894_p12 }
  0x65   : > { %12606 = vst [vmem:[#allocation25_spill] sm:$0xff] %v7987_v46  ;;  %12607 = vst [vmem:[#allocation26_spill] sm:$0xff] %v7989_v47  ;;  %v8004_v62 = vsub.f32 %v328_v36, %v3154_v53  ;;  %v3164_v63 = vand.u32 4294901760, %v335_v49  ;;  %v8006_v3 = vpack.c.bf16 %v3158_v54, %v3154_v53  ;;  %v8008_v4 = vsub.f32 %v330_v37, %v3158_v54  ;;  %v337_v8 = vld [vmem:[#allocation5 + $0x468] sm:$0xff]  ;;  %v339_v9 = vld [vmem:[#allocation5 + $0x478] sm:$0xff]  ;;  %s7720_s18 = scalar_lea.vmem %s7719_s7, 2048 }
  0x66   : > { %12608 = vst [vmem:[#allocation27_spill] sm:$0xff] %v7991_v48  ;;  %12609 = vst [vmem:[#allocation28_spill] sm:$0xff] %v7994_v50  ;;  %v8010_v5 = vpack.c.bf16 %v472_v56, %v468_v55  ;;  %v8012_v6 = vsub.f32 %v205_v42, %v468_v55  ;;  %5971 = vmatpush1.bf16.msra.mxu1 %v8000_v60  ;;  %v8015_v10 = vsub.f32 %v207_v43, %v472_v56  ;;  %v208_v31 = vld [vmem:[#allocation5 + $0x60] sm:$0xff]  ;;  %v210_v36 = vld [vmem:[#allocation5 + $0x70] sm:$0xff]  ;;  %p7717_p6 = pneg %p7716_p4  ;;  %p7722_p13 = scmp.lt.s32.totalorder %s7720_s18, %s7714_s13 }
  0x67   : > { %12610 = vst [vmem:[#allocation29_spill] sm:$0xff] %v7996_v52  ;;  %12611 = vst [vmem:[#allocation30_spill] sm:$0xff] %v8000_v60  ;;  %v8017_v11 = vpack.c.bf16 %v3164_v63, %v3160_v57  ;;  %v8019_v12 = vsub.f32 %v333_v44, %v3160_v57  ;;  %v8021_v13 = vsub.f32 %v335_v49, %v3164_v63  ;;  %6739 = vmatpush1.bf16.msra.mxu0 %v8006_v3  ;;  %v336_v37 = vld [vmem:[#allocation5 + $0x460] sm:$0xff]  ;;  %v338_v42 = vld [vmem:[#allocation5 + $0x470] sm:$0xff] }
  0x68   : > { %12612 = vst [vmem:[#allocation31_spill] sm:$0xff] %v8002_v61  ;;  %12613 = vst [vmem:[#allocation32_spill] sm:$0xff] %v8004_v62  ;;  %5973 = vmatprep.subr.bf16.mxu1 %v8010_v5  ;;  %v470_v14 = vand.u32 4294901760, %v204_v58  ;;  %v474_v19 = vand.u32 4294901760, %v206_v59  ;;  %v3162_v20 = vand.u32 4294901760, %v332_v0  ;;  %v3166_v21 = vand.u32 4294901760, %v334_v1  ;;  %p7723_p3 = por %p7722_p13, %p7721_p8 }
  0x69   : > { %12614 = vst [vmem:[#allocation33_spill] sm:$0xff] %v8006_v3  ;;  %12615 = vst [vmem:[#allocation34_spill] sm:$0xff] %v8008_v4  ;;  %6741 = vmatprep.subr.bf16.mxu0 %v8017_v11  ;;  %v476_v26 = vand.u32 4294901760, %v209_v2  ;;  %v480_v28 = vand.u32 4294901760, %v211_v7  ;;  %v3168_v29 = vand.u32 4294901760, %v337_v8  ;;  %v3172_v30 = vand.u32 4294901760, %v339_v9 }
  0x6a   : > { %12616 = vst [vmem:[#allocation35_spill] sm:$0xff] %v8010_v5  ;;  %12617 = vst [vmem:[#allocation36_spill] sm:$0xff] %v8012_v6  ;;  %v8026_v32 = vpack.c.bf16 %v474_v19, %v470_v14  ;;  %v8028_v33 = vsub.f32 %v204_v58, %v470_v14  ;;  %v8030_v34 = vsub.f32 %v206_v59, %v474_v19  ;;  %v213_v53 = vld [vmem:[#allocation5 + $0x88] sm:$0xff]  ;;  %v215_v54 = vld [vmem:[#allocation5 + $0x98] sm:$0xff]  ;;  %v478_v59 = vand.u32 4294901760, %v208_v31  ;;  %p7724_p7 = pnand %p7723_p3, %p7717_p6 }
  0x6b   : > { %12618 = vst [vmem:[#allocation37_spill] sm:$0xff] %v8015_v10  ;;  %12619 = vst [vmem:[#allocation38_spill] sm:$0xff] %v8017_v11  ;;  %v8032_v35 = vpack.c.bf16 %v3166_v21, %v3162_v20  ;;  %v8034_v43 = vsub.f32 %v332_v0, %v3162_v20  ;;  %v8036_v44 = vsub.f32 %v334_v1, %v3166_v21  ;;  %v341_v55 = vld [vmem:[#allocation5 + $0x488] sm:$0xff]  ;;  %v482_v0 = vand.u32 4294901760, %v210_v36  ;;  %v343_v14 = vld [vmem:[#allocation5 + $0x498] sm:$0xff] }
  0x6c   : > { %12620 = vst [vmem:[#allocation39_spill] sm:$0xff] %v8019_v12  ;;  %12621 = vst [vmem:[#allocation40_spill] sm:$0xff] %v8021_v13  ;;  %v8038_v49 = vpack.c.bf16 %v480_v28, %v476_v26  ;;  %v8040_v51 = vsub.f32 %v209_v2, %v476_v26  ;;  %5975 = vmatpush1.bf16.msra.mxu1 %v8026_v32  ;;  %v8044_v56 = vsub.f32 %v211_v7, %v480_v28  ;;  %v212_v26 = vld [vmem:[#allocation5 + $0x80] sm:$0xff]  ;;  %v214_v28 = vld [vmem:[#allocation5 + $0x90] sm:$0xff] }
  0x6d   : > { %12622 = vst [vmem:[#allocation41_spill] sm:$0xff] %v8026_v32  ;;  %12623 = vst [vmem:[#allocation42_spill] sm:$0xff] %v8028_v33  ;;  %6743 = vmatpush1.bf16.msra.mxu0 %v8032_v35  ;;  %v8046_v57 = vpack.c.bf16 %v3172_v30, %v3168_v29  ;;  %v8048_v58 = vsub.f32 %v337_v8, %v3168_v29  ;;  %v8051_v63 = vsub.f32 %v339_v9, %v3172_v30  ;;  %v340_v8 = vld [vmem:[#allocation5 + $0x480] sm:$0xff]  ;;  %v217_v32 = vld [vmem:[#allocation5 + $0xa8] sm:$0xff] }
  0x6e   : > { %12624 = vst [vmem:[#allocation43_spill] sm:$0xff] %v8030_v34  ;;  %12625 = vst [vmem:[#allocation44_spill] sm:$0xff] %v8032_v35  ;;  %5977 = vmatprep.subr.bf16.mxu1 %v8038_v49  ;;  %v3170_v1 = vand.u32 4294901760, %v336_v37  ;;  %v3174_v2 = vand.u32 4294901760, %v338_v42  ;;  %v8054_v19 = vsub.f32 %v208_v31, %v478_v59  ;;  %v484_v20 = vand.u32 4294901760, %v213_v53  ;;  %v219_v11 = vld [vmem:[#allocation5 + $0xb8] sm:$0xff] }
  0x6f   : > { %12626 = vst [vmem:[#allocation45_spill] sm:$0xff] %v8034_v43  ;;  %12627 = vst [vmem:[#allocation46_spill] sm:$0xff] %v8036_v44  ;;  %6745 = vmatprep.subr.bf16.mxu0 %v8046_v57  ;;  %v488_v7 = vand.u32 4294901760, %v215_v54  ;;  %v3176_v21 = vand.u32 4294901760, %v341_v55  ;;  %v8056_v29 = vpack.c.bf16 %v482_v0, %v478_v59  ;;  %v8058_v35 = vsub.f32 %v210_v36, %v482_v0  ;;  %v345_v47 = vld [vmem:[#allocation5 + $0x4a8] sm:$0xff]  ;;  %v344_v38 = vld [vmem:[#allocation5 + $0x4a0] sm:$0xff] }
  0x70   : > { %12628 = vst [vmem:[#allocation47_spill] sm:$0xff] %v8038_v49  ;;  %12629 = vst [vmem:[#allocation48_spill] sm:$0xff] %v8040_v51  ;;  %v8060_v9 = vpack.c.bf16 %v3174_v2, %v3170_v1  ;;  %v8062_v30 = vsub.f32 %v336_v37, %v3170_v1  ;;  %v342_v49 = vld [vmem:[#allocation5 + $0x490] sm:$0xff]  ;;  %v8068_v3 = vsub.f32 %v213_v53, %v484_v20  ;;  %v3180_v36 = vand.u32 4294901760, %v343_v14  ;;  %v347_v53 = vld [vmem:[#allocation5 + $0x4b8] sm:$0xff] }
  0x71   : > { %12630 = vst [vmem:[#allocation49_spill] sm:$0xff] %v8044_v56  ;;  %12631 = vst [vmem:[#allocation50_spill] sm:$0xff] %v8046_v57  ;;  %v8064_v57 = vsub.f32 %v338_v42, %v3174_v2  ;;  %v8066_v31 = vpack.c.bf16 %v488_v7, %v484_v20  ;;  %v8070_v5 = vsub.f32 %v215_v54, %v488_v7  ;;  %5979 = vmatpush1.bf16.msra.mxu1 %v8056_v29  ;;  %v346_v15 = vld [vmem:[#allocation5 + $0x4b0] sm:$0xff] }
  0x72   : > { %12632 = vst [vmem:[#allocation51_spill] sm:$0xff] %v8048_v58  ;;  %12633 = vst [vmem:[#allocation52_spill] sm:$0xff] %v8051_v63  ;;  %6747 = vmatpush1.bf16.msra.mxu0 %v8060_v9  ;;  %v8074_v59 = vsub.f32 %v341_v55, %v3176_v21  ;;  %v486_v37 = vand.u32 4294901760, %v212_v26  ;;  %v490_v0 = vand.u32 4294901760, %v214_v28  ;;  %v3178_v1 = vand.u32 4294901760, %v340_v8  ;;  %v216_v55 = vld [vmem:[#allocation5 + $0xa0] sm:$0xff] }
  0x73   : > { %12634 = vst [vmem:[#allocation53_spill] sm:$0xff] %v8054_v19  ;;  %12635 = vst [vmem:[#allocation54_spill] sm:$0xff] %v8056_v29  ;;  %5981 = vmatprep.subr.bf16.mxu1 %v8066_v31  ;;  %v3182_v42 = vand.u32 4294901760, %v342_v49  ;;  %v492_v2 = vand.u32 4294901760, %v217_v32  ;;  %v496_v60 = vand.u32 4294901760, %v219_v11  ;;  %v8077_v20 = vpack.c.bf16 %v3180_v36, %v3176_v21  ;;  %v218_v29 = vld [vmem:[#allocation5 + $0xb0] sm:$0xff] }
  0x74   : > { %12636 = vst [vmem:[#allocation55_spill] sm:$0xff] %v8058_v35  ;;  %12637 = vst [vmem:[#allocation56_spill] sm:$0xff] %v8060_v9  ;;  %v8079_v54 = vsub.f32 %v343_v14, %v3180_v36  ;;  %v8081_v7 = vpack.c.bf16 %v490_v0, %v486_v37  ;;  %v8083_v9 = vsub.f32 %v212_v26, %v486_v37  ;;  %v221_v21 = vld [vmem:[#allocation5 + $0xc8] sm:$0xff]  ;;  %v494_v37 = vand.u32 4294901760, %v216_v55 }
  0x75   : > { %12638 = vst [vmem:[#allocation57_spill] sm:$0xff] %v8062_v30  ;;  %12639 = vst [vmem:[#allocation58_spill] sm:$0xff] %v8064_v57  ;;  %v8085_v45 = vsub.f32 %v214_v28, %v490_v0  ;;  %v8089_v24 = vsub.f32 %v340_v8, %v3178_v1  ;;  %v8091_v22 = vsub.f32 %v342_v49, %v3182_v42  ;;  %6749 = vmatprep.subr.bf16.mxu0 %v8077_v20 }
  0x76   : > { %12640 = vst [vmem:[#allocation59_spill] sm:$0xff] %v8066_v31  ;;  %12641 = vst [vmem:[#allocation60_spill] sm:$0xff] %v8068_v3  ;;  %v8087_v31 = vpack.c.bf16 %v3182_v42, %v3178_v1  ;;  %5983 = vmatpush1.bf16.msra.mxu1 %v8081_v7  ;;  %v8095_v14 = vpack.c.bf16 %v496_v60, %v492_v2  ;;  %v8097_v26 = vsub.f32 %v217_v32, %v492_v2 }
  0x77   : > { %12642 = vst [vmem:[#allocation61_spill] sm:$0xff] %v8070_v5  ;;  %12643 = vst [vmem:[#allocation62_spill] sm:$0xff] %v8074_v59  ;;  %v223_v59 = vld [vmem:[#allocation5 + $0xd8] sm:$0xff]  ;;  %v8099_v36 = vsub.f32 %v219_v11, %v496_v60  ;;  %v3184_v28 = vand.u32 4294901760, %v345_v47  ;;  %v3188_v8 = vand.u32 4294901760, %v347_v53  ;;  %v498_v49 = vand.u32 4294901760, %v218_v29 }
  0x78   : > { %12644 = vst [vmem:[#allocation63_spill] sm:$0xff] %v8077_v20  ;;  %12645 = vst [vmem:[#allocation64_spill] sm:$0xff] %v8079_v54  ;;  %6751 = vmatpush1.bf16.msra.mxu0 %v8087_v31  ;;  %v3186_v0 = vand.u32 4294901760, %v344_v38  ;;  %5985 = vmatprep.subr.bf16.mxu1 %v8095_v14  ;;  %v3190_v42 = vand.u32 4294901760, %v346_v15  ;;  %v500_v20 = vand.u32 4294901760, %v221_v21  ;;  %v8111_v2 = vsub.f32 %v216_v55, %v494_v37  ;;  %v227_v54 = vld [vmem:[#allocation5 + $0xf8] sm:$0xff] }
  0x79   : > { %12646 = vst [vmem:[#allocation65_spill] sm:$0xff] %v8081_v7  ;;  %12647 = vst [vmem:[#allocation66_spill] sm:$0xff] %v8083_v9  ;;  %v8103_v1 = vsub.f32 %v345_v47, %v3184_v28  ;;  %v504_v7 = vand.u32 4294901760, %v223_v59  ;;  %v8105_v32 = vpack.c.bf16 %v3188_v8, %v3184_v28  ;;  %v8107_v60 = vsub.f32 %v347_v53, %v3188_v8  ;;  %v350_v9 = vld [vmem:[#allocation5 + $0x4d0] sm:$0xff]  ;;  %v225_v28 = vld [vmem:[#allocation5 + $0xe8] sm:$0xff] }
  0x7a   : > { %12648 = vst [vmem:[#allocation67_spill] sm:$0xff] %v8085_v45  ;;  %12649 = vst [vmem:[#allocation68_spill] sm:$0xff] %v8087_v31  ;;  %v8109_v11 = vpack.c.bf16 %v498_v49, %v494_v37  ;;  %v220_v31 = vld [vmem:[#allocation5 + $0xc0] sm:$0xff]  ;;  %v8113_v45 = vsub.f32 %v218_v29, %v498_v49  ;;  %v8115_v47 = vpack.c.bf16 %v3190_v42, %v3186_v0 }
  0x7b   : > { %12650 = vst [vmem:[#allocation69_spill] sm:$0xff] %v8089_v24  ;;  %12651 = vst [vmem:[#allocation70_spill] sm:$0xff] %v8091_v22  ;;  %v349_v22 = vld [vmem:[#allocation5 + $0x4c8] sm:$0xff]  ;;  %v351_v24 = vld [vmem:[#allocation5 + $0x4d8] sm:$0xff]  ;;  %6753 = vmatprep.subr.bf16.mxu0 %v8105_v32  ;;  %v8123_v53 = vpack.c.bf16 %v504_v7, %v500_v20  ;;  %v8125_v55 = vsub.f32 %v221_v21, %v500_v20  ;;  %v8127_v8 = vsub.f32 %v223_v59, %v504_v7 }
  0x7c   : > { %12652 = vst [vmem:[#allocation71_spill] sm:$0xff] %v8095_v14  ;;  %12653 = vst [vmem:[#allocation72_spill] sm:$0xff] %v8097_v26  ;;  %v348_v26 = vld [vmem:[#allocation5 + $0x4c0] sm:$0xff]  ;;  %v8117_v14 = vsub.f32 %v344_v38, %v3186_v0  ;;  %5987 = vmatpush1.bf16.msra.mxu1 %v8109_v11  ;;  %v3192_v29 = vand.u32 4294901760, %v349_v22  ;;  %6755 = vmatpush1.bf16.msra.mxu0 %v8115_v47  ;;  %v3196_v38 = vand.u32 4294901760, %v351_v24  ;;  %v502_v37 = vand.u32 4294901760, %v220_v31 }
  0x7d   : > { %12654 = vst [vmem:[#allocation73_spill] sm:$0xff] %v8099_v36  ;;  %12655 = vst [vmem:[#allocation74_spill] sm:$0xff] %v8103_v1  ;;  %v222_v36 = vld [vmem:[#allocation5 + $0xd0] sm:$0xff]  ;;  %v8119_v1 = vsub.f32 %v346_v15, %v3190_v42  ;;  %v3194_v49 = vand.u32 4294901760, %v348_v26  ;;  %5989 = vmatprep.subr.bf16.mxu1 %v8123_v53  ;;  %v3198_v42 = vand.u32 4294901760, %v350_v9 }
  0x7e   : > { %12656 = vst [vmem:[#allocation75_spill] sm:$0xff] %v8105_v32  ;;  %12657 = vst [vmem:[#allocation76_spill] sm:$0xff] %v8107_v60  ;;  %v506_v15 = vand.u32 4294901760, %v222_v36  ;;  %v8131_v0 = vsub.f32 %v349_v22, %v3192_v29  ;;  %v508_v32 = vand.u32 4294901760, %v225_v28  ;;  %v8133_v20 = vpack.c.bf16 %v3196_v38, %v3192_v29  ;;  %v229_v29 = vld [vmem:[#allocation5 + $0x108] sm:$0xff]  ;;  %v231_v60 = vld [vmem:[#allocation5 + $0x118] sm:$0xff] }
  0x7f   : > { %12658 = vst [vmem:[#allocation77_spill] sm:$0xff] %v8109_v11  ;;  %12659 = vst [vmem:[#allocation78_spill] sm:$0xff] %v8111_v2  ;;  %v512_v11 = vand.u32 4294901760, %v227_v54  ;;  %v8135_v59 = vsub.f32 %v351_v24, %v3196_v38  ;;  %v8139_v21 = vsub.f32 %v220_v31, %v502_v37  ;;  %v8143_v22 = vpack.c.bf16 %v3198_v42, %v3194_v49  ;;  %v354_v2 = vld [vmem:[#allocation5 + $0x4f0] sm:$0xff] }
  0x80   : > { %12660 = vst [vmem:[#allocation79_spill] sm:$0xff] %v8113_v45  ;;  %12661 = vst [vmem:[#allocation80_spill] sm:$0xff] %v8115_v47  ;;  %v8137_v7 = vpack.c.bf16 %v506_v15, %v502_v37  ;;  %v224_v47 = vld [vmem:[#allocation5 + $0xe0] sm:$0xff]  ;;  %v8141_v45 = vsub.f32 %v222_v36, %v506_v15  ;;  %6757 = vmatprep.subr.bf16.mxu0 %v8133_v20  ;;  %v8153_v31 = vsub.f32 %v225_v28, %v508_v32 }
  0x81   : > { %12662 = vst [vmem:[#allocation81_spill] sm:$0xff] %v8117_v14  ;;  %12663 = vst [vmem:[#allocation82_spill] sm:$0xff] %v8119_v1  ;;  %v353_v1 = vld [vmem:[#allocation5 + $0x4e8] sm:$0xff]  ;;  %v355_v14 = vld [vmem:[#allocation5 + $0x4f8] sm:$0xff]  ;;  %v8151_v24 = vpack.c.bf16 %v512_v11, %v508_v32  ;;  %v8155_v38 = vsub.f32 %v227_v54, %v512_v11  ;;  %6759 = vmatpush1.bf16.msra.mxu0 %v8143_v22  ;;  %v510_v37 = vand.u32 4294901760, %v224_v47 }
  0x82   : > { %12664 = vst [vmem:[#allocation83_spill] sm:$0xff] %v8123_v53  ;;  %12665 = vst [vmem:[#allocation84_spill] sm:$0xff] %v8125_v55  ;;  %v352_v55 = vld [vmem:[#allocation5 + $0x4e0] sm:$0xff]  ;;  %v8145_v53 = vsub.f32 %v348_v26, %v3194_v49  ;;  %5991 = vmatpush1.bf16.msra.mxu1 %v8137_v7  ;;  %v3200_v36 = vand.u32 4294901760, %v353_v1  ;;  %v3204_v26 = vand.u32 4294901760, %v355_v14 }
  0x83   : > { %12666 = vst [vmem:[#allocation85_spill] sm:$0xff] %v8127_v8  ;;  %12667 = vst [vmem:[#allocation86_spill] sm:$0xff] %v8131_v0  ;;  %v226_v8 = vld [vmem:[#allocation5 + $0xf0] sm:$0xff]  ;;  %v8147_v0 = vsub.f32 %v350_v9, %v3198_v42  ;;  %v3202_v15 = vand.u32 4294901760, %v352_v55  ;;  %5993 = vmatprep.subr.bf16.mxu1 %v8151_v24  ;;  %v3206_v42 = vand.u32 4294901760, %v354_v2  ;;  %v8167_v28 = vsub.f32 %v224_v47, %v510_v37 }
  0x84   : > { %12668 = vst [vmem:[#allocation87_spill] sm:$0xff] %v8133_v20  ;;  %12669 = vst [vmem:[#allocation88_spill] sm:$0xff] %v8135_v59  ;;  %v514_v9 = vand.u32 4294901760, %v226_v8  ;;  %v8159_v49 = vsub.f32 %v353_v1, %v3200_v36  ;;  %v516_v20 = vand.u32 4294901760, %v229_v29  ;;  %v8161_v32 = vpack.c.bf16 %v3204_v26, %v3200_v36  ;;  %v233_v36 = vld [vmem:[#allocation5 + $0x128] sm:$0xff]  ;;  %v235_v59 = vld [vmem:[#allocation5 + $0x138] sm:$0xff] }
  0x85   : > { %12670 = vst [vmem:[#allocation89_spill] sm:$0xff] %v8137_v7  ;;  %12671 = vst [vmem:[#allocation90_spill] sm:$0xff] %v8139_v21  ;;  %v520_v7 = vand.u32 4294901760, %v231_v60  ;;  %v8163_v54 = vsub.f32 %v355_v14, %v3204_v26  ;;  %v8171_v1 = vpack.c.bf16 %v3206_v42, %v3202_v15  ;;  %v358_v21 = vld [vmem:[#allocation5 + $0x510] sm:$0xff] }
  0x86   : > { %12672 = vst [vmem:[#allocation91_spill] sm:$0xff] %v8141_v45  ;;  %12673 = vst [vmem:[#allocation92_spill] sm:$0xff] %v8143_v22  ;;  %v8165_v11 = vpack.c.bf16 %v514_v9, %v510_v37  ;;  %v228_v22 = vld [vmem:[#allocation5 + $0x100] sm:$0xff]  ;;  %v8169_v45 = vsub.f32 %v226_v8, %v514_v9  ;;  %6761 = vmatprep.subr.bf16.mxu0 %v8161_v32  ;;  %v8181_v47 = vsub.f32 %v229_v29, %v516_v20 }
  0x87   : > { %12674 = vst [vmem:[#allocation93_spill] sm:$0xff] %v8145_v53  ;;  %12675 = vst [vmem:[#allocation94_spill] sm:$0xff] %v8147_v0  ;;  %v357_v0 = vld [vmem:[#allocation5 + $0x508] sm:$0xff]  ;;  %v359_v53 = vld [vmem:[#allocation5 + $0x518] sm:$0xff]  ;;  %v8179_v14 = vpack.c.bf16 %v520_v7, %v516_v20  ;;  %v8183_v26 = vsub.f32 %v231_v60, %v520_v7  ;;  %6763 = vmatpush1.bf16.msra.mxu0 %v8171_v1  ;;  %v518_v37 = vand.u32 4294901760, %v228_v22 }
  0x88   : > { %12676 = vst [vmem:[#allocation95_spill] sm:$0xff] %v8151_v24  ;;  %12677 = vst [vmem:[#allocation96_spill] sm:$0xff] %v8153_v31  ;;  %v356_v31 = vld [vmem:[#allocation5 + $0x500] sm:$0xff]  ;;  %v8173_v24 = vsub.f32 %v352_v55, %v3202_v15  ;;  %5995 = vmatpush1.bf16.msra.mxu1 %v8165_v11  ;;  %v3208_v8 = vand.u32 4294901760, %v357_v0  ;;  %v3212_v55 = vand.u32 4294901760, %v359_v53 }
  0x89   : > { %12678 = vst [vmem:[#allocation97_spill] sm:$0xff] %v8155_v38  ;;  %12679 = vst [vmem:[#allocation98_spill] sm:$0xff] %v8159_v49  ;;  %v230_v38 = vld [vmem:[#allocation5 + $0x110] sm:$0xff]  ;;  %v8175_v49 = vsub.f32 %v354_v2, %v3206_v42  ;;  %v3210_v9 = vand.u32 4294901760, %v356_v31  ;;  %5997 = vmatprep.subr.bf16.mxu1 %v8179_v14  ;;  %v3214_v42 = vand.u32 4294901760, %v358_v21  ;;  %v8195_v29 = vsub.f32 %v228_v22, %v518_v37 }
  0x8a   : > { %12680 = vst [vmem:[#allocation99_spill] sm:$0xff] %v8161_v32  ;;  %12681 = vst [vmem:[#allocation100_spill] sm:$0xff] %v8163_v54  ;;  %v522_v2 = vand.u32 4294901760, %v230_v38  ;;  %v8187_v15 = vsub.f32 %v357_v0, %v3208_v8  ;;  %v524_v32 = vand.u32 4294901760, %v233_v36  ;;  %v8189_v20 = vpack.c.bf16 %v3212_v55, %v3208_v8  ;;  %v237_v8 = vld [vmem:[#allocation5 + $0x148] sm:$0xff]  ;;  %v239_v54 = vld [vmem:[#allocation5 + $0x158] sm:$0xff] }
  0x8b   : > { %12682 = vst [vmem:[#allocation101_spill] sm:$0xff] %v8165_v11  ;;  %12683 = vst [vmem:[#allocation102_spill] sm:$0xff] %v8167_v28  ;;  %v528_v11 = vand.u32 4294901760, %v235_v59  ;;  %v8191_v60 = vsub.f32 %v359_v53, %v3212_v55  ;;  %v8199_v0 = vpack.c.bf16 %v3214_v42, %v3210_v9  ;;  %v362_v28 = vld [vmem:[#allocation5 + $0x530] sm:$0xff] }
  0x8c   : > { %12684 = vst [vmem:[#allocation103_spill] sm:$0xff] %v8169_v45  ;;  %12685 = vst [vmem:[#allocation104_spill] sm:$0xff] %v8171_v1  ;;  %v8193_v7 = vpack.c.bf16 %v522_v2, %v518_v37  ;;  %v232_v1 = vld [vmem:[#allocation5 + $0x120] sm:$0xff]  ;;  %v8197_v45 = vsub.f32 %v230_v38, %v522_v2  ;;  %6765 = vmatprep.subr.bf16.mxu0 %v8189_v20  ;;  %v8209_v22 = vsub.f32 %v233_v36, %v524_v32 }
  0x8d   : > { %12686 = vst [vmem:[#allocation105_spill] sm:$0xff] %v8173_v24  ;;  %12687 = vst [vmem:[#allocation106_spill] sm:$0xff] %v8175_v49  ;;  %v361_v49 = vld [vmem:[#allocation5 + $0x528] sm:$0xff]  ;;  %v363_v24 = vld [vmem:[#allocation5 + $0x538] sm:$0xff]  ;;  %v8207_v53 = vpack.c.bf16 %v528_v11, %v524_v32  ;;  %v8211_v55 = vsub.f32 %v235_v59, %v528_v11  ;;  %6767 = vmatpush1.bf16.msra.mxu0 %v8199_v0  ;;  %v526_v37 = vand.u32 4294901760, %v232_v1 }
  0x8e   : > { %12688 = vst [vmem:[#allocation107_spill] sm:$0xff] %v8179_v14  ;;  %12689 = vst [vmem:[#allocation108_spill] sm:$0xff] %v8181_v47  ;;  %v360_v47 = vld [vmem:[#allocation5 + $0x520] sm:$0xff]  ;;  %v8201_v14 = vsub.f32 %v356_v31, %v3210_v9  ;;  %5999 = vmatpush1.bf16.msra.mxu1 %v8193_v7  ;;  %v3216_v38 = vand.u32 4294901760, %v361_v49  ;;  %v3220_v31 = vand.u32 4294901760, %v363_v24 }
  0x8f   : > { %12690 = vst [vmem:[#allocation109_spill] sm:$0xff] %v8183_v26  ;;  %12691 = vst [vmem:[#allocation110_spill] sm:$0xff] %v8187_v15  ;;  %v234_v26 = vld [vmem:[#allocation5 + $0x130] sm:$0xff]  ;;  %v8203_v15 = vsub.f32 %v358_v21, %v3214_v42  ;;  %v3218_v2 = vand.u32 4294901760, %v360_v47  ;;  %6001 = vmatprep.subr.bf16.mxu1 %v8207_v53  ;;  %v3222_v42 = vand.u32 4294901760, %v362_v28  ;;  %v8223_v36 = vsub.f32 %v232_v1, %v526_v37 }
  0x90   : > { %12692 = vst [vmem:[#allocation111_spill] sm:$0xff] %v8189_v20  ;;  %12693 = vst [vmem:[#allocation112_spill] sm:$0xff] %v8191_v60  ;;  %v530_v21 = vand.u32 4294901760, %v234_v26  ;;  %v8215_v9 = vsub.f32 %v361_v49, %v3216_v38  ;;  %v532_v20 = vand.u32 4294901760, %v237_v8  ;;  %v8217_v32 = vpack.c.bf16 %v3220_v31, %v3216_v38  ;;  %v241_v38 = vld [vmem:[#allocation5 + $0x168] sm:$0xff]  ;;  %v243_v60 = vld [vmem:[#allocation5 + $0x178] sm:$0xff] }
  0x91   : > { %12694 = vst [vmem:[#allocation113_spill] sm:$0xff] %v8193_v7  ;;  %12695 = vst [vmem:[#allocation114_spill] sm:$0xff] %v8195_v29  ;;  %v536_v7 = vand.u32 4294901760, %v239_v54  ;;  %v8219_v59 = vsub.f32 %v363_v24, %v3220_v31  ;;  %v8227_v49 = vpack.c.bf16 %v3222_v42, %v3218_v2  ;;  %v366_v29 = vld [vmem:[#allocation5 + $0x550] sm:$0xff] }
  0x92   : > { %12696 = vst [vmem:[#allocation115_spill] sm:$0xff] %v8197_v45  ;;  %12697 = vst [vmem:[#allocation116_spill] sm:$0xff] %v8199_v0  ;;  %v8221_v11 = vpack.c.bf16 %v530_v21, %v526_v37  ;;  %v236_v0 = vld [vmem:[#allocation5 + $0x140] sm:$0xff]  ;;  %v8225_v45 = vsub.f32 %v234_v26, %v530_v21  ;;  %6769 = vmatprep.subr.bf16.mxu0 %v8217_v32  ;;  %v8237_v1 = vsub.f32 %v237_v8, %v532_v20 }
  0x93   : > { %12698 = vst [vmem:[#allocation117_spill] sm:$0xff] %v8201_v14  ;;  %12699 = vst [vmem:[#allocation118_spill] sm:$0xff] %v8203_v15  ;;  %v365_v15 = vld [vmem:[#allocation5 + $0x548] sm:$0xff]  ;;  %v367_v14 = vld [vmem:[#allocation5 + $0x558] sm:$0xff]  ;;  %v8235_v24 = vpack.c.bf16 %v536_v7, %v532_v20  ;;  %v8239_v31 = vsub.f32 %v239_v54, %v536_v7  ;;  %6771 = vmatpush1.bf16.msra.mxu0 %v8227_v49  ;;  %v534_v37 = vand.u32 4294901760, %v236_v0 }
  0x94   : > { %12700 = vst [vmem:[#allocation119_spill] sm:$0xff] %v8207_v53  ;;  %12701 = vst [vmem:[#allocation120_spill] sm:$0xff] %v8209_v22  ;;  %v364_v22 = vld [vmem:[#allocation5 + $0x540] sm:$0xff]  ;;  %v8229_v53 = vsub.f32 %v360_v47, %v3218_v2  ;;  %6003 = vmatpush1.bf16.msra.mxu1 %v8221_v11  ;;  %v3224_v26 = vand.u32 4294901760, %v365_v15  ;;  %v3228_v47 = vand.u32 4294901760, %v367_v14 }
  0x95   : > { %12702 = vst [vmem:[#allocation121_spill] sm:$0xff] %v8211_v55  ;;  %12703 = vst [vmem:[#allocation122_spill] sm:$0xff] %v8215_v9  ;;  %v238_v55 = vld [vmem:[#allocation5 + $0x150] sm:$0xff]  ;;  %v8231_v9 = vsub.f32 %v362_v28, %v3222_v42  ;;  %v3226_v21 = vand.u32 4294901760, %v364_v22  ;;  %6005 = vmatprep.subr.bf16.mxu1 %v8235_v24  ;;  %v3230_v42 = vand.u32 4294901760, %v366_v29  ;;  %v8251_v8 = vsub.f32 %v236_v0, %v534_v37 }
  0x96   : > { %12704 = vst [vmem:[#allocation123_spill] sm:$0xff] %v8217_v32  ;;  %12705 = vst [vmem:[#allocation124_spill] sm:$0xff] %v8219_v59  ;;  %v538_v28 = vand.u32 4294901760, %v238_v55  ;;  %v8243_v2 = vsub.f32 %v365_v15, %v3224_v26  ;;  %v540_v32 = vand.u32 4294901760, %v241_v38  ;;  %v8245_v20 = vpack.c.bf16 %v3228_v47, %v3224_v26  ;;  %v245_v26 = vld [vmem:[#allocation5 + $0x188] sm:$0xff]  ;;  %v247_v59 = vld [vmem:[#allocation5 + $0x198] sm:$0xff] }
  0x97   : > { %12706 = vst [vmem:[#allocation125_spill] sm:$0xff] %v8221_v11  ;;  %12707 = vst [vmem:[#allocation126_spill] sm:$0xff] %v8223_v36  ;;  %v544_v11 = vand.u32 4294901760, %v243_v60  ;;  %v8247_v54 = vsub.f32 %v367_v14, %v3228_v47  ;;  %v8255_v15 = vpack.c.bf16 %v3230_v42, %v3226_v21  ;;  %v370_v36 = vld [vmem:[#allocation5 + $0x570] sm:$0xff] }
  0x98   : > { %12708 = vst [vmem:[#allocation127_spill] sm:$0xff] %v8225_v45  ;;  %12709 = vst [vmem:[#allocation128_spill] sm:$0xff] %v8227_v49  ;;  %v8249_v7 = vpack.c.bf16 %v538_v28, %v534_v37  ;;  %v240_v49 = vld [vmem:[#allocation5 + $0x160] sm:$0xff]  ;;  %v8253_v45 = vsub.f32 %v238_v55, %v538_v28  ;;  %6773 = vmatprep.subr.bf16.mxu0 %v8245_v20  ;;  %v8265_v0 = vsub.f32 %v241_v38, %v540_v32 }
  0x99   : > { %12710 = vst [vmem:[#allocation129_spill] sm:$0xff] %v8229_v53  ;;  %12711 = vst [vmem:[#allocation130_spill] sm:$0xff] %v8231_v9  ;;  %v369_v9 = vld [vmem:[#allocation5 + $0x568] sm:$0xff]  ;;  %v371_v53 = vld [vmem:[#allocation5 + $0x578] sm:$0xff]  ;;  %v8263_v14 = vpack.c.bf16 %v544_v11, %v540_v32  ;;  %v8267_v47 = vsub.f32 %v243_v60, %v544_v11  ;;  %6775 = vmatpush1.bf16.msra.mxu0 %v8255_v15  ;;  %v542_v37 = vand.u32 4294901760, %v240_v49 }
  0x9a   : > { %12712 = vst [vmem:[#allocation131_spill] sm:$0xff] %v8235_v24  ;;  %12713 = vst [vmem:[#allocation132_spill] sm:$0xff] %v8237_v1  ;;  %v368_v1 = vld [vmem:[#allocation5 + $0x560] sm:$0xff]  ;;  %v8257_v24 = vsub.f32 %v364_v22, %v3226_v21  ;;  %6007 = vmatpush1.bf16.msra.mxu1 %v8249_v7  ;;  %v3232_v55 = vand.u32 4294901760, %v369_v9  ;;  %v3236_v22 = vand.u32 4294901760, %v371_v53 }
  0x9b   : > { %12714 = vst [vmem:[#allocation133_spill] sm:$0xff] %v8239_v31  ;;  %12715 = vst [vmem:[#allocation134_spill] sm:$0xff] %v8243_v2  ;;  %v242_v31 = vld [vmem:[#allocation5 + $0x170] sm:$0xff]  ;;  %v8259_v2 = vsub.f32 %v366_v29, %v3230_v42  ;;  %v3234_v28 = vand.u32 4294901760, %v368_v1  ;;  %6009 = vmatprep.subr.bf16.mxu1 %v8263_v14  ;;  %v3238_v42 = vand.u32 4294901760, %v370_v36  ;;  %v8279_v38 = vsub.f32 %v240_v49, %v542_v37 }
  0x9c   : > { %12716 = vst [vmem:[#allocation135_spill] sm:$0xff] %v8245_v20  ;;  %12717 = vst [vmem:[#allocation136_spill] sm:$0xff] %v8247_v54  ;;  %v546_v29 = vand.u32 4294901760, %v242_v31  ;;  %v8271_v21 = vsub.f32 %v369_v9, %v3232_v55  ;;  %v548_v20 = vand.u32 4294901760, %v245_v26  ;;  %v8273_v32 = vpack.c.bf16 %v3236_v22, %v3232_v55  ;;  %v249_v55 = vld [vmem:[#allocation5 + $0x1a8] sm:$0xff]  ;;  %v251_v54 = vld [vmem:[#allocation5 + $0x1b8] sm:$0xff] }
  0x9d   : > { %12718 = vst [vmem:[#allocation137_spill] sm:$0xff] %v8249_v7  ;;  %12719 = vst [vmem:[#allocation138_spill] sm:$0xff] %v8251_v8  ;;  %v552_v7 = vand.u32 4294901760, %v247_v59  ;;  %v8275_v60 = vsub.f32 %v371_v53, %v3236_v22  ;;  %v8283_v9 = vpack.c.bf16 %v3238_v42, %v3234_v28  ;;  %v374_v8 = vld [vmem:[#allocation5 + $0x590] sm:$0xff] }
  0x9e   : > { %12720 = vst [vmem:[#allocation139_spill] sm:$0xff] %v8253_v45  ;;  %12721 = vst [vmem:[#allocation140_spill] sm:$0xff] %v8255_v15  ;;  %v8277_v11 = vpack.c.bf16 %v546_v29, %v542_v37  ;;  %v244_v15 = vld [vmem:[#allocation5 + $0x180] sm:$0xff]  ;;  %v8281_v45 = vsub.f32 %v242_v31, %v546_v29  ;;  %6777 = vmatprep.subr.bf16.mxu0 %v8273_v32  ;;  %v8293_v49 = vsub.f32 %v245_v26, %v548_v20 }
  0x9f   : > { %12722 = vst [vmem:[#allocation141_spill] sm:$0xff] %v8257_v24  ;;  %12723 = vst [vmem:[#allocation142_spill] sm:$0xff] %v8259_v2  ;;  %v373_v2 = vld [vmem:[#allocation5 + $0x588] sm:$0xff]  ;;  %v375_v24 = vld [vmem:[#allocation5 + $0x598] sm:$0xff]  ;;  %v8291_v53 = vpack.c.bf16 %v552_v7, %v548_v20  ;;  %v8295_v22 = vsub.f32 %v247_v59, %v552_v7  ;;  %6779 = vmatpush1.bf16.msra.mxu0 %v8283_v9  ;;  %v550_v37 = vand.u32 4294901760, %v244_v15 }
  0xa0   : > { %12724 = vst [vmem:[#allocation143_spill] sm:$0xff] %v8263_v14  ;;  %12725 = vst [vmem:[#allocation144_spill] sm:$0xff] %v8265_v0  ;;  %v372_v0 = vld [vmem:[#allocation5 + $0x580] sm:$0xff]  ;;  %v8285_v14 = vsub.f32 %v368_v1, %v3234_v28  ;;  %6011 = vmatpush1.bf16.msra.mxu1 %v8277_v11  ;;  %v3240_v31 = vand.u32 4294901760, %v373_v2  ;;  %v3244_v1 = vand.u32 4294901760, %v375_v24 }
  0xa1   : > { %12726 = vst [vmem:[#allocation145_spill] sm:$0xff] %v8267_v47  ;;  %12727 = vst [vmem:[#allocation146_spill] sm:$0xff] %v8271_v21  ;;  %v246_v47 = vld [vmem:[#allocation5 + $0x190] sm:$0xff]  ;;  %v8287_v21 = vsub.f32 %v370_v36, %v3238_v42  ;;  %v3242_v29 = vand.u32 4294901760, %v372_v0  ;;  %6013 = vmatprep.subr.bf16.mxu1 %v8291_v53  ;;  %v3246_v42 = vand.u32 4294901760, %v374_v8  ;;  %v8307_v26 = vsub.f32 %v244_v15, %v550_v37 }
  0xa2   : > { %12728 = vst [vmem:[#allocation147_spill] sm:$0xff] %v8273_v32  ;;  %12729 = vst [vmem:[#allocation148_spill] sm:$0xff] %v8275_v60  ;;  %v554_v36 = vand.u32 4294901760, %v246_v47  ;;  %v8299_v28 = vsub.f32 %v373_v2, %v3240_v31  ;;  %v556_v32 = vand.u32 4294901760, %v249_v55  ;;  %v8301_v20 = vpack.c.bf16 %v3244_v1, %v3240_v31  ;;  %v253_v31 = vld [vmem:[#allocation5 + $0x1c8] sm:$0xff]  ;;  %v255_v60 = vld [vmem:[#allocation5 + $0x1d8] sm:$0xff] }
  0xa3   : > { %12730 = vst [vmem:[#allocation149_spill] sm:$0xff] %v8277_v11  ;;  %12731 = vst [vmem:[#allocation150_spill] sm:$0xff] %v8279_v38  ;;  %v560_v11 = vand.u32 4294901760, %v251_v54  ;;  %v8303_v59 = vsub.f32 %v375_v24, %v3244_v1  ;;  %v8311_v2 = vpack.c.bf16 %v3246_v42, %v3242_v29  ;;  %v378_v38 = vld [vmem:[#allocation5 + $0x5b0] sm:$0xff] }
  0xa4   : > { %12732 = vst [vmem:[#allocation151_spill] sm:$0xff] %v8281_v45  ;;  %12733 = vst [vmem:[#allocation152_spill] sm:$0xff] %v8283_v9  ;;  %v8305_v7 = vpack.c.bf16 %v554_v36, %v550_v37  ;;  %v248_v9 = vld [vmem:[#allocation5 + $0x1a0] sm:$0xff]  ;;  %v8309_v45 = vsub.f32 %v246_v47, %v554_v36  ;;  %6781 = vmatprep.subr.bf16.mxu0 %v8301_v20  ;;  %v8321_v15 = vsub.f32 %v249_v55, %v556_v32 }
  0xa5   : > { %12734 = vst [vmem:[#allocation153_spill] sm:$0xff] %v8285_v14  ;;  %12735 = vst [vmem:[#allocation154_spill] sm:$0xff] %v8287_v21  ;;  %v377_v21 = vld [vmem:[#allocation5 + $0x5a8] sm:$0xff]  ;;  %v379_v14 = vld [vmem:[#allocation5 + $0x5b8] sm:$0xff]  ;;  %v8319_v24 = vpack.c.bf16 %v560_v11, %v556_v32  ;;  %v8323_v1 = vsub.f32 %v251_v54, %v560_v11  ;;  %6783 = vmatpush1.bf16.msra.mxu0 %v8311_v2  ;;  %v558_v37 = vand.u32 4294901760, %v248_v9 }
  0xa6   : > { %12736 = vst [vmem:[#allocation155_spill] sm:$0xff] %v8291_v53  ;;  %12737 = vst [vmem:[#allocation156_spill] sm:$0xff] %v8293_v49  ;;  %v376_v49 = vld [vmem:[#allocation5 + $0x5a0] sm:$0xff]  ;;  %v8313_v53 = vsub.f32 %v372_v0, %v3242_v29  ;;  %6015 = vmatpush1.bf16.msra.mxu1 %v8305_v7  ;;  %v3248_v47 = vand.u32 4294901760, %v377_v21  ;;  %v3252_v0 = vand.u32 4294901760, %v379_v14 }
  0xa7   : > { %12738 = vst [vmem:[#allocation157_spill] sm:$0xff] %v8295_v22  ;;  %12739 = vst [vmem:[#allocation158_spill] sm:$0xff] %v8299_v28  ;;  %v250_v22 = vld [vmem:[#allocation5 + $0x1b0] sm:$0xff]  ;;  %v8315_v28 = vsub.f32 %v374_v8, %v3246_v42  ;;  %v3250_v36 = vand.u32 4294901760, %v376_v49  ;;  %6017 = vmatprep.subr.bf16.mxu1 %v8319_v24  ;;  %v3254_v42 = vand.u32 4294901760, %v378_v38  ;;  %v8335_v55 = vsub.f32 %v248_v9, %v558_v37 }
  0xa8   : > { %12740 = vst [vmem:[#allocation159_spill] sm:$0xff] %v8301_v20  ;;  %12741 = vst [vmem:[#allocation160_spill] sm:$0xff] %v8303_v59  ;;  %v562_v8 = vand.u32 4294901760, %v250_v22  ;;  %v8327_v29 = vsub.f32 %v377_v21, %v3248_v47  ;;  %v564_v20 = vand.u32 4294901760, %v253_v31  ;;  %v8329_v32 = vpack.c.bf16 %v3252_v0, %v3248_v47  ;;  %v257_v47 = vld [vmem:[#allocation5 + $0x1e8] sm:$0xff]  ;;  %v259_v59 = vld [vmem:[#allocation5 + $0x1f8] sm:$0xff] }
  0xa9   : > { %12742 = vst [vmem:[#allocation161_spill] sm:$0xff] %v8305_v7  ;;  %12743 = vst [vmem:[#allocation162_spill] sm:$0xff] %v8307_v26  ;;  %v568_v7 = vand.u32 4294901760, %v255_v60  ;;  %v8331_v54 = vsub.f32 %v379_v14, %v3252_v0  ;;  %v8339_v21 = vpack.c.bf16 %v3254_v42, %v3250_v36  ;;  %v382_v26 = vld [vmem:[#allocation5 + $0x5d0] sm:$0xff] }
  0xaa   : > { %12744 = vst [vmem:[#allocation163_spill] sm:$0xff] %v8309_v45  ;;  %12745 = vst [vmem:[#allocation164_spill] sm:$0xff] %v8311_v2  ;;  %v8333_v11 = vpack.c.bf16 %v562_v8, %v558_v37  ;;  %v252_v2 = vld [vmem:[#allocation5 + $0x1c0] sm:$0xff]  ;;  %v8337_v45 = vsub.f32 %v250_v22, %v562_v8  ;;  %6785 = vmatprep.subr.bf16.mxu0 %v8329_v32  ;;  %v8349_v9 = vsub.f32 %v253_v31, %v564_v20 }
  0xab   : > { %12746 = vst [vmem:[#allocation165_spill] sm:$0xff] %v8313_v53  ;;  %12747 = vst [vmem:[#allocation166_spill] sm:$0xff] %v8315_v28  ;;  %v381_v28 = vld [vmem:[#allocation5 + $0x5c8] sm:$0xff]  ;;  %v383_v53 = vld [vmem:[#allocation5 + $0x5d8] sm:$0xff]  ;;  %v8347_v14 = vpack.c.bf16 %v568_v7, %v564_v20  ;;  %v8351_v0 = vsub.f32 %v255_v60, %v568_v7  ;;  %6787 = vmatpush1.bf16.msra.mxu0 %v8339_v21  ;;  %v566_v37 = vand.u32 4294901760, %v252_v2 }
  0xac   : > { %12748 = vst [vmem:[#allocation167_spill] sm:$0xff] %v8319_v24  ;;  %12749 = vst [vmem:[#allocation168_spill] sm:$0xff] %v8321_v15  ;;  %v380_v15 = vld [vmem:[#allocation5 + $0x5c0] sm:$0xff]  ;;  %v8341_v24 = vsub.f32 %v376_v49, %v3250_v36  ;;  %6019 = vmatpush1.bf16.msra.mxu1 %v8333_v11  ;;  %v3256_v22 = vand.u32 4294901760, %v381_v28  ;;  %v3260_v49 = vand.u32 4294901760, %v383_v53  ;;  %v387_v20 = vld [vmem:[#allocation5 + $0x5f8] sm:$0xff] }
  0xad   : > { %12750 = vst [vmem:[#allocation169_spill] sm:$0xff] %v8323_v1  ;;  %12751 = vst [vmem:[#allocation170_spill] sm:$0xff] %v8327_v29  ;;  %v254_v1 = vld [vmem:[#allocation5 + $0x1d0] sm:$0xff]  ;;  %v8343_v29 = vsub.f32 %v378_v38, %v3254_v42  ;;  %v3258_v8 = vand.u32 4294901760, %v380_v15  ;;  %6021 = vmatprep.subr.bf16.mxu1 %v8347_v14  ;;  %v3262_v42 = vand.u32 4294901760, %v382_v26 }
  0xae   : > { %12752 = vst [vmem:[#allocation171_spill] sm:$0xff] %v8329_v32  ;;  %12753 = vst [vmem:[#allocation172_spill] sm:$0xff] %v8331_v54  ;;  %v570_v38 = vand.u32 4294901760, %v254_v1  ;;  %v8355_v36 = vsub.f32 %v381_v28, %v3256_v22  ;;  %v572_v32 = vand.u32 4294901760, %v257_v47  ;;  %v8357_v31 = vpack.c.bf16 %v3260_v49, %v3256_v22  ;;  %v181_v22 = vld [vmem:[%s7946_s3 + $0x8] sm:$0xff] }
  0xaf   : > { %12754 = vst [vmem:[#allocation173_spill] sm:$0xff] %v8333_v11  ;;  %12755 = vst [vmem:[#allocation174_spill] sm:$0xff] %v8335_v55  ;;  %v576_v11 = vand.u32 4294901760, %v259_v59  ;;  %v8359_v60 = vsub.f32 %v383_v53, %v3260_v49  ;;  %v8367_v28 = vpack.c.bf16 %v3262_v42, %v3258_v8  ;;  %v386_v55 = vld [vmem:[#allocation5 + $0x5f0] sm:$0xff] }
  0xb0   : > { %12756 = vst [vmem:[#allocation175_spill] sm:$0xff] %v8337_v45  ;;  %12757 = vst [vmem:[#allocation176_spill] sm:$0xff] %v8339_v21  ;;  %v8361_v7 = vpack.c.bf16 %v570_v38, %v566_v37  ;;  %v8363_v21 = vsub.f32 %v252_v2, %v566_v37  ;;  %v8371_v45 = vsub.f32 %v382_v26, %v3262_v42  ;;  %6789 = vmatprep.subr.bf16.mxu0 %v8357_v31 }
  0xb1   : > { %12758 = vst [vmem:[#allocation177_spill] sm:$0xff] %v8341_v24  ;;  %12759 = vst [vmem:[#allocation178_spill] sm:$0xff] %v8343_v29  ;;  %v385_v29 = vld [vmem:[#allocation5 + $0x5e8] sm:$0xff]  ;;  %v384_v24 = vld [vmem:[#allocation5 + $0x5e0] sm:$0xff]  ;;  %v8376_v53 = vpack.c.bf16 %v576_v11, %v572_v32  ;;  %v8378_v2 = vsub.f32 %v257_v47, %v572_v32  ;;  %v8380_v49 = vsub.f32 %v259_v59, %v576_v11  ;;  %6791 = vmatpush1.bf16.msra.mxu0 %v8367_v28 }
  0xb2   : > { %12760 = vst [vmem:[#allocation179_spill] sm:$0xff] %v8347_v14  ;;  %12761 = vst [vmem:[#allocation180_spill] sm:$0xff] %v8349_v9  ;;  %v258_v9 = vld [vmem:[#allocation5 + $0x1f0] sm:$0xff]  ;;  %v8365_v14 = vsub.f32 %v254_v1, %v570_v38  ;;  %6023 = vmatpush1.bf16.msra.mxu1 %v8361_v7  ;;  %v3264_v1 = vand.u32 4294901760, %v385_v29  ;;  %v3266_v38 = vand.u32 4294901760, %v384_v24  ;;  %v3270_v42 = vand.u32 4294901760, %v386_v55 }
  0xb3   : > { %12762 = vst [vmem:[#allocation181_spill] sm:$0xff] %v8351_v0  ;;  %12763 = vst [vmem:[#allocation182_spill] sm:$0xff] %v8355_v36  ;;  %v256_v0 = vld [vmem:[#allocation5 + $0x1e0] sm:$0xff]  ;;  %v8369_v36 = vsub.f32 %v380_v15, %v3258_v8  ;;  %v3268_v15 = vand.u32 4294901760, %v387_v20  ;;  %v578_v37 = vand.u32 4294901760, %v258_v9  ;;  %6025 = vmatprep.subr.bf16.mxu1 %v8376_v53  ;;  %v11880_v32 = vand.u32 4294901760, %v7958_v16 }
  0xb4   : > { %12764 = vst [vmem:[#allocation183_spill] sm:$0xff] %v8357_v31  ;;  %12765 = vst [vmem:[#allocation184_spill] sm:$0xff] %v8359_v60  ;;  %v574_v26 = vand.u32 4294901760, %v256_v0  ;;  %v8384_v8 = vsub.f32 %v385_v29, %v3264_v1  ;;  %v185_v47 = vld [vmem:[%s7946_s3 + $0x28] sm:$0xff]  ;;  %v8403_v29 = vsub.f32 %v384_v24, %v3266_v38  ;;  %v11888_v24 = vand.u32 4294901760, %v7962_v18 }
  0xb5   : > { %12766 = vst [vmem:[#allocation185_spill] sm:$0xff] %v8361_v7  ;;  %12767 = vst [vmem:[#allocation186_spill] sm:$0xff] %v8363_v21  ;;  %v8386_v7 = vand.u32 4294901760, %v181_v22  ;;  %v8390_v59 = vpack.c.bf16 %v3268_v15, %v3264_v1  ;;  %v8392_v11 = vsub.f32 %v387_v20, %v3268_v15  ;;  %v8416_v1 = vand.u32 4294901760, %v185_v47 }
  0xb6   : > { %12768 = vst [vmem:[#allocation187_spill] sm:$0xff] %v8365_v14  ;;  %12769 = vst [vmem:[#allocation188_spill] sm:$0xff] %v8367_v28  ;;  %v8394_v31 = vpack.c.bf16 %v578_v37, %v574_v26  ;;  %v8396_v28 = vsub.f32 %v256_v0, %v574_v26  ;;  %v616_v0 = vsub.f32 %v7958_v16, %v11880_v32 }
  0xb7   : > { %12770 = vst [vmem:[#allocation189_spill] sm:$0xff] %v8369_v36  ;;  %12771 = vst [vmem:[#allocation190_spill] sm:$0xff] %v8371_v45  ;;  %6793 = vmatprep.subr.bf16.mxu0 %v8390_v59  ;;  %v8410_v20 = vsub.f32 %v181_v22, %v8386_v7  ;;  %v3308_v32 = vsub.f32 %v7962_v18, %v11888_v24  ;;  %v11909_v24 = vand.u32 4294901760, %v7973_v27 }
  0xb8   : > { %12772 = vst [vmem:[#allocation191_spill] sm:$0xff] %v8376_v53  ;;  %12773 = vst [vmem:[#allocation192_spill] sm:$0xff] %v8378_v2  ;;  %v8399_v2 = vsub.f32 %v258_v9, %v578_v37  ;;  %v8401_v53 = vpack.c.bf16 %v3270_v42, %v3266_v38  ;;  %6027 = vmatpush1.bf16.msra.mxu1 %v8394_v31  ;;  %v11883_v9 = vand.u32 4294901760, %v7960_v17  ;;  %v617_v37 = vand.u32 4294901760, %v616_v0 }
  0xb9   : > { %12774 = vst [vmem:[#allocation193_spill] sm:$0xff] %v8380_v49  ;;  %12775 = vst [vmem:[#allocation194_spill] sm:$0xff] %v8384_v8  ;;  %v180_v49 = vld [vmem:[%s7946_s3] sm:$0xff]  ;;  %v8405_v8 = vsub.f32 %v386_v55, %v3270_v42  ;;  %v11895_v55 = vand.u32 4294901760, %v7966_v23  ;;  %v8429_v42 = vsub.f32 %v185_v47, %v8416_v1  ;;  %v12790_v0 = vand.u32 4294901760, %v7970_v25 }
  0xba   : > { %12776 = vst [vmem:[#allocation195_spill] sm:$0xff] %v8386_v7  ;;  %12777 = vst [vmem:[#allocation196_spill] sm:$0xff] %v8390_v59  ;;  %6795 = vmatpush1.bf16.msra.mxu0 %v8401_v53  ;;  %v8421_v15 = vand.u32 4294901760, %v180_v49  ;;  %v628_v38 = vsub.f32 %v7960_v17, %v11883_v9  ;;  %v12791_v9 = vand.u32 4294901760, %v8410_v20  ;;  %v3309_v7 = vand.u32 4294901760, %v3308_v32 }
  0xbb   : > { %12778 = vst [vmem:[#allocation197_spill] sm:$0xff] %v8392_v11  ;;  %12779 = vst [vmem:[#allocation198_spill] sm:$0xff] %v8394_v31  ;;  %v622_v26 = vsub.f32 %v7970_v25, %v12790_v0  ;;  %v11902_v59 = vand.u32 4294901760, %v8429_v42 }
  0xbc   : > { %12780 = vst [vmem:[#allocation199_spill] sm:$0xff] %v8396_v28  ;;  %12781 = vst [vmem:[#allocation200_spill] sm:$0xff] %v8399_v2  ;;  %v8438_v22 = vsub.f32 %v180_v49, %v8421_v15  ;;  %v583_v47 = vsub.f32 %v8410_v20, %v12791_v9  ;;  %v629_v31 = vand.u32 4294901760, %v628_v38  ;;  %v634_v9 = vsub.f32 %v7973_v27, %v11909_v24 }
  0xbd   : > { %12782 = vst [vmem:[#allocation201_spill] sm:$0xff] %v8401_v53  ;;  %12783 = vst [vmem:[#allocation202_spill] sm:$0xff] %v8403_v29  ;;  %v3320_v53 = vsub.f32 %v7966_v23, %v11895_v55  ;;  %v623_v49 = vand.u32 4294901760, %v622_v26  ;;  %v3275_v0 = vsub.f32 %v8429_v42, %v11902_v59 }
  0xbe   : > { %12784 = vst [vmem:[#allocation203_spill] sm:$0xff] %v8405_v8  ;;  %12785 = vst [vmem:[#allocation204_spill] sm:$0xff] %v8410_v20  ;;  %v11903_v55 = vand.u32 4294901760, %v8438_v22  ;;  %v6028_v23 = vpack.c.bf16 %v629_v31, %v617_v37  ;;  %v635_v26 = vand.u32 4294901760, %v634_v9  ;;  %v11904_v37 = vand.u32 4294901760, %v7981_v40 }
  0xbf   : > { %12786 = vst [vmem:[#allocation205_spill] sm:$0xff] %v8416_v1  ;;  %12787 = vst [vmem:[#allocation206_spill] sm:$0xff] %v8421_v15  ;;  %v184_v1 = vld [vmem:[%s7946_s3 + $0x20] sm:$0xff]  ;;  %v3321_v18 = vand.u32 4294901760, %v3320_v53  ;;  %v584_v15 = vand.u32 4294901760, %v583_v47  ;;  %v11905_v53 = vand.u32 4294901760, %v7979_v39 }
  0xc0   : > { %12788 = vst [vmem:[#allocation207_spill] sm:$0xff] %v8429_v42  ;;  %12789 = vst [vmem:[#allocation208_spill] sm:$0xff] %v8438_v22  ;;  %v589_v20 = vsub.f32 %v8438_v22, %v11903_v55  ;;  %v8459_v32 = vand.u32 4294901760, %v184_v1  ;;  %6029 = vmatprep.subr.bf16.mxu1 %v6028_v23  ;;  %v3276_v31 = vand.u32 4294901760, %v3275_v0  ;;  %v11907_v47 = vand.u32 4294901760, %v7983_v41 }
  0xc1   : > { %v6796_v38 = vpack.c.bf16 %v3321_v18, %v3309_v7  ;;  %585 = vmatprep.mubr.f32.mxu1 %v584_v15  ;;  %v3314_v7 = vsub.f32 %v7979_v39, %v11905_v53  ;;  %v11906_v55 = vand.u32 4294901760, %v7987_v46  ;;  %v6030_v15 = vpack.c.bf16 %v635_v26, %v623_v49 }
  0xc2   : > { %12792 = vst [vmem:[#allocation209_spill] sm:$0xff] %v8459_v32  ;;  %v590_v59 = vand.u32 4294901760, %v589_v20  ;;  %v8465_v18 = vsub.f32 %v184_v1, %v8459_v32  ;;  %3277 = vmatprep.mubr.f32.mxu0 %v3276_v31  ;;  %v3326_v23 = vsub.f32 %v7981_v40, %v11904_v37  ;;  %v640_v0 = vsub.f32 %v7983_v41, %v11907_v47 }
  0xc3   : > { %6797 = vmatprep.subr.bf16.mxu0 %v6796_v38  ;;  %v11908_v20 = vand.u32 4294901760, %v7991_v48  ;;  %v3315_v9 = vand.u32 4294901760, %v3314_v7  ;;  %v652_v38 = vsub.f32 %v7987_v46, %v11906_v55  ;;  %v11915_v49 = vand.u32 4294901760, %v7994_v50 }
  0xc4   : > { %12793 = vst [vmem:[#allocation210_spill] sm:$0xff] %v8465_v18  ;;  %591 = vmatmul.mubr.f32.vlgmr.msra.gmra.mrb[0].mxu1 %v590_v59  ;;  %v11914_v1 = vand.u32 4294901760, %v8465_v18  ;;  %v3327_v31 = vand.u32 4294901760, %v3326_v23  ;;  %v641_v26 = vand.u32 4294901760, %v640_v0  ;;  %v11916_v53 = vand.u32 4294901760, %v7996_v52 }
  0xc5   : > { %6031 = vmatpush1.bf16.msra.mxu1 %v6030_v15  ;;  %v3332_v37 = vsub.f32 %v7991_v48, %v11908_v20  ;;  %v653_v7 = vand.u32 4294901760, %v652_v38  ;;  %v3344_v55 = vsub.f32 %v7994_v50, %v11915_v49  ;;  %v11923_v47 = vand.u32 4294901760, %v8002_v61 }
  0xc6   : > { %v3281_v59 = vsub.f32 %v8465_v18, %v11914_v1  ;;  %v6798_v15 = vpack.c.bf16 %v3327_v31, %v3315_v9  ;;  %v646_v0 = vsub.f32 %v7996_v52, %v11916_v53  ;;  %v11917_v20 = vand.u32 4294901760, %v8004_v62 }
  0xc7   : > { %v3333_v23 = vand.u32 4294901760, %v3332_v37  ;;  %v6032_v22 = vpack.c.bf16 %v653_v7, %v641_v26  ;;  %v3345_v42 = vand.u32 4294901760, %v3344_v55  ;;  %v658_v38 = vsub.f32 %v8002_v61, %v11923_v47 }
  0xc8   : > { %v3282_v24 = vand.u32 4294901760, %v3281_v59  ;;  %v647_v1 = vand.u32 4294901760, %v646_v0  ;;  %v3338_v49 = vsub.f32 %v8004_v62, %v11917_v20  ;;  %v11918_v37 = vand.u32 4294901760, %v8008_v4 }
  0xc9   : > { %v11921_v9 = vand.u32 4294901760, %v8012_v6  ;;  %6033 = vmatprep.subr.bf16.mxu1 %v6032_v22  ;;  %v6800_v31 = vpack.c.bf16 %v3345_v42, %v3333_v23  ;;  %v659_v53 = vand.u32 4294901760, %v658_v38  ;;  %v11919_v26 = vand.u32 4294901760, %v8015_v10 }
  0xca   : > { %3283 = vmatmul.mubr.f32.vlgmr.msra.gmra.mrb[0].mxu0 %v3282_v24  ;;  %v11920_v55 = vand.u32 4294901760, %v8019_v12  ;;  %v3339_v59 = vand.u32 4294901760, %v3338_v49  ;;  %v3350_v7 = vsub.f32 %v8008_v4, %v11918_v37  ;;  %v11922_v20 = vand.u32 4294901760, %v8021_v13 }
  0xcb   : > { %6799 = vmatpush1.bf16.msra.mxu0 %v6798_v15  ;;  %v664_v0 = vsub.f32 %v8012_v6, %v11921_v9  ;;  %v6034_v24 = vpack.c.bf16 %v659_v53, %v647_v1  ;;  %v676_v22 = vsub.f32 %v8015_v10, %v11919_v26  ;;  %v11924_v49 = vand.u32 4294901760, %v8028_v33 }
  0xcc   : > { %6801 = vmatprep.subr.bf16.mxu0 %v6800_v31  ;;  %v3356_v42 = vsub.f32 %v8019_v12, %v11920_v55  ;;  %v3351_v15 = vand.u32 4294901760, %v3350_v7  ;;  %v3368_v38 = vsub.f32 %v8021_v13, %v11922_v20  ;;  %v11931_v37 = vand.u32 4294901760, %v8030_v34 }
  0xcd   : > { %v665_v23 = vand.u32 4294901760, %v664_v0  ;;  %6035 = vmatpush1.bf16.msra.mxu1 %v6034_v24  ;;  %v677_v53 = vand.u32 4294901760, %v676_v22  ;;  %v670_v31 = vsub.f32 %v8028_v33, %v11924_v49  ;;  %v11926_v26 = vand.u32 4294901760, %v8034_v43 }
  0xce   : > { %v3357_v1 = vand.u32 4294901760, %v3356_v42  ;;  %v6802_v55 = vpack.c.bf16 %v3351_v15, %v3339_v59  ;;  %v3369_v9 = vand.u32 4294901760, %v3368_v38  ;;  %v682_v7 = vsub.f32 %v8030_v34, %v11931_v37 }
  0xcf   : > { %v11925_v0 = vand.u32 4294901760, %v8036_v44  ;;  %v6036_v20 = vpack.c.bf16 %v677_v53, %v665_v23  ;;  %v671_v47 = vand.u32 4294901760, %v670_v31  ;;  %v3362_v24 = vsub.f32 %v8034_v43, %v11926_v26 }
  0xd0   : > { %v11929_v22 = vand.u32 4294901760, %v8040_v51  ;;  %6803 = vmatpush1.bf16.msra.mxu0 %v6802_v55  ;;  %v6804_v42 = vpack.c.bf16 %v3369_v9, %v3357_v1  ;;  %v683_v49 = vand.u32 4294901760, %v682_v7  ;;  %v11927_v15 = vand.u32 4294901760, %v8044_v56 }
  0xd1   : > { %v3374_v59 = vsub.f32 %v8036_v44, %v11925_v0  ;;  %6037 = vmatprep.subr.bf16.mxu1 %v6036_v20  ;;  %v3363_v38 = vand.u32 4294901760, %v3362_v24  ;;  %v11928_v53 = vand.u32 4294901760, %v8048_v58  ;;  %v11930_v31 = vand.u32 4294901760, %v8051_v63 }
  0xd2   : > { %v688_v23 = vsub.f32 %v8040_v51, %v11929_v22  ;;  %6805 = vmatprep.subr.bf16.mxu0 %v6804_v42  ;;  %v6038_v55 = vpack.c.bf16 %v683_v49, %v671_v47  ;;  %v700_v1 = vsub.f32 %v8044_v56, %v11927_v15  ;;  %v11934_v7 = vand.u32 4294901760, %v8054_v19 }
  0xd3   : > { %v3375_v9 = vand.u32 4294901760, %v3374_v59  ;;  %v3380_v20 = vsub.f32 %v8048_v58, %v11928_v53  ;;  %v3392_v24 = vsub.f32 %v8051_v63, %v11930_v31  ;;  %v11932_v26 = vand.u32 4294901760, %v8058_v35 }
  0xd4   : > { %v689_v0 = vand.u32 4294901760, %v688_v23  ;;  %6039 = vmatpush1.bf16.msra.mxu1 %v6038_v55  ;;  %v701_v49 = vand.u32 4294901760, %v700_v1  ;;  %v694_v42 = vsub.f32 %v8054_v19, %v11934_v7  ;;  %v11933_v59 = vand.u32 4294901760, %v8062_v30 }
  0xd5   : > { %v6806_v47 = vpack.c.bf16 %v3375_v9, %v3363_v38  ;;  %v3381_v23 = vand.u32 4294901760, %v3380_v20  ;;  %v3393_v15 = vand.u32 4294901760, %v3392_v24  ;;  %v706_v53 = vsub.f32 %v8058_v35, %v11932_v26 }
  0xd6   : > { %v11935_v22 = vand.u32 4294901760, %v8064_v57  ;;  %v6040_v31 = vpack.c.bf16 %v701_v49, %v689_v0  ;;  %v695_v37 = vand.u32 4294901760, %v694_v42  ;;  %v3386_v38 = vsub.f32 %v8062_v30, %v11933_v59  ;;  %v12795_v42 = vld [vmem:[#allocation64_spill] sm:$0xff] }
  0xd7   : > { %6807 = vmatpush1.bf16.msra.mxu0 %v6806_v47  ;;  %v11938_v55 = vand.u32 4294901760, %v8068_v3  ;;  %v6808_v9 = vpack.c.bf16 %v3393_v15, %v3381_v23  ;;  %v707_v1 = vand.u32 4294901760, %v706_v53  ;;  %v11941_v24 = vand.u32 4294901760, %v8070_v5  ;;  %v12794_v47 = vld [vmem:[#allocation62_spill] sm:$0xff] }
  0xd8   : > { %v3398_v20 = vsub.f32 %v8064_v57, %v11935_v22  ;;  %6041 = vmatprep.subr.bf16.mxu1 %v6040_v31  ;;  %v3387_v26 = vand.u32 4294901760, %v3386_v38  ;;  %v11944_v49 = vand.u32 4294901760, %v12794_v47  ;;  %v11948_v59 = vand.u32 4294901760, %v12795_v42  ;;  %v12796_v23 = vld [vmem:[#allocation66_spill] sm:$0xff] }
  0xd9   : > { %v712_v0 = vsub.f32 %v8068_v3, %v11938_v55  ;;  %6809 = vmatprep.subr.bf16.mxu0 %v6808_v9  ;;  %v6042_v7 = vpack.c.bf16 %v707_v1, %v695_v37  ;;  %v724_v53 = vsub.f32 %v8070_v5, %v11941_v24  ;;  %v11950_v22 = vand.u32 4294901760, %v12796_v23  ;;  %v12797_v55 = vld [vmem:[#allocation67_spill] sm:$0xff] }
  0xda   : > { %v3399_v15 = vand.u32 4294901760, %v3398_v20  ;;  %v3404_v31 = vsub.f32 %v12794_v47, %v11944_v49  ;;  %v3416_v38 = vsub.f32 %v12795_v42, %v11948_v59  ;;  %v11952_v57 = vand.u32 4294901760, %v12797_v55  ;;  %v12798_v20 = vld [vmem:[#allocation69_spill] sm:$0xff]  ;;  %v12799_v47 = vld [vmem:[#allocation70_spill] sm:$0xff] }
  0xdb   : > { %v713_v18 = vand.u32 4294901760, %v712_v0  ;;  %6043 = vmatpush1.bf16.msra.mxu1 %v6042_v7  ;;  %v725_v9 = vand.u32 4294901760, %v724_v53  ;;  %v718_v1 = vsub.f32 %v12796_v23, %v11950_v22  ;;  %v11953_v24 = vand.u32 4294901760, %v12798_v20  ;;  %v12800_v7 = vld [vmem:[#allocation72_spill] sm:$0xff] }
  0xdc   : > { %v6810_v37 = vpack.c.bf16 %v3399_v15, %v3387_v26  ;;  %v3405_v0 = vand.u32 4294901760, %v3404_v31  ;;  %v3417_v30 = vand.u32 4294901760, %v3416_v38  ;;  %v730_v49 = vsub.f32 %v12797_v55, %v11952_v57  ;;  %v12801_v38 = vld [vmem:[#allocation73_spill] sm:$0xff] }
  0xdd   : > { %v11955_v5 = vand.u32 4294901760, %v12799_v47  ;;  %v6044_v59 = vpack.c.bf16 %v725_v9, %v713_v18  ;;  %v719_v42 = vand.u32 4294901760, %v718_v1  ;;  %v3410_v26 = vsub.f32 %v12798_v20, %v11953_v24  ;;  %v12803_v1 = vld [vmem:[#allocation76_spill] sm:$0xff] }
  0xde   : > { %6811 = vmatpush1.bf16.msra.mxu0 %v6810_v37  ;;  %v11957_v15 = vand.u32 4294901760, %v12800_v7  ;;  %v6812_v53 = vpack.c.bf16 %v3417_v30, %v3405_v0  ;;  %v731_v22 = vand.u32 4294901760, %v730_v49  ;;  %v11959_v23 = vand.u32 4294901760, %v12801_v38  ;;  %v12802_v37 = vld [vmem:[#allocation74_spill] sm:$0xff] }
  0xdf   : > { %v3422_v31 = vsub.f32 %v12799_v47, %v11955_v5  ;;  %6045 = vmatprep.subr.bf16.mxu1 %v6044_v59  ;;  %v3411_v57 = vand.u32 4294901760, %v3410_v26  ;;  %v11961_v9 = vand.u32 4294901760, %v12802_v37  ;;  %v11964_v24 = vand.u32 4294901760, %v12803_v1  ;;  %v12804_v0 = vld [vmem:[#allocation78_spill] sm:$0xff] }
  0xe0   : > { %v736_v18 = vsub.f32 %v12800_v7, %v11957_v15  ;;  %6813 = vmatprep.subr.bf16.mxu0 %v6812_v53  ;;  %v6046_v20 = vpack.c.bf16 %v731_v22, %v719_v42  ;;  %v748_v49 = vsub.f32 %v12801_v38, %v11959_v23  ;;  %v11966_v5 = vand.u32 4294901760, %v12804_v0  ;;  %v12805_v15 = vld [vmem:[#allocation79_spill] sm:$0xff] }
  0xe1   : > { %v3423_v30 = vand.u32 4294901760, %v3422_v31  ;;  %v3428_v59 = vsub.f32 %v12802_v37, %v11961_v9  ;;  %v3440_v26 = vsub.f32 %v12803_v1, %v11964_v24  ;;  %v11968_v7 = vand.u32 4294901760, %v12805_v15  ;;  %v12806_v31 = vld [vmem:[#allocation81_spill] sm:$0xff]  ;;  %v12807_v37 = vld [vmem:[#allocation82_spill] sm:$0xff] }
  0xe2   : > { %v737_v47 = vand.u32 4294901760, %v736_v18  ;;  %6047 = vmatpush1.bf16.msra.mxu1 %v6046_v20  ;;  %v749_v42 = vand.u32 4294901760, %v748_v49  ;;  %v742_v53 = vsub.f32 %v12804_v0, %v11966_v5  ;;  %v11969_v23 = vand.u32 4294901760, %v12806_v31  ;;  %v12808_v20 = vld [vmem:[#allocation84_spill] sm:$0xff] }
  0xe3   : > { %v6814_v22 = vpack.c.bf16 %v3423_v30, %v3411_v57  ;;  %v3429_v18 = vand.u32 4294901760, %v3428_v59  ;;  %v3441_v38 = vand.u32 4294901760, %v3440_v26  ;;  %v754_v9 = vsub.f32 %v12805_v15, %v11968_v7  ;;  %v12809_v26 = vld [vmem:[#allocation85_spill] sm:$0xff] }
  0xe4   : > { %v11971_v55 = vand.u32 4294901760, %v12807_v37  ;;  %v6048_v24 = vpack.c.bf16 %v749_v42, %v737_v47  ;;  %v743_v1 = vand.u32 4294901760, %v742_v53  ;;  %v3434_v57 = vsub.f32 %v12806_v31, %v11969_v23  ;;  %v12811_v53 = vld [vmem:[#allocation88_spill] sm:$0xff] }
  0xe5   : > { %6815 = vmatpush1.bf16.msra.mxu0 %v6814_v22  ;;  %v11973_v30 = vand.u32 4294901760, %v12808_v20  ;;  %v6816_v49 = vpack.c.bf16 %v3441_v38, %v3429_v18  ;;  %v755_v5 = vand.u32 4294901760, %v754_v9  ;;  %v11975_v0 = vand.u32 4294901760, %v12809_v26  ;;  %v12810_v22 = vld [vmem:[#allocation86_spill] sm:$0xff] }
  0xe6   : > { %v3446_v59 = vsub.f32 %v12807_v37, %v11971_v55  ;;  %6049 = vmatprep.subr.bf16.mxu1 %v6048_v24  ;;  %v3435_v7 = vand.u32 4294901760, %v3434_v57  ;;  %v11977_v42 = vand.u32 4294901760, %v12810_v22  ;;  %v11980_v23 = vand.u32 4294901760, %v12811_v53  ;;  %v12812_v18 = vld [vmem:[#allocation90_spill] sm:$0xff] }
  0xe7   : > { %v760_v47 = vsub.f32 %v12808_v20, %v11973_v30  ;;  %6817 = vmatprep.subr.bf16.mxu0 %v6816_v49  ;;  %v6050_v31 = vpack.c.bf16 %v755_v5, %v743_v1  ;;  %v772_v9 = vsub.f32 %v12809_v26, %v11975_v0  ;;  %v11982_v55 = vand.u32 4294901760, %v12812_v18  ;;  %v12813_v30 = vld [vmem:[#allocation91_spill] sm:$0xff] }
  0xe8   : > { %v3447_v38 = vand.u32 4294901760, %v3446_v59  ;;  %v3452_v24 = vsub.f32 %v12810_v22, %v11977_v42  ;;  %v3464_v57 = vsub.f32 %v12811_v53, %v11980_v23  ;;  %v11984_v20 = vand.u32 4294901760, %v12813_v30  ;;  %v12814_v59 = vld [vmem:[#allocation93_spill] sm:$0xff]  ;;  %v12815_v22 = vld [vmem:[#allocation94_spill] sm:$0xff] }
  0xe9   : > { %v761_v37 = vand.u32 4294901760, %v760_v47  ;;  %6051 = vmatpush1.bf16.msra.mxu1 %v6050_v31  ;;  %v773_v1 = vand.u32 4294901760, %v772_v9  ;;  %v766_v49 = vsub.f32 %v12812_v18, %v11982_v55  ;;  %v11985_v0 = vand.u32 4294901760, %v12814_v59  ;;  %v12816_v31 = vld [vmem:[#allocation96_spill] sm:$0xff] }
  0xea   : > { %v6818_v5 = vpack.c.bf16 %v3447_v38, %v3435_v7  ;;  %v3453_v47 = vand.u32 4294901760, %v3452_v24  ;;  %v3465_v26 = vand.u32 4294901760, %v3464_v57  ;;  %v778_v42 = vsub.f32 %v12813_v30, %v11984_v20  ;;  %v12817_v57 = vld [vmem:[#allocation97_spill] sm:$0xff] }
  0xeb   : > { %v11987_v15 = vand.u32 4294901760, %v12815_v22  ;;  %v6052_v23 = vpack.c.bf16 %v773_v1, %v761_v37  ;;  %v767_v53 = vand.u32 4294901760, %v766_v49  ;;  %v3458_v7 = vsub.f32 %v12814_v59, %v11985_v0  ;;  %v12819_v49 = vld [vmem:[#allocation100_spill] sm:$0xff] }
  0xec   : > { %6819 = vmatpush1.bf16.msra.mxu0 %v6818_v5  ;;  %v11989_v38 = vand.u32 4294901760, %v12816_v31  ;;  %v6820_v9 = vpack.c.bf16 %v3465_v26, %v3453_v47  ;;  %v779_v55 = vand.u32 4294901760, %v778_v42  ;;  %v11991_v18 = vand.u32 4294901760, %v12817_v57  ;;  %v12818_v5 = vld [vmem:[#allocation98_spill] sm:$0xff] }
  0xed   : > { %v3470_v24 = vsub.f32 %v12815_v22, %v11987_v15  ;;  %6053 = vmatprep.subr.bf16.mxu1 %v6052_v23  ;;  %v3459_v20 = vand.u32 4294901760, %v3458_v7  ;;  %v11993_v1 = vand.u32 4294901760, %v12818_v5  ;;  %v11996_v0 = vand.u32 4294901760, %v12819_v49  ;;  %v12820_v47 = vld [vmem:[#allocation102_spill] sm:$0xff] }
  0xee   : > { %v784_v37 = vsub.f32 %v12816_v31, %v11989_v38  ;;  %6821 = vmatprep.subr.bf16.mxu0 %v6820_v9  ;;  %v6054_v59 = vpack.c.bf16 %v779_v55, %v767_v53  ;;  %v796_v42 = vsub.f32 %v12817_v57, %v11991_v18  ;;  %v11998_v15 = vand.u32 4294901760, %v12820_v47  ;;  %v12821_v38 = vld [vmem:[#allocation103_spill] sm:$0xff] }
  0xef   : > { %v3471_v26 = vand.u32 4294901760, %v3470_v24  ;;  %v3476_v23 = vsub.f32 %v12818_v5, %v11993_v1  ;;  %v3488_v7 = vsub.f32 %v12819_v49, %v11996_v0  ;;  %v12000_v31 = vand.u32 4294901760, %v12821_v38  ;;  %v12822_v24 = vld [vmem:[#allocation105_spill] sm:$0xff]  ;;  %v12823_v5 = vld [vmem:[#allocation106_spill] sm:$0xff] }
  0xf0   : > { %v785_v22 = vand.u32 4294901760, %v784_v37  ;;  %6055 = vmatpush1.bf16.msra.mxu1 %v6054_v59  ;;  %v797_v53 = vand.u32 4294901760, %v796_v42  ;;  %v790_v9 = vsub.f32 %v12820_v47, %v11998_v15  ;;  %v12001_v18 = vand.u32 4294901760, %v12822_v24  ;;  %v12824_v59 = vld [vmem:[#allocation108_spill] sm:$0xff] }
  0xf1   : > { %v6822_v55 = vpack.c.bf16 %v3471_v26, %v3459_v20  ;;  %v3477_v37 = vand.u32 4294901760, %v3476_v23  ;;  %v3489_v57 = vand.u32 4294901760, %v3488_v7  ;;  %v802_v1 = vsub.f32 %v12821_v38, %v12000_v31  ;;  %v12825_v7 = vld [vmem:[#allocation109_spill] sm:$0xff] }
  0xf2   : > { %v12003_v30 = vand.u32 4294901760, %v12823_v5  ;;  %v6056_v0 = vpack.c.bf16 %v797_v53, %v785_v22  ;;  %v791_v49 = vand.u32 4294901760, %v790_v9  ;;  %v3482_v20 = vsub.f32 %v12822_v24, %v12001_v18  ;;  %v12827_v9 = vld [vmem:[#allocation112_spill] sm:$0xff] }
  0xf3   : > { %6823 = vmatpush1.bf16.msra.mxu0 %v6822_v55  ;;  %v12005_v26 = vand.u32 4294901760, %v12824_v59  ;;  %v6824_v42 = vpack.c.bf16 %v3489_v57, %v3477_v37  ;;  %v803_v15 = vand.u32 4294901760, %v802_v1  ;;  %v12007_v47 = vand.u32 4294901760, %v12825_v7  ;;  %v12826_v55 = vld [vmem:[#allocation110_spill] sm:$0xff] }
  0xf4   : > { %v3494_v23 = vsub.f32 %v12823_v5, %v12003_v30  ;;  %6057 = vmatprep.subr.bf16.mxu1 %v6056_v0  ;;  %v3483_v31 = vand.u32 4294901760, %v3482_v20  ;;  %v12009_v53 = vand.u32 4294901760, %v12826_v55  ;;  %v12012_v18 = vand.u32 4294901760, %v12827_v9  ;;  %v12828_v37 = vld [vmem:[#allocation114_spill] sm:$0xff] }
  0xf5   : > { %v808_v22 = vsub.f32 %v12824_v59, %v12005_v26  ;;  %6825 = vmatprep.subr.bf16.mxu0 %v6824_v42  ;;  %v6058_v24 = vpack.c.bf16 %v803_v15, %v791_v49  ;;  %v820_v1 = vsub.f32 %v12825_v7, %v12007_v47  ;;  %v12014_v30 = vand.u32 4294901760, %v12828_v37  ;;  %v12829_v26 = vld [vmem:[#allocation115_spill] sm:$0xff] }
  0xf6   : > { %v3495_v57 = vand.u32 4294901760, %v3494_v23  ;;  %v3500_v0 = vsub.f32 %v12826_v55, %v12009_v53  ;;  %v3512_v20 = vsub.f32 %v12827_v9, %v12012_v18  ;;  %v12016_v59 = vand.u32 4294901760, %v12829_v26  ;;  %v12830_v23 = vld [vmem:[#allocation117_spill] sm:$0xff]  ;;  %v12831_v55 = vld [vmem:[#allocation118_spill] sm:$0xff] }
  0xf7   : > { %v809_v5 = vand.u32 4294901760, %v808_v22  ;;  %6059 = vmatpush1.bf16.msra.mxu1 %v6058_v24  ;;  %v821_v49 = vand.u32 4294901760, %v820_v1  ;;  %v814_v42 = vsub.f32 %v12828_v37, %v12014_v30  ;;  %v12017_v47 = vand.u32 4294901760, %v12830_v23  ;;  %v12832_v24 = vld [vmem:[#allocation120_spill] sm:$0xff] }
  0xf8   : > { %v6826_v15 = vpack.c.bf16 %v3495_v57, %v3483_v31  ;;  %v3501_v22 = vand.u32 4294901760, %v3500_v0  ;;  %v3513_v7 = vand.u32 4294901760, %v3512_v20  ;;  %v826_v53 = vsub.f32 %v12829_v26, %v12016_v59  ;;  %v12833_v20 = vld [vmem:[#allocation121_spill] sm:$0xff]  ;;  %v12839_v26 = vld [vmem:[#allocation130_spill] sm:$0xff] }
  0xf9   : > { %v12019_v38 = vand.u32 4294901760, %v12831_v55  ;;  %v6060_v18 = vpack.c.bf16 %v821_v49, %v809_v5  ;;  %v815_v9 = vand.u32 4294901760, %v814_v42  ;;  %v3506_v31 = vsub.f32 %v12830_v23, %v12017_v47  ;;  %v12835_v42 = vld [vmem:[#allocation124_spill] sm:$0xff] }
  0xfa   : > { %6827 = vmatpush1.bf16.msra.mxu0 %v6826_v15  ;;  %v12021_v57 = vand.u32 4294901760, %v12832_v24  ;;  %v6828_v1 = vpack.c.bf16 %v3513_v7, %v3501_v22  ;;  %v827_v30 = vand.u32 4294901760, %v826_v53  ;;  %v12023_v37 = vand.u32 4294901760, %v12833_v20  ;;  %v12834_v15 = vld [vmem:[#allocation122_spill] sm:$0xff] }
  0xfb   : > { %v3518_v0 = vsub.f32 %v12831_v55, %v12019_v38  ;;  %6061 = vmatprep.subr.bf16.mxu1 %v6060_v18  ;;  %v3507_v59 = vand.u32 4294901760, %v3506_v31  ;;  %v12025_v49 = vand.u32 4294901760, %v12834_v15  ;;  %v12028_v47 = vand.u32 4294901760, %v12835_v42  ;;  %v12836_v22 = vld [vmem:[#allocation126_spill] sm:$0xff] }
  0xfc   : > { %v832_v5 = vsub.f32 %v12832_v24, %v12021_v57  ;;  %6829 = vmatprep.subr.bf16.mxu0 %v6828_v1  ;;  %v6062_v23 = vpack.c.bf16 %v827_v30, %v815_v9  ;;  %v844_v53 = vsub.f32 %v12833_v20, %v12023_v37  ;;  %v12030_v38 = vand.u32 4294901760, %v12836_v22  ;;  %v12837_v57 = vld [vmem:[#allocation127_spill] sm:$0xff] }
  0xfd   : > { %v3519_v7 = vand.u32 4294901760, %v3518_v0  ;;  %v3524_v18 = vsub.f32 %v12834_v15, %v12025_v49  ;;  %v3536_v31 = vsub.f32 %v12835_v42, %v12028_v47  ;;  %v12032_v24 = vand.u32 4294901760, %v12837_v57  ;;  %v12838_v0 = vld [vmem:[#allocation129_spill] sm:$0xff] }
  0xfe   : > { %v833_v55 = vand.u32 4294901760, %v832_v5  ;;  %6063 = vmatpush1.bf16.msra.mxu1 %v6062_v23  ;;  %v845_v9 = vand.u32 4294901760, %v844_v53  ;;  %v838_v1 = vsub.f32 %v12836_v22, %v12030_v38  ;;  %v12033_v37 = vand.u32 4294901760, %v12838_v0  ;;  %v12840_v23 = vld [vmem:[#allocation132_spill] sm:$0xff] }
  0xff   : > { %v6830_v30 = vpack.c.bf16 %v3519_v7, %v3507_v59  ;;  %v3525_v5 = vand.u32 4294901760, %v3524_v18  ;;  %v3537_v20 = vand.u32 4294901760, %v3536_v31  ;;  %v850_v49 = vsub.f32 %v12837_v57, %v12032_v24  ;;  %v12841_v31 = vld [vmem:[#allocation133_spill] sm:$0xff] }
 0x100   : > { %v12035_v15 = vand.u32 4294901760, %v12839_v26  ;;  %v6064_v47 = vpack.c.bf16 %v845_v9, %v833_v55  ;;  %v839_v42 = vand.u32 4294901760, %v838_v1  ;;  %v3530_v59 = vsub.f32 %v12838_v0, %v12033_v37  ;;  %v12843_v1 = vld [vmem:[#allocation136_spill] sm:$0xff] }
 0x101   : > { %6831 = vmatpush1.bf16.msra.mxu0 %v6830_v30  ;;  %v12037_v7 = vand.u32 4294901760, %v12840_v23  ;;  %v6832_v53 = vpack.c.bf16 %v3537_v20, %v3525_v5  ;;  %v851_v38 = vand.u32 4294901760, %v850_v49  ;;  %v12039_v22 = vand.u32 4294901760, %v12841_v31  ;;  %v12842_v30 = vld [vmem:[#allocation134_spill] sm:$0xff] }
 0x102   : > { %v3542_v18 = vsub.f32 %v12839_v26, %v12035_v15  ;;  %6065 = vmatprep.subr.bf16.mxu1 %v6064_v47  ;;  %v3531_v24 = vand.u32 4294901760, %v3530_v59  ;;  %v12041_v9 = vand.u32 4294901760, %v12842_v30  ;;  %v12044_v37 = vand.u32 4294901760, %v12843_v1  ;;  %v12844_v5 = vld [vmem:[#allocation138_spill] sm:$0xff] }
 0x103   : > { %v856_v55 = vsub.f32 %v12840_v23, %v12037_v7  ;;  %6833 = vmatprep.subr.bf16.mxu0 %v6832_v53  ;;  %v6066_v0 = vpack.c.bf16 %v851_v38, %v839_v42  ;;  %v868_v49 = vsub.f32 %v12841_v31, %v12039_v22  ;;  %v12046_v15 = vand.u32 4294901760, %v12844_v5  ;;  %v12845_v7 = vld [vmem:[#allocation139_spill] sm:$0xff] }
 0x104   : > { %v3543_v20 = vand.u32 4294901760, %v3542_v18  ;;  %v3548_v47 = vsub.f32 %v12842_v30, %v12041_v9  ;;  %v3560_v59 = vsub.f32 %v12843_v1, %v12044_v37  ;;  %v12048_v23 = vand.u32 4294901760, %v12845_v7  ;;  %v12846_v18 = vld [vmem:[#allocation141_spill] sm:$0xff]  ;;  %v12847_v30 = vld [vmem:[#allocation142_spill] sm:$0xff] }
 0x105   : > { %v857_v26 = vand.u32 4294901760, %v856_v55  ;;  %6067 = vmatpush1.bf16.msra.mxu1 %v6066_v0  ;;  %v869_v42 = vand.u32 4294901760, %v868_v49  ;;  %v862_v53 = vsub.f32 %v12844_v5, %v12046_v15  ;;  %v12049_v22 = vand.u32 4294901760, %v12846_v18  ;;  %v12848_v0 = vld [vmem:[#allocation144_spill] sm:$0xff] }
 0x106   : > { %v6834_v38 = vpack.c.bf16 %v3543_v20, %v3531_v24  ;;  %v3549_v55 = vand.u32 4294901760, %v3548_v47  ;;  %v3561_v31 = vand.u32 4294901760, %v3560_v59  ;;  %v874_v9 = vsub.f32 %v12845_v7, %v12048_v23  ;;  %v12849_v59 = vld [vmem:[#allocation145_spill] sm:$0xff] }
 0x107   : > { %v12051_v57 = vand.u32 4294901760, %v12847_v30  ;;  %v6068_v37 = vpack.c.bf16 %v869_v42, %v857_v26  ;;  %v863_v1 = vand.u32 4294901760, %v862_v53  ;;  %v3554_v24 = vsub.f32 %v12846_v18, %v12049_v22  ;;  %v12851_v53 = vld [vmem:[#allocation148_spill] sm:$0xff] }
 0x108   : > { %6835 = vmatpush1.bf16.msra.mxu0 %v6834_v38  ;;  %v12053_v20 = vand.u32 4294901760, %v12848_v0  ;;  %v6836_v49 = vpack.c.bf16 %v3561_v31, %v3549_v55  ;;  %v875_v15 = vand.u32 4294901760, %v874_v9  ;;  %v12055_v5 = vand.u32 4294901760, %v12849_v59  ;;  %v12850_v38 = vld [vmem:[#allocation146_spill] sm:$0xff] }
 0x109   : > { %v3566_v47 = vsub.f32 %v12847_v30, %v12051_v57  ;;  %6069 = vmatprep.subr.bf16.mxu1 %v6068_v37  ;;  %v3555_v23 = vand.u32 4294901760, %v3554_v24  ;;  %v12057_v42 = vand.u32 4294901760, %v12850_v38  ;;  %v12060_v22 = vand.u32 4294901760, %v12851_v53  ;;  %v12852_v55 = vld [vmem:[#allocation150_spill] sm:$0xff] }
 0x10a   : > { %v880_v26 = vsub.f32 %v12848_v0, %v12053_v20  ;;  %6837 = vmatprep.subr.bf16.mxu0 %v6836_v49  ;;  %v6070_v18 = vpack.c.bf16 %v875_v15, %v863_v1  ;;  %v892_v9 = vsub.f32 %v12849_v59, %v12055_v5  ;;  %v12062_v57 = vand.u32 4294901760, %v12852_v55  ;;  %v12853_v20 = vld [vmem:[#allocation151_spill] sm:$0xff] }
 0x10b   : > { %v3567_v31 = vand.u32 4294901760, %v3566_v47  ;;  %v3572_v37 = vsub.f32 %v12850_v38, %v12057_v42  ;;  %v3584_v24 = vsub.f32 %v12851_v53, %v12060_v22  ;;  %v12064_v0 = vand.u32 4294901760, %v12853_v20  ;;  %v12854_v47 = vld [vmem:[#allocation153_spill] sm:$0xff]  ;;  %v12855_v38 = vld [vmem:[#allocation154_spill] sm:$0xff] }
 0x10c   : > { %v881_v30 = vand.u32 4294901760, %v880_v26  ;;  %6071 = vmatpush1.bf16.msra.mxu1 %v6070_v18  ;;  %v893_v1 = vand.u32 4294901760, %v892_v9  ;;  %v886_v49 = vsub.f32 %v12852_v55, %v12062_v57  ;;  %v12065_v5 = vand.u32 4294901760, %v12854_v47  ;;  %v12856_v18 = vld [vmem:[#allocation156_spill] sm:$0xff] }
 0x10d   : > { %v6838_v15 = vpack.c.bf16 %v3567_v31, %v3555_v23  ;;  %v3573_v26 = vand.u32 4294901760, %v3572_v37  ;;  %v3585_v59 = vand.u32 4294901760, %v3584_v24  ;;  %v898_v42 = vsub.f32 %v12853_v20, %v12064_v0  ;;  %v12857_v24 = vld [vmem:[#allocation157_spill] sm:$0xff] }
 0x10e   : > { %v12067_v7 = vand.u32 4294901760, %v12855_v38  ;;  %v6072_v22 = vpack.c.bf16 %v893_v1, %v881_v30  ;;  %v887_v53 = vand.u32 4294901760, %v886_v49  ;;  %v3578_v23 = vsub.f32 %v12854_v47, %v12065_v5  ;;  %v12859_v49 = vld [vmem:[#allocation160_spill] sm:$0xff] }
 0x10f   : > { %6839 = vmatpush1.bf16.msra.mxu0 %v6838_v15  ;;  %v12069_v31 = vand.u32 4294901760, %v12856_v18  ;;  %v6840_v9 = vpack.c.bf16 %v3585_v59, %v3573_v26  ;;  %v899_v57 = vand.u32 4294901760, %v898_v42  ;;  %v12071_v55 = vand.u32 4294901760, %v12857_v24  ;;  %v12858_v15 = vld [vmem:[#allocation158_spill] sm:$0xff] }
 0x110   : > { %v3590_v37 = vsub.f32 %v12855_v38, %v12067_v7  ;;  %6073 = vmatprep.subr.bf16.mxu1 %v6072_v22  ;;  %v3579_v0 = vand.u32 4294901760, %v3578_v23  ;;  %v12073_v1 = vand.u32 4294901760, %v12858_v15  ;;  %v12076_v5 = vand.u32 4294901760, %v12859_v49  ;;  %v12860_v26 = vld [vmem:[#allocation162_spill] sm:$0xff] }
 0x111   : > { %v904_v30 = vsub.f32 %v12856_v18, %v12069_v31  ;;  %6841 = vmatprep.subr.bf16.mxu0 %v6840_v9  ;;  %v6074_v47 = vpack.c.bf16 %v899_v57, %v887_v53  ;;  %v916_v42 = vsub.f32 %v12857_v24, %v12071_v55  ;;  %v12078_v7 = vand.u32 4294901760, %v12860_v26  ;;  %v12861_v31 = vld [vmem:[#allocation163_spill] sm:$0xff] }
 0x112   : > { %v3591_v59 = vand.u32 4294901760, %v3590_v37  ;;  %v3596_v22 = vsub.f32 %v12858_v15, %v12073_v1  ;;  %v3608_v23 = vsub.f32 %v12859_v49, %v12076_v5  ;;  %v12080_v18 = vand.u32 4294901760, %v12861_v31  ;;  %v12862_v37 = vld [vmem:[#allocation165_spill] sm:$0xff]  ;;  %v12863_v15 = vld [vmem:[#allocation166_spill] sm:$0xff] }
 0x113   : > { %v905_v38 = vand.u32 4294901760, %v904_v30  ;;  %6075 = vmatpush1.bf16.msra.mxu1 %v6074_v47  ;;  %v917_v53 = vand.u32 4294901760, %v916_v42  ;;  %v910_v9 = vsub.f32 %v12860_v26, %v12078_v7  ;;  %v12081_v55 = vand.u32 4294901760, %v12862_v37  ;;  %v12864_v47 = vld [vmem:[#allocation168_spill] sm:$0xff] }
 0x114   : > { %v6842_v57 = vpack.c.bf16 %v3591_v59, %v3579_v0  ;;  %v3597_v30 = vand.u32 4294901760, %v3596_v22  ;;  %v3609_v24 = vand.u32 4294901760, %v3608_v23  ;;  %v922_v1 = vsub.f32 %v12861_v31, %v12080_v18  ;;  %v12865_v23 = vld [vmem:[#allocation169_spill] sm:$0xff] }
 0x115   : > { %v12082_v20 = vand.u32 4294901760, %v12863_v15  ;;  %v6076_v5 = vpack.c.bf16 %v917_v53, %v905_v38  ;;  %v911_v49 = vand.u32 4294901760, %v910_v9  ;;  %v3602_v0 = vsub.f32 %v12862_v37, %v12081_v55 }
 0x116   : > { %6843 = vmatpush1.bf16.msra.mxu0 %v6842_v57  ;;  %v12084_v59 = vand.u32 4294901760, %v12864_v47  ;;  %v6844_v42 = vpack.c.bf16 %v3609_v24, %v3597_v30  ;;  %v923_v7 = vand.u32 4294901760, %v922_v1  ;;  %v12086_v26 = vand.u32 4294901760, %v12865_v23  ;;  %v12866_v57 = vld [vmem:[#allocation170_spill] sm:$0xff] }
 0x117   : > { %v3614_v22 = vsub.f32 %v12863_v15, %v12082_v20  ;;  %6077 = vmatprep.subr.bf16.mxu1 %v6076_v5  ;;  %v3603_v18 = vand.u32 4294901760, %v3602_v0  ;;  %v12088_v53 = vand.u32 4294901760, %v12866_v57  ;;  %v12091_v9 = vand.u32 4294901760, %v8331_v54  ;;  %v12867_v30 = vld [vmem:[#allocation174_spill] sm:$0xff] }
 0x118   : > { %v928_v38 = vsub.f32 %v12864_v47, %v12084_v59  ;;  %6845 = vmatprep.subr.bf16.mxu0 %v6844_v42  ;;  %v6078_v55 = vpack.c.bf16 %v923_v7, %v911_v49  ;;  %v940_v1 = vsub.f32 %v12865_v23, %v12086_v26  ;;  %v12094_v20 = vand.u32 4294901760, %v12867_v30  ;;  %v12868_v59 = vld [vmem:[#allocation175_spill] sm:$0xff] }
 0x119   : > { %v3615_v24 = vand.u32 4294901760, %v3614_v22  ;;  %v3620_v5 = vsub.f32 %v12866_v57, %v12088_v53  ;;  %v3632_v0 = vsub.f32 %v8331_v54, %v12091_v9  ;;  %v12095_v47 = vand.u32 4294901760, %v12868_v59  ;;  %v12869_v22 = vld [vmem:[#allocation177_spill] sm:$0xff]  ;;  %v12870_v57 = vld [vmem:[#allocation178_spill] sm:$0xff] }
 0x11a   : > { %v929_v15 = vand.u32 4294901760, %v928_v38  ;;  %6079 = vmatpush1.bf16.msra.mxu1 %v6078_v55  ;;  %v941_v49 = vand.u32 4294901760, %v940_v1  ;;  %v934_v42 = vsub.f32 %v12867_v30, %v12094_v20  ;;  %v12100_v26 = vand.u32 4294901760, %v12869_v22  ;;  %v12940_v30 = vld [vmem:[#allocation67_spill] sm:$0xff] }
 0x11b   : > { %v6846_v7 = vpack.c.bf16 %v3615_v24, %v3603_v18  ;;  %v3621_v38 = vand.u32 4294901760, %v3620_v5  ;;  %v3633_v23 = vand.u32 4294901760, %v3632_v0  ;;  %v946_v53 = vsub.f32 %v12868_v59, %v12095_v47  ;;  %v12871_v18 = vld [vmem:[#allocation180_spill] sm:$0xff]  ;;  %v12872_v0 = vld [vmem:[#allocation181_spill] sm:$0xff] }
 0x11c   : > { %v12097_v37 = vand.u32 4294901760, %v12870_v57  ;;  %v6080_v9 = vpack.c.bf16 %v941_v49, %v929_v15  ;;  %v935_v54 = vand.u32 4294901760, %v934_v42  ;;  %v3626_v55 = vsub.f32 %v12869_v22, %v12100_v26 }
 0x11d   : > { %6847 = vmatpush1.bf16.msra.mxu0 %v6846_v7  ;;  %v12098_v24 = vand.u32 4294901760, %v12871_v18  ;;  %v6848_v1 = vpack.c.bf16 %v3633_v23, %v3621_v38  ;;  %v947_v20 = vand.u32 4294901760, %v946_v53  ;;  %v12099_v47 = vand.u32 4294901760, %v12872_v0  ;;  %v12873_v7 = vld [vmem:[#allocation182_spill] sm:$0xff] }
 0x11e   : > { %v3638_v5 = vsub.f32 %v12870_v57, %v12097_v37  ;;  %6081 = vmatprep.subr.bf16.mxu1 %v6080_v9  ;;  %v3627_v59 = vand.u32 4294901760, %v3626_v55  ;;  %v12102_v49 = vand.u32 4294901760, %v12873_v7  ;;  %v12103_v42 = vand.u32 4294901760, %v8359_v60 }
 0x11f   : > { %v952_v15 = vsub.f32 %v12871_v18, %v12098_v24  ;;  %6849 = vmatprep.subr.bf16.mxu0 %v6848_v1  ;;  %v6082_v23 = vpack.c.bf16 %v947_v20, %v935_v54  ;;  %v964_v38 = vsub.f32 %v12872_v0, %v12099_v47  ;;  %v12106_v37 = vand.u32 4294901760, %v8363_v21  ;;  %v189_v54 = vld [vmem:[%s7946_s3 + $0x48] sm:$0xff] }
 0x120   : > { %v3639_v53 = vand.u32 4294901760, %v3638_v5  ;;  %v3644_v55 = vsub.f32 %v12873_v7, %v12102_v49  ;;  %v3656_v24 = vsub.f32 %v8359_v60, %v12103_v42  ;;  %v12107_v1 = vand.u32 4294901760, %v8365_v14  ;;  %v193_v60 = vld [vmem:[%s7946_s3 + $0x68] sm:$0xff] }
 0x121   : > { %v953_v9 = vand.u32 4294901760, %v952_v15  ;;  %6083 = vmatpush1.bf16.msra.mxu1 %v6082_v23  ;;  %v965_v5 = vand.u32 4294901760, %v964_v38  ;;  %v958_v47 = vsub.f32 %v8363_v21, %v12106_v37  ;;  %v12112_v15 = vand.u32 4294901760, %v8369_v36 }
 0x122   : > { %v6850_v20 = vpack.c.bf16 %v3639_v53, %v3627_v59  ;;  %v3645_v26 = vand.u32 4294901760, %v3644_v55  ;;  %v3657_v0 = vand.u32 4294901760, %v3656_v24  ;;  %v970_v49 = vsub.f32 %v8365_v14, %v12107_v1  ;;  %v12875_v1 = vld [vmem:[#allocation192_spill] sm:$0xff] }
 0x123   : > { %v12115_v42 = vand.u32 4294901760, %v8371_v45  ;;  %v6084_v23 = vpack.c.bf16 %v965_v5, %v953_v9  ;;  %v959_v59 = vand.u32 4294901760, %v958_v47  ;;  %v3650_v53 = vsub.f32 %v8369_v36, %v12112_v15  ;;  %v12877_v47 = vld [vmem:[#allocation193_spill] sm:$0xff]  ;;  %v188_v15 = vld [vmem:[%s7946_s3 + $0x40] sm:$0xff] }
 0x124   : > { %6851 = vmatpush1.bf16.msra.mxu0 %v6850_v20  ;;  %v8923_v38 = vand.u32 4294901760, %v189_v54  ;;  %v6852_v37 = vpack.c.bf16 %v3657_v0, %v3645_v26  ;;  %v971_v55 = vand.u32 4294901760, %v970_v49  ;;  %v12116_v14 = vand.u32 4294901760, %v12875_v1  ;;  %v12879_v49 = vld [vmem:[#allocation194_spill] sm:$0xff] }
 0x125   : > { %v3662_v24 = vsub.f32 %v8371_v45, %v12115_v42  ;;  %6085 = vmatprep.subr.bf16.mxu1 %v6084_v23  ;;  %v3651_v21 = vand.u32 4294901760, %v3650_v53  ;;  %v12120_v9 = vand.u32 4294901760, %v12877_v47  ;;  %v8933_v5 = vand.u32 4294901760, %v193_v60 }
 0x126   : > { %12874 = vst [vmem:[#allocation211_spill] sm:$0xff] %v8923_v38  ;;  %v8930_v20 = vsub.f32 %v189_v54, %v8923_v38  ;;  %6853 = vmatprep.subr.bf16.mxu0 %v6852_v37  ;;  %v6086_v36 = vpack.c.bf16 %v971_v55, %v959_v59  ;;  %v976_v0 = vsub.f32 %v12875_v1, %v12116_v14  ;;  %v12121_v42 = vand.u32 4294901760, %v12879_v49 }
 0x127   : > { %12878 = vst [vmem:[#allocation213_spill] sm:$0xff] %v8933_v5  ;;  %v3663_v26 = vand.u32 4294901760, %v3662_v24  ;;  %v988_v54 = vsub.f32 %v12877_v47, %v12120_v9  ;;  %v8945_v53 = vsub.f32 %v193_v60, %v8933_v5  ;;  %v12128_v37 = vand.u32 4294901760, %v8392_v11 }
 0x128   : > { %12876 = vst [vmem:[#allocation212_spill] sm:$0xff] %v8930_v20  ;;  %v12125_v23 = vand.u32 4294901760, %v8930_v20  ;;  %6087 = vmatpush1.bf16.msra.mxu1 %v6086_v36  ;;  %v977_v55 = vand.u32 4294901760, %v976_v0  ;;  %v3668_v24 = vsub.f32 %v12879_v49, %v12121_v42  ;;  %v8951_v14 = vand.u32 4294901760, %v188_v15  ;;  %v192_v36 = vld [vmem:[%s7946_s3 + $0x60] sm:$0xff] }
 0x129   : > { %12880 = vst [vmem:[#allocation214_spill] sm:$0xff] %v8945_v53  ;;  %v6854_v59 = vpack.c.bf16 %v3663_v26, %v3651_v21  ;;  %v989_v45 = vand.u32 4294901760, %v988_v54  ;;  %v12129_v9 = vand.u32 4294901760, %v8945_v53  ;;  %v3680_v60 = vsub.f32 %v8392_v11, %v12128_v37  ;;  %v12941_v11 = vld [vmem:[#allocation72_spill] sm:$0xff] }
 0x12a   : > { %12881 = vst [vmem:[#allocation215_spill] sm:$0xff] %v8951_v14  ;;  %v599_v1 = vsub.f32 %v8930_v20, %v12125_v23  ;;  %v3669_v21 = vand.u32 4294901760, %v3668_v24  ;;  %v8962_v26 = vsub.f32 %v188_v15, %v8951_v14  ;;  %v12130_v0 = vand.u32 4294901760, %v8396_v28 }
 0x12b   : > { %6855 = vmatpush1.bf16.msra.mxu0 %v6854_v59  ;;  %v12134_v42 = vand.u32 4294901760, %v8399_v2  ;;  %v6088_v5 = vpack.c.bf16 %v989_v45, %v977_v55  ;;  %v3291_v54 = vsub.f32 %v8945_v53, %v12129_v9  ;;  %v3681_v23 = vand.u32 4294901760, %v3680_v60 }
 0x12c   : > { %12882 = vst [vmem:[#allocation216_spill] sm:$0xff] %v8962_v26  ;;  %v600_v49 = vand.u32 4294901760, %v599_v1  ;;  %v12135_v20 = vand.u32 4294901760, %v8962_v26  ;;  %v982_v59 = vsub.f32 %v8396_v28, %v12130_v0  ;;  %v8976_v24 = vand.u32 4294901760, %v192_v36 }
 0x12d   : > { %v994_v15 = vsub.f32 %v8399_v2, %v12134_v42  ;;  %6089 = vmatprep.subr.bf16.mxu1 %v6088_v5  ;;  %v3292_v45 = vand.u32 4294901760, %v3291_v54  ;;  %v6856_v1 = vpack.c.bf16 %v3681_v23, %v3669_v21  ;;  %v12133_v55 = vand.u32 4294901760, %v8403_v29 }
 0x12e   : > { %12883 = vst [vmem:[#allocation217_spill] sm:$0xff] %v8976_v24  ;;  %601 = vmatprep.mubr.f32.mxu1 %v600_v49  ;;  %v12136_v60 = vand.u32 4294901760, %v8405_v8  ;;  %v605_v37 = vsub.f32 %v8962_v26, %v12135_v20  ;;  %v983_v9 = vand.u32 4294901760, %v982_v59  ;;  %v8984_v53 = vsub.f32 %v192_v36, %v8976_v24  ;;  %v12927_v26 = vld [vmem:[#allocation186_spill] sm:$0xff] }
 0x12f   : > { %v995_v0 = vand.u32 4294901760, %v994_v15  ;;  %3293 = vmatprep.mubr.f32.mxu0 %v3292_v45  ;;  %6857 = vmatprep.subr.bf16.mxu0 %v6856_v1  ;;  %v3674_v5 = vsub.f32 %v8403_v29, %v12133_v55  ;;  %v6092_v59 = vpack.c.bf16 %v7960_v17, %v7958_v16  ;;  %v12885_v1 = vld [vmem:[#allocation14_spill] sm:$0xff]  ;;  %v12886_v55 = vld [vmem:[#allocation16_spill] sm:$0xff]  ;;  %v12949_v29 = vld [vmem:[#allocation79_spill] sm:$0xff] }
 0x130   : > { %12884 = vst [vmem:[#allocation218_spill] sm:$0xff] %v8984_v53  ;;  %v3686_v49 = vsub.f32 %v8405_v8, %v12136_v60  ;;  %v606_v23 = vand.u32 4294901760, %v605_v37  ;;  %v12137_v54 = vand.u32 4294901760, %v8984_v53  ;;  %v6860_v42 = vpack.c.bf16 %v12886_v55, %v12885_v1  ;;  %v12887_v60 = vld [vmem:[#allocation195_spill] sm:$0xff]  ;;  %v12920_v55 = vld [vmem:[#allocation168_spill] sm:$0xff]  ;;  %v12935_v16 = vld [vmem:[#allocation58_spill] sm:$0xff] }
 0x131   : > { %v6090_v21 = vpack.c.bf16 %v995_v0, %v983_v9  ;;  %v3675_v15 = vand.u32 4294901760, %v3674_v5  ;;  %v6094_v37 = vpack.c.bf16 %v7973_v27, %v7970_v25  ;;  %v6096_v0 = vpack.c.bf16 %v7987_v46, %v7983_v41  ;;  %v12888_v5 = vld [vmem:[#allocation205_spill] sm:$0xff]  ;;  %v12917_v41 = vld [vmem:[#allocation162_spill] sm:$0xff]  ;;  %v12923_v17 = vld [vmem:[#allocation172_spill] sm:$0xff] }
 0x132   : > { %v3687_v36 = vand.u32 4294901760, %v3686_v49  ;;  %607 = vmatmul.mubr.f32.gmra.mrb[2].mxu1 %v606_v23  ;;  %v3297_v45 = vsub.f32 %v8984_v53, %v12137_v54  ;;  %v12889_v49 = vld [vmem:[#allocation206_spill] sm:$0xff]  ;;  %v6862_v23 = vpack.c.bf16 %v7981_v40, %v7979_v39  ;;  %v12890_v54 = vld [vmem:[#allocation61_spill] sm:$0xff]  ;;  %v12913_v40 = vld [vmem:[#allocation156_spill] sm:$0xff] }
 0x133   : > { %6091 = vmatpush1.bf16.msra.mxu1 %v6090_v21  ;;  %998 = vmatprep.mubr.f32.mxu1 %v12887_v60  ;;  %v6864_v21 = vpack.c.bf16 %v7994_v50, %v7991_v48  ;;  %v12904_v60 = vld [vmem:[#allocation142_spill] sm:$0xff]  ;;  %v12921_v50 = vld [vmem:[#allocation169_spill] sm:$0xff]  ;;  %v12926_v25 = vld [vmem:[#allocation184_spill] sm:$0xff] }
 0x134   : > { %v6858_v20 = vpack.c.bf16 %v3687_v36, %v3675_v15  ;;  %v3298_v9 = vand.u32 4294901760, %v3297_v45  ;;  %6093 = vmatprep.subr.bf16.mxu1 %v6092_v59  ;;  %v6098_v59 = vpack.c.bf16 %v8002_v61, %v7996_v52  ;;  %v6868_v15 = vpack.c.bf16 %v8021_v13, %v8019_v12  ;;  %v12898_v13 = vld [vmem:[#allocation133_spill] sm:$0xff]  ;;  %v12901_v12 = vld [vmem:[#allocation138_spill] sm:$0xff]  ;;  %v12910_v52 = vld [vmem:[#allocation151_spill] sm:$0xff] }
 0x135   : > { %v6102_v36 = vpack.c.bf16 %v8030_v34, %v8028_v33  ;;  %v6870_v45 = vpack.c.bf16 %v8036_v44, %v8034_v43  ;;  %v12893_v34 = vld [vmem:[#allocation126_spill] sm:$0xff]  ;;  %v12894_v44 = vld [vmem:[#allocation127_spill] sm:$0xff]  ;;  %v12895_v33 = vld [vmem:[#allocation129_spill] sm:$0xff] }
 0x136   : > { %6859 = vmatpush1.bf16.msra.mxu0 %v6858_v20  ;;  %1000 = vmatmul.mubr.f32.vlgmr.msra.gmra.mrb[0].mxu1 %v12889_v49  ;;  %v6866_v20 = vpack.c.bf16 %v8008_v4, %v8004_v62  ;;  %v12891_v49 = vld [vmem:[#allocation122_spill] sm:$0xff]  ;;  %v12903_v4 = vld [vmem:[#allocation141_spill] sm:$0xff]  ;;  %v12928_v1 = vld [vmem:[#allocation187_spill] sm:$0xff] }
 0x137   : > { %3299 = vmatmul.mubr.f32.gmra.mrb[2].mxu0 %v3298_v9  ;;  %6861 = vmatprep.subr.bf16.mxu0 %v6860_v42  ;;  %v6100_v42 = vpack.c.bf16 %v8015_v10, %v8012_v6  ;;  %v6104_v9 = vpack.c.bf16 %v8044_v56, %v8040_v51  ;;  %v12896_v56 = vld [vmem:[#allocation130_spill] sm:$0xff]  ;;  %v12897_v51 = vld [vmem:[#allocation132_spill] sm:$0xff]  ;;  %v12906_v62 = vld [vmem:[#allocation145_spill] sm:$0xff] }
 0x138   : > { %3690 = vmatprep.mubr.f32.mxu0 %v12888_v5  ;;  %6095 = vmatpush1.bf16.msra.mxu1 %v6094_v37  ;;  %v6872_v37 = vpack.c.bf16 %v8051_v63, %v8048_v58  ;;  %v12892_v5 = vld [vmem:[#allocation124_spill] sm:$0xff]  ;;  %v12899_v58 = vld [vmem:[#allocation134_spill] sm:$0xff]  ;;  %v12911_v63 = vld [vmem:[#allocation153_spill] sm:$0xff] }
 0x139   : > { %6097 = vmatprep.subr.bf16.mxu1 %v6096_v0  ;;  %v6106_v0 = vpack.c.bf16 %v8058_v35, %v8054_v19  ;;  %v12900_v35 = vld [vmem:[#allocation136_spill] sm:$0xff]  ;;  %v12907_v43 = vld [vmem:[#allocation146_spill] sm:$0xff]  ;;  %v12914_v19 = vld [vmem:[#allocation157_spill] sm:$0xff]  ;;  %1006 = vmatprep.mubr.f32.mxu1 %v8923_v38 }
 0x13a   : > { %v12908_v6 = vld [vmem:[#allocation148_spill] sm:$0xff]  ;;  %v12924_v38 = vld [vmem:[#allocation175_spill] sm:$0xff]  ;;  %v12925_v10 = vld [vmem:[#allocation181_spill] sm:$0xff]  ;;  %1008 = vmatmul.mubr.f32.gmra.mrb[2].mxu1 %v8951_v14 }
 0x13b   : > { %3692 = vmatmul.mubr.f32.vlgmr.msra.gmra.mrb[0].mxu0 %v8459_v32  ;;  %v6108_v32 = vpack.c.bf16 %v12890_v54, %v8068_v3  ;;  %v12902_v54 = vld [vmem:[#allocation139_spill] sm:$0xff]  ;;  %v12915_v3 = vld [vmem:[#allocation158_spill] sm:$0xff]  ;;  %v12931_v39 = vld [vmem:[#allocation192_spill] sm:$0xff] }
 0x13c   : > { %6863 = vmatpush1.bf16.msra.mxu0 %v6862_v23  ;;  %6099 = vmatpush1.bf16.msra.mxu1 %v6098_v59  ;;  %v12905_v59 = vld [vmem:[#allocation144_spill] sm:$0xff]  ;;  %v12909_v23 = vld [vmem:[#allocation150_spill] sm:$0xff]  ;;  %v12934_v53 = vld [vmem:[#allocation57_spill] sm:$0xff] }
 0x13d   : > { %6865 = vmatprep.subr.bf16.mxu0 %v6864_v21  ;;  %6101 = vmatprep.subr.bf16.mxu1 %v6100_v42  ;;  %v12912_v42 = vld [vmem:[#allocation154_spill] sm:$0xff]  ;;  %v12916_v21 = vld [vmem:[#allocation160_spill] sm:$0xff]  ;;  %v12942_v46 = vld [vmem:[#allocation73_spill] sm:$0xff] }
 0x13e   : > { %v12937_v48 = vld [vmem:[#allocation62_spill] sm:$0xff]  ;;  %v12944_v61 = vld [vmem:[#allocation69_spill] sm:$0xff] }
 0x140   : > { %6867 = vmatpush1.bf16.msra.mxu0 %v6866_v20  ;;  %6103 = vmatpush1.bf16.msra.mxu1 %v6102_v36  ;;  %v12932_v20 = vld [vmem:[#allocation213_spill] sm:$0xff]  ;;  %v12936_v36 = vld [vmem:[#allocation204_spill] sm:$0xff] }
 0x141   : > { %6869 = vmatprep.subr.bf16.mxu0 %v6868_v15  ;;  %6105 = vmatprep.subr.bf16.mxu1 %v6104_v9  ;;  %v6874_v15 = vpack.c.bf16 %v12935_v16, %v12934_v53  ;;  %v12939_v9 = vld [vmem:[#allocation66_spill] sm:$0xff]  ;;  %v12943_v16 = vld [vmem:[#allocation207_spill] sm:$0xff] }
 0x142   : > { %3698 = vmatprep.mubr.f32.mxu0 %v12932_v20  ;;  %1208 = vmatprep.mubr.f32.mxu1 %v12936_v36  ;;  %v12938_v20 = vld [vmem:[#allocation64_spill] sm:$0xff]  ;;  %v6110_v14 = vpack.c.bf16 %v12940_v30, %v12939_v9  ;;  %v12945_v53 = vld [vmem:[#allocation70_spill] sm:$0xff]  ;;  %v12951_v9 = vld [vmem:[#allocation85_spill] sm:$0xff] }
 0x143   : > { %v6876_v27 = vpack.c.bf16 %v12938_v20, %v12937_v48  ;;  %3700 = vmatmul.mubr.f32.gmra.mrb[2].mxu0 %v8976_v24  ;;  %v6878_v36 = vpack.c.bf16 %v12945_v53, %v12944_v61  ;;  %v12948_v48 = vld [vmem:[#allocation78_spill] sm:$0xff]  ;;  %v12952_v24 = vld [vmem:[#allocation81_spill] sm:$0xff]  ;;  %v12955_v53 = vld [vmem:[#allocation88_spill] sm:$0xff] }
 0x144   : > { %6871 = vmatpush1.bf16.msra.mxu0 %v6870_v45  ;;  %6107 = vmatpush1.bf16.msra.mxu1 %v6106_v0  ;;  %v6112_v45 = vpack.c.bf16 %v12942_v46, %v12941_v11  ;;  %v12947_v0 = vld [vmem:[#allocation76_spill] sm:$0xff]  ;;  %v6114_v30 = vpack.c.bf16 %v12949_v29, %v12948_v48  ;;  %v12953_v11 = vld [vmem:[#allocation82_spill] sm:$0xff]  ;;  %v12957_v61 = vld [vmem:[#allocation91_spill] sm:$0xff] }
 0x145   : > { %6873 = vmatprep.subr.bf16.mxu0 %v6872_v37  ;;  %6109 = vmatprep.subr.bf16.mxu1 %v6108_v32  ;;  %v12946_v37 = vld [vmem:[#allocation74_spill] sm:$0xff]  ;;  %v12950_v32 = vld [vmem:[#allocation84_spill] sm:$0xff] }
 0x146   : > { %3900 = vmatprep.mubr.f32.mxu0 %v12943_v16  ;;  %v6880_v20 = vpack.c.bf16 %v12947_v0, %v12946_v37  ;;  %v6116_v46 = vpack.c.bf16 %v12951_v9, %v12950_v32  ;;  %v6882_v16 = vpack.c.bf16 %v12953_v11, %v12952_v24  ;;  %v12958_v0 = vld [vmem:[#allocation96_spill] sm:$0xff]  ;;  %v12959_v37 = vld [vmem:[#allocation97_spill] sm:$0xff]  ;;  %v12961_v48 = vld [vmem:[#allocation94_spill] sm:$0xff] }
 0x147   : > { %v6120_v29 = vpack.c.bf16 %v12959_v37, %v12958_v0  ;;  %v12963_v11 = vld [vmem:[#allocation100_spill] sm:$0xff]  ;;  %v12965_v24 = vld [vmem:[#allocation103_spill] sm:$0xff] }
 0x148   : > { %6875 = vmatpush1.bf16.msra.mxu0 %v6874_v15  ;;  %6111 = vmatpush1.bf16.msra.mxu1 %v6110_v14  ;;  %v12954_v15 = vld [vmem:[#allocation86_spill] sm:$0xff] }
 0x149   : > { %6877 = vmatprep.subr.bf16.mxu0 %v6876_v27  ;;  %6113 = vmatprep.subr.bf16.mxu1 %v6112_v45  ;;  %v6884_v27 = vpack.c.bf16 %v12955_v53, %v12954_v15  ;;  %v12956_v14 = vld [vmem:[#allocation90_spill] sm:$0xff]  ;;  %v12960_v45 = vld [vmem:[#allocation93_spill] sm:$0xff]  ;;  %v12966_v53 = vld [vmem:[#allocation108_spill] sm:$0xff] }
 0x14a   : > { %v6118_v8 = vpack.c.bf16 %v12957_v61, %v12956_v14  ;;  %v6886_v9 = vpack.c.bf16 %v12961_v48, %v12960_v45  ;;  %v12967_v15 = vld [vmem:[#allocation109_spill] sm:$0xff]  ;;  %v12969_v14 = vld [vmem:[#allocation106_spill] sm:$0xff]  ;;  %v12971_v48 = vld [vmem:[#allocation112_spill] sm:$0xff] }
 0x14b   : > { %v6124_v61 = vpack.c.bf16 %v12967_v15, %v12966_v53  ;;  %v12973_v45 = vld [vmem:[#allocation115_spill] sm:$0xff] }
 0x14c   : > { %6879 = vmatpush1.bf16.msra.mxu0 %v6878_v36  ;;  %6115 = vmatpush1.bf16.msra.mxu1 %v6114_v30  ;;  %v12962_v36 = vld [vmem:[#allocation98_spill] sm:$0xff] }
 0x14d   : > { %6881 = vmatprep.subr.bf16.mxu0 %v6880_v20  ;;  %6117 = vmatprep.subr.bf16.mxu1 %v6116_v46  ;;  %v6888_v20 = vpack.c.bf16 %v12963_v11, %v12962_v36  ;;  %v12964_v30 = vld [vmem:[#allocation102_spill] sm:$0xff]  ;;  %v12968_v46 = vld [vmem:[#allocation105_spill] sm:$0xff]  ;;  %v12974_v11 = vld [vmem:[#allocation120_spill] sm:$0xff] }
 0x14e   : > { %v6122_v32 = vpack.c.bf16 %v12965_v24, %v12964_v30  ;;  %v6890_v37 = vpack.c.bf16 %v12969_v14, %v12968_v46  ;;  %v12975_v36 = vld [vmem:[#allocation121_spill] sm:$0xff]  ;;  %v12977_v30 = vld [vmem:[#allocation118_spill] sm:$0xff] }
 0x14f   : > { %v6128_v24 = vpack.c.bf16 %v12975_v36, %v12974_v11 }
 0x150   : > { %6883 = vmatpush1.bf16.msra.mxu0 %v6882_v16  ;;  %6119 = vmatpush1.bf16.msra.mxu1 %v6118_v8  ;;  %v12970_v16 = vld [vmem:[#allocation110_spill] sm:$0xff] }
 0x151   : > { %6885 = vmatprep.subr.bf16.mxu0 %v6884_v27  ;;  %6121 = vmatprep.subr.bf16.mxu1 %v6120_v29  ;;  %v6892_v27 = vpack.c.bf16 %v12971_v48, %v12970_v16  ;;  %v12972_v8 = vld [vmem:[#allocation114_spill] sm:$0xff]  ;;  %v12976_v29 = vld [vmem:[#allocation117_spill] sm:$0xff] }
 0x152   : > { %v6126_v0 = vpack.c.bf16 %v12973_v45, %v12972_v8  ;;  %v6894_v15 = vpack.c.bf16 %v12977_v30, %v12976_v29 }
 0x154   : > { %6887 = vmatpush1.bf16.msra.mxu0 %v6886_v9  ;;  %6123 = vmatpush1.bf16.msra.mxu1 %v6122_v32  ;;  %v12978_v9 = vpack.c.bf16 %v12892_v5, %v12891_v49  ;;  %v12979_v32 = vpack.c.bf16 %v12894_v44, %v12893_v34 }
 0x155   : > { %6889 = vmatprep.subr.bf16.mxu0 %v6888_v20  ;;  %6125 = vmatprep.subr.bf16.mxu1 %v6124_v61  ;;  %v12980_v61 = vpack.c.bf16 %v12898_v13, %v12897_v51  ;;  %v12985_v20 = vpack.c.bf16 %v12904_v60, %v12903_v4 }
 0x158   : > { %6891 = vmatpush1.bf16.msra.mxu0 %v6890_v37  ;;  %6127 = vmatpush1.bf16.msra.mxu1 %v6126_v0  ;;  %v12981_v37 = vpack.c.bf16 %v12896_v56, %v12895_v33  ;;  %v12983_v0 = vpack.c.bf16 %v12902_v54, %v12901_v12 }
 0x159   : > { %6893 = vmatprep.subr.bf16.mxu0 %v6892_v27  ;;  %6129 = vmatprep.subr.bf16.mxu1 %v6128_v24  ;;  %v12982_v24 = vpack.c.bf16 %v12900_v35, %v12899_v58  ;;  %v12986_v27 = vpack.c.bf16 %v12908_v6, %v12907_v43 }
 0x15c   : > { %6895 = vmatpush1.bf16.msra.mxu0 %v6894_v15  ;;  %6131 = vmatpush1.bf16.msra.mxu1 %v12979_v32  ;;  %v12984_v15 = vpack.c.bf16 %v12906_v62, %v12905_v59  ;;  %v12988_v32 = vpack.c.bf16 %v12914_v19, %v12913_v40 }
 0x15d   : > { %6897 = vmatprep.subr.bf16.mxu0 %v12978_v9  ;;  %6133 = vmatprep.subr.bf16.mxu1 %v12980_v61  ;;  %v12987_v9 = vpack.c.bf16 %v12910_v52, %v12909_v23  ;;  %v12989_v61 = vpack.c.bf16 %v12912_v42, %v12911_v63 }
 0x160   : > { %6899 = vmatpush1.bf16.msra.mxu0 %v12981_v37  ;;  %6135 = vmatpush1.bf16.msra.mxu1 %v12983_v0  ;;  %v12990_v37 = vpack.c.bf16 %v12916_v21, %v12915_v3  ;;  %v12992_v0 = vpack.c.bf16 %v12921_v50, %v12920_v55  ;;  %v13098_v50 = vld [vmem:[#allocation19_spill] sm:$0xff] }
 0x161   : > { %6901 = vmatprep.subr.bf16.mxu0 %v12982_v24  ;;  %6137 = vmatprep.subr.bf16.mxu1 %v12984_v15  ;;  %v12991_v24 = vpack.c.bf16 %v12861_v31, %v12917_v41  ;;  %v12993_v15 = vld [vmem:[#allocation166_spill] sm:$0xff] }
 0x164   : > { %6903 = vmatpush1.bf16.msra.mxu0 %v12985_v20  ;;  %6139 = vmatpush1.bf16.msra.mxu1 %v12987_v9  ;;  %v12994_v20 = vld [vmem:[#allocation165_spill] sm:$0xff]  ;;  %v12996_v9 = vld [vmem:[#allocation170_spill] sm:$0xff] }
 0x165   : > { %6905 = vmatprep.subr.bf16.mxu0 %v12986_v27  ;;  %6141 = vmatprep.subr.bf16.mxu1 %v12988_v32  ;;  %v12995_v27 = vpack.c.bf16 %v12993_v15, %v12994_v20  ;;  %v12997_v32 = vpack.c.bf16 %v12923_v17, %v12996_v9  ;;  %v13096_v9 = vld [vmem:[#allocation18_spill] sm:$0xff]  ;;  %v13104_v15 = vld [vmem:[#allocation201_spill] sm:$0xff] }
 0x166   : > { %v13120_v20 = vld [vmem:[#allocation37_spill] sm:$0xff] }
 0x168   : > { %6907 = vmatpush1.bf16.msra.mxu0 %v12989_v61  ;;  %6143 = vmatpush1.bf16.msra.mxu1 %v12991_v24  ;;  %v12998_v61 = vld [vmem:[#allocation174_spill] sm:$0xff]  ;;  %v13001_v24 = vpack.c.bf16 %v12870_v57, %v12869_v22 }
 0x169   : > { %6909 = vmatprep.subr.bf16.mxu0 %v12990_v37  ;;  %6145 = vmatprep.subr.bf16.mxu1 %v12992_v0  ;;  %v12999_v21 = vpack.c.bf16 %v12924_v38, %v12998_v61  ;;  %v13000_v37 = vpack.c.bf16 %v12925_v10, %v12871_v18  ;;  %v13002_v0 = vpack.c.bf16 %v12926_v25, %v12873_v7  ;;  %v13006_v38 = vld [vmem:[#allocation189_spill] sm:$0xff]  ;;  %v13009_v18 = vld [vmem:[#allocation194_spill] sm:$0xff]  ;;  %v13040_v7 = vld [vmem:[#allocation59_spill] sm:$0xff] }
 0x16a   : > { %v13039_v25 = vld [vmem:[#allocation54_spill] sm:$0xff] }
 0x16c   : > { %6911 = vmatpush1.bf16.msra.mxu0 %v12995_v27  ;;  %6147 = vmatpush1.bf16.msra.mxu1 %v12999_v21  ;;  %v13003_v27 = vpack.c.bf16 %v12928_v1, %v12927_v26  ;;  %v13005_v21 = vld [vmem:[#allocation190_spill] sm:$0xff]  ;;  %v13013_v1 = vld [vmem:[#allocation203_spill] sm:$0xff] }
 0x16d   : > { %6913 = vmatprep.subr.bf16.mxu0 %v12997_v32  ;;  %6149 = vmatprep.subr.bf16.mxu1 %v13000_v37  ;;  %v13004_v32 = vpack.c.bf16 %v12877_v47, %v12931_v39  ;;  %v13007_v10 = vpack.c.bf16 %v13005_v21, %v13006_v38  ;;  %v13008_v37 = vld [vmem:[#allocation197_spill] sm:$0xff]  ;;  %v13016_v47 = vld [vmem:[#allocation208_spill] sm:$0xff] }
 0x16e   : > { %v13010_v57 = vpack.c.bf16 %v13008_v37, %v13009_v18  ;;  %v13018_v39 = vld [vmem:[#allocation17_spill] sm:$0xff]  ;;  %v13020_v37 = vld [vmem:[#allocation212_spill] sm:$0xff]  ;;  %v13032_v18 = vld [vmem:[#allocation207_spill] sm:$0xff] }
 0x16f   : > { %v13033_v21 = vand.u32 4294901760, %v13032_v18  ;;  %v13035_v38 = vld [vmem:[#allocation41_spill] sm:$0xff] }
 0x170   : > { %6915 = vmatpush1.bf16.msra.mxu0 %v13001_v24  ;;  %6151 = vmatpush1.bf16.msra.mxu1 %v13003_v27  ;;  %v13011_v24 = vpack.c.bf16 %v8399_v2, %v8396_v28  ;;  %v13014_v27 = vld [vmem:[#allocation202_spill] sm:$0xff]  ;;  %v13022_v2 = vld [vmem:[#allocation20_spill] sm:$0xff]  ;;  %v13031_v28 = vld [vmem:[#allocation33_spill] sm:$0xff] }
 0x171   : > { %6917 = vmatprep.subr.bf16.mxu0 %v13002_v0  ;;  %6153 = vmatprep.subr.bf16.mxu1 %v13004_v32  ;;  %v13012_v0 = vld [vmem:[#allocation11_spill] sm:$0xff]  ;;  %v13015_v26 = vpack.c.bf16 %v13013_v1, %v13014_v27  ;;  %v13025_v1 = vld [vmem:[#allocation30_spill] sm:$0xff]  ;;  %v13027_v27 = vld [vmem:[#allocation216_spill] sm:$0xff] }
 0x172   : > { %v13017_v32 = vld [vmem:[#allocation15_spill] sm:$0xff]  ;;  %v13043_v18 = vld [vmem:[#allocation65_spill] sm:$0xff] }
 0x174   : > { %6919 = vmatpush1.bf16.msra.mxu0 %v13007_v10  ;;  %6155 = vmatpush1.bf16.msra.mxu1 %v13011_v24  ;;  %v13019_v10 = vld [vmem:[#allocation24_spill] sm:$0xff]  ;;  %v13023_v24 = vld [vmem:[#allocation214_spill] sm:$0xff] }
 0x175   : > { %6921 = vmatprep.subr.bf16.mxu0 %v13010_v57  ;;  %6157 = vmatprep.subr.bf16.mxu1 %v13012_v0  ;;  %v13021_v57 = vld [vmem:[#allocation210_spill] sm:$0xff] }
 0x176   : > { %v13024_v0 = vld [vmem:[#allocation26_spill] sm:$0xff] }
 0x177   : > { %1211 = vmatmul.mubr.f32.vlgmr.msra.gmra.mrb[0].mxu1 %v13016_v47 }
 0x178   : > { %6923 = vmatpush1.bf16.msra.mxu0 %v13015_v26  ;;  %6159 = vmatpush1.bf16.msra.mxu1 %v13018_v39  ;;  %v13026_v26 = vld [vmem:[#allocation35_spill] sm:$0xff]  ;;  %v13029_v39 = vld [vmem:[#allocation204_spill] sm:$0xff] }
 0x179   : > { %6925 = vmatprep.subr.bf16.mxu0 %v13017_v32  ;;  %6161 = vmatprep.subr.bf16.mxu1 %v13019_v10  ;;  %v13028_v32 = vld [vmem:[#allocation218_spill] sm:$0xff]  ;;  %v13030_v10 = vand.u32 4294901760, %v13029_v39  ;;  %v13041_v39 = vld [vmem:[#allocation56_spill] sm:$0xff] }
 0x17a   : > { %1218 = vmatprep.mubr.f32.mxu1 %v13020_v37 }
 0x17b   : > { %3903 = vmatmul.mubr.f32.vlgmr.msra.gmra.mrb[0].mxu0 %v13021_v57  ;;  %1221 = vmatmul.mubr.f32.gmra.mrb[2].mxu1 %v13027_v27 }
 0x17c   : > { %6927 = vmatpush1.bf16.msra.mxu0 %v13022_v2  ;;  %3910 = vmatprep.mubr.f32.mxu0 %v13023_v24  ;;  %v13034_v2 = vld [vmem:[#allocation38_spill] sm:$0xff] }
 0x17d   : > { %6929 = vmatprep.subr.bf16.mxu0 %v13024_v0  ;;  %6163 = vmatpush1.bf16.msra.mxu1 %v13025_v1  ;;  %v13036_v0 = vld [vmem:[#allocation47_spill] sm:$0xff]  ;;  %v13037_v1 = vld [vmem:[#allocation44_spill] sm:$0xff] }
 0x17e   : > { %6165 = vmatprep.subr.bf16.mxu1 %v13026_v26  ;;  %1358 = vmatprep.mubr.f32.mxu1 %v13030_v10  ;;  %v13038_v26 = vld [vmem:[#allocation50_spill] sm:$0xff]  ;;  %v13042_v10 = vld [vmem:[#allocation63_spill] sm:$0xff] }
 0x17f   : > { %3913 = vmatmul.mubr.f32.gmra.mrb[2].mxu0 %v13028_v32 }
 0x180   : > { %6931 = vmatpush1.bf16.msra.mxu0 %v13031_v28  ;;  %4050 = vmatprep.mubr.f32.mxu0 %v13033_v21  ;;  %v13044_v21 = vld [vmem:[#allocation71_spill] sm:$0xff]  ;;  %v13087_v28 = vld [vmem:[#allocation13_spill] sm:$0xff] }
 0x181   : > { %6933 = vmatprep.subr.bf16.mxu0 %v13034_v2  ;;  %6167 = vmatpush1.bf16.msra.mxu1 %v13035_v38  ;;  %v13045_v2 = vld [vmem:[#allocation68_spill] sm:$0xff]  ;;  %v13046_v38 = vld [vmem:[#allocation75_spill] sm:$0xff] }
 0x182   : > { %6169 = vmatprep.subr.bf16.mxu1 %v13036_v0  ;;  %v13047_v0 = vld [vmem:[#allocation77_spill] sm:$0xff] }
 0x184   : > { %6935 = vmatpush1.bf16.msra.mxu0 %v13037_v1  ;;  %v13048_v1 = vld [vmem:[#allocation83_spill] sm:$0xff] }
 0x185   : > { %6937 = vmatprep.subr.bf16.mxu0 %v13038_v26  ;;  %6171 = vmatpush1.bf16.msra.mxu1 %v13039_v25  ;;  %v13049_v26 = vld [vmem:[#allocation80_spill] sm:$0xff]  ;;  %v13050_v25 = vld [vmem:[#allocation87_spill] sm:$0xff] }
 0x186   : > { %6173 = vmatprep.subr.bf16.mxu1 %v13040_v7  ;;  %v13051_v7 = vld [vmem:[#allocation89_spill] sm:$0xff] }
 0x188   : > { %6939 = vmatpush1.bf16.msra.mxu0 %v13041_v39  ;;  %v13052_v39 = vld [vmem:[#allocation95_spill] sm:$0xff] }
 0x189   : > { %6941 = vmatprep.subr.bf16.mxu0 %v13042_v10  ;;  %6175 = vmatpush1.bf16.msra.mxu1 %v13043_v18  ;;  %v13053_v10 = vld [vmem:[#allocation92_spill] sm:$0xff]  ;;  %v13054_v18 = vld [vmem:[#allocation99_spill] sm:$0xff] }
 0x18a   : > { %6177 = vmatprep.subr.bf16.mxu1 %v13044_v21  ;;  %v13055_v21 = vld [vmem:[#allocation101_spill] sm:$0xff] }
 0x18c   : > { %6943 = vmatpush1.bf16.msra.mxu0 %v13045_v2  ;;  %v13056_v2 = vld [vmem:[#allocation107_spill] sm:$0xff] }
 0x18d   : > { %6945 = vmatprep.subr.bf16.mxu0 %v13046_v38  ;;  %6179 = vmatpush1.bf16.msra.mxu1 %v13047_v0  ;;  %v13057_v38 = vld [vmem:[#allocation104_spill] sm:$0xff]  ;;  %v13058_v0 = vld [vmem:[#allocation111_spill] sm:$0xff] }
 0x18e   : > { %6181 = vmatprep.subr.bf16.mxu1 %v13048_v1  ;;  %v13059_v1 = vld [vmem:[#allocation113_spill] sm:$0xff] }
 0x190   : > { %6947 = vmatpush1.bf16.msra.mxu0 %v13049_v26  ;;  %v13060_v26 = vld [vmem:[#allocation119_spill] sm:$0xff] }
 0x191   : > { %6949 = vmatprep.subr.bf16.mxu0 %v13050_v25  ;;  %6183 = vmatpush1.bf16.msra.mxu1 %v13051_v7  ;;  %v13061_v25 = vld [vmem:[#allocation116_spill] sm:$0xff]  ;;  %v13062_v7 = vld [vmem:[#allocation123_spill] sm:$0xff] }
 0x192   : > { %6185 = vmatprep.subr.bf16.mxu1 %v13052_v39  ;;  %v13063_v39 = vld [vmem:[#allocation125_spill] sm:$0xff] }
 0x194   : > { %6951 = vmatpush1.bf16.msra.mxu0 %v13053_v10  ;;  %v13064_v10 = vld [vmem:[#allocation131_spill] sm:$0xff] }
 0x195   : > { %6953 = vmatprep.subr.bf16.mxu0 %v13054_v18  ;;  %6187 = vmatpush1.bf16.msra.mxu1 %v13055_v21  ;;  %v13065_v18 = vld [vmem:[#allocation128_spill] sm:$0xff]  ;;  %v13066_v21 = vld [vmem:[#allocation135_spill] sm:$0xff] }
 0x196   : > { %6189 = vmatprep.subr.bf16.mxu1 %v13056_v2  ;;  %v13067_v2 = vld [vmem:[#allocation137_spill] sm:$0xff] }
 0x198   : > { %6955 = vmatpush1.bf16.msra.mxu0 %v13057_v38  ;;  %v13068_v38 = vld [vmem:[#allocation143_spill] sm:$0xff] }
 0x199   : > { %6957 = vmatprep.subr.bf16.mxu0 %v13058_v0  ;;  %6191 = vmatpush1.bf16.msra.mxu1 %v13059_v1  ;;  %v13069_v0 = vld [vmem:[#allocation140_spill] sm:$0xff]  ;;  %v13070_v1 = vld [vmem:[#allocation147_spill] sm:$0xff] }
 0x19a   : > { %6193 = vmatprep.subr.bf16.mxu1 %v13060_v26  ;;  %v13071_v26 = vld [vmem:[#allocation149_spill] sm:$0xff] }
 0x19c   : > { %6959 = vmatpush1.bf16.msra.mxu0 %v13061_v25  ;;  %v13072_v25 = vld [vmem:[#allocation155_spill] sm:$0xff] }
 0x19d   : > { %6961 = vmatprep.subr.bf16.mxu0 %v13062_v7  ;;  %6195 = vmatpush1.bf16.msra.mxu1 %v13063_v39  ;;  %v13073_v7 = vld [vmem:[#allocation152_spill] sm:$0xff]  ;;  %v13074_v39 = vld [vmem:[#allocation159_spill] sm:$0xff] }
 0x19e   : > { %6197 = vmatprep.subr.bf16.mxu1 %v13064_v10  ;;  %v13075_v10 = vld [vmem:[#allocation161_spill] sm:$0xff] }
 0x1a0   : > { %6963 = vmatpush1.bf16.msra.mxu0 %v13065_v18  ;;  %v13076_v18 = vld [vmem:[#allocation167_spill] sm:$0xff] }
 0x1a1   : > { %6965 = vmatprep.subr.bf16.mxu0 %v13066_v21  ;;  %6199 = vmatpush1.bf16.msra.mxu1 %v13067_v2  ;;  %v13077_v21 = vld [vmem:[#allocation164_spill] sm:$0xff]  ;;  %v13078_v2 = vld [vmem:[#allocation171_spill] sm:$0xff] }
 0x1a2   : > { %6201 = vmatprep.subr.bf16.mxu1 %v13068_v38  ;;  %v13079_v38 = vld [vmem:[#allocation173_spill] sm:$0xff] }
 0x1a4   : > { %6967 = vmatpush1.bf16.msra.mxu0 %v13069_v0  ;;  %v13080_v0 = vld [vmem:[#allocation179_spill] sm:$0xff] }
 0x1a5   : > { %6969 = vmatprep.subr.bf16.mxu0 %v13070_v1  ;;  %6203 = vmatpush1.bf16.msra.mxu1 %v13071_v26  ;;  %v13081_v1 = vld [vmem:[#allocation176_spill] sm:$0xff]  ;;  %v13082_v26 = vld [vmem:[#allocation183_spill] sm:$0xff] }
 0x1a6   : > { %6205 = vmatprep.subr.bf16.mxu1 %v13072_v25  ;;  %v13083_v25 = vld [vmem:[#allocation185_spill] sm:$0xff] }
 0x1a8   : > { %6971 = vmatpush1.bf16.msra.mxu0 %v13073_v7  ;;  %v13084_v7 = vld [vmem:[#allocation191_spill] sm:$0xff] }
 0x1a9   : > { %6973 = vmatprep.subr.bf16.mxu0 %v13074_v39  ;;  %6207 = vmatpush1.bf16.msra.mxu1 %v13075_v10  ;;  %v13085_v39 = vld [vmem:[#allocation12_spill] sm:$0xff] }
 0x1aa   : > { %6209 = vmatprep.subr.bf16.mxu1 %v13076_v18  ;;  %v13086_v10 = vand.u32 4294901760, %v13085_v39  ;;  %v13088_v18 = vand.u32 4294901760, %v13087_v28  ;;  %v13100_v39 = vld [vmem:[#allocation23_spill] sm:$0xff] }
 0x1ab   : > { %v13101_v28 = vand.u32 4294901760, %v13100_v39  ;;  %v13114_v39 = vld [vmem:[#allocation29_spill] sm:$0xff] }
 0x1ac   : > { %6975 = vmatpush1.bf16.msra.mxu0 %v13077_v21  ;;  %v6220_v22 = vpack.c.bf16 %v13088_v18, %v13086_v10  ;;  %v13089_v21 = vld [vmem:[#allocation188_spill] sm:$0xff]  ;;  %v13102_v10 = vld [vmem:[#allocation25_spill] sm:$0xff] }
 0x1ad   : > { %6977 = vmatprep.subr.bf16.mxu0 %v13078_v2  ;;  %6211 = vmatpush1.bf16.msra.mxu1 %v13079_v38  ;;  %v13090_v2 = vld [vmem:[#allocation196_spill] sm:$0xff]  ;;  %v13091_v38 = vld [vmem:[#allocation198_spill] sm:$0xff]  ;;  %v13103_v18 = vand.u32 4294901760, %v13102_v10  ;;  %v13115_v10 = vand.u32 4294901760, %v13114_v39 }
 0x1ae   : > { %6213 = vmatprep.subr.bf16.mxu1 %v13080_v0  ;;  %v13092_v0 = vld [vmem:[#allocation14_spill] sm:$0xff] }
 0x1af   : > { %v13093_v61 = vand.u32 4294901760, %v13092_v0  ;;  %v13106_v0 = vld [vmem:[#allocation21_spill] sm:$0xff] }
 0x1b0   : > { %6979 = vmatpush1.bf16.msra.mxu0 %v13081_v1  ;;  %v13094_v1 = vld [vmem:[#allocation16_spill] sm:$0xff] }
 0x1b1   : > { %6981 = vmatprep.subr.bf16.mxu0 %v13082_v26  ;;  %6215 = vmatpush1.bf16.msra.mxu1 %v13083_v25  ;;  %v13095_v17 = vand.u32 4294901760, %v13094_v1  ;;  %v13097_v25 = vand.u32 4294901760, %v13096_v9  ;;  %v13108_v1 = vld [vmem:[#allocation22_spill] sm:$0xff] }
 0x1b2   : > { %6217 = vmatprep.subr.bf16.mxu1 %v13084_v7  ;;  %v13099_v7 = vand.u32 4294901760, %v13098_v50  ;;  %v13110_v50 = vld [vmem:[#allocation27_spill] sm:$0xff] }
 0x1b3   : > { %v6988_v26 = vpack.c.bf16 %v13095_v17, %v13093_v61  ;;  %v13109_v17 = vand.u32 4294901760, %v13108_v1 }
 0x1b4   : > { %6983 = vmatpush1.bf16.msra.mxu0 %v13089_v21  ;;  %v6222_v55 = vpack.c.bf16 %v13099_v7, %v13097_v25  ;;  %v6224_v21 = vpack.c.bf16 %v13103_v18, %v13101_v28  ;;  %v13111_v25 = vand.u32 4294901760, %v13110_v50  ;;  %v13116_v28 = vld [vmem:[#allocation31_spill] sm:$0xff] }
 0x1b5   : > { %6985 = vmatprep.subr.bf16.mxu0 %v13090_v2  ;;  %6219 = vmatpush1.bf16.msra.mxu1 %v13091_v38  ;;  %v13105_v38 = vand.u32 4294901760, %v13016_v47  ;;  %v13107_v2 = vand.u32 4294901760, %v13106_v0  ;;  %v13117_v18 = vand.u32 4294901760, %v13116_v28  ;;  %v13118_v47 = vld [vmem:[#allocation36_spill] sm:$0xff]  ;;  %v13121_v0 = vand.u32 4294901760, %v13120_v20 }
 0x1b6   : > { %6221 = vmatprep.subr.bf16.mxu1 %v6220_v22  ;;  %v13112_v22 = vld [vmem:[#allocation28_spill] sm:$0xff] }
 0x1b7   : > { %v6990_v61 = vpack.c.bf16 %v13109_v17, %v13107_v2  ;;  %v13113_v7 = vand.u32 4294901760, %v13112_v22  ;;  %v13122_v2 = vand.u32 4294901760, %v13020_v37  ;;  %v13126_v17 = vld [vmem:[#allocation34_spill] sm:$0xff]  ;;  %v13128_v22 = vand.u32 4294901760, %v13023_v24 }
 0x1b8   : > { %6987 = vmatpush1.bf16.msra.mxu0 %v13104_v15  ;;  %1362 = vmatmul.mubr.f32.vlgmr.msra.gmra.mrb[0].mxu1 %v13105_v38  ;;  %v6226_v15 = vpack.c.bf16 %v13117_v18, %v13115_v10  ;;  %v13119_v38 = vand.u32 4294901760, %v13118_v47  ;;  %v13127_v50 = vand.u32 4294901760, %v13126_v17  ;;  %v13133_v10 = vld [vmem:[#allocation42_spill] sm:$0xff]  ;;  %v13137_v47 = vld [vmem:[#allocation48_spill] sm:$0xff]  ;;  %v13141_v24 = vand.u32 4294901760, %v13027_v27 }
 0x1b9   : > { %6989 = vmatprep.subr.bf16.mxu0 %v6988_v26  ;;  %6223 = vmatpush1.bf16.msra.mxu1 %v6222_v55  ;;  %v6992_v9 = vpack.c.bf16 %v13113_v7, %v13111_v25  ;;  %v13123_v55 = vand.u32 4294901760, %v13021_v57  ;;  %v13124_v26 = vld [vmem:[#allocation32_spill] sm:$0xff]  ;;  %v13134_v28 = vand.u32 4294901760, %v13133_v10  ;;  %v13135_v57 = vld [vmem:[#allocation43_spill] sm:$0xff]  ;;  %v13146_v17 = vld [vmem:[#allocation46_spill] sm:$0xff] }
 0x1ba   : > { %6225 = vmatprep.subr.bf16.mxu1 %v6224_v21  ;;  %v6228_v31 = vpack.c.bf16 %v13121_v0, %v13119_v38  ;;  %1370 = vmatprep.mubr.f32.mxu1 %v13122_v2  ;;  %v13125_v1 = vand.u32 4294901760, %v13124_v26  ;;  %v13129_v21 = vld [vmem:[#allocation39_spill] sm:$0xff]  ;;  %v13131_v7 = vld [vmem:[#allocation40_spill] sm:$0xff]  ;;  %v13136_v18 = vand.u32 4294901760, %v13135_v57  ;;  %v13138_v38 = vand.u32 4294901760, %v13137_v47  ;;  %v13139_v0 = vld [vmem:[#allocation49_spill] sm:$0xff] }
 0x1bb   : > { %4054 = vmatmul.mubr.f32.vlgmr.msra.gmra.mrb[0].mxu0 %v13123_v55  ;;  %v13130_v20 = vand.u32 4294901760, %v13129_v21  ;;  %v13132_v39 = vand.u32 4294901760, %v13131_v7  ;;  %v13140_v2 = vand.u32 4294901760, %v13139_v0  ;;  %v13144_v26 = vld [vmem:[#allocation45_spill] sm:$0xff]  ;;  %v13149_v21 = vld [vmem:[#allocation51_spill] sm:$0xff]  ;;  %v13151_v7 = vld [vmem:[#allocation52_spill] sm:$0xff] }
 0x1bc   : > { %6991 = vmatpush1.bf16.msra.mxu0 %v6990_v61  ;;  %v6994_v25 = vpack.c.bf16 %v13127_v50, %v13125_v1  ;;  %4062 = vmatprep.mubr.f32.mxu0 %v13128_v22  ;;  %v6230_v61 = vpack.c.bf16 %v13136_v18, %v13134_v28  ;;  %v13145_v1 = vand.u32 4294901760, %v13144_v26  ;;  %v13147_v50 = vand.u32 4294901760, %v13146_v17  ;;  %v13153_v10 = vld [vmem:[#allocation53_spill] sm:$0xff]  ;;  %v13155_v28 = vld [vmem:[#allocation55_spill] sm:$0xff] }
 0x1bd   : > { %6993 = vmatprep.subr.bf16.mxu0 %v6992_v9  ;;  %6227 = vmatpush1.bf16.msra.mxu1 %v6226_v15  ;;  %v6996_v37 = vpack.c.bf16 %v13132_v39, %v13130_v20  ;;  %v6232_v55 = vpack.c.bf16 %v13140_v2, %v13138_v38  ;;  %v13142_v15 = vand.u32 4294901760, %v13028_v32  ;;  %v13143_v9 = vld [vmem:[#allocation195_spill] sm:$0xff]  ;;  %v13150_v20 = vand.u32 4294901760, %v13149_v21  ;;  %v13159_v38 = vld [vmem:[#allocation61_spill] sm:$0xff] }
 0x1be   : > { %6229 = vmatprep.subr.bf16.mxu1 %v6228_v31  ;;  %1374 = vmatmul.mubr.f32.gmra.mrb[2].mxu1 %v13141_v24  ;;  %v6998_v22 = vpack.c.bf16 %v13147_v50, %v13145_v1  ;;  %v13148_v31 = vld [vmem:[#allocation205_spill] sm:$0xff]  ;;  %v13152_v27 = vand.u32 4294901760, %v13151_v7  ;;  %v13154_v32 = vand.u32 4294901760, %v13153_v10  ;;  %v13156_v57 = vand.u32 4294901760, %v13155_v28  ;;  %v13165_v1 = vld [vmem:[#allocation62_spill] sm:$0xff]  ;;  %v13167_v50 = vld [vmem:[#allocation64_spill] sm:$0xff] }
 0x1bf   : > { %4066 = vmatmul.mubr.f32.gmra.mrb[2].mxu0 %v13142_v15  ;;  %1637 = vmatprep.mubr.f32.mxu1 %v13143_v9  ;;  %v13160_v0 = vand.u32 4294901760, %v13159_v38  ;;  %v13161_v24 = vld [vmem:[#allocation57_spill] sm:$0xff]  ;;  %v13166_v17 = vand.u32 4294901760, %v13165_v1  ;;  %v13168_v21 = vand.u32 4294901760, %v13167_v50  ;;  %v13169_v7 = vld [vmem:[#allocation66_spill] sm:$0xff]  ;;  %v13173_v28 = vld [vmem:[#allocation72_spill] sm:$0xff] }
 0x1c0   : > { %6995 = vmatpush1.bf16.msra.mxu0 %v6994_v25  ;;  %4329 = vmatprep.mubr.f32.mxu0 %v13148_v31  ;;  %v7000_v39 = vpack.c.bf16 %v13152_v27, %v13150_v20  ;;  %v6234_v18 = vpack.c.bf16 %v13156_v57, %v13154_v32  ;;  %v13157_v25 = vld [vmem:[#allocation60_spill] sm:$0xff]  ;;  %v13171_v27 = vld [vmem:[#allocation67_spill] sm:$0xff]  ;;  %v13175_v57 = vld [vmem:[#allocation73_spill] sm:$0xff] }
 0x1c1   : > { %6997 = vmatprep.subr.bf16.mxu0 %v6996_v37  ;;  %6231 = vmatpush1.bf16.msra.mxu1 %v6230_v61  ;;  %v13158_v47 = vand.u32 4294901760, %v13157_v25  ;;  %v13162_v37 = vand.u32 4294901760, %v13161_v24  ;;  %v13163_v61 = vld [vmem:[#allocation58_spill] sm:$0xff]  ;;  %v7004_v20 = vpack.c.bf16 %v13168_v21, %v13166_v17  ;;  %v13172_v10 = vand.u32 4294901760, %v13171_v27  ;;  %v13177_v38 = vld [vmem:[#allocation69_spill] sm:$0xff]  ;;  %v13187_v21 = vld [vmem:[#allocation79_spill] sm:$0xff] }
 0x1c2   : > { %6233 = vmatprep.subr.bf16.mxu1 %v6232_v55  ;;  %v13164_v15 = vand.u32 4294901760, %v13163_v61  ;;  %v13170_v55 = vand.u32 4294901760, %v13169_v7  ;;  %v13176_v25 = vand.u32 4294901760, %v13175_v57  ;;  %v13185_v50 = vld [vmem:[#allocation78_spill] sm:$0xff]  ;;  %v13188_v7 = vand.u32 4294901760, %v13187_v21  ;;  %v13189_v27 = vld [vmem:[#allocation84_spill] sm:$0xff] }
 0x1c3   : > { %v6236_v2 = vpack.c.bf16 %v13160_v0, %v13158_v47  ;;  %v13193_v57 = vld [vmem:[#allocation81_spill] sm:$0xff]  ;;  %v13205_v21 = vld [vmem:[#allocation96_spill] sm:$0xff] }
 0x1c4   : > { %6999 = vmatpush1.bf16.msra.mxu0 %v6998_v22  ;;  %v7002_v26 = vpack.c.bf16 %v13164_v15, %v13162_v37  ;;  %v6238_v32 = vpack.c.bf16 %v13172_v10, %v13170_v55  ;;  %v13174_v22 = vand.u32 4294901760, %v13173_v28  ;;  %v13181_v37 = vld [vmem:[#allocation74_spill] sm:$0xff]  ;;  %v13183_v15 = vld [vmem:[#allocation76_spill] sm:$0xff]  ;;  %v13191_v10 = vld [vmem:[#allocation85_spill] sm:$0xff] }
 0x1c5   : > { %7001 = vmatprep.subr.bf16.mxu0 %v7000_v39  ;;  %6235 = vmatpush1.bf16.msra.mxu1 %v6234_v18  ;;  %v13178_v39 = vand.u32 4294901760, %v13177_v38  ;;  %v13179_v18 = vld [vmem:[#allocation70_spill] sm:$0xff]  ;;  %v13182_v61 = vand.u32 4294901760, %v13181_v37  ;;  %v13184_v1 = vand.u32 4294901760, %v13183_v15  ;;  %v13192_v28 = vand.u32 4294901760, %v13191_v10  ;;  %v13209_v10 = vld [vmem:[#allocation93_spill] sm:$0xff] }
 0x1c6   : > { %6237 = vmatprep.subr.bf16.mxu1 %v6236_v2  ;;  %v6240_v47 = vpack.c.bf16 %v13176_v25, %v13174_v22  ;;  %v13180_v0 = vand.u32 4294901760, %v13179_v18  ;;  %v13186_v2 = vand.u32 4294901760, %v13185_v50  ;;  %v13201_v15 = vld [vmem:[#allocation90_spill] sm:$0xff] }
 0x1c7   : > { %v7008_v17 = vpack.c.bf16 %v13184_v1, %v13182_v61  ;;  %v13203_v1 = vld [vmem:[#allocation91_spill] sm:$0xff] }
 0x1c8   : > { %7003 = vmatpush1.bf16.msra.mxu0 %v7002_v26  ;;  %v7006_v24 = vpack.c.bf16 %v13180_v0, %v13178_v39  ;;  %v6242_v55 = vpack.c.bf16 %v13188_v7, %v13186_v2  ;;  %v13190_v26 = vand.u32 4294901760, %v13189_v27  ;;  %v13197_v39 = vld [vmem:[#allocation86_spill] sm:$0xff]  ;;  %v13199_v0 = vld [vmem:[#allocation88_spill] sm:$0xff]  ;;  %v13204_v50 = vand.u32 4294901760, %v13203_v1  ;;  %v13207_v7 = vld [vmem:[#allocation97_spill] sm:$0xff] }
 0x1c9   : > { %7005 = vmatprep.subr.bf16.mxu0 %v7004_v20  ;;  %6239 = vmatpush1.bf16.msra.mxu1 %v6238_v32  ;;  %v13194_v20 = vand.u32 4294901760, %v13193_v57  ;;  %v13195_v32 = vld [vmem:[#allocation82_spill] sm:$0xff]  ;;  %v13198_v18 = vand.u32 4294901760, %v13197_v39  ;;  %v13200_v37 = vand.u32 4294901760, %v13199_v0  ;;  %v13208_v27 = vand.u32 4294901760, %v13207_v7  ;;  %v13222_v1 = vld [vmem:[#allocation109_spill] sm:$0xff] }
 0x1ca   : > { %6241 = vmatprep.subr.bf16.mxu1 %v6240_v47  ;;  %v6244_v22 = vpack.c.bf16 %v13192_v28, %v13190_v26  ;;  %v13196_v25 = vand.u32 4294901760, %v13195_v32  ;;  %v13202_v47 = vand.u32 4294901760, %v13201_v15  ;;  %v13217_v0 = vld [vmem:[#allocation102_spill] sm:$0xff]  ;;  %v13226_v7 = vand.u32 4294901760, %v12970_v16 }
 0x1cb   : > { %v7012_v61 = vpack.c.bf16 %v13200_v37, %v13198_v18  ;;  %v13219_v37 = vld [vmem:[#allocation103_spill] sm:$0xff] }
 0x1cc   : > { %7007 = vmatpush1.bf16.msra.mxu0 %v7006_v24  ;;  %v7010_v38 = vpack.c.bf16 %v13196_v25, %v13194_v20  ;;  %v6246_v2 = vpack.c.bf16 %v13204_v50, %v13202_v47  ;;  %v13206_v24 = vand.u32 4294901760, %v13205_v21  ;;  %v13213_v20 = vld [vmem:[#allocation98_spill] sm:$0xff]  ;;  %v13215_v25 = vld [vmem:[#allocation100_spill] sm:$0xff]  ;;  %v13220_v15 = vand.u32 4294901760, %v13219_v37 }
 0x1cd   : > { %7009 = vmatprep.subr.bf16.mxu0 %v7008_v17  ;;  %6243 = vmatpush1.bf16.msra.mxu1 %v6242_v55  ;;  %v13210_v17 = vand.u32 4294901760, %v13209_v10  ;;  %v13211_v55 = vld [vmem:[#allocation94_spill] sm:$0xff]  ;;  %v13214_v32 = vand.u32 4294901760, %v13213_v20  ;;  %v13216_v39 = vand.u32 4294901760, %v13215_v25  ;;  %v13223_v50 = vand.u32 4294901760, %v13222_v1 }
 0x1ce   : > { %6245 = vmatprep.subr.bf16.mxu1 %v6244_v22  ;;  %v6248_v26 = vpack.c.bf16 %v13208_v27, %v13206_v24  ;;  %v13212_v28 = vand.u32 4294901760, %v13211_v55  ;;  %v13218_v22 = vand.u32 4294901760, %v13217_v0  ;;  %v13227_v27 = vand.u32 4294901760, %v12971_v48 }
 0x1cf   : > { %v7016_v18 = vpack.c.bf16 %v13216_v39, %v13214_v32  ;;  %v13234_v48 = vand.u32 4294901760, %v12891_v49  ;;  %v13235_v20 = vand.u32 4294901760, %v12892_v5  ;;  %v13237_v32 = vand.u32 4294901760, %v12894_v44 }
 0x1d0   : > { %7011 = vmatpush1.bf16.msra.mxu0 %v7010_v38  ;;  %v7014_v57 = vpack.c.bf16 %v13212_v28, %v13210_v17  ;;  %v6250_v47 = vpack.c.bf16 %v13220_v15, %v13218_v22  ;;  %v13221_v38 = vand.u32 4294901760, %v12966_v53  ;;  %v7020_v10 = vpack.c.bf16 %v13227_v27, %v13226_v7 }
 0x1d1   : > { %7013 = vmatprep.subr.bf16.mxu0 %v7012_v61  ;;  %6247 = vmatpush1.bf16.msra.mxu1 %v6246_v2  ;;  %v13224_v61 = vand.u32 4294901760, %v12968_v46  ;;  %v13225_v2 = vand.u32 4294901760, %v12969_v14  ;;  %v13228_v17 = vand.u32 4294901760, %v12972_v8  ;;  %v13230_v53 = vand.u32 4294901760, %v12976_v29 }
 0x1d2   : > { %6249 = vmatprep.subr.bf16.mxu1 %v6248_v26  ;;  %v6252_v21 = vpack.c.bf16 %v13223_v50, %v13221_v38  ;;  %v13229_v26 = vand.u32 4294901760, %v12973_v45  ;;  %v13231_v28 = vand.u32 4294901760, %v12977_v30  ;;  %v13232_v14 = vand.u32 4294901760, %v12974_v11 }
 0x1d3   : > { %v7018_v24 = vpack.c.bf16 %v13225_v2, %v13224_v61  ;;  %v7024_v8 = vpack.c.bf16 %v13235_v20, %v13234_v48  ;;  %v13236_v45 = vand.u32 4294901760, %v12893_v34  ;;  %v13238_v29 = vand.u32 4294901760, %v12895_v33  ;;  %v13259_v61 = vld [vmem:[#allocation160_spill] sm:$0xff] }
 0x1d4   : > { %7015 = vmatpush1.bf16.msra.mxu0 %v7014_v57  ;;  %v6254_v55 = vpack.c.bf16 %v13229_v26, %v13228_v17  ;;  %v7022_v46 = vpack.c.bf16 %v13231_v28, %v13230_v53  ;;  %v13233_v57 = vand.u32 4294901760, %v12975_v36  ;;  %v13239_v30 = vand.u32 4294901760, %v12896_v56  ;;  %v13266_v17 = vld [vmem:[#allocation166_spill] sm:$0xff] }
 0x1d5   : > { %7017 = vmatprep.subr.bf16.mxu0 %v7016_v18  ;;  %6251 = vmatpush1.bf16.msra.mxu1 %v6250_v47  ;;  %v6258_v25 = vpack.c.bf16 %v13237_v32, %v13236_v45  ;;  %v13240_v11 = vand.u32 4294901760, %v12897_v51  ;;  %v13241_v36 = vand.u32 4294901760, %v12898_v13  ;;  %v13242_v49 = vand.u32 4294901760, %v12899_v58  ;;  %v263_v47 = vld [vmem:[#allocation5 + $0x218] sm:$0xff] }
 0x1d6   : > { %v6256_v16 = vpack.c.bf16 %v13233_v57, %v13232_v14  ;;  %6253 = vmatprep.subr.bf16.mxu1 %v6252_v21  ;;  %v7026_v39 = vpack.c.bf16 %v13239_v30, %v13238_v29  ;;  %v13243_v5 = vand.u32 4294901760, %v12900_v35  ;;  %v13244_v34 = vand.u32 4294901760, %v12901_v12  ;;  %v13270_v14 = vld [vmem:[#allocation169_spill] sm:$0xff]  ;;  %v13276_v32 = vld [vmem:[#allocation174_spill] sm:$0xff]  ;;  %v13278_v30 = vld [vmem:[#allocation175_spill] sm:$0xff] }
 0x1d7   : > { %v6260_v18 = vpack.c.bf16 %v13241_v36, %v13240_v11  ;;  %v13245_v44 = vand.u32 4294901760, %v12902_v54  ;;  %v13246_v33 = vand.u32 4294901760, %v12903_v4  ;;  %v13247_v56 = vand.u32 4294901760, %v12904_v60  ;;  %v261_v54 = vld [vmem:[#allocation5 + $0x208] sm:$0xff] }
 0x1d8   : > { %v9471_v0 = vpack.c.bf16 %v13243_v5, %v13242_v49  ;;  %v13248_v13 = vand.u32 4294901760, %v12905_v59  ;;  %v13249_v58 = vand.u32 4294901760, %v12906_v62  ;;  %v13250_v35 = vand.u32 4294901760, %v12907_v43  ;;  %7019 = vmatpush1.bf16.msra.mxu0 %v7018_v24  ;;  %v391_v24 = vld [vmem:[#allocation5 + $0x618] sm:$0xff] }
 0x1d9   : > { %v9477_v22 = vpack.c.bf16 %v13245_v44, %v13244_v34  ;;  %v9483_v51 = vpack.c.bf16 %v13247_v56, %v13246_v33  ;;  %v13251_v12 = vand.u32 4294901760, %v12908_v6  ;;  %v13252_v4 = vand.u32 4294901760, %v12909_v23  ;;  %7021 = vmatprep.subr.bf16.mxu0 %v7020_v10  ;;  %6255 = vmatpush1.bf16.msra.mxu1 %v6254_v55  ;;  %v13272_v10 = vld [vmem:[#allocation170_spill] sm:$0xff]  ;;  %v260_v34 = vld [vmem:[#allocation5 + $0x200] sm:$0xff]  ;;  %v262_v44 = vld [vmem:[#allocation5 + $0x210] sm:$0xff] }
 0x1da   : > { %v9489_v37 = vpack.c.bf16 %v13249_v58, %v13248_v13  ;;  %v13253_v60 = vand.u32 4294901760, %v12910_v52  ;;  %v13254_v59 = vand.u32 4294901760, %v12911_v63  ;;  %v13255_v62 = vand.u32 4294901760, %v12912_v42  ;;  %v389_v52 = vld [vmem:[#allocation5 + $0x608] sm:$0xff]  ;;  %v13262_v42 = vld [vmem:[#allocation163_spill] sm:$0xff]  ;;  %6257 = vmatprep.subr.bf16.mxu1 %v6256_v16  ;;  %v13280_v33 = vld [vmem:[#allocation177_spill] sm:$0xff] }
 0x1db   : > { %v9495_v15 = vpack.c.bf16 %v13251_v12, %v13250_v35  ;;  %v13256_v43 = vand.u32 4294901760, %v12913_v40  ;;  %v13257_v6 = vand.u32 4294901760, %v12914_v19  ;;  %v13258_v21 = vand.u32 4294901760, %v12915_v3  ;;  %v13264_v40 = vld [vmem:[#allocation165_spill] sm:$0xff]  ;;  %v13268_v3 = vld [vmem:[#allocation168_spill] sm:$0xff]  ;;  %v13282_v13 = vld [vmem:[#allocation178_spill] sm:$0xff] }
 0x1dc   : > { %v9501_v38 = vpack.c.bf16 %v13253_v60, %v13252_v4  ;;  %v9507_v1 = vpack.c.bf16 %v13255_v62, %v13254_v59  ;;  %v13260_v23 = vand.u32 4294901760, %v13259_v61  ;;  %v13261_v63 = vand.u32 4294901760, %v12917_v41  ;;  %v13274_v41 = vld [vmem:[#allocation172_spill] sm:$0xff]  ;;  %v13286_v4 = vld [vmem:[#allocation181_spill] sm:$0xff]  ;;  %7023 = vmatpush1.bf16.msra.mxu0 %v7022_v46  ;;  %v13288_v61 = vld [vmem:[#allocation182_spill] sm:$0xff] }
 0x1dd   : > { %v9513_v50 = vpack.c.bf16 %v13257_v6, %v13256_v43  ;;  %v13263_v7 = vand.u32 4294901760, %v13262_v42  ;;  %v13265_v19 = vand.u32 4294901760, %v13264_v40  ;;  %v13267_v26 = vand.u32 4294901760, %v13266_v17  ;;  %v13284_v35 = vld [vmem:[#allocation180_spill] sm:$0xff]  ;;  %v388_v6 = vld [vmem:[#allocation5 + $0x600] sm:$0xff]  ;;  %v13292_v40 = vld [vmem:[#allocation186_spill] sm:$0xff]  ;;  %7025 = vmatprep.subr.bf16.mxu0 %v7024_v8  ;;  %6259 = vmatpush1.bf16.msra.mxu1 %v6258_v25 }
 0x1de   : > { %v9519_v2 = vpack.c.bf16 %v13260_v23, %v13258_v21  ;;  %v13269_v28 = vand.u32 4294901760, %v13268_v3  ;;  %v13271_v57 = vand.u32 4294901760, %v13270_v14  ;;  %v13273_v55 = vand.u32 4294901760, %v13272_v10  ;;  %v390_v21 = vld [vmem:[#allocation5 + $0x610] sm:$0xff]  ;;  %v13294_v17 = vld [vmem:[#allocation187_spill] sm:$0xff]  ;;  %6261 = vmatprep.subr.bf16.mxu1 %v6260_v18  ;;  %v13312_v8 = vld [vmem:[#allocation202_spill] sm:$0xff] }
 0x1df   : > { %v9525_v27 = vpack.c.bf16 %v13263_v7, %v13261_v63  ;;  %v9531_v53 = vpack.c.bf16 %v13267_v26, %v13265_v19  ;;  %v13275_v20 = vand.u32 4294901760, %v13274_v41  ;;  %v13277_v29 = vand.u32 4294901760, %v13276_v32  ;;  %v13290_v63 = vld [vmem:[#allocation184_spill] sm:$0xff] }
 0x1e0   : > { %v9537_v48 = vpack.c.bf16 %v13271_v57, %v13269_v28  ;;  %v13279_v11 = vand.u32 4294901760, %v13278_v30  ;;  %v1798_v49 = vand.u32 4294901760, %v261_v54  ;;  %v1802_v5 = vand.u32 4294901760, %v263_v47  ;;  %v13296_v28 = vld [vmem:[#allocation189_spill] sm:$0xff]  ;;  %v13298_v57 = vld [vmem:[#allocation190_spill] sm:$0xff]  ;;  %v13300_v41 = vld [vmem:[#allocation192_spill] sm:$0xff]  ;;  %7027 = vmatpush1.bf16.msra.mxu0 %v7026_v39 }
 0x1e1   : > { %v9543_v45 = vpack.c.bf16 %v13275_v20, %v13273_v55  ;;  %v13281_v56 = vand.u32 4294901760, %v13280_v33  ;;  %v13283_v16 = vand.u32 4294901760, %v13282_v13  ;;  %v13285_v12 = vand.u32 4294901760, %v13284_v35  ;;  %v13302_v20 = vld [vmem:[#allocation193_spill] sm:$0xff]  ;;  %v265_v30 = vld [vmem:[#allocation5 + $0x228] sm:$0xff]  ;;  %v13308_v35 = vld [vmem:[#allocation199_spill] sm:$0xff]  ;;  %7029 = vmatprep.subr.bf16.mxu0 %v9471_v0  ;;  %6263 = vmatpush1.bf16.msra.mxu1 %v9477_v22 }
 0x1e2   : > { %v9549_v36 = vpack.c.bf16 %v13279_v11, %v13277_v29  ;;  %v13287_v60 = vand.u32 4294901760, %v13286_v4  ;;  %v4490_v62 = vand.u32 4294901760, %v389_v52  ;;  %v4494_v43 = vand.u32 4294901760, %v391_v24  ;;  %v13304_v11 = vld [vmem:[#allocation194_spill] sm:$0xff]  ;;  %v13310_v4 = vld [vmem:[#allocation200_spill] sm:$0xff]  ;;  %6265 = vmatprep.subr.bf16.mxu1 %v9489_v37 }
 0x1e3   : > { %v9555_v58 = vpack.c.bf16 %v13283_v16, %v13281_v56  ;;  %v13289_v23 = vand.u32 4294901760, %v13288_v61  ;;  %v13291_v42 = vand.u32 4294901760, %v13290_v63  ;;  %v13293_v19 = vand.u32 4294901760, %v13292_v40  ;;  %v13306_v56 = vld [vmem:[#allocation197_spill] sm:$0xff]  ;;  %v393_v40 = vld [vmem:[#allocation5 + $0x628] sm:$0xff]  ;;  %v271_v0 = vld [vmem:[#allocation5 + $0x258] sm:$0xff] }
 0x1e4   : > { %v9561_v59 = vpack.c.bf16 %v13287_v60, %v13285_v12  ;;  %v13295_v26 = vand.u32 4294901760, %v13294_v17  ;;  %v13297_v14 = vand.u32 4294901760, %v13296_v28  ;;  %v13299_v10 = vand.u32 4294901760, %v13298_v57  ;;  %v13314_v17 = vld [vmem:[#allocation203_spill] sm:$0xff]  ;;  %7031 = vmatpush1.bf16.msra.mxu0 %v9483_v51  ;;  %v270_v51 = vld [vmem:[#allocation5 + $0x250] sm:$0xff] }
 0x1e5   : > { %v9567_v7 = vpack.c.bf16 %v13291_v42, %v13289_v23  ;;  %v13301_v46 = vand.u32 4294901760, %v13300_v41  ;;  %v13303_v32 = vand.u32 4294901760, %v13302_v20  ;;  %v13305_v33 = vand.u32 4294901760, %v13304_v11  ;;  %v267_v42 = vld [vmem:[#allocation5 + $0x238] sm:$0xff]  ;;  %v264_v41 = vld [vmem:[#allocation5 + $0x220] sm:$0xff]  ;;  %7033 = vmatprep.subr.bf16.mxu0 %v9495_v15  ;;  %6267 = vmatpush1.bf16.msra.mxu1 %v9501_v38  ;;  %v273_v15 = vld [vmem:[#allocation5 + $0x268] sm:$0xff] }
 0x1e6   : > { %v9573_v3 = vpack.c.bf16 %v13295_v26, %v13293_v19  ;;  %v9579_v55 = vpack.c.bf16 %v13299_v10, %v13297_v14  ;;  %v13307_v13 = vand.u32 4294901760, %v13306_v56  ;;  %v13309_v12 = vand.u32 4294901760, %v13308_v35  ;;  %v395_v19 = vld [vmem:[#allocation5 + $0x638] sm:$0xff]  ;;  %6269 = vmatprep.subr.bf16.mxu1 %v9513_v50 }
 0x1e7   : > { %v9585_v29 = vpack.c.bf16 %v13303_v32, %v13301_v46  ;;  %v13311_v60 = vand.u32 4294901760, %v13310_v4  ;;  %v1800_v23 = vand.u32 4294901760, %v260_v34  ;;  %v1804_v63 = vand.u32 4294901760, %v262_v44  ;;  %v266_v46 = vld [vmem:[#allocation5 + $0x230] sm:$0xff] }
 0x1e8   : > { %v9591_v16 = vpack.c.bf16 %v13307_v13, %v13305_v33  ;;  %v13313_v25 = vand.u32 4294901760, %v13312_v8  ;;  %v13315_v26 = vand.u32 4294901760, %v13314_v17  ;;  %v9605_v14 = vpack.c.bf16 %v1802_v5, %v1798_v49  ;;  %v394_v4 = vld [vmem:[#allocation5 + $0x630] sm:$0xff]  ;;  %v269_v8 = vld [vmem:[#allocation5 + $0x248] sm:$0xff]  ;;  %7035 = vmatpush1.bf16.msra.mxu0 %v9507_v1 }
 0x1e9   : > { %v9597_v61 = vpack.c.bf16 %v13311_v60, %v13309_v12  ;;  %v4492_v57 = vand.u32 4294901760, %v388_v6  ;;  %v4496_v10 = vand.u32 4294901760, %v390_v21  ;;  %v9607_v20 = vsub.f32 %v261_v54, %v1798_v49  ;;  %v392_v12 = vld [vmem:[#allocation5 + $0x620] sm:$0xff]  ;;  %v397_v17 = vld [vmem:[#allocation5 + $0x648] sm:$0xff]  ;;  %7037 = vmatprep.subr.bf16.mxu0 %v9519_v2  ;;  %6271 = vmatpush1.bf16.msra.mxu1 %v9525_v27 }
 0x1ea   : > { %v9603_v28 = vpack.c.bf16 %v13315_v26, %v13313_v25  ;;  %13316 = vst [vmem:[#allocation122_spill] sm:$0xff] %v9605_v14  ;;  %v9609_v32 = vsub.f32 %v263_v47, %v1802_v5  ;;  %v9611_v11 = vpack.c.bf16 %v4494_v43, %v4490_v62  ;;  %v9613_v33 = vsub.f32 %v389_v52, %v4490_v62  ;;  %v399_v26 = vld [vmem:[#allocation5 + $0x658] sm:$0xff] }
 0x1eb   : > { %13317 = vst [vmem:[#allocation124_spill] sm:$0xff] %v9607_v20  ;;  %v1806_v18 = vand.u32 4294901760, %v265_v30  ;;  %v1810_v56 = vand.u32 4294901760, %v267_v42  ;;  %v4498_v13 = vand.u32 4294901760, %v393_v40  ;;  %v4502_v35 = vand.u32 4294901760, %v395_v19  ;;  %6273 = vmatprep.subr.bf16.mxu1 %v9537_v48 }
 0x1ec   : > { %13318 = vst [vmem:[#allocation126_spill] sm:$0xff] %v9609_v32  ;;  %13319 = vst [vmem:[#allocation127_spill] sm:$0xff] %v9611_v11  ;;  %v9617_v60 = vsub.f32 %v391_v24, %v4494_v43  ;;  %v9619_v54 = vpack.c.bf16 %v1804_v63, %v1800_v23  ;;  %v1808_v47 = vand.u32 4294901760, %v264_v41  ;;  %v1812_v49 = vand.u32 4294901760, %v266_v46  ;;  %7039 = vmatpush1.bf16.msra.mxu0 %v9531_v53 }
 0x1ed   : > { %13320 = vst [vmem:[#allocation129_spill] sm:$0xff] %v9613_v33  ;;  %v9622_v52 = vsub.f32 %v260_v34, %v1800_v23  ;;  %v9624_v39 = vsub.f32 %v262_v44, %v1804_v63  ;;  %v9626_v5 = vpack.c.bf16 %v4496_v10, %v4492_v57  ;;  %v9628_v62 = vsub.f32 %v388_v6, %v4492_v57  ;;  %v268_v23 = vld [vmem:[#allocation5 + $0x240] sm:$0xff] }
 0x1ee   : > { %13321 = vst [vmem:[#allocation130_spill] sm:$0xff] %v9617_v60  ;;  %13322 = vst [vmem:[#allocation132_spill] sm:$0xff] %v9619_v54  ;;  %v9630_v25 = vsub.f32 %v390_v21, %v4496_v10  ;;  %v9632_v22 = vsub.f32 %v265_v30, %v1806_v18  ;;  %v4500_v24 = vand.u32 4294901760, %v392_v12  ;;  %v4504_v43 = vand.u32 4294901760, %v394_v4  ;;  %v396_v10 = vld [vmem:[#allocation5 + $0x640] sm:$0xff]  ;;  %7041 = vmatprep.subr.bf16.mxu0 %v9543_v45 }
 0x1ef   : > { %13323 = vst [vmem:[#allocation133_spill] sm:$0xff] %v9622_v52  ;;  %13324 = vst [vmem:[#allocation134_spill] sm:$0xff] %v9624_v39  ;;  %v9635_v37 = vpack.c.bf16 %v1810_v56, %v1806_v18  ;;  %v9637_v34 = vsub.f32 %v267_v42, %v1810_v56  ;;  %v9639_v44 = vpack.c.bf16 %v4502_v35, %v4498_v13  ;;  %v1814_v63 = vand.u32 4294901760, %v269_v8  ;;  %v398_v18 = vld [vmem:[#allocation5 + $0x650] sm:$0xff]  ;;  %v276_v45 = vld [vmem:[#allocation5 + $0x280] sm:$0xff] }
 0x1f0   : > { %13325 = vst [vmem:[#allocation136_spill] sm:$0xff] %v9626_v5  ;;  %13326 = vst [vmem:[#allocation138_spill] sm:$0xff] %v9628_v62  ;;  %v9641_v6 = vsub.f32 %v393_v40, %v4498_v13  ;;  %v9645_v21 = vsub.f32 %v395_v19, %v4502_v35  ;;  %v9647_v30 = vpack.c.bf16 %v1812_v49, %v1808_v47  ;;  %v1818_v57 = vand.u32 4294901760, %v271_v0  ;;  %v401_v5 = vld [vmem:[#allocation5 + $0x668] sm:$0xff] }
 0x1f1   : > { %13327 = vst [vmem:[#allocation139_spill] sm:$0xff] %v9630_v25  ;;  %13328 = vst [vmem:[#allocation141_spill] sm:$0xff] %v9632_v22  ;;  %v9650_v42 = vsub.f32 %v264_v41, %v1808_v47  ;;  %v9652_v40 = vsub.f32 %v266_v46, %v1812_v49  ;;  %v4506_v56 = vand.u32 4294901760, %v397_v17  ;;  %v4510_v13 = vand.u32 4294901760, %v399_v26  ;;  %v272_v49 = vld [vmem:[#allocation5 + $0x260] sm:$0xff]  ;;  %6275 = vmatpush1.bf16.msra.mxu1 %v9549_v36  ;;  %v278_v36 = vld [vmem:[#allocation5 + $0x290] sm:$0xff] }
 0x1f2   : > { %13329 = vst [vmem:[#allocation142_spill] sm:$0xff] %v9635_v37  ;;  %13330 = vst [vmem:[#allocation144_spill] sm:$0xff] %v9637_v34  ;;  %v9654_v38 = vpack.c.bf16 %v4504_v43, %v4500_v24  ;;  %v9656_v19 = vsub.f32 %v392_v12, %v4500_v24  ;;  %v9658_v35 = vsub.f32 %v394_v4, %v4504_v43  ;;  %v403_v37 = vld [vmem:[#allocation5 + $0x678] sm:$0xff]  ;;  %v1816_v50 = vand.u32 4294901760, %v268_v23 }
 0x1f3   : > { %13331 = vst [vmem:[#allocation145_spill] sm:$0xff] %v9639_v44  ;;  %13332 = vst [vmem:[#allocation146_spill] sm:$0xff] %v9641_v6  ;;  %v275_v44 = vld [vmem:[#allocation5 + $0x278] sm:$0xff]  ;;  %v1820_v41 = vand.u32 4294901760, %v270_v51  ;;  %v4508_v46 = vand.u32 4294901760, %v396_v10  ;;  %v4512_v47 = vand.u32 4294901760, %v398_v18  ;;  %v9665_v12 = vpack.c.bf16 %v1818_v57, %v1814_v63  ;;  %6277 = vmatprep.subr.bf16.mxu1 %v9561_v59  ;;  %7043 = vmatpush1.bf16.msra.mxu0 %v9555_v58 }
 0x1f4   : > { %13333 = vst [vmem:[#allocation148_spill] sm:$0xff] %v9645_v21  ;;  %13334 = vst [vmem:[#allocation150_spill] sm:$0xff] %v9647_v30  ;;  %v9660_v30 = vsub.f32 %v269_v8, %v1814_v63  ;;  %v9667_v4 = vsub.f32 %v271_v0, %v1818_v57  ;;  %v1822_v8 = vand.u32 4294901760, %v273_v15  ;;  %v1826_v24 = vand.u32 4294901760, %v275_v44  ;;  %7045 = vmatprep.subr.bf16.mxu0 %v9567_v7 }
 0x1f5   : > { %13335 = vst [vmem:[#allocation151_spill] sm:$0xff] %v9650_v42  ;;  %13336 = vst [vmem:[#allocation153_spill] sm:$0xff] %v9652_v40  ;;  %v274_v40 = vld [vmem:[#allocation5 + $0x270] sm:$0xff]  ;;  %v9670_v43 = vpack.c.bf16 %v4510_v13, %v4506_v56  ;;  %v9672_v1 = vsub.f32 %v397_v17, %v4506_v56  ;;  %v9674_v54 = vsub.f32 %v399_v26, %v4510_v13  ;;  %v1824_v27 = vand.u32 4294901760, %v272_v49  ;;  %v277_v56 = vld [vmem:[#allocation5 + $0x288] sm:$0xff] }
 0x1f6   : > { %13337 = vst [vmem:[#allocation154_spill] sm:$0xff] %v9654_v38  ;;  %13338 = vst [vmem:[#allocation156_spill] sm:$0xff] %v9656_v19  ;;  %v4514_v38 = vand.u32 4294901760, %v401_v5  ;;  %v402_v19 = vld [vmem:[#allocation5 + $0x670] sm:$0xff]  ;;  %v9676_v2 = vsub.f32 %v268_v23, %v1816_v50  ;;  %v1828_v63 = vand.u32 4294901760, %v274_v40  ;;  %v9679_v0 = vpack.c.bf16 %v1820_v41, %v1816_v50  ;;  %v405_v50 = vld [vmem:[#allocation5 + $0x688] sm:$0xff]  ;;  %6279 = vmatpush1.bf16.msra.mxu1 %v9573_v3 }
 0x1f7   : > { %13339 = vst [vmem:[#allocation157_spill] sm:$0xff] %v9658_v35  ;;  %13340 = vst [vmem:[#allocation158_spill] sm:$0xff] %v9660_v30  ;;  %v4518_v30 = vand.u32 4294901760, %v403_v37  ;;  %v400_v35 = vld [vmem:[#allocation5 + $0x660] sm:$0xff]  ;;  %v9681_v57 = vsub.f32 %v270_v51, %v1820_v41  ;;  %v9683_v48 = vpack.c.bf16 %v4512_v47, %v4508_v46  ;;  %v9685_v17 = vsub.f32 %v396_v10, %v4508_v46 }
 0x1f8   : > { %13341 = vst [vmem:[#allocation162_spill] sm:$0xff] %v9665_v12  ;;  %13342 = vst [vmem:[#allocation108_spill] sm:$0xff] %v9667_v4  ;;  %v9689_v26 = vsub.f32 %v398_v18, %v4512_v47  ;;  %v9691_v23 = vpack.c.bf16 %v1826_v24, %v1822_v8  ;;  %v4516_v13 = vand.u32 4294901760, %v400_v35  ;;  %v4520_v53 = vand.u32 4294901760, %v402_v19  ;;  %6281 = vmatprep.subr.bf16.mxu1 %v9585_v29 }
 0x1f9   : > { %13343 = vst [vmem:[#allocation105_spill] sm:$0xff] %v9670_v43  ;;  %13344 = vst [vmem:[#allocation106_spill] sm:$0xff] %v9672_v1  ;;  %v279_v43 = vld [vmem:[#allocation5 + $0x298] sm:$0xff]  ;;  %v9694_v51 = vsub.f32 %v273_v15, %v1822_v8  ;;  %v9696_v10 = vsub.f32 %v275_v44, %v1826_v24  ;;  %v9698_v41 = vpack.c.bf16 %v4518_v30, %v4514_v38  ;;  %v4522_v15 = vand.u32 4294901760, %v405_v50 }
 0x1fa   : > { %13345 = vst [vmem:[#allocation110_spill] sm:$0xff] %v9674_v54  ;;  %13346 = vst [vmem:[#allocation112_spill] sm:$0xff] %v9676_v2  ;;  %v9700_v46 = vsub.f32 %v401_v5, %v4514_v38  ;;  %v9702_v18 = vsub.f32 %v403_v37, %v4518_v30  ;;  %v9704_v47 = vpack.c.bf16 %v1828_v63, %v1824_v27  ;;  %v281_v5 = vld [vmem:[#allocation5 + $0x2a8] sm:$0xff]  ;;  %v283_v38 = vld [vmem:[#allocation5 + $0x2b8] sm:$0xff]  ;;  %v1832_v24 = vand.u32 4294901760, %v276_v45 }
 0x1fb   : > { %13347 = vst [vmem:[#allocation114_spill] sm:$0xff] %v9679_v0  ;;  %13348 = vst [vmem:[#allocation115_spill] sm:$0xff] %v9681_v57  ;;  %v407_v0 = vld [vmem:[#allocation5 + $0x698] sm:$0xff]  ;;  %v9707_v59 = vsub.f32 %v272_v49, %v1824_v27  ;;  %v9709_v44 = vsub.f32 %v274_v40, %v1828_v63  ;;  %v9713_v37 = vpack.c.bf16 %v4520_v53, %v4516_v13  ;;  %v409_v63 = vld [vmem:[#allocation5 + $0x6a8] sm:$0xff]  ;;  %v1838_v3 = vand.u32 4294901760, %v281_v5 }
 0x1fc   : > { %13349 = vst [vmem:[#allocation120_spill] sm:$0xff] %v9683_v48  ;;  %13350 = vst [vmem:[#allocation121_spill] sm:$0xff] %v9685_v17  ;;  %v1830_v48 = vand.u32 4294901760, %v277_v56  ;;  %v406_v17 = vld [vmem:[#allocation5 + $0x690] sm:$0xff]  ;;  %v4526_v8 = vand.u32 4294901760, %v407_v0  ;;  %v9715_v30 = vsub.f32 %v400_v35, %v4516_v13  ;;  %v9718_v58 = vsub.f32 %v402_v19, %v4520_v53  ;;  %v280_v35 = vld [vmem:[#allocation5 + $0x2a0] sm:$0xff]  ;;  %7047 = vmatpush1.bf16.msra.mxu0 %v9579_v55 }
 0x1fd   : > { %13351 = vst [vmem:[#allocation117_spill] sm:$0xff] %v9689_v26  ;;  %13352 = vst [vmem:[#allocation118_spill] sm:$0xff] %v9691_v23  ;;  %v1834_v26 = vand.u32 4294901760, %v279_v43  ;;  %v404_v23 = vld [vmem:[#allocation5 + $0x680] sm:$0xff]  ;;  %v4528_v27 = vand.u32 4294901760, %v406_v17  ;;  %v282_v13 = vld [vmem:[#allocation5 + $0x2b0] sm:$0xff]  ;;  %v9729_v29 = vsub.f32 %v405_v50, %v4522_v15  ;;  %7049 = vmatprep.subr.bf16.mxu0 %v9591_v16  ;;  %6283 = vmatpush1.bf16.msra.mxu1 %v9597_v61 }
 0x1fe   : > { %13353 = vst [vmem:[#allocation208_spill] sm:$0xff] %v9694_v51  ;;  %13354 = vst [vmem:[#allocation212_spill] sm:$0xff] %v9696_v10  ;;  %v9720_v40 = vsub.f32 %v277_v56, %v1830_v48  ;;  %v4524_v49 = vand.u32 4294901760, %v404_v23  ;;  %v9731_v19 = vsub.f32 %v407_v0, %v4526_v8  ;;  %v9733_v56 = vsub.f32 %v276_v45, %v1832_v24  ;;  %v408_v53 = vld [vmem:[#allocation5 + $0x6a0] sm:$0xff]  ;;  %v410_v55 = vld [vmem:[#allocation5 + $0x6b0] sm:$0xff] }
 0x1ff   : > { %13355 = vst [vmem:[#allocation210_spill] sm:$0xff] %v9698_v41  ;;  %13356 = vst [vmem:[#allocation214_spill] sm:$0xff] %v9700_v46  ;;  %v9722_v41 = vpack.c.bf16 %v1834_v26, %v1830_v48  ;;  %v9724_v7 = vsub.f32 %v279_v43, %v1834_v26  ;;  %v4530_v26 = vand.u32 4294901760, %v409_v63  ;;  %v13373_v50 = vld [vmem:[#allocation11_spill] sm:$0xff]  ;;  %v9746_v16 = vsub.f32 %v406_v17, %v4528_v27 }
 0x200   : > { %13357 = vst [vmem:[#allocation216_spill] sm:$0xff] %v9702_v18  ;;  %13358 = vst [vmem:[#allocation218_spill] sm:$0xff] %v9704_v47  ;;  %v1836_v47 = vand.u32 4294901760, %v278_v36  ;;  %6285 = vmatprep.subr.bf16.mxu1 %v13373_v50  ;;  %v9742_v0 = vpack.c.bf16 %v4528_v27, %v4524_v49  ;;  %v9744_v45 = vsub.f32 %v404_v23, %v4524_v49  ;;  %7051 = vmatpush1.bf16.msra.mxu0 %v9603_v28  ;;  %v13381_v17 = vld [vmem:[#allocation15_spill] sm:$0xff]  ;;  %v13382_v27 = vld [vmem:[#allocation17_spill] sm:$0xff] }
 0x201   : > { %13359 = vst [vmem:[#allocation204_spill] sm:$0xff] %v9707_v59  ;;  %13360 = vst [vmem:[#allocation207_spill] sm:$0xff] %v9709_v44  ;;  %v411_v44 = vld [vmem:[#allocation5 + $0x6b8] sm:$0xff]  ;;  %v4532_v50 = vand.u32 4294901760, %v408_v53  ;;  %7053 = vmatprep.subr.bf16.mxu0 %v13381_v17  ;;  %v13387_v28 = vld [vmem:[#allocation211_spill] sm:$0xff] }
 0x202   : > { %13361 = vst [vmem:[#allocation12_spill] sm:$0xff] %v9713_v37  ;;  %13362 = vst [vmem:[#allocation13_spill] sm:$0xff] %v9715_v30  ;;  %v1842_v37 = vand.u32 4294901760, %v283_v38  ;;  %v9727_v30 = vpack.c.bf16 %v4526_v8, %v4522_v15  ;;  %v9737_v43 = vpack.c.bf16 %v1836_v47, %v1832_v24  ;;  %v9739_v48 = vsub.f32 %v278_v36, %v1836_v47  ;;  %v413_v47 = vld [vmem:[#allocation5 + $0x6c8] sm:$0xff]  ;;  %v414_v17 = vld [vmem:[#allocation5 + $0x6d0] sm:$0xff] }
 0x203   : > { %13363 = vst [vmem:[#allocation14_spill] sm:$0xff] %v9718_v58  ;;  %13364 = vst [vmem:[#allocation16_spill] sm:$0xff] %v9720_v40  ;;  %v285_v40 = vld [vmem:[#allocation5 + $0x2c8] sm:$0xff]  ;;  %v287_v58 = vld [vmem:[#allocation5 + $0x2d8] sm:$0xff]  ;;  %v1840_v15 = vand.u32 4294901760, %v280_v35  ;;  %v1844_v8 = vand.u32 4294901760, %v282_v13  ;;  %v9750_v24 = vsub.f32 %v281_v5, %v1838_v3 }
 0x204   : > { %13365 = vst [vmem:[#allocation18_spill] sm:$0xff] %v9722_v41  ;;  %13366 = vst [vmem:[#allocation19_spill] sm:$0xff] %v9724_v7  ;;  %v4534_v7 = vand.u32 4294901760, %v411_v44  ;;  %v9748_v61 = vpack.c.bf16 %v1842_v37, %v1838_v3  ;;  %v9752_v36 = vsub.f32 %v283_v38, %v1842_v37  ;;  %v1846_v23 = vand.u32 4294901760, %v285_v40  ;;  %v13386_v3 = vld [vmem:[#allocation24_spill] sm:$0xff]  ;;  %v290_v41 = vld [vmem:[#allocation5 + $0x2f0] sm:$0xff] }
 0x205   : > { %13367 = vst [vmem:[#allocation23_spill] sm:$0xff] %v9727_v30  ;;  %13368 = vst [vmem:[#allocation25_spill] sm:$0xff] %v9729_v29  ;;  %v1850_v49 = vand.u32 4294901760, %v287_v58  ;;  %v286_v29 = vld [vmem:[#allocation5 + $0x2d0] sm:$0xff]  ;;  %v9760_v38 = vsub.f32 %v409_v63, %v4530_v26  ;;  %v9773_v63 = vsub.f32 %v408_v53, %v4532_v50  ;;  %v13399_v53 = vld [vmem:[#allocation30_spill] sm:$0xff] }
 0x206   : > { %13369 = vst [vmem:[#allocation21_spill] sm:$0xff] %v9731_v19  ;;  %13370 = vst [vmem:[#allocation22_spill] sm:$0xff] %v9733_v56  ;;  %v13380_v56 = vld [vmem:[#allocation206_spill] sm:$0xff]  ;;  %v4536_v19 = vand.u32 4294901760, %v410_v55  ;;  %v9758_v5 = vpack.c.bf16 %v4534_v7, %v4530_v26  ;;  %v9762_v37 = vsub.f32 %v411_v44, %v4534_v7  ;;  %v1852_v7 = vand.u32 4294901760, %v286_v29  ;;  %v289_v26 = vld [vmem:[#allocation5 + $0x2e8] sm:$0xff] }
 0x207   : > { %13371 = vst [vmem:[#allocation27_spill] sm:$0xff] %v9737_v43  ;;  %13372 = vst [vmem:[#allocation28_spill] sm:$0xff] %v9739_v48  ;;  %v415_v48 = vld [vmem:[#allocation5 + $0x6d8] sm:$0xff]  ;;  %1639 = vmatmul.mubr.f32.vlgmr.msra.gmra.mrb[0].mxu1 %v13380_v56  ;;  %v13390_v43 = vld [vmem:[#allocation209_spill] sm:$0xff] }
 0x208   : > { %13374 = vst [vmem:[#allocation29_spill] sm:$0xff] %v9742_v0  ;;  %13375 = vst [vmem:[#allocation31_spill] sm:$0xff] %v9744_v45  ;;  %v284_v45 = vld [vmem:[#allocation5 + $0x2c0] sm:$0xff]  ;;  %6287 = vmatpush1.bf16.msra.mxu1 %v13382_v27  ;;  %1645 = vmatprep.mubr.f32.mxu1 %v13387_v28  ;;  %v4542_v0 = vand.u32 4294901760, %v415_v48  ;;  %v9771_v27 = vsub.f32 %v282_v13, %v1844_v8  ;;  %v13398_v13 = vld [vmem:[#allocation26_spill] sm:$0xff] }
 0x209   : > { %13376 = vst [vmem:[#allocation36_spill] sm:$0xff] %v9746_v16  ;;  %13377 = vst [vmem:[#allocation37_spill] sm:$0xff] %v9748_v61  ;;  %6289 = vmatprep.subr.bf16.mxu1 %v13386_v3  ;;  %v4538_v16 = vand.u32 4294901760, %v413_v47  ;;  %v412_v61 = vld [vmem:[#allocation5 + $0x6c0] sm:$0xff]  ;;  %4331 = vmatmul.mubr.f32.vlgmr.msra.gmra.mrb[0].mxu0 %v13390_v43  ;;  %v1848_v44 = vand.u32 4294901760, %v284_v45  ;;  %v291_v3 = vld [vmem:[#allocation5 + $0x2f8] sm:$0xff] }
 0x20a   : > { %13378 = vst [vmem:[#allocation32_spill] sm:$0xff] %v9750_v24  ;;  %13379 = vst [vmem:[#allocation34_spill] sm:$0xff] %v9752_v36  ;;  %v9766_v36 = vpack.c.bf16 %v1844_v8, %v1840_v15  ;;  %v9768_v24 = vsub.f32 %v280_v35, %v1840_v15  ;;  %v9777_v35 = vpack.c.bf16 %v4536_v19, %v4532_v50  ;;  %v288_v30 = vld [vmem:[#allocation5 + $0x2e0] sm:$0xff]  ;;  %v295_v59 = vld [vmem:[#allocation5 + $0x318] sm:$0xff] }
 0x20b   : > { %13383 = vst [vmem:[#allocation39_spill] sm:$0xff] %v9758_v5  ;;  %13384 = vst [vmem:[#allocation40_spill] sm:$0xff] %v9760_v38  ;;  %v13394_v38 = vld [vmem:[#allocation213_spill] sm:$0xff]  ;;  %v9779_v15 = vsub.f32 %v410_v55, %v4536_v19  ;;  %v419_v5 = vld [vmem:[#allocation5 + $0x6f8] sm:$0xff]  ;;  %v9785_v8 = vsub.f32 %v285_v40, %v1846_v23  ;;  %v9791_v55 = vpack.c.bf16 %v4542_v0, %v4538_v16 }
 0x20c   : > { %13385 = vst [vmem:[#allocation42_spill] sm:$0xff] %v9762_v37  ;;  %13388 = vst [vmem:[#allocation43_spill] sm:$0xff] %v9766_v36  ;;  %v13393_v37 = vld [vmem:[#allocation20_spill] sm:$0xff]  ;;  %4337 = vmatprep.mubr.f32.mxu0 %v13394_v38  ;;  %6291 = vmatpush1.bf16.msra.mxu1 %v13399_v53  ;;  %v13402_v50 = vld [vmem:[#allocation35_spill] sm:$0xff] }
 0x20d   : > { %13389 = vst [vmem:[#allocation48_spill] sm:$0xff] %v9768_v24  ;;  %13391 = vst [vmem:[#allocation49_spill] sm:$0xff] %v9771_v27  ;;  %7055 = vmatpush1.bf16.msra.mxu0 %v13393_v37  ;;  %v9781_v24 = vpack.c.bf16 %v1850_v49, %v1846_v23  ;;  %v417_v36 = vld [vmem:[#allocation5 + $0x6e8] sm:$0xff]  ;;  %v4540_v27 = vand.u32 4294901760, %v412_v61  ;;  %v4544_v37 = vand.u32 4294901760, %v414_v17  ;;  %6293 = vmatprep.subr.bf16.mxu1 %v13402_v50  ;;  %v13403_v19 = vld [vmem:[#allocation215_spill] sm:$0xff] }
 0x20e   : > { %13392 = vst [vmem:[#allocation195_spill] sm:$0xff] %v9773_v63  ;;  %13395 = vst [vmem:[#allocation45_spill] sm:$0xff] %v9777_v35  ;;  %7057 = vmatprep.subr.bf16.mxu0 %v13398_v13  ;;  %v9787_v63 = vsub.f32 %v287_v58, %v1850_v49  ;;  %1647 = vmatmul.mubr.f32.gmra.mrb[2].mxu1 %v13403_v19  ;;  %v1854_v35 = vand.u32 4294901760, %v289_v26  ;;  %v1858_v13 = vand.u32 4294901760, %v291_v3  ;;  %v418_v53 = vld [vmem:[#allocation5 + $0x6f0] sm:$0xff]  ;;  %v4546_v49 = vand.u32 4294901760, %v417_v36 }
 0x20f   : > { %13396 = vst [vmem:[#allocation46_spill] sm:$0xff] %v9779_v15  ;;  %13397 = vst [vmem:[#allocation205_spill] sm:$0xff] %v9781_v24  ;;  %v9793_v15 = vsub.f32 %v413_v47, %v4538_v16  ;;  %v416_v24 = vld [vmem:[#allocation5 + $0x6e0] sm:$0xff]  ;;  %v13406_v40 = vld [vmem:[#allocation217_spill] sm:$0xff]  ;;  %1782 = vmatprep.mubr.f32.mxu1 %v13143_v9  ;;  %v9797_v58 = vsub.f32 %v415_v48, %v4542_v0  ;;  %v9799_v23 = vpack.c.bf16 %v1852_v7, %v1848_v44 }
 0x210   : > { %13400 = vst [vmem:[#allocation51_spill] sm:$0xff] %v9785_v8  ;;  %13401 = vst [vmem:[#allocation52_spill] sm:$0xff] %v9787_v63  ;;  %4339 = vmatmul.mubr.f32.gmra.mrb[2].mxu0 %v13406_v40  ;;  %v4550_v50 = vand.u32 4294901760, %v419_v5  ;;  %v13409_v63 = vld [vmem:[#allocation33_spill] sm:$0xff]  ;;  %v9803_v16 = vsub.f32 %v284_v45, %v1848_v44  ;;  %v9805_v47 = vsub.f32 %v286_v29, %v1852_v7  ;;  %v1860_v8 = vand.u32 4294901760, %v290_v41  ;;  %v13412_v18 = vld [vmem:[#allocation38_spill] sm:$0xff] }
 0x211   : > { %13404 = vst [vmem:[#allocation53_spill] sm:$0xff] %v9791_v55  ;;  %13405 = vst [vmem:[#allocation55_spill] sm:$0xff] %v9793_v15  ;;  %7059 = vmatpush1.bf16.msra.mxu0 %v13409_v63  ;;  %4474 = vmatprep.mubr.f32.mxu0 %v13148_v31  ;;  %v1856_v15 = vand.u32 4294901760, %v288_v30  ;;  %v293_v55 = vld [vmem:[#allocation5 + $0x308] sm:$0xff]  ;;  %v13413_v9 = vld [vmem:[#allocation41_spill] sm:$0xff]  ;;  %v9809_v48 = vpack.c.bf16 %v4544_v37, %v4540_v27  ;;  %v9811_v0 = vsub.f32 %v412_v61, %v4540_v27 }
 0x212   : > { %13407 = vst [vmem:[#allocation60_spill] sm:$0xff] %v9797_v58  ;;  %13408 = vst [vmem:[#allocation61_spill] sm:$0xff] %v9799_v23  ;;  %7061 = vmatprep.subr.bf16.mxu0 %v13412_v18  ;;  %6295 = vmatpush1.bf16.msra.mxu1 %v13413_v9  ;;  %v4548_v58 = vand.u32 4294901760, %v416_v24  ;;  %v4552_v63 = vand.u32 4294901760, %v418_v53  ;;  %v421_v23 = vld [vmem:[#allocation5 + $0x708] sm:$0xff]  ;;  %v423_v31 = vld [vmem:[#allocation5 + $0x718] sm:$0xff]  ;;  %v9814_v29 = vsub.f32 %v414_v17, %v4544_v37 }
 0x213   : > { %13410 = vst [vmem:[#allocation57_spill] sm:$0xff] %v9803_v16  ;;  %13411 = vst [vmem:[#allocation58_spill] sm:$0xff] %v9805_v47  ;;  %v13416_v45 = vld [vmem:[#allocation47_spill] sm:$0xff]  ;;  %v9816_v44 = vpack.c.bf16 %v1858_v13, %v1854_v35  ;;  %v9818_v7 = vsub.f32 %v289_v26, %v1854_v35  ;;  %v9820_v47 = vsub.f32 %v291_v3, %v1858_v13  ;;  %v1862_v61 = vand.u32 4294901760, %v293_v55  ;;  %v294_v16 = vld [vmem:[#allocation5 + $0x310] sm:$0xff] }
 0x214   : > { %13414 = vst [vmem:[#allocation62_spill] sm:$0xff] %v9809_v48  ;;  %13415 = vst [vmem:[#allocation64_spill] sm:$0xff] %v9811_v0  ;;  %6297 = vmatprep.subr.bf16.mxu1 %v13416_v45  ;;  %v9822_v18 = vpack.c.bf16 %v4550_v50, %v4546_v49  ;;  %v9824_v9 = vsub.f32 %v417_v36, %v4546_v49  ;;  %v1866_v27 = vand.u32 4294901760, %v295_v59  ;;  %v292_v0 = vld [vmem:[#allocation5 + $0x300] sm:$0xff]  ;;  %v13423_v48 = vld [vmem:[#allocation44_spill] sm:$0xff]  ;;  %v4554_v37 = vand.u32 4294901760, %v421_v23 }
 0x215   : > { %13417 = vst [vmem:[#allocation66_spill] sm:$0xff] %v9814_v29  ;;  %13418 = vst [vmem:[#allocation67_spill] sm:$0xff] %v9816_v44  ;;  %7063 = vmatpush1.bf16.msra.mxu0 %v13423_v48  ;;  %v9827_v46 = vsub.f32 %v419_v5, %v4550_v50  ;;  %v9829_v17 = vpack.c.bf16 %v1860_v8, %v1856_v15  ;;  %v4558_v45 = vand.u32 4294901760, %v423_v31  ;;  %v420_v26 = vld [vmem:[#allocation5 + $0x700] sm:$0xff]  ;;  %v422_v35 = vld [vmem:[#allocation5 + $0x710] sm:$0xff]  ;;  %v1868_v29 = vand.u32 4294901760, %v294_v16 }
 0x216   : > { %13419 = vst [vmem:[#allocation72_spill] sm:$0xff] %v9818_v7  ;;  %13420 = vst [vmem:[#allocation73_spill] sm:$0xff] %v9820_v47  ;;  %v13426_v3 = vld [vmem:[#allocation50_spill] sm:$0xff]  ;;  %v9833_v36 = vsub.f32 %v288_v30, %v1856_v15  ;;  %v9835_v49 = vsub.f32 %v290_v41, %v1860_v8  ;;  %v297_v47 = vld [vmem:[#allocation5 + $0x328] sm:$0xff]  ;;  %v9840_v50 = vsub.f32 %v416_v24, %v4548_v58  ;;  %v1864_v7 = vand.u32 4294901760, %v292_v0 }
 0x217   : > { %13421 = vst [vmem:[#allocation69_spill] sm:$0xff] %v9822_v18  ;;  %13422 = vst [vmem:[#allocation70_spill] sm:$0xff] %v9824_v9  ;;  %7065 = vmatprep.subr.bf16.mxu0 %v13426_v3  ;;  %v13427_v13 = vld [vmem:[#allocation54_spill] sm:$0xff]  ;;  %v9837_v9 = vpack.c.bf16 %v4552_v63, %v4548_v58  ;;  %v13431_v5 = vld [vmem:[#allocation59_spill] sm:$0xff]  ;;  %v9844_v18 = vpack.c.bf16 %v1866_v27, %v1862_v61  ;;  %v9846_v30 = vsub.f32 %v293_v55, %v1862_v61 }
 0x218   : > { %13424 = vst [vmem:[#allocation74_spill] sm:$0xff] %v9827_v46  ;;  %13425 = vst [vmem:[#allocation76_spill] sm:$0xff] %v9829_v17  ;;  %6299 = vmatpush1.bf16.msra.mxu1 %v13427_v13  ;;  %v299_v48 = vld [vmem:[#allocation5 + $0x338] sm:$0xff]  ;;  %v9842_v46 = vsub.f32 %v418_v53, %v4552_v63  ;;  %v425_v17 = vld [vmem:[#allocation5 + $0x728] sm:$0xff]  ;;  %v4556_v41 = vand.u32 4294901760, %v420_v26  ;;  %v4560_v15 = vand.u32 4294901760, %v422_v35  ;;  %v9851_v24 = vpack.c.bf16 %v4558_v45, %v4554_v37 }
 0x219   : > { %13428 = vst [vmem:[#allocation78_spill] sm:$0xff] %v9833_v36  ;;  %13429 = vst [vmem:[#allocation79_spill] sm:$0xff] %v9835_v49  ;;  %6301 = vmatprep.subr.bf16.mxu1 %v13431_v5  ;;  %v427_v3 = vld [vmem:[#allocation5 + $0x738] sm:$0xff]  ;;  %v296_v8 = vld [vmem:[#allocation5 + $0x320] sm:$0xff]  ;;  %v9849_v36 = vsub.f32 %v295_v59, %v1866_v27  ;;  %v1870_v53 = vand.u32 4294901760, %v297_v47  ;;  %v1874_v58 = vand.u32 4294901760, %v299_v48  ;;  %v9857_v55 = vsub.f32 %v423_v31, %v4558_v45 }
 0x21a   : > { %13430 = vst [vmem:[#allocation84_spill] sm:$0xff] %v9837_v9  ;;  %13432 = vst [vmem:[#allocation85_spill] sm:$0xff] %v9840_v50  ;;  %v298_v13 = vld [vmem:[#allocation5 + $0x330] sm:$0xff]  ;;  %v13436_v49 = vld [vmem:[#allocation56_spill] sm:$0xff]  ;;  %v4562_v61 = vand.u32 4294901760, %v425_v17  ;;  %v9860_v59 = vpack.c.bf16 %v1868_v29, %v1864_v7  ;;  %v9862_v27 = vsub.f32 %v292_v0, %v1864_v7  ;;  %v9870_v31 = vsub.f32 %v422_v35, %v4560_v15 }
 0x21b   : > { %13433 = vst [vmem:[#allocation81_spill] sm:$0xff] %v9842_v46  ;;  %13434 = vst [vmem:[#allocation82_spill] sm:$0xff] %v9844_v18  ;;  %7067 = vmatpush1.bf16.msra.mxu0 %v13436_v49  ;;  %v13439_v63 = vld [vmem:[#allocation63_spill] sm:$0xff]  ;;  %v13440_v5 = vld [vmem:[#allocation65_spill] sm:$0xff]  ;;  %v9855_v46 = vsub.f32 %v421_v23, %v4554_v37  ;;  %v1872_v49 = vand.u32 4294901760, %v296_v8  ;;  %v9868_v23 = vsub.f32 %v420_v26, %v4556_v41 }
 0x21c   : > { %13435 = vst [vmem:[#allocation86_spill] sm:$0xff] %v9846_v30  ;;  %13437 = vst [vmem:[#allocation88_spill] sm:$0xff] %v9849_v36  ;;  %7069 = vmatprep.subr.bf16.mxu0 %v13439_v63  ;;  %6303 = vmatpush1.bf16.msra.mxu1 %v13440_v5  ;;  %v4566_v30 = vand.u32 4294901760, %v427_v3  ;;  %v424_v50 = vld [vmem:[#allocation5 + $0x720] sm:$0xff]  ;;  %v426_v9 = vld [vmem:[#allocation5 + $0x730] sm:$0xff]  ;;  %v1876_v36 = vand.u32 4294901760, %v298_v13  ;;  %v9866_v63 = vpack.c.bf16 %v4560_v15, %v4556_v41 }
 0x21d   : > { %13438 = vst [vmem:[#allocation90_spill] sm:$0xff] %v9851_v24  ;;  %13441 = vst [vmem:[#allocation91_spill] sm:$0xff] %v9855_v46  ;;  %v13443_v18 = vld [vmem:[#allocation71_spill] sm:$0xff]  ;;  %v9864_v24 = vsub.f32 %v294_v16, %v1868_v29  ;;  %v301_v37 = vld [vmem:[#allocation5 + $0x348] sm:$0xff]  ;;  %v4564_v0 = vand.u32 4294901760, %v424_v50  ;;  %v4568_v7 = vand.u32 4294901760, %v426_v9  ;;  %v9879_v26 = vsub.f32 %v299_v48, %v1874_v58 }
 0x21e   : > { %13442 = vst [vmem:[#allocation96_spill] sm:$0xff] %v9857_v55  ;;  %6305 = vmatprep.subr.bf16.mxu1 %v13443_v18  ;;  %13444 = vst [vmem:[#allocation97_spill] sm:$0xff] %v9860_v59  ;;  %v303_v45 = vld [vmem:[#allocation5 + $0x358] sm:$0xff]  ;;  %v13450_v5 = vld [vmem:[#allocation68_spill] sm:$0xff]  ;;  %v9873_v55 = vpack.c.bf16 %v1874_v58, %v1870_v53  ;;  %v9875_v18 = vsub.f32 %v297_v47, %v1870_v53  ;;  %v9881_v35 = vpack.c.bf16 %v4566_v30, %v4562_v61 }
 0x21f   : > { %13445 = vst [vmem:[#allocation93_spill] sm:$0xff] %v9862_v27  ;;  %13446 = vst [vmem:[#allocation94_spill] sm:$0xff] %v9864_v24  ;;  %7071 = vmatpush1.bf16.msra.mxu0 %v13450_v5  ;;  %v429_v27 = vld [vmem:[#allocation5 + $0x748] sm:$0xff]  ;;  %v431_v46 = vld [vmem:[#allocation5 + $0x758] sm:$0xff]  ;;  %v9883_v41 = vsub.f32 %v425_v17, %v4562_v61  ;;  %v9886_v47 = vsub.f32 %v427_v3, %v4566_v30  ;;  %v9888_v53 = vpack.c.bf16 %v1876_v36, %v1872_v49 }
 0x220   : > { %13447 = vst [vmem:[#allocation98_spill] sm:$0xff] %v9866_v63  ;;  %13448 = vst [vmem:[#allocation100_spill] sm:$0xff] %v9868_v23  ;;  %v13453_v16 = vld [vmem:[#allocation75_spill] sm:$0xff]  ;;  %v13454_v29 = vld [vmem:[#allocation77_spill] sm:$0xff]  ;;  %v1882_v23 = vand.u32 4294901760, %v303_v45  ;;  %v9890_v63 = vsub.f32 %v296_v8, %v1872_v49  ;;  %v9892_v48 = vsub.f32 %v298_v13, %v1876_v36  ;;  %v4570_v58 = vand.u32 4294901760, %v429_v27 }
 0x221   : > { %13449 = vst [vmem:[#allocation102_spill] sm:$0xff] %v9870_v31  ;;  %13451 = vst [vmem:[#allocation103_spill] sm:$0xff] %v9873_v55  ;;  %7073 = vmatprep.subr.bf16.mxu0 %v13453_v16  ;;  %6307 = vmatpush1.bf16.msra.mxu1 %v13454_v29  ;;  %v300_v15 = vld [vmem:[#allocation5 + $0x340] sm:$0xff]  ;;  %v302_v5 = vld [vmem:[#allocation5 + $0x350] sm:$0xff]  ;;  %v4574_v29 = vand.u32 4294901760, %v431_v46  ;;  %v9897_v3 = vsub.f32 %v424_v50, %v4564_v0  ;;  %v9901_v36 = vsub.f32 %v426_v9, %v4568_v7 }
 0x222   : > { %13452 = vst [vmem:[#allocation109_spill] sm:$0xff] %v9875_v18  ;;  %13455 = vst [vmem:[#allocation160_spill] sm:$0xff] %v9879_v26  ;;  %v13458_v31 = vld [vmem:[#allocation83_spill] sm:$0xff]  ;;  %v1878_v18 = vand.u32 4294901760, %v301_v37  ;;  %v430_v16 = vld [vmem:[#allocation5 + $0x750] sm:$0xff]  ;;  %v9895_v26 = vpack.c.bf16 %v4568_v7, %v4564_v0  ;;  %v1880_v30 = vand.u32 4294901760, %v300_v15  ;;  %v9908_v50 = vsub.f32 %v303_v45, %v1882_v23 }
 0x223   : > { %13456 = vst [vmem:[#allocation163_spill] sm:$0xff] %v9881_v35  ;;  %13457 = vst [vmem:[#allocation165_spill] sm:$0xff] %v9883_v41  ;;  %6309 = vmatprep.subr.bf16.mxu1 %v13458_v31  ;;  %v428_v24 = vld [vmem:[#allocation5 + $0x740] sm:$0xff]  ;;  %v305_v17 = vld [vmem:[#allocation5 + $0x368] sm:$0xff]  ;;  %v1884_v31 = vand.u32 4294901760, %v302_v5  ;;  %v9910_v59 = vpack.c.bf16 %v4574_v29, %v4570_v58 }
 0x224   : > { %13459 = vst [vmem:[#allocation166_spill] sm:$0xff] %v9886_v47  ;;  %13460 = vst [vmem:[#allocation168_spill] sm:$0xff] %v9888_v53  ;;  %v307_v61 = vld [vmem:[#allocation5 + $0x378] sm:$0xff]  ;;  %v13463_v41 = vld [vmem:[#allocation80_spill] sm:$0xff]  ;;  %v9903_v13 = vsub.f32 %v301_v37, %v1878_v18  ;;  %v4572_v49 = vand.u32 4294901760, %v428_v24  ;;  %v1886_v0 = vand.u32 4294901760, %v305_v17 }
 0x225   : > { %13461 = vst [vmem:[#allocation169_spill] sm:$0xff] %v9890_v63  ;;  %13462 = vst [vmem:[#allocation170_spill] sm:$0xff] %v9892_v48  ;;  %7075 = vmatpush1.bf16.msra.mxu0 %v13463_v41  ;;  %v433_v47 = vld [vmem:[#allocation5 + $0x768] sm:$0xff]  ;;  %v435_v53 = vld [vmem:[#allocation5 + $0x778] sm:$0xff]  ;;  %v4576_v48 = vand.u32 4294901760, %v430_v16  ;;  %v9906_v41 = vpack.c.bf16 %v1882_v23, %v1878_v18  ;;  %v9921_v23 = vsub.f32 %v302_v5, %v1884_v31 }
 0x226   : > { %13464 = vst [vmem:[#allocation172_spill] sm:$0xff] %v9895_v26  ;;  %13465 = vst [vmem:[#allocation174_spill] sm:$0xff] %v9897_v3  ;;  %v13466_v35 = vld [vmem:[#allocation87_spill] sm:$0xff]  ;;  %v13467_v8 = vld [vmem:[#allocation89_spill] sm:$0xff]  ;;  %v1890_v3 = vand.u32 4294901760, %v307_v61  ;;  %v4578_v9 = vand.u32 4294901760, %v433_v47 }
 0x227   : > { %7077 = vmatprep.subr.bf16.mxu0 %v13466_v35  ;;  %6311 = vmatpush1.bf16.msra.mxu1 %v13467_v8  ;;  %13468 = vst [vmem:[#allocation175_spill] sm:$0xff] %v9901_v36  ;;  %13469 = vst [vmem:[#allocation177_spill] sm:$0xff] %v9903_v13  ;;  %v13470_v63 = vld [vmem:[#allocation95_spill] sm:$0xff]  ;;  %v306_v55 = vld [vmem:[#allocation5 + $0x370] sm:$0xff]  ;;  %v9912_v35 = vsub.f32 %v429_v27, %v4570_v58  ;;  %v4582_v7 = vand.u32 4294901760, %v435_v53  ;;  %v9915_v8 = vsub.f32 %v431_v46, %v4574_v29 }
 0x228   : > { %6313 = vmatprep.subr.bf16.mxu1 %v13470_v63  ;;  %13471 = vst [vmem:[#allocation178_spill] sm:$0xff] %v9906_v41  ;;  %13472 = vst [vmem:[#allocation180_spill] sm:$0xff] %v9908_v50  ;;  %v304_v26 = vld [vmem:[#allocation5 + $0x360] sm:$0xff]  ;;  %v13475_v37 = vld [vmem:[#allocation92_spill] sm:$0xff]  ;;  %v9917_v13 = vpack.c.bf16 %v1884_v31, %v1880_v30  ;;  %v9919_v63 = vsub.f32 %v300_v15, %v1880_v30  ;;  %v9925_v27 = vpack.c.bf16 %v4576_v48, %v4572_v49 }
 0x229   : > { %13473 = vst [vmem:[#allocation181_spill] sm:$0xff] %v9910_v59  ;;  %13474 = vst [vmem:[#allocation182_spill] sm:$0xff] %v9912_v35  ;;  %7079 = vmatpush1.bf16.msra.mxu0 %v13475_v37  ;;  %v432_v45 = vld [vmem:[#allocation5 + $0x760] sm:$0xff]  ;;  %v434_v18 = vld [vmem:[#allocation5 + $0x770] sm:$0xff]  ;;  %v9927_v58 = vsub.f32 %v428_v24, %v4572_v49  ;;  %v1888_v37 = vand.u32 4294901760, %v304_v26  ;;  %v1892_v46 = vand.u32 4294901760, %v306_v55  ;;  %v9930_v5 = vsub.f32 %v430_v16, %v4576_v48 }
 0x22a   : > { %13476 = vst [vmem:[#allocation184_spill] sm:$0xff] %v9915_v8  ;;  %13477 = vst [vmem:[#allocation186_spill] sm:$0xff] %v9917_v13  ;;  %v309_v50 = vld [vmem:[#allocation5 + $0x388] sm:$0xff]  ;;  %v13480_v36 = vld [vmem:[#allocation99_spill] sm:$0xff]  ;;  %v9932_v30 = vpack.c.bf16 %v1890_v3, %v1886_v0  ;;  %v9934_v31 = vsub.f32 %v305_v17, %v1886_v0  ;;  %v4580_v24 = vand.u32 4294901760, %v432_v45  ;;  %v4584_v49 = vand.u32 4294901760, %v434_v18 }
 0x22b   : > { %13478 = vst [vmem:[#allocation187_spill] sm:$0xff] %v9919_v63  ;;  %13479 = vst [vmem:[#allocation189_spill] sm:$0xff] %v9921_v23  ;;  %7081 = vmatprep.subr.bf16.mxu0 %v13480_v36  ;;  %v13481_v59 = vld [vmem:[#allocation101_spill] sm:$0xff]  ;;  %v311_v29 = vld [vmem:[#allocation5 + $0x398] sm:$0xff]  ;;  %v9936_v36 = vsub.f32 %v307_v61, %v1890_v3  ;;  %v9940_v23 = vsub.f32 %v433_v47, %v4578_v9  ;;  %v1894_v13 = vand.u32 4294901760, %v309_v50 }
 0x22c   : > { %6315 = vmatpush1.bf16.msra.mxu1 %v13481_v59  ;;  %13482 = vst [vmem:[#allocation190_spill] sm:$0xff] %v9925_v27  ;;  %13483 = vst [vmem:[#allocation192_spill] sm:$0xff] %v9927_v58  ;;  %v437_v8 = vld [vmem:[#allocation5 + $0x788] sm:$0xff]  ;;  %v439_v35 = vld [vmem:[#allocation5 + $0x798] sm:$0xff]  ;;  %v9938_v59 = vpack.c.bf16 %v4582_v7, %v4578_v9  ;;  %v9945_v3 = vsub.f32 %v435_v53, %v4582_v7  ;;  %v9947_v47 = vpack.c.bf16 %v1892_v46, %v1888_v37 }
 0x22d   : > { %v13484_v15 = vld [vmem:[#allocation107_spill] sm:$0xff]  ;;  %13485 = vst [vmem:[#allocation193_spill] sm:$0xff] %v9930_v5  ;;  %13486 = vst [vmem:[#allocation194_spill] sm:$0xff] %v9932_v30  ;;  %v310_v63 = vld [vmem:[#allocation5 + $0x390] sm:$0xff]  ;;  %v4586_v16 = vand.u32 4294901760, %v437_v8  ;;  %v4590_v48 = vand.u32 4294901760, %v439_v35  ;;  %v9949_v0 = vsub.f32 %v304_v26, %v1888_v37  ;;  %v9956_v44 = vpack.c.bf16 %v4584_v49, %v4580_v24 }
 0x22e   : > { %6317 = vmatprep.subr.bf16.mxu1 %v13484_v15  ;;  %13487 = vst [vmem:[#allocation197_spill] sm:$0xff] %v9934_v31  ;;  %13488 = vst [vmem:[#allocation199_spill] sm:$0xff] %v9936_v36  ;;  %v308_v58 = vld [vmem:[#allocation5 + $0x380] sm:$0xff]  ;;  %v13491_v27 = vld [vmem:[#allocation104_spill] sm:$0xff]  ;;  %v1898_v15 = vand.u32 4294901760, %v311_v29  ;;  %v1900_v31 = vand.u32 4294901760, %v310_v63 }
 0x22f   : > { %13489 = vst [vmem:[#allocation200_spill] sm:$0xff] %v9938_v59  ;;  %13490 = vst [vmem:[#allocation202_spill] sm:$0xff] %v9940_v23  ;;  %7083 = vmatpush1.bf16.msra.mxu0 %v13491_v27  ;;  %v436_v5 = vld [vmem:[#allocation5 + $0x780] sm:$0xff]  ;;  %v438_v30 = vld [vmem:[#allocation5 + $0x790] sm:$0xff]  ;;  %v9952_v23 = vsub.f32 %v306_v55, %v1892_v46  ;;  %v9954_v27 = vsub.f32 %v432_v45, %v4580_v24  ;;  %v1896_v36 = vand.u32 4294901760, %v308_v58 }
 0x230   : > { %v13492_v17 = vld [vmem:[#allocation111_spill] sm:$0xff]  ;;  %v13493_v61 = vld [vmem:[#allocation113_spill] sm:$0xff]  ;;  %13494 = vst [vmem:[#allocation203_spill] sm:$0xff] %v9945_v3  ;;  %13495 = vst [vmem:[#allocation11_spill] sm:$0xff] %v9947_v47  ;;  %v4588_v53 = vand.u32 4294901760, %v436_v5  ;;  %v4592_v7 = vand.u32 4294901760, %v438_v30  ;;  %v9961_v37 = vpack.c.bf16 %v1898_v15, %v1894_v13  ;;  %v9963_v55 = vsub.f32 %v309_v50, %v1894_v13 }
 0x231   : > { %7085 = vmatprep.subr.bf16.mxu0 %v13492_v17  ;;  %6319 = vmatpush1.bf16.msra.mxu1 %v13493_v61  ;;  %13496 = vst [vmem:[#allocation206_spill] sm:$0xff] %v9949_v0  ;;  %v13497_v9 = vld [vmem:[#allocation119_spill] sm:$0xff]  ;;  %13498 = vst [vmem:[#allocation15_spill] sm:$0xff] %v9952_v23  ;;  %v313_v59 = vld [vmem:[#allocation5 + $0x3a8] sm:$0xff]  ;;  %v9958_v17 = vsub.f32 %v434_v18, %v4584_v49  ;;  %v9965_v45 = vsub.f32 %v311_v29, %v1898_v15 }
 0x232   : > { %6321 = vmatprep.subr.bf16.mxu1 %v13497_v9  ;;  %13499 = vst [vmem:[#allocation17_spill] sm:$0xff] %v9954_v27  ;;  %v315_v41 = vld [vmem:[#allocation5 + $0x3b8] sm:$0xff]  ;;  %13500 = vst [vmem:[#allocation24_spill] sm:$0xff] %v9956_v44  ;;  %v441_v61 = vld [vmem:[#allocation5 + $0x7a8] sm:$0xff]  ;;  %v9967_v46 = vpack.c.bf16 %v4590_v48, %v4586_v16  ;;  %v9971_v18 = vsub.f32 %v437_v8, %v4586_v16  ;;  %v9973_v49 = vsub.f32 %v439_v35, %v4590_v48 }
 0x233   : > { %13501 = vst [vmem:[#allocation211_spill] sm:$0xff] %v9958_v17  ;;  %v443_v3 = vld [vmem:[#allocation5 + $0x7b8] sm:$0xff]  ;;  %v13502_v26 = vld [vmem:[#allocation116_spill] sm:$0xff]  ;;  %13503 = vst [vmem:[#allocation209_spill] sm:$0xff] %v9961_v37  ;;  %v1902_v17 = vand.u32 4294901760, %v313_v59  ;;  %v1906_v23 = vand.u32 4294901760, %v315_v41  ;;  %v9976_v50 = vpack.c.bf16 %v1900_v31, %v1896_v36  ;;  %v9978_v29 = vsub.f32 %v308_v58, %v1896_v36 }
 0x234   : > { %7087 = vmatpush1.bf16.msra.mxu0 %v13502_v26  ;;  %13504 = vst [vmem:[#allocation20_spill] sm:$0xff] %v9963_v55  ;;  %13505 = vst [vmem:[#allocation213_spill] sm:$0xff] %v9965_v45  ;;  %v312_v9 = vld [vmem:[#allocation5 + $0x3a0] sm:$0xff]  ;;  %v13508_v24 = vld [vmem:[#allocation125_spill] sm:$0xff]  ;;  %v4594_v15 = vand.u32 4294901760, %v441_v61  ;;  %v4598_v45 = vand.u32 4294901760, %v443_v3  ;;  %v9984_v8 = vsub.f32 %v436_v5, %v4588_v53  ;;  %v9986_v35 = vsub.f32 %v438_v30, %v4592_v7 }
 0x235   : > { %13506 = vst [vmem:[#allocation26_spill] sm:$0xff] %v9967_v46  ;;  %v13507_v27 = vld [vmem:[#allocation123_spill] sm:$0xff]  ;;  %6323 = vmatpush1.bf16.msra.mxu1 %v13508_v24  ;;  %13509 = vst [vmem:[#allocation30_spill] sm:$0xff] %v9971_v18  ;;  %v314_v26 = vld [vmem:[#allocation5 + $0x3b0] sm:$0xff]  ;;  %v9982_v24 = vpack.c.bf16 %v4592_v7, %v4588_v53  ;;  %v1904_v18 = vand.u32 4294901760, %v312_v9  ;;  %v9993_v5 = vsub.f32 %v313_v59, %v1902_v17 }
 0x236   : > { %7089 = vmatprep.subr.bf16.mxu0 %v13507_v27  ;;  %13510 = vst [vmem:[#allocation35_spill] sm:$0xff] %v9973_v49  ;;  %v440_v0 = vld [vmem:[#allocation5 + $0x7a0] sm:$0xff]  ;;  %v442_v44 = vld [vmem:[#allocation5 + $0x7b0] sm:$0xff]  ;;  %13512 = vst [vmem:[#allocation215_spill] sm:$0xff] %v9976_v50  ;;  %v9980_v27 = vsub.f32 %v310_v63, %v1900_v31  ;;  %v9991_v31 = vpack.c.bf16 %v1906_v23, %v1902_v17  ;;  %v9995_v30 = vsub.f32 %v315_v41, %v1906_v23 }
 0x237   : > { %v13511_v13 = vld [vmem:[#allocation131_spill] sm:$0xff]  ;;  %13513 = vst [vmem:[#allocation217_spill] sm:$0xff] %v9978_v29  ;;  %13515 = vst [vmem:[#allocation38_spill] sm:$0xff] %v9982_v24  ;;  %v317_v16 = vld [vmem:[#allocation5 + $0x3c8] sm:$0xff]  ;;  %v4596_v55 = vand.u32 4294901760, %v440_v0  ;;  %v4600_v50 = vand.u32 4294901760, %v442_v44  ;;  %v9998_v7 = vpack.c.bf16 %v4598_v45, %v4594_v15 }
 0x238   : > { %6325 = vmatprep.subr.bf16.mxu1 %v13511_v13  ;;  %13514 = vst [vmem:[#allocation33_spill] sm:$0xff] %v9980_v27  ;;  %13516 = vst [vmem:[#allocation41_spill] sm:$0xff] %v9984_v8  ;;  %v319_v48 = vld [vmem:[#allocation5 + $0x3d8] sm:$0xff]  ;;  %v13518_v49 = vld [vmem:[#allocation128_spill] sm:$0xff]  ;;  %v1908_v13 = vand.u32 4294901760, %v314_v26 }
 0x239   : > { %13517 = vst [vmem:[#allocation47_spill] sm:$0xff] %v9986_v35  ;;  %7091 = vmatpush1.bf16.msra.mxu0 %v13518_v49  ;;  %v445_v58 = vld [vmem:[#allocation5 + $0x7c8] sm:$0xff]  ;;  %v447_v36 = vld [vmem:[#allocation5 + $0x7d8] sm:$0xff]  ;;  %v13519_v29 = vld [vmem:[#allocation135_spill] sm:$0xff]  ;;  %v10000_v49 = vsub.f32 %v441_v61, %v4594_v15  ;;  %v1910_v35 = vand.u32 4294901760, %v317_v16  ;;  %v1914_v8 = vand.u32 4294901760, %v319_v48  ;;  %v10011_v15 = vpack.c.bf16 %v4600_v50, %v4596_v55 }
 0x23a   : > { %7093 = vmatprep.subr.bf16.mxu0 %v13519_v29  ;;  %v13520_v63 = vld [vmem:[#allocation137_spill] sm:$0xff]  ;;  %13521 = vst [vmem:[#allocation44_spill] sm:$0xff] %v9991_v31  ;;  %13522 = vst [vmem:[#allocation50_spill] sm:$0xff] %v9993_v5  ;;  %v13524_v53 = vld [vmem:[#allocation143_spill] sm:$0xff]  ;;  %v10002_v29 = vsub.f32 %v443_v3, %v4598_v45  ;;  %v4602_v31 = vand.u32 4294901760, %v445_v58  ;;  %v4606_v59 = vand.u32 4294901760, %v447_v36  ;;  %v10009_v61 = vsub.f32 %v314_v26, %v1908_v13 }
 0x23b   : > { %6327 = vmatpush1.bf16.msra.mxu1 %v13520_v63  ;;  %13523 = vst [vmem:[#allocation54_spill] sm:$0xff] %v9995_v30  ;;  %13525 = vst [vmem:[#allocation59_spill] sm:$0xff] %v9998_v7  ;;  %v316_v27 = vld [vmem:[#allocation5 + $0x3c0] sm:$0xff]  ;;  %v318_v24 = vld [vmem:[#allocation5 + $0x3d0] sm:$0xff]  ;;  %v10004_v63 = vsub.f32 %v312_v9, %v1904_v18  ;;  %v10018_v9 = vsub.f32 %v442_v44, %v4600_v50 }
 0x23c   : > { %6329 = vmatprep.subr.bf16.mxu1 %v13524_v53  ;;  %13526 = vst [vmem:[#allocation56_spill] sm:$0xff] %v10000_v49  ;;  %13527 = vst [vmem:[#allocation63_spill] sm:$0xff] %v10002_v29  ;;  %v444_v17 = vld [vmem:[#allocation5 + $0x7c0] sm:$0xff]  ;;  %v446_v41 = vld [vmem:[#allocation5 + $0x7d0] sm:$0xff]  ;;  %v10007_v53 = vpack.c.bf16 %v1908_v13, %v1904_v18  ;;  %v10013_v49 = vsub.f32 %v440_v0, %v4596_v55  ;;  %v1912_v29 = vand.u32 4294901760, %v316_v27  ;;  %v1916_v5 = vand.u32 4294901760, %v318_v24 }
 0x23d   : > { %13528 = vst [vmem:[#allocation65_spill] sm:$0xff] %v10004_v63  ;;  %v13529_v23 = vld [vmem:[#allocation140_spill] sm:$0xff]  ;;  %13531 = vst [vmem:[#allocation68_spill] sm:$0xff] %v10009_v61  ;;  %v183_v30 = vld [vmem:[%s7946_s3 + $0x18] sm:$0xff]  ;;  %v10020_v63 = vsub.f32 %v317_v16, %v1910_v35  ;;  %v10024_v13 = vpack.c.bf16 %v1914_v8, %v1910_v35  ;;  %v10026_v0 = vsub.f32 %v319_v48, %v1914_v8  ;;  %v4604_v55 = vand.u32 4294901760, %v444_v17 }
 0x23e   : > { %7095 = vmatpush1.bf16.msra.mxu0 %v13529_v23  ;;  %13530 = vst [vmem:[#allocation71_spill] sm:$0xff] %v10007_v53  ;;  %13532 = vst [vmem:[#allocation75_spill] sm:$0xff] %v10011_v15  ;;  %v13534_v3 = vld [vmem:[#allocation147_spill] sm:$0xff]  ;;  %v13535_v45 = vld [vmem:[#allocation149_spill] sm:$0xff]  ;;  %v10030_v44 = vsub.f32 %v445_v58, %v4602_v31  ;;  %v10032_v50 = vsub.f32 %v447_v36, %v4606_v59  ;;  %v10034_v16 = vand.u32 4294901760, %v183_v30 }
 0x23f   : > { %13533 = vst [vmem:[#allocation77_spill] sm:$0xff] %v10013_v49  ;;  %7097 = vmatprep.subr.bf16.mxu0 %v13534_v3  ;;  %6331 = vmatpush1.bf16.msra.mxu1 %v13535_v45  ;;  %13536 = vst [vmem:[#allocation83_spill] sm:$0xff] %v10018_v9  ;;  %v321_v23 = vld [vmem:[#allocation5 + $0x3e8] sm:$0xff]  ;;  %v323_v18 = vld [vmem:[#allocation5 + $0x3f8] sm:$0xff]  ;;  %v4608_v49 = vand.u32 4294901760, %v446_v41  ;;  %v10028_v45 = vpack.c.bf16 %v4606_v59, %v4602_v31  ;;  %v10037_v9 = vsub.f32 %v316_v27, %v1912_v29 }
 0x240   : > { %13537 = vst [vmem:[#allocation80_spill] sm:$0xff] %v10020_v63  ;;  %v187_v53 = vld [vmem:[%s7946_s3 + $0x38] sm:$0xff]  ;;  %v13538_v26 = vld [vmem:[#allocation155_spill] sm:$0xff]  ;;  %13539 = vst [vmem:[#allocation87_spill] sm:$0xff] %v10024_v13  ;;  %v1918_v35 = vand.u32 4294901760, %v321_v23  ;;  %v1922_v8 = vand.u32 4294901760, %v323_v18  ;;  %v10043_v58 = vpack.c.bf16 %v1916_v5, %v1912_v29  ;;  %v10045_v36 = vsub.f32 %v318_v24, %v1916_v5 }
 0x241   : > { %6333 = vmatprep.subr.bf16.mxu1 %v13538_v26  ;;  %13540 = vst [vmem:[#allocation89_spill] sm:$0xff] %v10026_v0  ;;  %v449_v3 = vld [vmem:[#allocation5 + $0x7e8] sm:$0xff]  ;;  %v451_v61 = vld [vmem:[#allocation5 + $0x7f8] sm:$0xff]  ;;  %13541 = vst [vmem:[#allocation95_spill] sm:$0xff] %v10028_v45  ;;  %v10039_v26 = vand.u32 4294901760, %v187_v53  ;;  %v10048_v27 = vpack.c.bf16 %v4608_v49, %v4604_v55  ;;  %v10059_v24 = vsub.f32 %v183_v30, %v10034_v16  ;;  %v13577_v5 = vand.u32 4294901760, %v9613_v33 }
 0x242   : > { %13542 = vst [vmem:[#allocation92_spill] sm:$0xff] %v10030_v44  ;;  %13543 = vst [vmem:[#allocation99_spill] sm:$0xff] %v10032_v50  ;;  %v13545_v63 = vld [vmem:[#allocation152_spill] sm:$0xff]  ;;  %v320_v48 = vld [vmem:[#allocation5 + $0x3e0] sm:$0xff]  ;;  %v4610_v31 = vand.u32 4294901760, %v449_v3  ;;  %v4614_v59 = vand.u32 4294901760, %v451_v61  ;;  %v10052_v44 = vsub.f32 %v446_v41, %v4608_v49  ;;  %v10056_v13 = vsub.f32 %v321_v23, %v1918_v35 }
 0x243   : > { %13544 = vst [vmem:[#allocation101_spill] sm:$0xff] %v10034_v16  ;;  %7099 = vmatpush1.bf16.msra.mxu0 %v13545_v63  ;;  %13546 = vst [vmem:[#allocation107_spill] sm:$0xff] %v10037_v9  ;;  %v13548_v0 = vld [vmem:[#allocation159_spill] sm:$0xff]  ;;  %v13549_v15 = vld [vmem:[#allocation161_spill] sm:$0xff]  ;;  %v10050_v9 = vsub.f32 %v444_v17, %v4604_v55  ;;  %v1920_v29 = vand.u32 4294901760, %v320_v48  ;;  %v10068_v55 = vsub.f32 %v187_v53, %v10039_v26 }
 0x244   : > { %13547 = vst [vmem:[#allocation104_spill] sm:$0xff] %v10039_v26  ;;  %7101 = vmatprep.subr.bf16.mxu0 %v13548_v0  ;;  %6335 = vmatpush1.bf16.msra.mxu1 %v13549_v15  ;;  %13550 = vst [vmem:[#allocation111_spill] sm:$0xff] %v10043_v58  ;;  %v322_v50 = vld [vmem:[#allocation5 + $0x3f0] sm:$0xff]  ;;  %v13552_v63 = vld [vmem:[#allocation167_spill] sm:$0xff]  ;;  %v10072_v30 = vpack.c.bf16 %v4614_v59, %v4610_v31 }
 0x245   : > { %13551 = vst [vmem:[#allocation113_spill] sm:$0xff] %v10045_v36  ;;  %6337 = vmatprep.subr.bf16.mxu1 %v13552_v63  ;;  %13553 = vst [vmem:[#allocation119_spill] sm:$0xff] %v10048_v27  ;;  %v182_v0 = vld [vmem:[%s7946_s3 + $0x10] sm:$0xff]  ;;  %v13558_v15 = vld [vmem:[#allocation164_spill] sm:$0xff]  ;;  %v10063_v63 = vpack.c.bf16 %v1922_v8, %v1918_v35  ;;  %v10065_v36 = vsub.f32 %v323_v18, %v1922_v8  ;;  %v1924_v17 = vand.u32 4294901760, %v322_v50  ;;  %v13571_v35 = vand.u32 4294901760, %v9609_v32 }
 0x246   : > { %13554 = vst [vmem:[#allocation116_spill] sm:$0xff] %v10050_v9  ;;  %13555 = vst [vmem:[#allocation123_spill] sm:$0xff] %v10052_v44  ;;  %v448_v49 = vld [vmem:[#allocation5 + $0x7e0] sm:$0xff]  ;;  %v450_v41 = vld [vmem:[#allocation5 + $0x7f0] sm:$0xff]  ;;  %v10079_v8 = vsub.f32 %v449_v3, %v4610_v31  ;;  %v10083_v53 = vsub.f32 %v320_v48, %v1920_v29 }
 0x247   : > { %13556 = vst [vmem:[#allocation125_spill] sm:$0xff] %v10056_v13  ;;  %13557 = vst [vmem:[#allocation131_spill] sm:$0xff] %v10059_v24  ;;  %7103 = vmatpush1.bf16.msra.mxu0 %v13558_v15  ;;  %v13562_v23 = vld [vmem:[#allocation171_spill] sm:$0xff]  ;;  %v13563_v45 = vld [vmem:[#allocation173_spill] sm:$0xff]  ;;  %v10076_v15 = vand.u32 4294901760, %v182_v0  ;;  %v4612_v13 = vand.u32 4294901760, %v448_v49  ;;  %v1974_v9 = vsub.f32 %v9609_v32, %v13571_v35  ;;  %v10094_v3 = vpack.c.bf16 %v1924_v17, %v1920_v29 }
 0x248   : > { %13559 = vst [vmem:[#allocation128_spill] sm:$0xff] %v10063_v63  ;;  %13560 = vst [vmem:[#allocation135_spill] sm:$0xff] %v10065_v36  ;;  %7105 = vmatprep.subr.bf16.mxu0 %v13562_v23  ;;  %6339 = vmatpush1.bf16.msra.mxu1 %v13563_v45  ;;  %v13566_v18 = vld [vmem:[#allocation179_spill] sm:$0xff]  ;;  %v10081_v36 = vsub.f32 %v451_v61, %v4614_v59  ;;  %v13570_v23 = vand.u32 4294901760, %v9607_v20  ;;  %v4616_v44 = vand.u32 4294901760, %v450_v41  ;;  %v186_v26 = vld [vmem:[%s7946_s3 + $0x30] sm:$0xff] }
 0x249   : > { %13561 = vst [vmem:[#allocation137_spill] sm:$0xff] %v10068_v55  ;;  %13564 = vst [vmem:[#allocation143_spill] sm:$0xff] %v10072_v30  ;;  %6341 = vmatprep.subr.bf16.mxu1 %v13566_v18  ;;  %v13572_v18 = vld [vmem:[#allocation176_spill] sm:$0xff]  ;;  %v10096_v61 = vsub.f32 %v322_v50, %v1924_v17  ;;  %v13575_v59 = vld [vmem:[#allocation183_spill] sm:$0xff]  ;;  %v13578_v35 = vand.u32 4294901760, %v9617_v60  ;;  %v10109_v29 = vsub.f32 %v182_v0, %v10076_v15  ;;  %v10115_v48 = vand.u32 4294901760, %v186_v26 }
 0x24a   : > { %13565 = vst [vmem:[#allocation140_spill] sm:$0xff] %v10076_v15  ;;  %13567 = vst [vmem:[#allocation147_spill] sm:$0xff] %v10079_v8  ;;  %v1962_v45 = vsub.f32 %v9607_v20, %v13570_v23  ;;  %v13576_v23 = vld [vmem:[#allocation185_spill] sm:$0xff]  ;;  %v4654_v20 = vsub.f32 %v9613_v33, %v13577_v5  ;;  %v13580_v17 = vld [vmem:[#allocation191_spill] sm:$0xff]  ;;  %v10113_v31 = vsub.f32 %v448_v49, %v4612_v13  ;;  %v13583_v5 = vand.u32 4294901760, %v10059_v24 }
 0x24b   : > { %13568 = vst [vmem:[#allocation149_spill] sm:$0xff] %v10081_v36  ;;  %13569 = vst [vmem:[#allocation155_spill] sm:$0xff] %v10083_v53  ;;  %7107 = vmatpush1.bf16.msra.mxu0 %v13572_v18  ;;  %v4666_v18 = vsub.f32 %v9617_v60, %v13578_v35  ;;  %v1975_v35 = vand.u32 4294901760, %v1974_v9  ;;  %v13584_v50 = vld [vmem:[#allocation188_spill] sm:$0xff]  ;;  %v13586_v49 = vand.u32 4294901760, %v10068_v55  ;;  %v13589_v0 = vld [vmem:[#allocation198_spill] sm:$0xff] }
 0x24c   : > { %13573 = vst [vmem:[#allocation152_spill] sm:$0xff] %v10094_v3  ;;  %13574 = vst [vmem:[#allocation159_spill] sm:$0xff] %v10096_v61  ;;  %7109 = vmatprep.subr.bf16.mxu0 %v13575_v59  ;;  %6343 = vmatpush1.bf16.msra.mxu1 %v13576_v23  ;;  %v1963_v59 = vand.u32 4294901760, %v1962_v45  ;;  %v10121_v33 = vsub.f32 %v10059_v24, %v13583_v5  ;;  %v13587_v23 = vand.u32 4294901760, %v9622_v52  ;;  %v13588_v9 = vld [vmem:[#allocation196_spill] sm:$0xff]  ;;  %v4655_v15 = vand.u32 4294901760, %v4654_v20 }
 0x24d   : > { %13579 = vst [vmem:[#allocation161_spill] sm:$0xff] %v10109_v29  ;;  %6345 = vmatprep.subr.bf16.mxu1 %v13580_v17  ;;  %13581 = vst [vmem:[#allocation167_spill] sm:$0xff] %v10113_v31  ;;  %v10126_v17 = vpack.c.bf16 %v4616_v44, %v4612_v13  ;;  %v10131_v45 = vsub.f32 %v10068_v55, %v13586_v49  ;;  %v4667_v24 = vand.u32 4294901760, %v4666_v18  ;;  %v13593_v5 = vand.u32 4294901760, %v9628_v62  ;;  %v13600_v55 = vld [vmem:[#allocation142_spill] sm:$0xff]  ;;  %v13745_v8 = vld [vmem:[#allocation96_spill] sm:$0xff] }
 0x24e   : > { %13582 = vst [vmem:[#allocation164_spill] sm:$0xff] %v10115_v48  ;;  %v1968_v60 = vsub.f32 %v9622_v52, %v13587_v23  ;;  %v10144_v49 = vsub.f32 %v450_v41, %v4616_v44  ;;  %v10147_v23 = vsub.f32 %v186_v26, %v10115_v48  ;;  %v1930_v18 = vand.u32 4294901760, %v10121_v33  ;;  %v13596_v26 = vld [vmem:[#allocation201_spill] sm:$0xff]  ;;  %v13605_v48 = vld [vmem:[#allocation136_spill] sm:$0xff]  ;;  %v13719_v36 = vld [vmem:[#allocation74_spill] sm:$0xff] }
 0x24f   : > { %7111 = vmatpush1.bf16.msra.mxu0 %v13584_v50  ;;  %13585 = vst [vmem:[#allocation171_spill] sm:$0xff] %v10126_v17  ;;  %v13590_v50 = vand.u32 4294901760, %v9624_v39  ;;  %v13594_v13 = vand.u32 4294901760, %v9630_v25  ;;  %v13595_v44 = vand.u32 4294901760, %v9632_v22  ;;  %v13601_v33 = vand.u32 4294901760, %v9641_v6 }
 0x250   : > { %7113 = vmatprep.subr.bf16.mxu0 %v13588_v9  ;;  %6347 = vmatpush1.bf16.msra.mxu1 %v13589_v0  ;;  %13591 = vst [vmem:[#allocation173_spill] sm:$0xff] %v10144_v49  ;;  %13592 = vst [vmem:[#allocation179_spill] sm:$0xff] %v10147_v23  ;;  %v4660_v9 = vsub.f32 %v9628_v62, %v13593_v5  ;;  %v10154_v0 = vpack.c.bf16 %v1975_v35, %v1963_v59  ;;  %v13597_v5 = vand.u32 4294901760, %v9637_v34  ;;  %v13598_v35 = vld [vmem:[#allocation132_spill] sm:$0xff]  ;;  %v13688_v49 = vld [vmem:[#allocation46_spill] sm:$0xff] }
 0x251   : > { %v1980_v32 = vsub.f32 %v9624_v39, %v13590_v50  ;;  %6349 = vmatprep.subr.bf16.mxu1 %v9605_v14  ;;  %v4672_v50 = vsub.f32 %v9630_v25, %v13594_v13  ;;  %v1986_v41 = vsub.f32 %v9632_v22, %v13595_v44  ;;  %v1969_v14 = vand.u32 4294901760, %v1968_v60 }
 0x252   : > { %v1998_v20 = vsub.f32 %v9637_v34, %v13597_v5  ;;  %v4622_v13 = vand.u32 4294901760, %v10131_v45  ;;  %v10172_v44 = vpack.c.bf16 %v4667_v24, %v4655_v15  ;;  %v4661_v59 = vand.u32 4294901760, %v4660_v9  ;;  %v13602_v24 = vld [vmem:[#allocation153_spill] sm:$0xff]  ;;  %v13678_v34 = vld [vmem:[#allocation42_spill] sm:$0xff] }
 0x253   : > { %7115 = vmatpush1.bf16.msra.mxu0 %v13596_v26  ;;  %1784 = vmatmul.mubr.f32.vlgmr.msra.gmra.mrb[0].mxu1 %v13380_v56  ;;  %v13599_v26 = vand.u32 4294901760, %v10109_v29  ;;  %v1981_v56 = vand.u32 4294901760, %v1980_v32  ;;  %v4673_v45 = vand.u32 4294901760, %v4672_v50  ;;  %v13606_v9 = vand.u32 4294901760, %v9645_v21  ;;  %v13610_v32 = vld [vmem:[#allocation150_spill] sm:$0xff] }
 0x254   : > { %7117 = vmatprep.subr.bf16.mxu0 %v9611_v11  ;;  %6351 = vmatpush1.bf16.msra.mxu1 %v13598_v35  ;;  %v10185_v35 = vsub.f32 %v9641_v6, %v13601_v33  ;;  %v13603_v11 = vld [vmem:[#allocation156_spill] sm:$0xff]  ;;  %v13607_v5 = vand.u32 4294901760, %v9650_v42  ;;  %v13612_v50 = vand.u32 4294901760, %v13602_v24 }
 0x255   : > { %v10177_v60 = vsub.f32 %v10109_v29, %v13599_v26  ;;  %6353 = vmatprep.subr.bf16.mxu1 %v13600_v55  ;;  %1790 = vmatprep.mubr.f32.mxu1 %v13387_v28  ;;  %v1987_v26 = vand.u32 4294901760, %v1986_v41  ;;  %v13604_v29 = vld [vmem:[#allocation157_spill] sm:$0xff]  ;;  %v1999_v28 = vand.u32 4294901760, %v1998_v20  ;;  %v4690_v33 = vsub.f32 %v9645_v21, %v13606_v9 }
 0x256   : > { %4476 = vmatmul.mubr.f32.vlgmr.msra.gmra.mrb[0].mxu0 %v13390_v43  ;;  %v1992_v15 = vsub.f32 %v9650_v42, %v13607_v5  ;;  %v13608_v43 = vld [vmem:[#allocation158_spill] sm:$0xff]  ;;  %v13609_v41 = vld [vmem:[#allocation145_spill] sm:$0xff]  ;;  %v10202_v55 = vpack.c.bf16 %v1981_v56, %v1969_v14  ;;  %v13611_v5 = vand.u32 4294901760, %v10147_v23  ;;  %v2004_v14 = vsub.f32 %v13602_v24, %v13612_v50 }
 0x257   : > { %7119 = vmatpush1.bf16.msra.mxu0 %v13605_v48  ;;  %4482 = vmatprep.mubr.f32.mxu0 %v13394_v38  ;;  %v10220_v20 = vpack.c.bf16 %v4673_v45, %v4661_v59  ;;  %v13613_v38 = vand.u32 4294901760, %v13603_v11  ;;  %v13615_v50 = vld [vmem:[#allocation154_spill] sm:$0xff]  ;;  %v10230_v56 = vpack.c.bf16 %v1999_v28, %v1987_v26  ;;  %v4691_v48 = vand.u32 4294901760, %v4690_v33  ;;  %v13622_v28 = vld [vmem:[#allocation121_spill] sm:$0xff]  ;;  %v13627_v33 = vld [vmem:[#allocation120_spill] sm:$0xff] }
 0x258   : > { %7121 = vmatprep.subr.bf16.mxu0 %v13609_v41  ;;  %6355 = vmatpush1.bf16.msra.mxu1 %v13610_v32  ;;  %v10212_v9 = vsub.f32 %v10147_v23, %v13611_v5  ;;  %v13618_v45 = vld [vmem:[#allocation114_spill] sm:$0xff]  ;;  %v13621_v26 = vand.u32 4294901760, %v9674_v54  ;;  %v13625_v23 = vand.u32 4294901760, %v9681_v57 }
 0x259   : > { %6357 = vmatprep.subr.bf16.mxu1 %v9665_v12  ;;  %1792 = vmatmul.mubr.f32.gmra.mrb[2].mxu1 %v13403_v19  ;;  %v4679_v19 = vand.u32 4294901760, %v10185_v35  ;;  %v4684_v5 = vsub.f32 %v13603_v11, %v13613_v38  ;;  %v13614_v12 = vand.u32 4294901760, %v13604_v29  ;;  %v13617_v35 = vld [vmem:[#allocation105_spill] sm:$0xff]  ;;  %v13619_v38 = vand.u32 4294901760, %v9667_v4  ;;  %v13631_v42 = vld [vmem:[#allocation210_spill] sm:$0xff] }
 0x25a   : > { %4484 = vmatmul.mubr.f32.gmra.mrb[2].mxu0 %v13406_v40  ;;  %1931 = vmatprep.mubr.f32.mxu1 %v1930_v18  ;;  %v1993_v40 = vand.u32 4294901760, %v1992_v15  ;;  %v13616_v18 = vand.u32 4294901760, %v13608_v43  ;;  %v4714_v15 = vsub.f32 %v9674_v54, %v13621_v26 }
 0x25b   : > { %v4696_v32 = vsub.f32 %v13604_v29, %v13614_v12  ;;  %7123 = vmatpush1.bf16.msra.mxu0 %v13615_v50  ;;  %4623 = vmatprep.mubr.f32.mxu0 %v4622_v13  ;;  %v2022_v41 = vsub.f32 %v9667_v4, %v13619_v38  ;;  %v13620_v12 = vand.u32 4294901760, %v9672_v1  ;;  %v13623_v50 = vld [vmem:[#allocation118_spill] sm:$0xff]  ;;  %v2028_v38 = vsub.f32 %v9681_v57, %v13625_v23  ;;  %v13626_v29 = vld [vmem:[#allocation117_spill] sm:$0xff] }
 0x25c   : > { %v2010_v59 = vsub.f32 %v13608_v43, %v13616_v18  ;;  %7125 = vmatprep.subr.bf16.mxu0 %v13617_v35  ;;  %6359 = vmatpush1.bf16.msra.mxu1 %v13618_v45  ;;  %v2005_v18 = vand.u32 4294901760, %v2004_v14  ;;  %v13624_v35 = vand.u32 4294901760, %v9676_v2  ;;  %v13628_v14 = vld [vmem:[#allocation214_spill] sm:$0xff]  ;;  %v13629_v43 = vld [vmem:[#allocation216_spill] sm:$0xff]  ;;  %v13633_v4 = vand.u32 4294901760, %v13622_v28 }
 0x25d   : > { %v4702_v13 = vsub.f32 %v9672_v1, %v13620_v12  ;;  %6361 = vmatprep.subr.bf16.mxu1 %v13623_v50  ;;  %v4685_v12 = vand.u32 4294901760, %v4684_v5  ;;  %v4697_v1 = vand.u32 4294901760, %v4696_v32  ;;  %v13632_v23 = vld [vmem:[#allocation218_spill] sm:$0xff]  ;;  %v2023_v11 = vand.u32 4294901760, %v2022_v41 }
 0x25e   : > { %v2016_v45 = vsub.f32 %v9676_v2, %v13624_v35  ;;  %v2011_v50 = vand.u32 4294901760, %v2010_v59  ;;  %v13630_v35 = vld [vmem:[#allocation204_spill] sm:$0xff]  ;;  %v4715_v32 = vand.u32 4294901760, %v4714_v15  ;;  %v4708_v26 = vsub.f32 %v13622_v28, %v13633_v4  ;;  %v13634_v57 = vld [vmem:[#allocation18_spill] sm:$0xff]  ;;  %v13636_v2 = vld [vmem:[#allocation207_spill] sm:$0xff] }
 0x25f   : > { %7127 = vmatpush1.bf16.msra.mxu0 %v13627_v33  ;;  %v4703_v5 = vand.u32 4294901760, %v4702_v13  ;;  %v2029_v33 = vand.u32 4294901760, %v2028_v38  ;;  %v13635_v54 = vand.u32 4294901760, %v13626_v29  ;;  %v13637_v41 = vand.u32 4294901760, %v9694_v51 }
 0x260   : > { %7129 = vmatprep.subr.bf16.mxu0 %v13631_v42  ;;  %6363 = vmatpush1.bf16.msra.mxu1 %v13632_v23  ;;  %v2017_v59 = vand.u32 4294901760, %v2016_v45  ;;  %v10271_v42 = vpack.c.bf16 %v4691_v48, %v4679_v19  ;;  %v10273_v23 = vpack.c.bf16 %v2005_v18, %v1993_v40  ;;  %v13638_v4 = vand.u32 4294901760, %v9696_v10  ;;  %v13639_v45 = vld [vmem:[#allocation12_spill] sm:$0xff] }
 0x261   : > { %6365 = vmatprep.subr.bf16.mxu1 %v13634_v57  ;;  %v4720_v24 = vsub.f32 %v13626_v29, %v13635_v54  ;;  %v2034_v13 = vsub.f32 %v9694_v51, %v13637_v41  ;;  %v10282_v38 = vpack.c.bf16 %v4697_v1, %v4685_v12  ;;  %v13640_v54 = vand.u32 4294901760, %v13628_v14  ;;  %v13643_v41 = vld [vmem:[#allocation23_spill] sm:$0xff] }
 0x262   : > { %v2046_v15 = vsub.f32 %v9696_v10, %v13638_v4  ;;  %v13641_v48 = vand.u32 4294901760, %v13629_v43  ;;  %v13642_v40 = vand.u32 4294901760, %v13630_v35  ;;  %v13644_v57 = vld [vmem:[#allocation27_spill] sm:$0xff]  ;;  %v10295_v4 = vpack.c.bf16 %v2023_v11, %v2011_v50  ;;  %v13649_v11 = vld [vmem:[#allocation16_spill] sm:$0xff]  ;;  %v13657_v50 = vld [vmem:[#allocation22_spill] sm:$0xff] }
 0x263   : > { %7131 = vmatpush1.bf16.msra.mxu0 %v13639_v45  ;;  %v4726_v21 = vsub.f32 %v13628_v14, %v13640_v54  ;;  %v10297_v1 = vpack.c.bf16 %v4715_v32, %v4703_v5  ;;  %v4709_v12 = vand.u32 4294901760, %v4708_v26  ;;  %v13645_v45 = vld [vmem:[#allocation13_spill] sm:$0xff]  ;;  %v10301_v14 = vpack.c.bf16 %v2029_v33, %v2017_v59  ;;  %v13650_v5 = vld [vmem:[#allocation19_spill] sm:$0xff]  ;;  %v13658_v32 = vld [vmem:[#allocation28_spill] sm:$0xff] }
 0x264   : > { %v4738_v19 = vsub.f32 %v13629_v43, %v13641_v48  ;;  %v2040_v18 = vsub.f32 %v13630_v35, %v13642_v40  ;;  %7133 = vmatprep.subr.bf16.mxu0 %v13643_v41  ;;  %6367 = vmatpush1.bf16.msra.mxu1 %v13644_v57  ;;  %v13646_v54 = vld [vmem:[#allocation37_spill] sm:$0xff]  ;;  %v4721_v48 = vand.u32 4294901760, %v4720_v24  ;;  %v13647_v43 = vand.u32 4294901760, %v13636_v2  ;;  %v13648_v35 = vld [vmem:[#allocation14_spill] sm:$0xff]  ;;  %v13653_v24 = vld [vmem:[#allocation39_spill] sm:$0xff] }
 0x265   : > { %6369 = vmatprep.subr.bf16.mxu1 %v13646_v54  ;;  %v2035_v28 = vand.u32 4294901760, %v2034_v13  ;;  %v2047_v57 = vand.u32 4294901760, %v2046_v15  ;;  %v13651_v26 = vld [vmem:[#allocation29_spill] sm:$0xff]  ;;  %v4727_v29 = vand.u32 4294901760, %v4726_v21  ;;  %v13654_v51 = vld [vmem:[#allocation43_spill] sm:$0xff]  ;;  %v13663_v41 = vand.u32 4294901760, %v13649_v11 }
 0x266   : > { %v2052_v40 = vsub.f32 %v13636_v2, %v13647_v43  ;;  %v4739_v10 = vand.u32 4294901760, %v4738_v19  ;;  %v2041_v54 = vand.u32 4294901760, %v2040_v18  ;;  %v13652_v33 = vld [vmem:[#allocation25_spill] sm:$0xff]  ;;  %v13655_v43 = vand.u32 4294901760, %v13645_v45  ;;  %v13661_v59 = vld [vmem:[#allocation31_spill] sm:$0xff] }
 0x267   : > { %7135 = vmatpush1.bf16.msra.mxu0 %v13651_v26  ;;  %v13656_v15 = vld [vmem:[#allocation21_spill] sm:$0xff]  ;;  %v13660_v19 = vand.u32 4294901760, %v13648_v35  ;;  %v10325_v62 = vpack.c.bf16 %v4721_v48, %v4709_v12  ;;  %v2058_v2 = vsub.f32 %v13649_v11, %v13663_v41  ;;  %v13664_v6 = vand.u32 4294901760, %v13650_v5  ;;  %v13667_v12 = vld [vmem:[#allocation32_spill] sm:$0xff]  ;;  %v13674_v48 = vld [vmem:[#allocation67_spill] sm:$0xff] }
 0x268   : > { %7137 = vmatprep.subr.bf16.mxu0 %v13653_v24  ;;  %6371 = vmatpush1.bf16.msra.mxu1 %v13654_v51  ;;  %v4732_v13 = vsub.f32 %v13645_v45, %v13655_v43  ;;  %v13659_v26 = vld [vmem:[#allocation205_spill] sm:$0xff]  ;;  %v2053_v21 = vand.u32 4294901760, %v2052_v40  ;;  %v13662_v51 = vld [vmem:[#allocation36_spill] sm:$0xff]  ;;  %v10327_v43 = vpack.c.bf16 %v2047_v57, %v2035_v28  ;;  %v10336_v45 = vpack.c.bf16 %v4739_v10, %v4727_v29  ;;  %v13668_v57 = vld [vmem:[#allocation34_spill] sm:$0xff] }
 0x269   : > { %6373 = vmatprep.subr.bf16.mxu1 %v13659_v26  ;;  %v4744_v18 = vsub.f32 %v13648_v35, %v13660_v19  ;;  %v2070_v40 = vsub.f32 %v13650_v5, %v13664_v6  ;;  %v13665_v26 = vld [vmem:[#allocation45_spill] sm:$0xff]  ;;  %v13666_v19 = vand.u32 4294901760, %v13652_v33  ;;  %v13671_v11 = vand.u32 4294901760, %v13656_v15 }
 0x26a   : > { %v13669_v24 = vld [vmem:[#allocation53_spill] sm:$0xff]  ;;  %v4733_v41 = vand.u32 4294901760, %v4732_v13  ;;  %v13672_v10 = vand.u32 4294901760, %v13657_v50  ;;  %v10355_v28 = vpack.c.bf16 %v2053_v21, %v2041_v54  ;;  %v13680_v54 = vand.u32 4294901760, %v13667_v12 }
 0x26b   : > { %7139 = vmatpush1.bf16.msra.mxu0 %v13665_v26  ;;  %v4750_v25 = vsub.f32 %v13652_v33, %v13666_v19  ;;  %v13670_v35 = vld [vmem:[#allocation61_spill] sm:$0xff]  ;;  %v4762_v6 = vsub.f32 %v13656_v15, %v13671_v11  ;;  %v13673_v26 = vand.u32 4294901760, %v13658_v32  ;;  %v13676_v33 = vand.u32 4294901760, %v13662_v51 }
 0x26c   : > { %7141 = vmatprep.subr.bf16.mxu0 %v13669_v24  ;;  %6375 = vmatpush1.bf16.msra.mxu1 %v13670_v35  ;;  %v2064_v29 = vsub.f32 %v13657_v50, %v13672_v10  ;;  %v4745_v24 = vand.u32 4294901760, %v4744_v18  ;;  %v13675_v35 = vand.u32 4294901760, %v13661_v59  ;;  %v2059_v15 = vand.u32 4294901760, %v2058_v2  ;;  %v13677_v10 = vld [vmem:[#allocation40_spill] sm:$0xff] }
 0x26d   : > { %v2076_v19 = vsub.f32 %v13658_v32, %v13673_v26  ;;  %6377 = vmatprep.subr.bf16.mxu1 %v13674_v48  ;;  %v4768_v11 = vsub.f32 %v13662_v51, %v13676_v33  ;;  %v2071_v5 = vand.u32 4294901760, %v2070_v40  ;;  %v13679_v26 = vld [vmem:[#allocation62_spill] sm:$0xff]  ;;  %v4751_v48 = vand.u32 4294901760, %v4750_v25  ;;  %v13683_v33 = vld [vmem:[#allocation69_spill] sm:$0xff]  ;;  %v13684_v2 = vld [vmem:[#allocation76_spill] sm:$0xff] }
 0x26e   : > { %v4756_v13 = vsub.f32 %v13661_v59, %v13675_v35  ;;  %v2082_v21 = vsub.f32 %v13667_v12, %v13680_v54  ;;  %v13681_v18 = vand.u32 4294901760, %v13668_v57  ;;  %v13682_v59 = vld [vmem:[#allocation48_spill] sm:$0xff]  ;;  %v4763_v40 = vand.u32 4294901760, %v4762_v6  ;;  %v13685_v51 = vld [vmem:[#allocation49_spill] sm:$0xff]  ;;  %v13686_v25 = vld [vmem:[#allocation82_spill] sm:$0xff] }
 0x26f   : > { %7143 = vmatpush1.bf16.msra.mxu0 %v13679_v26  ;;  %v2065_v50 = vand.u32 4294901760, %v2064_v29  ;;  %v2077_v22 = vand.u32 4294901760, %v2076_v19  ;;  %v4769_v52 = vand.u32 4294901760, %v4768_v11  ;;  %v13687_v54 = vld [vmem:[#allocation195_spill] sm:$0xff]  ;;  %v13689_v32 = vand.u32 4294901760, %v13677_v10 }
 0x270   : > { %v2094_v35 = vsub.f32 %v13668_v57, %v13681_v18  ;;  %7145 = vmatprep.subr.bf16.mxu0 %v13683_v33  ;;  %6379 = vmatpush1.bf16.msra.mxu1 %v13684_v2  ;;  %v4757_v39 = vand.u32 4294901760, %v4756_v13  ;;  %v10379_v18 = vpack.c.bf16 %v4745_v24, %v4733_v41  ;;  %v13690_v6 = vand.u32 4294901760, %v13678_v34  ;;  %v13691_v19 = vld [vmem:[#allocation51_spill] sm:$0xff]  ;;  %v13692_v2 = vld [vmem:[#allocation84_spill] sm:$0xff]  ;;  %v13696_v57 = vld [vmem:[#allocation97_spill] sm:$0xff] }
 0x271   : > { %6381 = vmatprep.subr.bf16.mxu1 %v13686_v25  ;;  %v4774_v33 = vsub.f32 %v13677_v10, %v13689_v32  ;;  %v2083_v13 = vand.u32 4294901760, %v2082_v21  ;;  %v13693_v12 = vand.u32 4294901760, %v13682_v59  ;;  %v13694_v24 = vld [vmem:[#allocation52_spill] sm:$0xff]  ;;  %v13695_v25 = vld [vmem:[#allocation90_spill] sm:$0xff]  ;;  %v10396_v10 = vpack.c.bf16 %v2071_v5, %v2059_v15 }
 0x272   : > { %v4786_v29 = vsub.f32 %v13678_v34, %v13690_v6  ;;  %v2095_v11 = vand.u32 4294901760, %v2094_v35  ;;  %v10398_v6 = vpack.c.bf16 %v4763_v40, %v4751_v48  ;;  %v13697_v26 = vand.u32 4294901760, %v13685_v51  ;;  %v13698_v35 = vld [vmem:[#allocation103_spill] sm:$0xff]  ;;  %v13712_v34 = vld [vmem:[#allocation66_spill] sm:$0xff] }
 0x273   : > { %7147 = vmatpush1.bf16.msra.mxu0 %v13692_v2  ;;  %v2088_v31 = vsub.f32 %v13682_v59, %v13693_v12  ;;  %v10404_v2 = vpack.c.bf16 %v2077_v22, %v2065_v50  ;;  %v10406_v12 = vpack.c.bf16 %v4769_v52, %v4757_v39  ;;  %v13699_v41 = vand.u32 4294901760, %v13687_v54  ;;  %v13703_v22 = vld [vmem:[#allocation98_spill] sm:$0xff]  ;;  %v13710_v59 = vld [vmem:[#allocation64_spill] sm:$0xff] }
 0x274   : > { %7149 = vmatprep.subr.bf16.mxu0 %v13695_v25  ;;  %6383 = vmatpush1.bf16.msra.mxu1 %v13696_v57  ;;  %v2100_v21 = vsub.f32 %v13685_v51, %v13697_v26  ;;  %v13700_v32 = vand.u32 4294901760, %v13688_v49  ;;  %v4775_v15 = vand.u32 4294901760, %v4774_v33  ;;  %v4787_v48 = vand.u32 4294901760, %v4786_v29  ;;  %v13702_v25 = vld [vmem:[#allocation55_spill] sm:$0xff]  ;;  %v13707_v33 = vld [vmem:[#allocation168_spill] sm:$0xff] }
 0x275   : > { %6385 = vmatprep.subr.bf16.mxu1 %v13698_v35  ;;  %v4780_v57 = vsub.f32 %v13687_v54, %v13699_v41  ;;  %v13701_v40 = vand.u32 4294901760, %v13691_v19  ;;  %v10419_v52 = vpack.c.bf16 %v2095_v11, %v2083_v13  ;;  %v2089_v39 = vand.u32 4294901760, %v2088_v31  ;;  %v13705_v54 = vld [vmem:[#allocation60_spill] sm:$0xff]  ;;  %v13711_v13 = vld [vmem:[#allocation178_spill] sm:$0xff] }
 0x276   : > { %v4792_v5 = vsub.f32 %v13688_v49, %v13700_v32  ;;  %v13704_v50 = vand.u32 4294901760, %v13694_v24  ;;  %v13706_v32 = vld [vmem:[#allocation163_spill] sm:$0xff]  ;;  %v2101_v29 = vand.u32 4294901760, %v2100_v21  ;;  %v13708_v49 = vld [vmem:[#allocation57_spill] sm:$0xff]  ;;  %v10433_v51 = vpack.c.bf16 %v4787_v48, %v4775_v15  ;;  %v13716_v35 = vld [vmem:[#allocation172_spill] sm:$0xff] }
 0x277   : > { %v2106_v26 = vsub.f32 %v13691_v19, %v13701_v40  ;;  %7151 = vmatpush1.bf16.msra.mxu0 %v13703_v22  ;;  %v13709_v19 = vld [vmem:[#allocation58_spill] sm:$0xff]  ;;  %v4781_v31 = vand.u32 4294901760, %v4780_v57  ;;  %v13715_v40 = vld [vmem:[#allocation73_spill] sm:$0xff] }
 0x278   : > { %v2118_v41 = vsub.f32 %v13694_v24, %v13704_v50  ;;  %7153 = vmatprep.subr.bf16.mxu0 %v13706_v32  ;;  %6387 = vmatpush1.bf16.msra.mxu1 %v13707_v33  ;;  %v4793_v11 = vand.u32 4294901760, %v4792_v5  ;;  %v13713_v50 = vld [vmem:[#allocation72_spill] sm:$0xff]  ;;  %v13714_v33 = vand.u32 4294901760, %v13702_v25  ;;  %v13718_v5 = vld [vmem:[#allocation70_spill] sm:$0xff]  ;;  %v13720_v15 = vld [vmem:[#allocation181_spill] sm:$0xff]  ;;  %v10458_v24 = vpack.c.bf16 %v2101_v29, %v2089_v39 }
 0x279   : > { %6389 = vmatprep.subr.bf16.mxu1 %v13711_v13  ;;  %v2107_v32 = vand.u32 4294901760, %v2106_v26  ;;  %v13717_v13 = vand.u32 4294901760, %v13705_v54  ;;  %v13721_v48 = vld [vmem:[#allocation186_spill] sm:$0xff]  ;;  %v13727_v26 = vand.u32 4294901760, %v13712_v34 }
 0x27a   : > { %v4798_v21 = vsub.f32 %v13702_v25, %v13714_v33  ;;  %v2119_v22 = vand.u32 4294901760, %v2118_v41  ;;  %v13722_v33 = vand.u32 4294901760, %v13708_v49  ;;  %v13723_v41 = vand.u32 4294901760, %v13709_v19  ;;  %v13732_v29 = vld [vmem:[#allocation190_spill] sm:$0xff] }
 0x27b   : > { %7155 = vmatpush1.bf16.msra.mxu0 %v13716_v35  ;;  %v4810_v57 = vsub.f32 %v13705_v54, %v13717_v13  ;;  %v13724_v13 = vand.u32 4294901760, %v13710_v59  ;;  %v13725_v54 = vld [vmem:[#allocation194_spill] sm:$0xff] }
 0x27c   : > { %7157 = vmatprep.subr.bf16.mxu0 %v13720_v15  ;;  %6391 = vmatpush1.bf16.msra.mxu1 %v13721_v48  ;;  %v2112_v53 = vsub.f32 %v13708_v49, %v13722_v33  ;;  %v2124_v35 = vsub.f32 %v13709_v19, %v13723_v41  ;;  %v10460_v15 = vpack.c.bf16 %v4793_v11, %v4781_v31  ;;  %v13728_v33 = vand.u32 4294901760, %v13713_v50 }
 0x27d   : > { %v4804_v61 = vsub.f32 %v13710_v59, %v13724_v13  ;;  %6393 = vmatprep.subr.bf16.mxu1 %v13725_v54  ;;  %v4816_v48 = vsub.f32 %v13712_v34, %v13727_v26  ;;  %v4799_v25 = vand.u32 4294901760, %v4798_v21  ;;  %v13729_v41 = vand.u32 4294901760, %v13715_v40  ;;  %v13730_v13 = vld [vmem:[#allocation78_spill] sm:$0xff]  ;;  %v13731_v54 = vld [vmem:[#allocation79_spill] sm:$0xff] }
 0x27e   : > { %13726 = vst [vmem:[#allocation176_spill] sm:$0xff] %v10460_v15  ;;  %v2130_v49 = vsub.f32 %v13713_v50, %v13728_v33  ;;  %v10474_v31 = vpack.c.bf16 %v2119_v22, %v2107_v32  ;;  %v4811_v11 = vand.u32 4294901760, %v4810_v57  ;;  %v13734_v26 = vand.u32 4294901760, %v13718_v5  ;;  %v13736_v50 = vld [vmem:[#allocation200_spill] sm:$0xff]  ;;  %v13738_v57 = vld [vmem:[#allocation81_spill] sm:$0xff] }
 0x27f   : > { %v2142_v19 = vsub.f32 %v13715_v40, %v13729_v41  ;;  %7159 = vmatpush1.bf16.msra.mxu0 %v13732_v29  ;;  %v13735_v33 = vand.u32 4294901760, %v13719_v36  ;;  %v2113_v41 = vand.u32 4294901760, %v2112_v53  ;;  %v2125_v59 = vand.u32 4294901760, %v2124_v35  ;;  %v13737_v40 = vld [vmem:[#allocation85_spill] sm:$0xff]  ;;  %v13743_v29 = vld [vmem:[#allocation24_spill] sm:$0xff] }
 0x280   : > { %13733 = vst [vmem:[#allocation183_spill] sm:$0xff] %v10474_v31  ;;  %v4822_v34 = vsub.f32 %v13718_v5, %v13734_v26  ;;  %7161 = vmatprep.subr.bf16.mxu0 %v13736_v50  ;;  %6395 = vmatpush1.bf16.msra.mxu1 %v9947_v47  ;;  %v4805_v39 = vand.u32 4294901760, %v4804_v61  ;;  %v4817_v22 = vand.u32 4294901760, %v4816_v48  ;;  %v2131_v32 = vand.u32 4294901760, %v2130_v49  ;;  %v13739_v26 = vld [vmem:[#allocation86_spill] sm:$0xff]  ;;  %v13742_v61 = vld [vmem:[#allocation88_spill] sm:$0xff] }
 0x281   : > { %v4834_v21 = vsub.f32 %v13719_v36, %v13735_v33  ;;  %6397 = vmatprep.subr.bf16.mxu1 %v9961_v37  ;;  %v2143_v15 = vand.u32 4294901760, %v2142_v19  ;;  %v13740_v33 = vand.u32 4294901760, %v13730_v13  ;;  %v13741_v47 = vand.u32 4294901760, %v13731_v54  ;;  %v13744_v49 = vld [vmem:[#allocation91_spill] sm:$0xff] }
 0x282   : > { %v4823_v37 = vand.u32 4294901760, %v4822_v34  ;;  %v13746_v19 = vld [vmem:[#allocation215_spill] sm:$0xff]  ;;  %v10500_v5 = vpack.c.bf16 %v4811_v11, %v4799_v25  ;;  %v13751_v34 = vld [vmem:[#allocation44_spill] sm:$0xff]  ;;  %v10510_v36 = vpack.c.bf16 %v4817_v22, %v4805_v39  ;;  %v13754_v31 = vand.u32 4294901760, %v13738_v57 }
 0x283   : > { %v2136_v50 = vsub.f32 %v13730_v13, %v13740_v33  ;;  %v2148_v53 = vsub.f32 %v13731_v54, %v13741_v47  ;;  %7163 = vmatpush1.bf16.msra.mxu0 %v13743_v29  ;;  %v4835_v48 = vand.u32 4294901760, %v4834_v21  ;;  %v13748_v33 = vand.u32 4294901760, %v13737_v40  ;;  %v13749_v54 = vld [vmem:[#allocation93_spill] sm:$0xff]  ;;  %v13750_v13 = vld [vmem:[#allocation94_spill] sm:$0xff] }
 0x284   : > { %7165 = vmatprep.subr.bf16.mxu0 %v9967_v46  ;;  %6399 = vmatpush1.bf16.msra.mxu1 %v13746_v19  ;;  %13747 = vst [vmem:[#allocation185_spill] sm:$0xff] %v10500_v5  ;;  %v10508_v21 = vpack.c.bf16 %v2125_v59, %v2113_v41  ;;  %13753 = vst [vmem:[#allocation188_spill] sm:$0xff] %v10510_v36  ;;  %v4840_v19 = vsub.f32 %v13738_v57, %v13754_v31  ;;  %v13755_v25 = vand.u32 4294901760, %v13739_v26  ;;  %v13758_v59 = vld [vmem:[#allocation38_spill] sm:$0xff]  ;;  %v13767_v57 = vld [vmem:[#allocation87_spill] sm:$0xff] }
 0x285   : > { %v4828_v47 = vsub.f32 %v13737_v40, %v13748_v33  ;;  %6401 = vmatprep.subr.bf16.mxu1 %v13751_v34  ;;  %v10518_v46 = vpack.c.bf16 %v2143_v15, %v2131_v32  ;;  %v2137_v33 = vand.u32 4294901760, %v2136_v50  ;;  %v2149_v35 = vand.u32 4294901760, %v2148_v53  ;;  %v13762_v15 = vld [vmem:[#allocation100_spill] sm:$0xff]  ;;  %v13763_v50 = vld [vmem:[#allocation71_spill] sm:$0xff] }
 0x286   : > { %13752 = vst [vmem:[#allocation191_spill] sm:$0xff] %v10508_v21  ;;  %v2154_v11 = vsub.f32 %v13739_v26, %v13755_v25  ;;  %v13757_v29 = vand.u32 4294901760, %v13742_v61  ;;  %v10524_v39 = vpack.c.bf16 %v4835_v48, %v4823_v37  ;;  %v13760_v41 = vand.u32 4294901760, %v13744_v49  ;;  %v13769_v40 = vld [vmem:[#allocation160_spill] sm:$0xff] }
 0x287   : > { %13756 = vst [vmem:[#allocation196_spill] sm:$0xff] %v10518_v46  ;;  %7167 = vmatpush1.bf16.msra.mxu0 %v13758_v59  ;;  %v13761_v22 = vand.u32 4294901760, %v13745_v8  ;;  %v4829_v53 = vand.u32 4294901760, %v4828_v47  ;;  %v13765_v48 = vand.u32 4294901760, %v13750_v13  ;;  %v13773_v46 = vld [vmem:[#allocation75_spill] sm:$0xff] }
 0x288   : > { %v2166_v34 = vsub.f32 %v13742_v61, %v13757_v29  ;;  %13759 = vst [vmem:[#allocation198_spill] sm:$0xff] %v10524_v39  ;;  %v4846_v31 = vsub.f32 %v13744_v49, %v13760_v41  ;;  %7169 = vmatprep.subr.bf16.mxu0 %v9998_v7  ;;  %6403 = vmatpush1.bf16.msra.mxu1 %v13763_v50  ;;  %v13764_v29 = vand.u32 4294901760, %v13749_v54  ;;  %v13766_v41 = vld [vmem:[#allocation102_spill] sm:$0xff]  ;;  %v2155_v32 = vand.u32 4294901760, %v2154_v11  ;;  %v13770_v61 = vld [vmem:[#allocation165_spill] sm:$0xff]  ;;  %v13776_v50 = vld [vmem:[#allocation95_spill] sm:$0xff] }
 0x289   : > { %v4858_v25 = vsub.f32 %v13745_v8, %v13761_v22  ;;  %v2172_v59 = vsub.f32 %v13750_v13, %v13765_v48  ;;  %6405 = vmatprep.subr.bf16.mxu1 %v13767_v57  ;;  %v4841_v22 = vand.u32 4294901760, %v4840_v19  ;;  %v13768_v8 = vld [vmem:[#allocation109_spill] sm:$0xff]  ;;  %v13771_v39 = vld [vmem:[#allocation166_spill] sm:$0xff]  ;;  %v13774_v49 = vand.u32 4294901760, %v13762_v15 }
 0x28a   : > { %v2160_v37 = vsub.f32 %v13749_v54, %v13764_v29  ;;  %v2167_v47 = vand.u32 4294901760, %v2166_v34  ;;  %v13772_v54 = vld [vmem:[#allocation169_spill] sm:$0xff]  ;;  %v4847_v48 = vand.u32 4294901760, %v4846_v31  ;;  %v13775_v11 = vld [vmem:[#allocation170_spill] sm:$0xff]  ;;  %v10558_v34 = vpack.c.bf16 %v2149_v35, %v2137_v33 }
 0x28b   : > { %7171 = vmatpush1.bf16.msra.mxu0 %v13773_v46  ;;  %v4859_v13 = vand.u32 4294901760, %v4858_v25  ;;  %v10552_v19 = vsub.f32 %v13762_v15, %v13774_v49  ;;  %v191_v57 = vld [vmem:[%s7946_s3 + $0x58] sm:$0xff]  ;;  %v2173_v29 = vand.u32 4294901760, %v2172_v59  ;;  %v13778_v31 = vand.u32 4294901760, %v13766_v41 }
 0x28c   : > { %7173 = vmatprep.subr.bf16.mxu0 %v13776_v50  ;;  %6407 = vmatpush1.bf16.msra.mxu1 %v10043_v58  ;;  %13777 = vst [vmem:[#allocation201_spill] sm:$0xff] %v10558_v34  ;;  %v2161_v36 = vand.u32 4294901760, %v2160_v37  ;;  %v10566_v49 = vpack.c.bf16 %v4841_v22, %v4829_v53  ;;  %v13780_v7 = vand.u32 4294901760, %v13768_v8  ;;  %v13781_v58 = vand.u32 4294901760, %v13769_v40  ;;  %v13782_v33 = vld [vmem:[#allocation174_spill] sm:$0xff]  ;;  %v13825_v34 = vld [vmem:[#allocation203_spill] sm:$0xff] }
 0x28d   : > { %v10563_v25 = vsub.f32 %v13766_v41, %v13778_v31  ;;  %6409 = vmatprep.subr.bf16.mxu1 %v10063_v63  ;;  %v13783_v37 = vand.u32 4294901760, %v13770_v61  ;;  %v13784_v53 = vand.u32 4294901760, %v13771_v39  ;;  %v195_v50 = vld [vmem:[%s7946_s3 + $0x78] sm:$0xff]  ;;  %v10598_v59 = vpack.c.bf16 %v2167_v47, %v2155_v32  ;;  %v190_v47 = vld [vmem:[%s7946_s3 + $0x50] sm:$0xff] }
 0x28e   : > { %13779 = vst [vmem:[#allocation219_spill] sm:$0xff] %v10566_v49  ;;  %v10571_v26 = vsub.f32 %v13768_v8, %v13780_v7  ;;  %v10576_v35 = vsub.f32 %v13769_v40, %v13781_v58  ;;  %v13785_v7 = vand.u32 4294901760, %v13772_v54  ;;  %v10594_v58 = vand.u32 4294901760, %v191_v57  ;;  %v13803_v40 = vld [vmem:[#allocation184_spill] sm:$0xff]  ;;  %v13824_v49 = vld [vmem:[#allocation202_spill] sm:$0xff] }
 0x28f   : > { %v10582_v31 = vsub.f32 %v13770_v61, %v13783_v37  ;;  %v10587_v22 = vsub.f32 %v13771_v39, %v13784_v53  ;;  %7175 = vmatpush1.bf16.msra.mxu0 %v10048_v27  ;;  %13787 = vst [vmem:[#allocation221_spill] sm:$0xff] %v10598_v59  ;;  %v10600_v37 = vpack.c.bf16 %v4859_v13, %v4847_v48  ;;  %v13789_v41 = vand.u32 4294901760, %v13775_v11  ;;  %v13791_v27 = vld [vmem:[#allocation175_spill] sm:$0xff] }
 0x290   : > { %v10592_v63 = vsub.f32 %v13772_v54, %v13785_v7  ;;  %13786 = vst [vmem:[#allocation220_spill] sm:$0xff] %v10594_v58  ;;  %7177 = vmatprep.subr.bf16.mxu0 %v10072_v30  ;;  %6411 = vmatpush1.bf16.msra.mxu1 %v10094_v3  ;;  %v10610_v7 = vpack.c.bf16 %v2173_v29, %v2161_v36  ;;  %v13793_v46 = vand.u32 4294901760, %v13782_v33  ;;  %v10626_v36 = vand.u32 4294901760, %v195_v50  ;;  %v13806_v48 = vld [vmem:[#allocation187_spill] sm:$0xff] }
 0x291   : > { %13788 = vst [vmem:[#allocation222_spill] sm:$0xff] %v10600_v37  ;;  %v10606_v53 = vsub.f32 %v13775_v11, %v13789_v41  ;;  %v10615_v13 = vsub.f32 %v191_v57, %v10594_v58  ;;  %6413 = vmatprep.subr.bf16.mxu1 %v10154_v0  ;;  %v13795_v41 = vand.u32 4294901760, %v10177_v60  ;;  %v10640_v29 = vand.u32 4294901760, %v190_v47  ;;  %v13800_v60 = vld [vmem:[#allocation180_spill] sm:$0xff]  ;;  %v13801_v0 = vld [vmem:[#allocation182_spill] sm:$0xff]  ;;  %v13807_v58 = vld [vmem:[#allocation189_spill] sm:$0xff] }
 0x292   : > { %13790 = vst [vmem:[#allocation223_spill] sm:$0xff] %v10610_v7  ;;  %v10624_v3 = vsub.f32 %v13782_v33, %v13793_v46  ;;  %13794 = vst [vmem:[#allocation225_spill] sm:$0xff] %v10626_v36  ;;  %v13796_v46 = vld [vmem:[#allocation177_spill] sm:$0xff]  ;;  %v10638_v30 = vsub.f32 %v195_v50, %v10626_v36  ;;  %v13799_v15 = vand.u32 4294901760, %v13791_v27  ;;  %v13817_v7 = vand.u32 4294901760, %v13803_v40  ;;  %v13883_v33 = vld [vmem:[#allocation188_spill] sm:$0xff] }
 0x293   : > { %13792 = vst [vmem:[#allocation224_spill] sm:$0xff] %v10615_v13  ;;  %7179 = vmatpush1.bf16.msra.mxu0 %v10126_v17  ;;  %1937 = vmatmul.mubr.f32.vlgmr.msra.gmra.mrb[0].mxu1 %v13795_v41  ;;  %13798 = vst [vmem:[#allocation227_spill] sm:$0xff] %v10640_v29  ;;  %v13802_v32 = vand.u32 4294901760, %v10615_v13  ;;  %v194_v17 = vld [vmem:[%s7946_s3 + $0x70] sm:$0xff]  ;;  %v13805_v41 = vand.u32 4294901760, %v10212_v9 }
 0x294   : > { %13797 = vst [vmem:[#allocation226_spill] sm:$0xff] %v10638_v30  ;;  %7181 = vmatprep.subr.bf16.mxu0 %v10172_v44  ;;  %6415 = vmatpush1.bf16.msra.mxu1 %v10202_v55  ;;  %v10647_v57 = vsub.f32 %v13791_v27, %v13799_v15  ;;  %v12505_v8 = vand.u32 4294901760, %v10638_v30  ;;  %v10660_v15 = vsub.f32 %v190_v47, %v10640_v29  ;;  %v10673_v29 = vand.u32 4294901760, %v194_v17 }
 0x295   : > { %v1945_v50 = vsub.f32 %v10615_v13, %v13802_v32  ;;  %6417 = vmatprep.subr.bf16.mxu1 %v10230_v56  ;;  %v13808_v32 = vld [vmem:[#allocation192_spill] sm:$0xff]  ;;  %v13809_v56 = vld [vmem:[#allocation193_spill] sm:$0xff]  ;;  %v13813_v13 = vld [vmem:[#allocation199_spill] sm:$0xff] }
 0x296   : > { %13804 = vst [vmem:[#allocation228_spill] sm:$0xff] %v10660_v15  ;;  %4629 = vmatmul.mubr.f32.vlgmr.msra.gmra.mrb[0].mxu0 %v13805_v41  ;;  %v4637_v55 = vsub.f32 %v10638_v30, %v12505_v8  ;;  %v12508_v47 = vand.u32 4294901760, %v10660_v15  ;;  %13810 = vst [vmem:[#allocation229_spill] sm:$0xff] %v10673_v29  ;;  %v4889_v9 = vand.u32 4294901760, %v10647_v57  ;;  %v13811_v41 = vand.u32 4294901760, %v13796_v46 }
 0x297   : > { %v1946_v37 = vand.u32 4294901760, %v1945_v50  ;;  %7183 = vmatpush1.bf16.msra.mxu0 %v10220_v20  ;;  %v13812_v50 = vld [vmem:[#allocation197_spill] sm:$0xff]  ;;  %v13814_v8 = vand.u32 4294901760, %v13800_v60  ;;  %v10691_v57 = vsub.f32 %v194_v17, %v10673_v29  ;;  %v13818_v30 = vand.u32 4294901760, %v13806_v48 }
 0x298   : > { %7185 = vmatprep.subr.bf16.mxu0 %v10271_v42  ;;  %6419 = vmatpush1.bf16.msra.mxu1 %v10273_v23  ;;  %v2202_v20 = vsub.f32 %v13796_v46, %v13811_v41  ;;  %v4638_v42 = vand.u32 4294901760, %v4637_v55  ;;  %v1951_v23 = vsub.f32 %v10660_v15, %v12508_v47  ;;  %v13816_v41 = vand.u32 4294901760, %v13801_v0  ;;  %v13885_v46 = vld [vmem:[#allocation198_spill] sm:$0xff] }
 0x299   : > { %6421 = vmatprep.subr.bf16.mxu1 %v10295_v4  ;;  %v2214_v36 = vsub.f32 %v13800_v60, %v13814_v8  ;;  %1947 = vmatprep.mubr.f32.mxu1 %v1946_v37  ;;  %13815 = vst [vmem:[#allocation230_spill] sm:$0xff] %v10691_v57  ;;  %v4906_v4 = vsub.f32 %v13803_v40, %v13817_v7  ;;  %v13819_v37 = vand.u32 4294901760, %v13807_v58  ;;  %v13820_v17 = vand.u32 4294901760, %v13808_v32  ;;  %v13886_v40 = vld [vmem:[#allocation201_spill] sm:$0xff] }
 0x29a   : > { %v4894_v44 = vsub.f32 %v13801_v0, %v13816_v41  ;;  %v2208_v8 = vsub.f32 %v13806_v48, %v13818_v30  ;;  %v13821_v41 = vand.u32 4294901760, %v13809_v56  ;;  %4639 = vmatprep.mubr.f32.mxu0 %v4638_v42  ;;  %v1952_v7 = vand.u32 4294901760, %v1951_v23  ;;  %v13826_v23 = vld [vmem:[#allocation206_spill] sm:$0xff]  ;;  %v13880_v48 = vld [vmem:[#allocation159_spill] sm:$0xff]  ;;  %v13882_v0 = vld [vmem:[#allocation173_spill] sm:$0xff] }
 0x29b   : > { %v2220_v55 = vsub.f32 %v13807_v58, %v13819_v37  ;;  %7187 = vmatpush1.bf16.msra.mxu0 %v10282_v38  ;;  %v4900_v47 = vsub.f32 %v13808_v32, %v13820_v17  ;;  %v13822_v30 = vand.u32 4294901760, %v13812_v50  ;;  %v13823_v37 = vand.u32 4294901760, %v13813_v13  ;;  %v13874_v32 = vld [vmem:[#allocation196_spill] sm:$0xff]  ;;  %v13881_v58 = vld [vmem:[#allocation167_spill] sm:$0xff] }
 0x29c   : > { %v4912_v15 = vsub.f32 %v13809_v56, %v13821_v41  ;;  %7189 = vmatprep.subr.bf16.mxu0 %v10297_v1  ;;  %6423 = vmatpush1.bf16.msra.mxu1 %v10301_v14  ;;  %v2203_v42 = vand.u32 4294901760, %v2202_v20  ;;  %v12515_v29 = vand.u32 4294901760, %v13826_v23  ;;  %v13827_v1 = vld [vmem:[#allocation15_spill] sm:$0xff]  ;;  %v13828_v14 = vand.u32 4294901760, %v10691_v57 }
 0x29d   : > { %v2226_v38 = vsub.f32 %v13812_v50, %v13822_v30  ;;  %v2238_v17 = vsub.f32 %v13813_v13, %v13823_v37  ;;  %6425 = vmatprep.subr.bf16.mxu1 %v10327_v43  ;;  %1953 = vmatmul.mubr.f32.gmra.mrb[2].mxu1 %v1952_v7  ;;  %v2215_v5 = vand.u32 4294901760, %v2214_v36  ;;  %v4895_v50 = vand.u32 4294901760, %v4894_v44 }
 0x29e   : > { %v4643_v30 = vsub.f32 %v10691_v57, %v13828_v14  ;;  %v4907_v56 = vand.u32 4294901760, %v4906_v4  ;;  %v2209_v37 = vand.u32 4294901760, %v2208_v8  ;;  %2344 = vmatprep.mubr.f32.mxu1 %v10034_v16  ;;  %v2221_v41 = vand.u32 4294901760, %v2220_v55  ;;  %v13834_v55 = vld [vmem:[#allocation17_spill] sm:$0xff] }
 0x29f   : > { %7191 = vmatpush1.bf16.msra.mxu0 %v10325_v62  ;;  %v4901_v43 = vand.u32 4294901760, %v4900_v47  ;;  %v4913_v20 = vand.u32 4294901760, %v4912_v15  ;;  %v2227_v7 = vand.u32 4294901760, %v2226_v38  ;;  %v2239_v21 = vand.u32 4294901760, %v2238_v17  ;;  %v13865_v16 = vld [vmem:[#allocation89_spill] sm:$0xff] }
 0x2a0   : > { %v4644_v59 = vand.u32 4294901760, %v4643_v30  ;;  %7193 = vmatprep.subr.bf16.mxu0 %v10336_v45  ;;  %6427 = vmatpush1.bf16.msra.mxu1 %v10355_v28  ;;  %v13829_v14 = vand.u32 4294901760, %v13824_v49  ;;  %v13830_v44 = vand.u32 4294901760, %v13825_v34  ;;  %v13831_v62 = vand.u32 4294901760, %v10552_v19  ;;  %v13866_v57 = vld [vmem:[#allocation185_spill] sm:$0xff] }
 0x2a1   : > { %6429 = vmatprep.subr.bf16.mxu1 %v10396_v10  ;;  %v13832_v45 = vand.u32 4294901760, %v10563_v25  ;;  %v10753_v28 = vsub.f32 %v13826_v23, %v12515_v29  ;;  %v13833_v47 = vand.u32 4294901760, %v13827_v1  ;;  %v12517_v38 = vand.u32 4294901760, %v13834_v55  ;;  %v13842_v29 = vld [vmem:[#allocation104_spill] sm:$0xff]  ;;  %v13870_v23 = vld [vmem:[#allocation107_spill] sm:$0xff] }
 0x2a2   : > { %v10736_v36 = vsub.f32 %v13824_v49, %v13829_v14  ;;  %v10741_v4 = vsub.f32 %v13825_v34, %v13830_v44  ;;  %4645 = vmatmul.mubr.f32.gmra.mrb[2].mxu0 %v4644_v59  ;;  %v13835_v10 = vand.u32 4294901760, %v10571_v26  ;;  %v13836_v19 = vand.u32 4294901760, %v10576_v35  ;;  %v13872_v49 = vld [vmem:[#allocation116_spill] sm:$0xff] }
 0x2a3   : > { %v10748_v15 = vpack.c.bf16 %v13832_v45, %v13831_v62  ;;  %v10758_v8 = vsub.f32 %v13827_v1, %v13833_v47  ;;  %v13837_v17 = vand.u32 4294901760, %v10582_v31  ;;  %v13838_v30 = vand.u32 4294901760, %v10587_v22  ;;  %v13841_v47 = vld [vmem:[#allocation211_spill] sm:$0xff]  ;;  %5036 = vmatprep.mubr.f32.mxu0 %v13842_v29  ;;  %7195 = vmatpush1.bf16.msra.mxu0 %v10379_v18  ;;  %v13864_v29 = vld [vmem:[#allocation80_spill] sm:$0xff] }
 0x2a4   : > { %v10765_v25 = vpack.c.bf16 %v13836_v19, %v13835_v10  ;;  %v13839_v44 = vand.u32 4294901760, %v10592_v63  ;;  %v13840_v62 = vand.u32 4294901760, %v10606_v53  ;;  %v12516_v59 = vand.u32 4294901760, %v13841_v47  ;;  %7197 = vmatprep.subr.bf16.mxu0 %v10398_v6  ;;  %6431 = vmatpush1.bf16.msra.mxu1 %v10404_v2  ;;  %v13844_v2 = vld [vmem:[#allocation20_spill] sm:$0xff]  ;;  %v13852_v19 = vld [vmem:[#allocation33_spill] sm:$0xff] }
 0x2a5   : > { %v10771_v14 = vpack.c.bf16 %v13838_v30, %v13837_v17  ;;  %v13843_v26 = vand.u32 4294901760, %v10624_v3  ;;  %v10786_v31 = vpack.c.bf16 %v2215_v5, %v2203_v42  ;;  %v10788_v22 = vpack.c.bf16 %v4907_v56, %v4895_v50  ;;  %6433 = vmatprep.subr.bf16.mxu1 %v10419_v52  ;;  %v13845_v50 = vld [vmem:[#allocation213_spill] sm:$0xff]  ;;  %v13846_v42 = vld [vmem:[#allocation30_spill] sm:$0xff]  ;;  %v13861_v52 = vld [vmem:[#allocation68_spill] sm:$0xff] }
 0x2a6   : > { %v10777_v45 = vpack.c.bf16 %v13840_v62, %v13839_v44  ;;  %v10790_v10 = vpack.c.bf16 %v2221_v41, %v2209_v37  ;;  %v10794_v63 = vpack.c.bf16 %v4913_v20, %v4901_v43  ;;  %v10796_v53 = vpack.c.bf16 %v2239_v21, %v2227_v7  ;;  %v13850_v44 = vld [vmem:[#allocation183_spill] sm:$0xff]  ;;  %v13855_v20 = vld [vmem:[#allocation50_spill] sm:$0xff]  ;;  %v13857_v43 = vld [vmem:[#allocation176_spill] sm:$0xff] }
 0x2a7   : > { %v10784_v35 = vpack.c.bf16 %v4889_v9, %v13843_v26  ;;  %v4919_v18 = vand.u32 4294901760, %v10736_v36  ;;  %v4931_v3 = vand.u32 4294901760, %v10741_v4  ;;  %v2233_v5 = vand.u32 4294901760, %v10753_v28  ;;  %7199 = vmatpush1.bf16.msra.mxu0 %v10406_v12  ;;  %v13847_v4 = vld [vmem:[#allocation35_spill] sm:$0xff]  ;;  %v13853_v12 = vld [vmem:[#allocation41_spill] sm:$0xff]  ;;  %v13856_v62 = vld [vmem:[#allocation54_spill] sm:$0xff] }
 0x2a8   : > { %v2245_v56 = vand.u32 4294901760, %v10758_v8  ;;  %v10806_v6 = vsub.f32 %v13834_v55, %v12517_v38  ;;  %v10812_v21 = vsub.f32 %v13841_v47, %v12516_v59  ;;  %7201 = vmatprep.subr.bf16.mxu0 %v10433_v51  ;;  %6435 = vmatpush1.bf16.msra.mxu1 %v10458_v24  ;;  %v13851_v38 = vld [vmem:[#allocation217_spill] sm:$0xff]  ;;  %v13858_v51 = vld [vmem:[#allocation56_spill] sm:$0xff]  ;;  %v13859_v37 = vld [vmem:[#allocation63_spill] sm:$0xff]  ;;  %v13884_v27 = vand.u32 4294901760, %v13844_v2 }
 0x2a9   : > { %6437 = vmatprep.subr.bf16.mxu1 %v13850_v44  ;;  %v13854_v44 = vld [vmem:[#allocation47_spill] sm:$0xff]  ;;  %v13860_v28 = vld [vmem:[#allocation65_spill] sm:$0xff]  ;;  %v13868_v55 = vld [vmem:[#allocation92_spill] sm:$0xff]  ;;  %v10885_v30 = vpack.c.bf16 %v4931_v3, %v4919_v18  ;;  %v13889_v47 = vand.u32 4294901760, %v13846_v42  ;;  %v13892_v18 = vand.u32 4294901760, %v13852_v19 }
 0x2aa   : > { %v13862_v41 = vld [vmem:[#allocation77_spill] sm:$0xff]  ;;  %v13863_v9 = vld [vmem:[#allocation83_spill] sm:$0xff]  ;;  %v12543_v34 = vand.u32 4294901760, %v13854_v44  ;;  %v4925_v13 = vand.u32 4294901760, %v10806_v6  ;;  %v2250_v7 = vsub.f32 %v13844_v2, %v13884_v27  ;;  %v10894_v1 = vpack.c.bf16 %v2245_v56, %v2233_v5 }
 0x2ab   : > { %7203 = vmatpush1.bf16.msra.mxu0 %v13857_v43  ;;  %v13867_v36 = vld [vmem:[#allocation191_spill] sm:$0xff]  ;;  %v13871_v24 = vld [vmem:[#allocation113_spill] sm:$0xff]  ;;  %v13888_v6 = vand.u32 4294901760, %v13845_v50  ;;  %v13891_v56 = vand.u32 4294901760, %v13851_v38 }
 0x2ac   : > { %7205 = vmatprep.subr.bf16.mxu0 %v13866_v57  ;;  %6439 = vmatpush1.bf16.msra.mxu1 %v13867_v36  ;;  %v13869_v43 = vld [vmem:[#allocation99_spill] sm:$0xff]  ;;  %v13875_v59 = vld [vmem:[#allocation125_spill] sm:$0xff]  ;;  %v2251_v2 = vand.u32 4294901760, %v2250_v7  ;;  %v13900_v7 = vand.u32 4294901760, %v13859_v37 }
 0x2ad   : > { %v13873_v26 = vld [vmem:[#allocation123_spill] sm:$0xff]  ;;  %6441 = vmatprep.subr.bf16.mxu1 %v13874_v32  ;;  %v13878_v57 = vld [vmem:[#allocation149_spill] sm:$0xff]  ;;  %v4937_v32 = vand.u32 4294901760, %v10812_v21  ;;  %v2262_v27 = vsub.f32 %v13845_v50, %v13888_v6  ;;  %v2256_v21 = vsub.f32 %v13851_v38, %v13891_v56  ;;  %v13896_v56 = vand.u32 4294901760, %v13856_v62 }
 0x2ae   : > { %v13876_v8 = vld [vmem:[#allocation135_spill] sm:$0xff]  ;;  %v13887_v3 = vld [vmem:[#allocation221_spill] sm:$0xff] }
 0x2af   : > { %v13877_v17 = vld [vmem:[#allocation147_spill] sm:$0xff]  ;;  %7207 = vmatpush1.bf16.msra.mxu0 %v13883_v33  ;;  %v13893_v33 = vand.u32 4294901760, %v13853_v12  ;;  %v2286_v38 = vsub.f32 %v13856_v62, %v13896_v56 }
 0x2b0   : > { %v13879_v36 = vld [vmem:[#allocation155_spill] sm:$0xff]  ;;  %7209 = vmatprep.subr.bf16.mxu0 %v13885_v46  ;;  %6443 = vmatpush1.bf16.msra.mxu1 %v13886_v40  ;;  %v4942_v46 = vsub.f32 %v13846_v42, %v13889_v47  ;;  %v13890_v40 = vand.u32 4294901760, %v13847_v4  ;;  %v4960_v47 = vsub.f32 %v13854_v44, %v12543_v34  ;;  %v13894_v42 = vand.u32 4294901760, %v13855_v20 }
 0x2b1   : > { %6445 = vmatprep.subr.bf16.mxu1 %v13887_v3  ;;  %v2268_v3 = vsub.f32 %v13852_v19, %v13892_v18  ;;  %v4948_v6 = vsub.f32 %v13853_v12, %v13893_v33  ;;  %v13897_v33 = vld [vmem:[#allocation222_spill] sm:$0xff]  ;;  %v13898_v12 = vld [vmem:[#allocation223_spill] sm:$0xff]  ;;  %v10932_v34 = vpack.c.bf16 %v4937_v32, %v4925_v13  ;;  %v13899_v44 = vand.u32 4294901760, %v13858_v51 }
 0x2b2   : > { %v4954_v5 = vsub.f32 %v13847_v4, %v13890_v40  ;;  %v2274_v40 = vsub.f32 %v13855_v20, %v13894_v42  ;;  %v13895_v4 = vld [vmem:[#allocation219_spill] sm:$0xff]  ;;  %v2263_v18 = vand.u32 4294901760, %v2262_v27  ;;  %v4943_v19 = vand.u32 4294901760, %v4942_v46 }
 0x2b3   : > { %7211 = vmatpush1.bf16.msra.mxu0 %v13895_v4  ;;  %v4966_v42 = vsub.f32 %v13858_v51, %v13899_v44  ;;  %v4978_v4 = vsub.f32 %v13859_v37, %v13900_v7  ;;  %v2269_v62 = vand.u32 4294901760, %v2268_v3  ;;  %v4961_v13 = vand.u32 4294901760, %v4960_v47 }
 0x2b4   : > { %7213 = vmatprep.subr.bf16.mxu0 %v13897_v33  ;;  %6447 = vmatpush1.bf16.msra.mxu1 %v13898_v12  ;;  %v4955_v20 = vand.u32 4294901760, %v4954_v5  ;;  %v2257_v33 = vand.u32 4294901760, %v2256_v21  ;;  %v4949_v12 = vand.u32 4294901760, %v4948_v6  ;;  %v2275_v32 = vand.u32 4294901760, %v2274_v40 }
 0x2b5   : > { %6449 = vmatprep.subr.bf16.mxu1 %v10765_v25  ;;  %v2287_v50 = vand.u32 4294901760, %v2286_v38  ;;  %v13901_v44 = vand.u32 4294901760, %v13860_v28  ;;  %v13902_v7 = vand.u32 4294901760, %v13861_v52  ;;  %v12563_v25 = vand.u32 4294901760, %v13863_v9 }
 0x2b6   : > { %v4967_v27 = vand.u32 4294901760, %v4966_v42  ;;  %v4979_v46 = vand.u32 4294901760, %v4978_v4  ;;  %v13903_v5 = vand.u32 4294901760, %v13862_v41  ;;  %v12565_v38 = vand.u32 4294901760, %v13864_v29 }
 0x2b7   : > { %7215 = vmatpush1.bf16.msra.mxu0 %v10748_v15  ;;  %v2280_v51 = vsub.f32 %v13860_v28, %v13901_v44  ;;  %v2292_v56 = vsub.f32 %v13861_v52, %v13902_v7  ;;  %v6460_v21 = vpack.c.bf16 %v2263_v18, %v2251_v2  ;;  %v7228_v3 = vpack.c.bf16 %v4955_v20, %v4943_v19 }
 0x2b8   : > { %7217 = vmatprep.subr.bf16.mxu0 %v10771_v14  ;;  %6451 = vmatpush1.bf16.msra.mxu1 %v10777_v45  ;;  %v10955_v15 = vsub.f32 %v13862_v41, %v13903_v5  ;;  %v12564_v6 = vand.u32 4294901760, %v13865_v16  ;;  %v12562_v47 = vand.u32 4294901760, %v13868_v55  ;;  %v6462_v14 = vpack.c.bf16 %v2269_v62, %v2257_v33 }
 0x2b9   : > { %6453 = vmatprep.subr.bf16.mxu1 %v10786_v31  ;;  %v12561_v45 = vand.u32 4294901760, %v13869_v43  ;;  %v12555_v40 = vand.u32 4294901760, %v13870_v23  ;;  %v12549_v42 = vand.u32 4294901760, %v13871_v24  ;;  %v7230_v4 = vpack.c.bf16 %v4961_v13, %v4949_v12 }
 0x2ba   : > { %v2281_v44 = vand.u32 4294901760, %v2280_v51  ;;  %v2293_v7 = vand.u32 4294901760, %v2292_v56  ;;  %v4984_v31 = vsub.f32 %v13863_v9, %v12563_v25  ;;  %v6464_v2 = vpack.c.bf16 %v2287_v50, %v2275_v32 }
 0x2bb   : > { %7219 = vmatpush1.bf16.msra.mxu0 %v10784_v35  ;;  %v7232_v20 = vpack.c.bf16 %v4979_v46, %v4967_v27  ;;  %v4973_v19 = vand.u32 4294901760, %v10955_v15  ;;  %v2298_v62 = vsub.f32 %v13864_v29, %v12565_v38  ;;  %v2310_v35 = vsub.f32 %v13865_v16, %v12564_v6  ;;  %v13932_v6 = vld [vmem:[#allocation227_spill] sm:$0xff] }
 0x2bc   : > { %7221 = vmatprep.subr.bf16.mxu0 %v10788_v22  ;;  %6455 = vmatpush1.bf16.msra.mxu1 %v10790_v10  ;;  %v4990_v22 = vsub.f32 %v13868_v55, %v12562_v47  ;;  %v12554_v10 = vand.u32 4294901760, %v13875_v59  ;;  %v12553_v50 = vand.u32 4294901760, %v13876_v8  ;;  %v5002_v51 = vsub.f32 %v13869_v43, %v12561_v45  ;;  %v13930_v45 = vld [vmem:[#allocation208_spill] sm:$0xff]  ;;  %v13934_v38 = vld [vmem:[#allocation131_spill] sm:$0xff] }
 0x2bd   : > { %6457 = vmatprep.subr.bf16.mxu1 %v10796_v53  ;;  %v2304_v53 = vsub.f32 %v13870_v23, %v12555_v40  ;;  %v2316_v18 = vsub.f32 %v13871_v24, %v12549_v42  ;;  %v12552_v56 = vand.u32 4294901760, %v13872_v49  ;;  %v6466_v33 = vpack.c.bf16 %v2293_v7, %v2281_v44  ;;  %v13931_v47 = vld [vmem:[#allocation212_spill] sm:$0xff] }
 0x2be   : > { %v4985_v12 = vand.u32 4294901760, %v4984_v31  ;;  %v12551_v13 = vand.u32 4294901760, %v13873_v26  ;;  %v12550_v32 = vand.u32 4294901760, %v13877_v17  ;;  %v2299_v27 = vand.u32 4294901760, %v2298_v62 }
 0x2bf   : > { %7223 = vmatpush1.bf16.msra.mxu0 %v10794_v63  ;;  %v12556_v46 = vand.u32 4294901760, %v13878_v57  ;;  %v12557_v5 = vand.u32 4294901760, %v13879_v36  ;;  %v12560_v15 = vand.u32 4294901760, %v13880_v48  ;;  %v2311_v42 = vand.u32 4294901760, %v2310_v35 }
 0x2c0   : > { %7225 = vmatprep.subr.bf16.mxu0 %v10885_v30  ;;  %6459 = vmatpush1.bf16.msra.mxu1 %v10894_v1  ;;  %v4991_v63 = vand.u32 4294901760, %v4990_v22  ;;  %v2322_v44 = vsub.f32 %v13875_v59, %v12554_v10  ;;  %v2334_v30 = vsub.f32 %v13876_v8, %v12553_v50  ;;  %v5003_v7 = vand.u32 4294901760, %v5002_v51 }
 0x2c1   : > { %6461 = vmatprep.subr.bf16.mxu1 %v6460_v21  ;;  %v2305_v1 = vand.u32 4294901760, %v2304_v53  ;;  %v2317_v31 = vand.u32 4294901760, %v2316_v18  ;;  %v4996_v62 = vsub.f32 %v13872_v49, %v12552_v56  ;;  %v5008_v21 = vsub.f32 %v13873_v26, %v12551_v13 }
 0x2c2   : > { %v5014_v35 = vsub.f32 %v13877_v17, %v12550_v32  ;;  %v12559_v22 = vand.u32 4294901760, %v13881_v58  ;;  %v12558_v51 = vand.u32 4294901760, %v13882_v0  ;;  %v5026_v53 = vsub.f32 %v13878_v57, %v12556_v46 }
 0x2c3   : > { %7227 = vmatpush1.bf16.msra.mxu0 %v10932_v34  ;;  %v2328_v34 = vsub.f32 %v13879_v36, %v12557_v5  ;;  %v2340_v18 = vsub.f32 %v13880_v48, %v12560_v15  ;;  %v6468_v32 = vpack.c.bf16 %v2311_v42, %v2299_v27  ;;  %v2323_v13 = vand.u32 4294901760, %v2322_v44 }
 0x2c4   : > { %7229 = vmatprep.subr.bf16.mxu0 %v7228_v3  ;;  %6463 = vmatpush1.bf16.msra.mxu1 %v6462_v14  ;;  %v2335_v56 = vand.u32 4294901760, %v2334_v30  ;;  %v7234_v50 = vpack.c.bf16 %v4985_v12, %v4973_v19  ;;  %v7236_v10 = vpack.c.bf16 %v5003_v7, %v4991_v63  ;;  %v4997_v3 = vand.u32 4294901760, %v4996_v62 }
 0x2c5   : > { %6465 = vmatprep.subr.bf16.mxu1 %v6464_v2  ;;  %v6470_v14 = vpack.c.bf16 %v2317_v31, %v2305_v1  ;;  %v5009_v40 = vand.u32 4294901760, %v5008_v21  ;;  %v5020_v46 = vsub.f32 %v13881_v58, %v12559_v22  ;;  %v5032_v5 = vsub.f32 %v13882_v0, %v12558_v51  ;;  %v13904_v1 = vld [vmem:[#allocation124_spill] sm:$0xff]  ;;  %v13905_v31 = vld [vmem:[#allocation126_spill] sm:$0xff] }
 0x2c6   : > { %v5015_v2 = vand.u32 4294901760, %v5014_v35  ;;  %v5027_v42 = vand.u32 4294901760, %v5026_v53  ;;  %v2329_v27 = vand.u32 4294901760, %v2328_v34  ;;  %v2341_v44 = vand.u32 4294901760, %v2340_v18  ;;  %v13907_v21 = vld [vmem:[#allocation130_spill] sm:$0xff]  ;;  %v13914_v53 = vld [vmem:[#allocation139_spill] sm:$0xff] }
 0x2c7   : > { %7231 = vmatpush1.bf16.msra.mxu0 %v7230_v4  ;;  %v6472_v19 = vpack.c.bf16 %v2335_v56, %v2323_v13  ;;  %v7238_v4 = vpack.c.bf16 %v5009_v40, %v4997_v3  ;;  %v5021_v12 = vand.u32 4294901760, %v5020_v46  ;;  %v5033_v63 = vand.u32 4294901760, %v5032_v5  ;;  %v13908_v56 = vld [vmem:[#allocation133_spill] sm:$0xff]  ;;  %v13912_v5 = vld [vmem:[#allocation140_spill] sm:$0xff]  ;;  %v13913_v35 = vld [vmem:[#allocation138_spill] sm:$0xff] }
 0x2c8   : > { %7233 = vmatprep.subr.bf16.mxu0 %v7232_v20  ;;  %6467 = vmatpush1.bf16.msra.mxu1 %v6466_v33  ;;  %v7240_v30 = vpack.c.bf16 %v5027_v42, %v5015_v2  ;;  %v6474_v7 = vpack.c.bf16 %v2341_v44, %v2329_v27  ;;  %v6476_v62 = vpack.c.bf16 %v13905_v31, %v13904_v1  ;;  %v13906_v33 = vld [vmem:[#allocation129_spill] sm:$0xff]  ;;  %v13915_v18 = vld [vmem:[#allocation146_spill] sm:$0xff]  ;;  %v13916_v3 = vld [vmem:[#allocation148_spill] sm:$0xff] }
 0x2c9   : > { %6469 = vmatprep.subr.bf16.mxu1 %v6468_v32  ;;  %v7242_v20 = vpack.c.bf16 %v5033_v63, %v5021_v12  ;;  %v7244_v32 = vpack.c.bf16 %v13907_v21, %v13906_v33  ;;  %v13910_v13 = vld [vmem:[#allocation141_spill] sm:$0xff]  ;;  %v7246_v34 = vpack.c.bf16 %v13914_v53, %v13913_v35  ;;  %v13917_v2 = vld [vmem:[#allocation151_spill] sm:$0xff]  ;;  %v13919_v44 = vld [vmem:[#allocation158_spill] sm:$0xff]  ;;  %v6488_v25 = vpack.c.bf16 %v13931_v47, %v13930_v45 }
 0x2ca   : > { %v13918_v42 = vld [vmem:[#allocation153_spill] sm:$0xff]  ;;  %v13921_v12 = vld [vmem:[#allocation220_spill] sm:$0xff]  ;;  %v13943_v45 = vld [vmem:[#allocation19_spill] sm:$0xff] }
 0x2cb   : > { %7235 = vmatpush1.bf16.msra.mxu0 %v7234_v50  ;;  %v13909_v50 = vld [vmem:[#allocation134_spill] sm:$0xff]  ;;  %v6482_v27 = vpack.c.bf16 %v13918_v42, %v13917_v2  ;;  %v13922_v63 = vld [vmem:[#allocation164_spill] sm:$0xff] }
 0x2cc   : > { %7237 = vmatprep.subr.bf16.mxu0 %v7236_v10  ;;  %6471 = vmatpush1.bf16.msra.mxu1 %v6470_v14  ;;  %v6478_v40 = vpack.c.bf16 %v13909_v50, %v13908_v56  ;;  %v13911_v10 = vld [vmem:[#allocation144_spill] sm:$0xff]  ;;  %v7248_v14 = vpack.c.bf16 %v13916_v3, %v13915_v18 }
 0x2cd   : > { %6473 = vmatprep.subr.bf16.mxu1 %v6472_v19  ;;  %v6480_v46 = vpack.c.bf16 %v13911_v10, %v13910_v13  ;;  %v13920_v19 = vld [vmem:[#allocation108_spill] sm:$0xff] }
 0x2ce   : > { %v13928_v22 = vld [vmem:[#allocation112_spill] sm:$0xff] }
 0x2cf   : > { %7239 = vmatpush1.bf16.msra.mxu0 %v7238_v4  ;;  %v6484_v4 = vpack.c.bf16 %v13920_v19, %v13919_v44 }
 0x2d0   : > { %7241 = vmatprep.subr.bf16.mxu0 %v7240_v30  ;;  %6475 = vmatpush1.bf16.msra.mxu1 %v6474_v7  ;;  %v13923_v30 = vld [vmem:[#allocation156_spill] sm:$0xff]  ;;  %v13924_v7 = vld [vmem:[#allocation157_spill] sm:$0xff] }
 0x2d1   : > { %6477 = vmatprep.subr.bf16.mxu1 %v6476_v62  ;;  %v7250_v62 = vpack.c.bf16 %v13924_v7, %v13923_v30  ;;  %v13949_v7 = vld [vmem:[#allocation28_spill] sm:$0xff] }
 0x2d3   : > { %7243 = vmatpush1.bf16.msra.mxu0 %v7242_v20  ;;  %2346 = vmatmul.mubr.f32.vlgmr.msra.gmra.mrb[0].mxu1 %v13912_v5  ;;  %v13925_v20 = vld [vmem:[#allocation225_spill] sm:$0xff]  ;;  %v13939_v5 = vld [vmem:[#allocation216_spill] sm:$0xff] }
 0x2d4   : > { %7245 = vmatprep.subr.bf16.mxu0 %v7244_v32  ;;  %6479 = vmatpush1.bf16.msra.mxu1 %v6478_v40  ;;  %v13926_v32 = vld [vmem:[#allocation106_spill] sm:$0xff] }
 0x2d5   : > { %6481 = vmatprep.subr.bf16.mxu1 %v6480_v46  ;;  %2352 = vmatprep.mubr.f32.mxu1 %v13921_v12  ;;  %v13927_v40 = vld [vmem:[#allocation110_spill] sm:$0xff]  ;;  %v13929_v46 = vld [vmem:[#allocation115_spill] sm:$0xff] }
 0x2d6   : > { %5038 = vmatmul.mubr.f32.vlgmr.msra.gmra.mrb[0].mxu0 %v13922_v63  ;;  %v7252_v51 = vpack.c.bf16 %v13927_v40, %v13926_v32  ;;  %v6486_v15 = vpack.c.bf16 %v13929_v46, %v13928_v22  ;;  %v13937_v63 = vld [vmem:[#allocation137_spill] sm:$0xff]  ;;  %v13938_v12 = vld [vmem:[#allocation214_spill] sm:$0xff]  ;;  %v13940_v46 = vld [vmem:[#allocation204_spill] sm:$0xff] }
 0x2d7   : > { %7247 = vmatpush1.bf16.msra.mxu0 %v7246_v34  ;;  %5044 = vmatprep.mubr.f32.mxu0 %v13925_v20  ;;  %v13933_v34 = vld [vmem:[#allocation229_spill] sm:$0xff]  ;;  %v13941_v22 = vld [vmem:[#allocation207_spill] sm:$0xff] }
 0x2d8   : > { %7249 = vmatprep.subr.bf16.mxu0 %v7248_v14  ;;  %6483 = vmatpush1.bf16.msra.mxu1 %v6482_v27  ;;  %v13935_v20 = vld [vmem:[#allocation121_spill] sm:$0xff]  ;;  %v6490_v47 = vpack.c.bf16 %v13941_v22, %v13940_v46  ;;  %v13953_v46 = vld [vmem:[#allocation36_spill] sm:$0xff] }
 0x2d9   : > { %6485 = vmatprep.subr.bf16.mxu1 %v6484_v4  ;;  %2354 = vmatmul.mubr.f32.gmra.mrb[2].mxu1 %v13932_v6  ;;  %v13936_v14 = vld [vmem:[#allocation117_spill] sm:$0xff]  ;;  %v7256_v4 = vpack.c.bf16 %v13939_v5, %v13938_v12  ;;  %v13942_v6 = vld [vmem:[#allocation16_spill] sm:$0xff]  ;;  %v13951_v12 = vld [vmem:[#allocation34_spill] sm:$0xff] }
 0x2da   : > { %5046 = vmatmul.mubr.f32.gmra.mrb[2].mxu0 %v13933_v34  ;;  %2554 = vmatprep.mubr.f32.mxu1 %v13934_v38  ;;  %v7254_v27 = vpack.c.bf16 %v13936_v14, %v13935_v20  ;;  %v6492_v34 = vpack.c.bf16 %v13943_v45, %v13942_v6  ;;  %v13944_v40 = vld [vmem:[#allocation13_spill] sm:$0xff]  ;;  %v13950_v5 = vld [vmem:[#allocation32_spill] sm:$0xff] }
 0x2db   : > { %7251 = vmatpush1.bf16.msra.mxu0 %v7250_v62  ;;  %5246 = vmatprep.mubr.f32.mxu0 %v13937_v63  ;;  %v13945_v62 = vld [vmem:[#allocation14_spill] sm:$0xff]  ;;  %v13946_v14 = vld [vmem:[#allocation25_spill] sm:$0xff]  ;;  %v6496_v22 = vpack.c.bf16 %v13951_v12, %v13950_v5 }
 0x2dc   : > { %7253 = vmatprep.subr.bf16.mxu0 %v7252_v51  ;;  %6487 = vmatpush1.bf16.msra.mxu1 %v6486_v15  ;;  %v7258_v32 = vpack.c.bf16 %v13945_v62, %v13944_v40  ;;  %v13947_v20 = vld [vmem:[#allocation21_spill] sm:$0xff]  ;;  %v13948_v15 = vld [vmem:[#allocation22_spill] sm:$0xff] }
 0x2dd   : > { %6489 = vmatprep.subr.bf16.mxu1 %v6488_v25  ;;  %v7260_v51 = vpack.c.bf16 %v13947_v20, %v13946_v14  ;;  %v6494_v30 = vpack.c.bf16 %v13949_v7, %v13948_v15  ;;  %v13952_v25 = vld [vmem:[#allocation31_spill] sm:$0xff]  ;;  %v13955_v62 = vld [vmem:[#allocation42_spill] sm:$0xff]  ;;  %v13957_v40 = vld [vmem:[#allocation49_spill] sm:$0xff] }
 0x2de   : > { %v7262_v45 = vpack.c.bf16 %v13953_v46, %v13952_v25  ;;  %v13958_v20 = vld [vmem:[#allocation51_spill] sm:$0xff]  ;;  %v13959_v14 = vld [vmem:[#allocation52_spill] sm:$0xff]  ;;  %v13961_v15 = vld [vmem:[#allocation46_spill] sm:$0xff] }
 0x2df   : > { %7255 = vmatpush1.bf16.msra.mxu0 %v7254_v27  ;;  %v13954_v27 = vld [vmem:[#allocation40_spill] sm:$0xff]  ;;  %v6500_v7 = vpack.c.bf16 %v13959_v14, %v13958_v20  ;;  %v13965_v25 = vld [vmem:[#allocation58_spill] sm:$0xff] }
 0x2e0   : > { %7257 = vmatprep.subr.bf16.mxu0 %v7256_v4  ;;  %6491 = vmatpush1.bf16.msra.mxu1 %v6490_v47  ;;  %v7264_v4 = vpack.c.bf16 %v13955_v62, %v13954_v27  ;;  %v13956_v47 = vld [vmem:[#allocation48_spill] sm:$0xff]  ;;  %v13967_v27 = vld [vmem:[#allocation73_spill] sm:$0xff] }
 0x2e1   : > { %6493 = vmatprep.subr.bf16.mxu1 %v6492_v34  ;;  %v6498_v6 = vpack.c.bf16 %v13957_v40, %v13956_v47  ;;  %v13960_v34 = vld [vmem:[#allocation195_spill] sm:$0xff]  ;;  %v13963_v46 = vld [vmem:[#allocation60_spill] sm:$0xff]  ;;  %v13969_v47 = vld [vmem:[#allocation66_spill] sm:$0xff] }
 0x2e2   : > { %v7266_v12 = vpack.c.bf16 %v13961_v15, %v13960_v34  ;;  %v13966_v62 = vld [vmem:[#allocation72_spill] sm:$0xff]  ;;  %v13971_v15 = vld [vmem:[#allocation74_spill] sm:$0xff]  ;;  %v13973_v34 = vld [vmem:[#allocation79_spill] sm:$0xff] }
 0x2e3   : > { %7259 = vmatpush1.bf16.msra.mxu0 %v7258_v32  ;;  %v13962_v32 = vld [vmem:[#allocation55_spill] sm:$0xff]  ;;  %v6504_v40 = vpack.c.bf16 %v13967_v27, %v13966_v62 }
 0x2e4   : > { %7261 = vmatprep.subr.bf16.mxu0 %v7260_v51  ;;  %6495 = vmatpush1.bf16.msra.mxu1 %v6494_v30  ;;  %v7268_v51 = vpack.c.bf16 %v13963_v46, %v13962_v32  ;;  %v13964_v30 = vld [vmem:[#allocation57_spill] sm:$0xff]  ;;  %v13974_v46 = vld [vmem:[#allocation86_spill] sm:$0xff]  ;;  %v13975_v32 = vld [vmem:[#allocation88_spill] sm:$0xff] }
 0x2e5   : > { %6497 = vmatprep.subr.bf16.mxu1 %v6496_v22  ;;  %v6502_v5 = vpack.c.bf16 %v13965_v25, %v13964_v30  ;;  %v13968_v22 = vld [vmem:[#allocation64_spill] sm:$0xff]  ;;  %v6508_v25 = vpack.c.bf16 %v13975_v32, %v13974_v46  ;;  %v13977_v30 = vld [vmem:[#allocation81_spill] sm:$0xff] }
 0x2e6   : > { %v7270_v14 = vpack.c.bf16 %v13969_v47, %v13968_v22  ;;  %v13979_v47 = vld [vmem:[#allocation96_spill] sm:$0xff]  ;;  %v13981_v22 = vld [vmem:[#allocation94_spill] sm:$0xff] }
 0x2e7   : > { %7263 = vmatpush1.bf16.msra.mxu0 %v7262_v45  ;;  %v13970_v45 = vld [vmem:[#allocation70_spill] sm:$0xff] }
 0x2e8   : > { %7265 = vmatprep.subr.bf16.mxu0 %v7264_v4  ;;  %6499 = vmatpush1.bf16.msra.mxu1 %v6498_v6  ;;  %v7272_v4 = vpack.c.bf16 %v13971_v15, %v13970_v45  ;;  %v13972_v6 = vld [vmem:[#allocation78_spill] sm:$0xff]  ;;  %v13982_v15 = vld [vmem:[#allocation109_spill] sm:$0xff]  ;;  %v13983_v45 = vld [vmem:[#allocation160_spill] sm:$0xff] }
 0x2e9   : > { %6501 = vmatprep.subr.bf16.mxu1 %v6500_v7  ;;  %v6506_v20 = vpack.c.bf16 %v13973_v34, %v13972_v6  ;;  %v13976_v7 = vld [vmem:[#allocation85_spill] sm:$0xff]  ;;  %v6512_v34 = vpack.c.bf16 %v13983_v45, %v13982_v15  ;;  %v13985_v6 = vld [vmem:[#allocation102_spill] sm:$0xff] }
 0x2ea   : > { %v7274_v27 = vpack.c.bf16 %v13977_v30, %v13976_v7  ;;  %v13991_v45 = vld [vmem:[#allocation174_spill] sm:$0xff] }
 0x2eb   : > { %7267 = vmatpush1.bf16.msra.mxu0 %v7266_v12  ;;  %v13978_v12 = vld [vmem:[#allocation91_spill] sm:$0xff] }
 0x2ec   : > { %7269 = vmatprep.subr.bf16.mxu0 %v7268_v51  ;;  %6503 = vmatpush1.bf16.msra.mxu1 %v6502_v5  ;;  %v7276_v51 = vpack.c.bf16 %v13979_v47, %v13978_v12  ;;  %v13980_v5 = vld [vmem:[#allocation93_spill] sm:$0xff] }
 0x2ed   : > { %6505 = vmatprep.subr.bf16.mxu1 %v6504_v40  ;;  %v6510_v62 = vpack.c.bf16 %v13981_v22, %v13980_v5  ;;  %v13984_v40 = vld [vmem:[#allocation100_spill] sm:$0xff] }
 0x2ee   : > { %v7278_v32 = vpack.c.bf16 %v13985_v6, %v13984_v40  ;;  %v13997_v6 = vld [vmem:[#allocation187_spill] sm:$0xff] }
 0x2ef   : > { %7271 = vmatpush1.bf16.msra.mxu0 %v7270_v14  ;;  %v13987_v14 = vpack.c.bf16 %v13775_v11, %v13772_v54  ;;  %v14003_v54 = vld [vmem:[#allocation192_spill] sm:$0xff] }
 0x2f0   : > { %7273 = vmatprep.subr.bf16.mxu0 %v7272_v4  ;;  %6507 = vmatpush1.bf16.msra.mxu1 %v6506_v20  ;;  %v13986_v20 = vpack.c.bf16 %v13771_v39, %v13770_v61  ;;  %v14000_v61 = vld [vmem:[#allocation197_spill] sm:$0xff] }
 0x2f1   : > { %6509 = vmatprep.subr.bf16.mxu1 %v6508_v25  ;;  %v13988_v25 = vld [vmem:[#allocation177_spill] sm:$0xff] }
 0x2f2   : > { %v13989_v4 = vpack.c.bf16 %v13800_v60, %v13988_v25  ;;  %v14006_v25 = vld [vmem:[#allocation202_spill] sm:$0xff] }
 0x2f3   : > { %7275 = vmatpush1.bf16.msra.mxu0 %v7274_v27  ;;  %v13990_v27 = vld [vmem:[#allocation175_spill] sm:$0xff] }
 0x2f4   : > { %7277 = vmatprep.subr.bf16.mxu0 %v7276_v51  ;;  %6511 = vmatpush1.bf16.msra.mxu1 %v6510_v62  ;;  %v13992_v15 = vpack.c.bf16 %v13990_v27, %v13991_v45  ;;  %v13993_v51 = vld [vmem:[#allocation184_spill] sm:$0xff]  ;;  %v13994_v62 = vld [vmem:[#allocation182_spill] sm:$0xff] }
 0x2f5   : > { %6513 = vmatprep.subr.bf16.mxu1 %v6512_v34  ;;  %v13995_v34 = vpack.c.bf16 %v13993_v51, %v13994_v62  ;;  %v14009_v45 = vld [vmem:[#allocation206_spill] sm:$0xff]  ;;  %v14012_v62 = vld [vmem:[#allocation20_spill] sm:$0xff] }
 0x2f7   : > { %7279 = vmatpush1.bf16.msra.mxu0 %v7278_v32  ;;  %v13996_v32 = vld [vmem:[#allocation189_spill] sm:$0xff] }
 0x2f8   : > { %7281 = vmatprep.subr.bf16.mxu0 %v13986_v20  ;;  %6515 = vmatpush1.bf16.msra.mxu1 %v13987_v14  ;;  %v13998_v39 = vpack.c.bf16 %v13996_v32, %v13997_v6  ;;  %v13999_v20 = vld [vmem:[#allocation199_spill] sm:$0xff]  ;;  %v14002_v14 = vld [vmem:[#allocation193_spill] sm:$0xff] }
 0x2f9   : > { %6517 = vmatprep.subr.bf16.mxu1 %v13989_v4  ;;  %v14001_v11 = vpack.c.bf16 %v13999_v20, %v14000_v61  ;;  %v14004_v60 = vpack.c.bf16 %v14002_v14, %v14003_v54  ;;  %v14005_v4 = vld [vmem:[#allocation203_spill] sm:$0xff]  ;;  %v14015_v6 = vld [vmem:[#allocation17_spill] sm:$0xff]  ;;  %v14018_v61 = vld [vmem:[#allocation30_spill] sm:$0xff] }
 0x2fa   : > { %v14007_v27 = vpack.c.bf16 %v14005_v4, %v14006_v25  ;;  %v14021_v54 = vld [vmem:[#allocation217_spill] sm:$0xff]  ;;  %v14024_v25 = vld [vmem:[#allocation50_spill] sm:$0xff] }
 0x2fb   : > { %7283 = vmatpush1.bf16.msra.mxu0 %v13992_v15  ;;  %v14008_v15 = vld [vmem:[#allocation15_spill] sm:$0xff] }
 0x2fc   : > { %7285 = vmatprep.subr.bf16.mxu0 %v13995_v34  ;;  %6519 = vmatpush1.bf16.msra.mxu1 %v13998_v39  ;;  %v14010_v51 = vpack.c.bf16 %v14008_v15, %v14009_v45  ;;  %v14011_v34 = vld [vmem:[#allocation213_spill] sm:$0xff]  ;;  %v14014_v39 = vld [vmem:[#allocation211_spill] sm:$0xff] }
 0x2fd   : > { %6521 = vmatprep.subr.bf16.mxu1 %v14001_v11  ;;  %v14013_v32 = vpack.c.bf16 %v14011_v34, %v14012_v62  ;;  %v14016_v20 = vpack.c.bf16 %v14014_v39, %v14015_v6  ;;  %v14017_v11 = vld [vmem:[#allocation35_spill] sm:$0xff]  ;;  %v14027_v45 = vld [vmem:[#allocation41_spill] sm:$0xff] }
 0x2fe   : > { %v14019_v14 = vpack.c.bf16 %v14017_v11, %v14018_v61 }
 0x2ff   : > { %7287 = vmatpush1.bf16.msra.mxu0 %v14004_v60  ;;  %v14020_v60 = vld [vmem:[#allocation33_spill] sm:$0xff] }
 0x300   : > { %7289 = vmatprep.subr.bf16.mxu0 %v14007_v27  ;;  %6523 = vmatpush1.bf16.msra.mxu1 %v14010_v51  ;;  %v14022_v4 = vpack.c.bf16 %v14020_v60, %v14021_v54  ;;  %v14023_v27 = vld [vmem:[#allocation54_spill] sm:$0xff]  ;;  %v14026_v51 = vld [vmem:[#allocation47_spill] sm:$0xff] }
 0x301   : > { %6525 = vmatprep.subr.bf16.mxu1 %v14013_v32  ;;  %v14025_v15 = vpack.c.bf16 %v14023_v27, %v14024_v25  ;;  %v14028_v34 = vpack.c.bf16 %v14026_v51, %v14027_v45  ;;  %v14029_v32 = vld [vmem:[#allocation56_spill] sm:$0xff] }
 0x302   : > { %v14030_v39 = vpack.c.bf16 %v13859_v37, %v14029_v32 }
 0x303   : > { %7291 = vmatpush1.bf16.msra.mxu0 %v14016_v20  ;;  %v14031_v20 = vpack.c.bf16 %v13861_v52, %v13860_v28 }
 0x304   : > { %7293 = vmatprep.subr.bf16.mxu0 %v14019_v14  ;;  %6527 = vmatpush1.bf16.msra.mxu1 %v14022_v4  ;;  %v14032_v14 = vpack.c.bf16 %v13865_v16, %v13864_v29  ;;  %v14033_v4 = vpack.c.bf16 %v13863_v9, %v13862_v41 }
 0x305   : > { %6529 = vmatprep.subr.bf16.mxu1 %v14025_v15  ;;  %v14034_v15 = vpack.c.bf16 %v13869_v43, %v13868_v55 }
 0x307   : > { %7295 = vmatpush1.bf16.msra.mxu0 %v14028_v34  ;;  %v14035_v34 = vpack.c.bf16 %v13871_v24, %v13870_v23 }
 0x308   : > { %7297 = vmatprep.subr.bf16.mxu0 %v14030_v39  ;;  %6531 = vmatpush1.bf16.msra.mxu1 %v14031_v20  ;;  %v14036_v39 = vpack.c.bf16 %v13876_v8, %v13875_v59  ;;  %v14037_v20 = vpack.c.bf16 %v13873_v26, %v13872_v49  ;;  %v14042_v8 = vld [vmem:[#allocation161_spill] sm:$0xff]  ;;  %v14044_v26 = vld [vmem:[#allocation132_spill] sm:$0xff]  ;;  %v14063_v49 = vld [vmem:[#allocation218_spill] sm:$0xff] }
 0x309   : > { %6533 = vmatprep.subr.bf16.mxu1 %v14032_v14  ;;  %v14038_v14 = vpack.c.bf16 %v13878_v57, %v13877_v17  ;;  %v14046_v57 = vld [vmem:[#allocation224_spill] sm:$0xff]  ;;  %v14059_v17 = vld [vmem:[#allocation114_spill] sm:$0xff] }
 0x30a   : > { %v14064_v59 = vld [vmem:[#allocation18_spill] sm:$0xff] }
 0x30b   : > { %7299 = vmatpush1.bf16.msra.mxu0 %v14033_v4  ;;  %v14039_v4 = vpack.c.bf16 %v13880_v48, %v13879_v36  ;;  %v14048_v48 = vld [vmem:[#allocation136_spill] sm:$0xff]  ;;  %v14057_v36 = vand.u32 4294901760, %v13937_v63  ;;  %v14067_v63 = vld [vmem:[#allocation27_spill] sm:$0xff] }
 0x30c   : > { %7301 = vmatprep.subr.bf16.mxu0 %v14034_v15  ;;  %6535 = vmatpush1.bf16.msra.mxu1 %v14035_v34  ;;  %v14040_v15 = vld [vmem:[#allocation122_spill] sm:$0xff]  ;;  %v14041_v34 = vpack.c.bf16 %v13882_v0, %v13881_v58  ;;  %v14053_v58 = vld [vmem:[#allocation228_spill] sm:$0xff] }
 0x30d   : > { %6537 = vmatprep.subr.bf16.mxu1 %v14036_v39  ;;  %v14043_v39 = vld [vmem:[#allocation127_spill] sm:$0xff]  ;;  %v14051_v0 = vld [vmem:[#allocation150_spill] sm:$0xff] }
 0x30f   : > { %7303 = vmatpush1.bf16.msra.mxu0 %v14037_v20  ;;  %v14045_v20 = vld [vmem:[#allocation142_spill] sm:$0xff] }
 0x310   : > { %7305 = vmatprep.subr.bf16.mxu0 %v14038_v14  ;;  %6539 = vmatpush1.bf16.msra.mxu1 %v14039_v4  ;;  %v14047_v14 = vld [vmem:[#allocation179_spill] sm:$0xff]  ;;  %v14049_v4 = vld [vmem:[#allocation226_spill] sm:$0xff] }
 0x311   : > { %6541 = vmatprep.subr.bf16.mxu1 %v14040_v15  ;;  %v14050_v15 = vld [vmem:[#allocation145_spill] sm:$0xff] }
 0x313   : > { %7307 = vmatpush1.bf16.msra.mxu0 %v14041_v34  ;;  %2557 = vmatmul.mubr.f32.vlgmr.msra.gmra.mrb[0].mxu1 %v14042_v8  ;;  %v14052_v34 = vld [vmem:[#allocation162_spill] sm:$0xff] }
 0x314   : > { %7309 = vmatprep.subr.bf16.mxu0 %v14043_v39  ;;  %6543 = vmatpush1.bf16.msra.mxu1 %v14044_v26  ;;  %v14054_v39 = vld [vmem:[#allocation230_spill] sm:$0xff] }
 0x315   : > { %6545 = vmatprep.subr.bf16.mxu1 %v14045_v20  ;;  %2564 = vmatprep.mubr.f32.mxu1 %v14046_v57  ;;  %v14055_v20 = vand.u32 4294901760, %v13934_v38  ;;  %v14056_v26 = vld [vmem:[#allocation154_spill] sm:$0xff]  ;;  %v14065_v38 = vld [vmem:[#allocation12_spill] sm:$0xff] }
 0x316   : > { %5249 = vmatmul.mubr.f32.vlgmr.msra.gmra.mrb[0].mxu0 %v14047_v14 }
 0x317   : > { %7311 = vmatpush1.bf16.msra.mxu0 %v14048_v48  ;;  %5256 = vmatprep.mubr.f32.mxu0 %v14049_v4  ;;  %v14058_v48 = vld [vmem:[#allocation105_spill] sm:$0xff] }
 0x318   : > { %7313 = vmatprep.subr.bf16.mxu0 %v14050_v15  ;;  %6547 = vmatpush1.bf16.msra.mxu1 %v14051_v0  ;;  %v14060_v15 = vld [vmem:[#allocation118_spill] sm:$0xff]  ;;  %v14061_v0 = vld [vmem:[#allocation120_spill] sm:$0xff] }
 0x319   : > { %6549 = vmatprep.subr.bf16.mxu1 %v14052_v34  ;;  %2567 = vmatmul.mubr.f32.gmra.mrb[2].mxu1 %v14053_v58  ;;  %v14062_v34 = vld [vmem:[#allocation210_spill] sm:$0xff] }
 0x31a   : > { %5259 = vmatmul.mubr.f32.gmra.mrb[2].mxu0 %v14054_v39  ;;  %2704 = vmatprep.mubr.f32.mxu1 %v14055_v20  ;;  %v14066_v20 = vld [vmem:[#allocation23_spill] sm:$0xff] }
 0x31b   : > { %7315 = vmatpush1.bf16.msra.mxu0 %v14056_v26  ;;  %5396 = vmatprep.mubr.f32.mxu0 %v14057_v36  ;;  %v14068_v36 = vld [vmem:[#allocation37_spill] sm:$0xff] }
 0x31c   : > { %7317 = vmatprep.subr.bf16.mxu0 %v14058_v48  ;;  %6551 = vmatpush1.bf16.msra.mxu1 %v14059_v17  ;;  %v14069_v48 = vld [vmem:[#allocation29_spill] sm:$0xff]  ;;  %v14070_v17 = vld [vmem:[#allocation39_spill] sm:$0xff] }
 0x31d   : > { %6553 = vmatprep.subr.bf16.mxu1 %v14060_v15  ;;  %v14071_v15 = vld [vmem:[#allocation43_spill] sm:$0xff] }
 0x31f   : > { %7319 = vmatpush1.bf16.msra.mxu0 %v14061_v0  ;;  %v14072_v0 = vld [vmem:[#allocation205_spill] sm:$0xff] }
 0x320   : > { %7321 = vmatprep.subr.bf16.mxu0 %v14062_v34  ;;  %6555 = vmatpush1.bf16.msra.mxu1 %v14063_v49  ;;  %v14073_v34 = vld [vmem:[#allocation45_spill] sm:$0xff] }
 0x321   : > { %6557 = vmatprep.subr.bf16.mxu1 %v14064_v59  ;;  %v14074_v49 = vld [vmem:[#allocation53_spill] sm:$0xff] }
 0x322   : > { %v14075_v59 = vld [vmem:[#allocation61_spill] sm:$0xff] }
 0x323   : > { %7323 = vmatpush1.bf16.msra.mxu0 %v14065_v38  ;;  %v14076_v38 = vld [vmem:[#allocation67_spill] sm:$0xff] }
 0x324   : > { %7325 = vmatprep.subr.bf16.mxu0 %v14066_v20  ;;  %6559 = vmatpush1.bf16.msra.mxu1 %v14067_v63  ;;  %v14077_v20 = vld [vmem:[#allocation62_spill] sm:$0xff]  ;;  %v14078_v63 = vld [vmem:[#allocation69_spill] sm:$0xff] }
 0x325   : > { %6561 = vmatprep.subr.bf16.mxu1 %v14068_v36  ;;  %v14079_v36 = vld [vmem:[#allocation76_spill] sm:$0xff] }
 0x327   : > { %7327 = vmatpush1.bf16.msra.mxu0 %v14069_v48  ;;  %v14080_v48 = vld [vmem:[#allocation82_spill] sm:$0xff] }
 0x328   : > { %7329 = vmatprep.subr.bf16.mxu0 %v14070_v17  ;;  %6563 = vmatpush1.bf16.msra.mxu1 %v14071_v15  ;;  %v14081_v17 = vld [vmem:[#allocation84_spill] sm:$0xff]  ;;  %v14082_v15 = vld [vmem:[#allocation90_spill] sm:$0xff] }
 0x329   : > { %6565 = vmatprep.subr.bf16.mxu1 %v14072_v0  ;;  %v14083_v0 = vld [vmem:[#allocation97_spill] sm:$0xff] }
 0x32b   : > { %7331 = vmatpush1.bf16.msra.mxu0 %v14073_v34  ;;  %v14084_v34 = vld [vmem:[#allocation103_spill] sm:$0xff] }
 0x32c   : > { %7333 = vmatprep.subr.bf16.mxu0 %v14074_v49  ;;  %6567 = vmatpush1.bf16.msra.mxu1 %v14075_v59  ;;  %v14085_v49 = vld [vmem:[#allocation98_spill] sm:$0xff]  ;;  %v14086_v59 = vld [vmem:[#allocation163_spill] sm:$0xff] }
 0x32d   : > { %6569 = vmatprep.subr.bf16.mxu1 %v14076_v38  ;;  %v14087_v38 = vld [vmem:[#allocation168_spill] sm:$0xff] }
 0x32f   : > { %7335 = vmatpush1.bf16.msra.mxu0 %v14077_v20  ;;  %v14088_v20 = vld [vmem:[#allocation178_spill] sm:$0xff] }
 0x330   : > { %7337 = vmatprep.subr.bf16.mxu0 %v14078_v63  ;;  %6571 = vmatpush1.bf16.msra.mxu1 %v14079_v36  ;;  %v14089_v63 = vld [vmem:[#allocation172_spill] sm:$0xff]  ;;  %v14090_v36 = vld [vmem:[#allocation181_spill] sm:$0xff] }
 0x331   : > { %6573 = vmatprep.subr.bf16.mxu1 %v14080_v48  ;;  %v14091_v48 = vld [vmem:[#allocation186_spill] sm:$0xff] }
 0x333   : > { %7339 = vmatpush1.bf16.msra.mxu0 %v14081_v17  ;;  %v14092_v17 = vld [vmem:[#allocation194_spill] sm:$0xff] }
 0x334   : > { %7341 = vmatprep.subr.bf16.mxu0 %v14082_v15  ;;  %6575 = vmatpush1.bf16.msra.mxu1 %v14083_v0  ;;  %v14093_v15 = vld [vmem:[#allocation190_spill] sm:$0xff]  ;;  %v14094_v0 = vld [vmem:[#allocation200_spill] sm:$0xff] }
 0x335   : > { %6577 = vmatprep.subr.bf16.mxu1 %v14084_v34  ;;  %v14095_v34 = vld [vmem:[#allocation11_spill] sm:$0xff] }
 0x337   : > { %7343 = vmatpush1.bf16.msra.mxu0 %v14085_v49  ;;  %v14096_v49 = vld [vmem:[#allocation209_spill] sm:$0xff] }
 0x338   : > { %7345 = vmatprep.subr.bf16.mxu0 %v14086_v59  ;;  %6579 = vmatpush1.bf16.msra.mxu1 %v14087_v38  ;;  %v14097_v59 = vld [vmem:[#allocation24_spill] sm:$0xff]  ;;  %v14098_v38 = vld [vmem:[#allocation26_spill] sm:$0xff] }
 0x339   : > { %6581 = vmatprep.subr.bf16.mxu1 %v14088_v20  ;;  %v14099_v20 = vld [vmem:[#allocation215_spill] sm:$0xff] }
 0x33b   : > { %7347 = vmatpush1.bf16.msra.mxu0 %v14089_v63  ;;  %v14100_v63 = vld [vmem:[#allocation44_spill] sm:$0xff] }
 0x33c   : > { %7349 = vmatprep.subr.bf16.mxu0 %v14090_v36  ;;  %6583 = vmatpush1.bf16.msra.mxu1 %v14091_v48  ;;  %v14101_v36 = vld [vmem:[#allocation38_spill] sm:$0xff]  ;;  %v14102_v48 = vld [vmem:[#allocation59_spill] sm:$0xff] }
 0x33d   : > { %6585 = vmatprep.subr.bf16.mxu1 %v14092_v17  ;;  %v14103_v17 = vld [vmem:[#allocation71_spill] sm:$0xff] }
 0x33f   : > { %7351 = vmatpush1.bf16.msra.mxu0 %v14093_v15  ;;  %v14104_v15 = vld [vmem:[#allocation87_spill] sm:$0xff] }
 0x340   : > { %7353 = vmatprep.subr.bf16.mxu0 %v14094_v0  ;;  %6587 = vmatpush1.bf16.msra.mxu1 %v14095_v34  ;;  %v14105_v0 = vld [vmem:[#allocation75_spill] sm:$0xff] }
 0x341   : > { %6589 = vmatprep.subr.bf16.mxu1 %v14096_v49  ;;  %v14106_v34 = vld [vmem:[#allocation95_spill] sm:$0xff] }
 0x342   : > { %v14107_v49 = vld [vmem:[#allocation111_spill] sm:$0xff] }
 0x343   : > { %7355 = vmatpush1.bf16.msra.mxu0 %v14097_v59  ;;  %v14108_v59 = vld [vmem:[#allocation128_spill] sm:$0xff] }
 0x344   : > { %7357 = vmatprep.subr.bf16.mxu0 %v14098_v38  ;;  %6591 = vmatpush1.bf16.msra.mxu1 %v14099_v20  ;;  %v14109_v20 = vand.u32 4294901760, %v13904_v1  ;;  %v14118_v1 = vand.u32 4294901760, %v13910_v13  ;;  %v14127_v13 = vand.u32 4294901760, %v13918_v42  ;;  %v14136_v42 = vand.u32 4294901760, %v14049_v4 }
 0x345   : > { %6593 = vmatprep.subr.bf16.mxu1 %v14100_v63  ;;  %v14110_v63 = vand.u32 4294901760, %v13905_v31  ;;  %v14119_v31 = vand.u32 4294901760, %v13911_v10  ;;  %v14149_v4 = vand.u32 4294901760, %v14053_v58 }
 0x347   : > { %7359 = vmatpush1.bf16.msra.mxu0 %v14101_v36  ;;  %v6604_v38 = vpack.c.bf16 %v14110_v63, %v14109_v20  ;;  %v14111_v36 = vld [vmem:[#allocation119_spill] sm:$0xff]  ;;  %v6608_v20 = vpack.c.bf16 %v14119_v31, %v14118_v1  ;;  %v14141_v31 = vld [vmem:[#allocation112_spill] sm:$0xff] }
 0x348   : > { %7361 = vmatprep.subr.bf16.mxu0 %v14102_v48  ;;  %6595 = vmatpush1.bf16.msra.mxu1 %v14103_v17  ;;  %v14112_v48 = vld [vmem:[#allocation143_spill] sm:$0xff]  ;;  %v14113_v17 = vld [vmem:[#allocation152_spill] sm:$0xff] }
 0x349   : > { %6597 = vmatprep.subr.bf16.mxu1 %v14104_v15  ;;  %v14114_v15 = vand.u32 4294901760, %v13906_v33  ;;  %v14120_v63 = vld [vmem:[#allocation171_spill] sm:$0xff]  ;;  %v14122_v33 = vand.u32 4294901760, %v13913_v35 }
 0x34b   : > { %7363 = vmatpush1.bf16.msra.mxu0 %v14105_v0  ;;  %v14115_v0 = vand.u32 4294901760, %v13907_v21 }
 0x34c   : > { %7365 = vmatprep.subr.bf16.mxu0 %v14106_v34  ;;  %6599 = vmatpush1.bf16.msra.mxu1 %v14107_v49  ;;  %v14116_v49 = vand.u32 4294901760, %v13908_v56 }
 0x34d   : > { %6601 = vmatprep.subr.bf16.mxu1 %v14108_v59  ;;  %v7372_v34 = vpack.c.bf16 %v14115_v0, %v14114_v15  ;;  %v14117_v59 = vand.u32 4294901760, %v13909_v50  ;;  %v14123_v0 = vand.u32 4294901760, %v13914_v53  ;;  %v14126_v50 = vand.u32 4294901760, %v13917_v2  ;;  %v14134_v15 = vld [vmem:[#allocation157_spill] sm:$0xff] }
 0x34e   : > { %v14130_v53 = vand.u32 4294901760, %v14046_v57  ;;  %v14135_v2 = vand.u32 4294901760, %v14134_v15 }
 0x34f   : > { %7367 = vmatpush1.bf16.msra.mxu0 %v14111_v36  ;;  %v6606_v26 = vpack.c.bf16 %v14117_v59, %v14116_v49  ;;  %v7374_v21 = vpack.c.bf16 %v14123_v0, %v14122_v33  ;;  %v14124_v49 = vand.u32 4294901760, %v13915_v18  ;;  %v14125_v59 = vand.u32 4294901760, %v13916_v3  ;;  %v14132_v18 = vld [vmem:[#allocation156_spill] sm:$0xff] }
 0x350   : > { %7369 = vmatprep.subr.bf16.mxu0 %v14112_v48  ;;  %6603 = vmatpush1.bf16.msra.mxu1 %v14113_v17  ;;  %v14121_v17 = vand.u32 4294901760, %v14042_v8  ;;  %v6610_v10 = vpack.c.bf16 %v14127_v13, %v14126_v50  ;;  %v14128_v8 = vand.u32 4294901760, %v13919_v44  ;;  %v14133_v3 = vand.u32 4294901760, %v14132_v18  ;;  %v14137_v44 = vld [vmem:[#allocation106_spill] sm:$0xff] }
 0x351   : > { %6605 = vmatprep.subr.bf16.mxu1 %v6604_v38  ;;  %v7376_v56 = vpack.c.bf16 %v14125_v59, %v14124_v49  ;;  %v14139_v38 = vld [vmem:[#allocation110_spill] sm:$0xff]  ;;  %v14147_v59 = vld [vmem:[#allocation212_spill] sm:$0xff] }
 0x352   : > { %v14140_v1 = vand.u32 4294901760, %v14139_v38  ;;  %v14148_v50 = vand.u32 4294901760, %v14147_v59 }
 0x353   : > { %7371 = vmatpush1.bf16.msra.mxu0 %v14120_v63  ;;  %2708 = vmatmul.mubr.f32.vlgmr.msra.gmra.mrb[0].mxu1 %v14121_v17  ;;  %v14129_v17 = vand.u32 4294901760, %v13920_v19  ;;  %v14138_v19 = vand.u32 4294901760, %v14137_v44  ;;  %v14161_v44 = vld [vmem:[#allocation204_spill] sm:$0xff] }
 0x354   : > { %7373 = vmatprep.subr.bf16.mxu0 %v7372_v34  ;;  %6607 = vmatpush1.bf16.msra.mxu1 %v6606_v26  ;;  %v14131_v26 = vand.u32 4294901760, %v14047_v14  ;;  %v7378_v34 = vpack.c.bf16 %v14135_v2, %v14133_v3  ;;  %v14143_v14 = vld [vmem:[#allocation115_spill] sm:$0xff]  ;;  %v14157_v3 = vld [vmem:[#allocation214_spill] sm:$0xff]  ;;  %v14159_v2 = vld [vmem:[#allocation216_spill] sm:$0xff] }
 0x355   : > { %6609 = vmatprep.subr.bf16.mxu1 %v6608_v20  ;;  %v6612_v35 = vpack.c.bf16 %v14129_v17, %v14128_v8  ;;  %2716 = vmatprep.mubr.f32.mxu1 %v14130_v53  ;;  %v7380_v57 = vpack.c.bf16 %v14140_v1, %v14138_v19  ;;  %v14142_v20 = vand.u32 4294901760, %v14141_v31  ;;  %v14144_v33 = vand.u32 4294901760, %v14143_v14  ;;  %v14152_v8 = vld [vmem:[#allocation121_spill] sm:$0xff]  ;;  %v14163_v19 = vld [vmem:[#allocation207_spill] sm:$0xff] }
 0x356   : > { %5400 = vmatmul.mubr.f32.vlgmr.msra.gmra.mrb[0].mxu0 %v14131_v26  ;;  %v14153_v17 = vand.u32 4294901760, %v14152_v8  ;;  %v14154_v53 = vld [vmem:[#allocation117_spill] sm:$0xff]  ;;  %v14158_v15 = vand.u32 4294901760, %v14157_v3  ;;  %v14160_v58 = vand.u32 4294901760, %v14159_v2  ;;  %v14164_v38 = vand.u32 4294901760, %v14163_v19  ;;  %v14181_v2 = vld [vmem:[#allocation32_spill] sm:$0xff] }
 0x357   : > { %7375 = vmatpush1.bf16.msra.mxu0 %v7374_v21  ;;  %5408 = vmatprep.mubr.f32.mxu0 %v14136_v42  ;;  %v6614_v0 = vpack.c.bf16 %v14144_v33, %v14142_v20  ;;  %v14145_v21 = vld [vmem:[#allocation208_spill] sm:$0xff]  ;;  %v14155_v26 = vand.u32 4294901760, %v14154_v53  ;;  %v14167_v20 = vld [vmem:[#allocation19_spill] sm:$0xff]  ;;  %v14177_v53 = vld [vmem:[#allocation22_spill] sm:$0xff] }
 0x358   : > { %7377 = vmatprep.subr.bf16.mxu0 %v7376_v56  ;;  %6611 = vmatpush1.bf16.msra.mxu1 %v6610_v10  ;;  %v14146_v49 = vand.u32 4294901760, %v14145_v21  ;;  %v14150_v56 = vand.u32 4294901760, %v14054_v39  ;;  %v14151_v10 = vld [vmem:[#allocation101_spill] sm:$0xff]  ;;  %v7384_v42 = vpack.c.bf16 %v14160_v58, %v14158_v15  ;;  %v14162_v39 = vand.u32 4294901760, %v14161_v44  ;;  %v14183_v58 = vld [vmem:[#allocation34_spill] sm:$0xff]  ;;  %v14185_v19 = vld [vmem:[#allocation31_spill] sm:$0xff] }
 0x359   : > { %6613 = vmatprep.subr.bf16.mxu1 %v6612_v35  ;;  %2720 = vmatmul.mubr.f32.gmra.mrb[2].mxu1 %v14149_v4  ;;  %v7382_v18 = vpack.c.bf16 %v14155_v26, %v14153_v17  ;;  %v14156_v35 = vld [vmem:[#allocation104_spill] sm:$0xff]  ;;  %v14168_v14 = vand.u32 4294901760, %v14167_v20  ;;  %v14169_v21 = vld [vmem:[#allocation13_spill] sm:$0xff]  ;;  %v14184_v44 = vand.u32 4294901760, %v14183_v58 }
 0x35a   : > { %v6616_v13 = vpack.c.bf16 %v14148_v50, %v14146_v49  ;;  %5412 = vmatmul.mubr.f32.gmra.mrb[2].mxu0 %v14150_v56  ;;  %2983 = vmatprep.mubr.f32.mxu1 %v14151_v10  ;;  %v6618_v1 = vpack.c.bf16 %v14164_v38, %v14162_v39  ;;  %v14173_v50 = vld [vmem:[#allocation25_spill] sm:$0xff]  ;;  %v14179_v26 = vld [vmem:[#allocation28_spill] sm:$0xff] }
 0x35b   : > { %7379 = vmatpush1.bf16.msra.mxu0 %v7378_v34  ;;  %5675 = vmatprep.mubr.f32.mxu0 %v14156_v35  ;;  %v14165_v34 = vld [vmem:[#allocation16_spill] sm:$0xff]  ;;  %v14174_v4 = vand.u32 4294901760, %v14173_v50  ;;  %v14175_v56 = vld [vmem:[#allocation21_spill] sm:$0xff]  ;;  %v14180_v3 = vand.u32 4294901760, %v14179_v26  ;;  %v14201_v26 = vld [vmem:[#allocation195_spill] sm:$0xff] }
 0x35c   : > { %7381 = vmatprep.subr.bf16.mxu0 %v7380_v57  ;;  %6615 = vmatpush1.bf16.msra.mxu1 %v6614_v0  ;;  %v14166_v31 = vand.u32 4294901760, %v14165_v34  ;;  %v14170_v57 = vand.u32 4294901760, %v14169_v21  ;;  %v14171_v0 = vld [vmem:[#allocation14_spill] sm:$0xff]  ;;  %v14176_v8 = vand.u32 4294901760, %v14175_v56  ;;  %v14187_v38 = vld [vmem:[#allocation36_spill] sm:$0xff]  ;;  %v14197_v56 = vld [vmem:[#allocation51_spill] sm:$0xff] }
 0x35d   : > { %6617 = vmatprep.subr.bf16.mxu1 %v6616_v13  ;;  %v14172_v49 = vand.u32 4294901760, %v14171_v0  ;;  %v14178_v13 = vand.u32 4294901760, %v14177_v53  ;;  %v14193_v0 = vld [vmem:[#allocation48_spill] sm:$0xff] }
 0x35e   : > { %v6620_v33 = vpack.c.bf16 %v14168_v14, %v14166_v31  ;;  %v7388_v17 = vpack.c.bf16 %v14176_v8, %v14174_v4  ;;  %v14189_v31 = vld [vmem:[#allocation40_spill] sm:$0xff]  ;;  %v14191_v14 = vld [vmem:[#allocation42_spill] sm:$0xff] }
 0x35f   : > { %7383 = vmatpush1.bf16.msra.mxu0 %v7382_v18  ;;  %v7386_v59 = vpack.c.bf16 %v14172_v49, %v14170_v57  ;;  %v6622_v15 = vpack.c.bf16 %v14180_v3, %v14178_v13  ;;  %v14182_v18 = vand.u32 4294901760, %v14181_v2  ;;  %v14190_v20 = vand.u32 4294901760, %v14189_v31  ;;  %v14195_v49 = vld [vmem:[#allocation49_spill] sm:$0xff]  ;;  %v14199_v8 = vld [vmem:[#allocation52_spill] sm:$0xff]  ;;  %v14203_v3 = vld [vmem:[#allocation46_spill] sm:$0xff] }
 0x360   : > { %7385 = vmatprep.subr.bf16.mxu0 %v7384_v42  ;;  %6619 = vmatpush1.bf16.msra.mxu1 %v6618_v1  ;;  %v14186_v42 = vand.u32 4294901760, %v14185_v19  ;;  %v14188_v1 = vand.u32 4294901760, %v14187_v38  ;;  %v14192_v21 = vand.u32 4294901760, %v14191_v14  ;;  %v14196_v50 = vand.u32 4294901760, %v14195_v49  ;;  %v14209_v38 = vld [vmem:[#allocation57_spill] sm:$0xff]  ;;  %v14213_v14 = vld [vmem:[#allocation72_spill] sm:$0xff] }
 0x361   : > { %6621 = vmatprep.subr.bf16.mxu1 %v6620_v33  ;;  %v6624_v39 = vpack.c.bf16 %v14184_v44, %v14182_v18  ;;  %v14194_v33 = vand.u32 4294901760, %v14193_v0  ;;  %v14200_v53 = vand.u32 4294901760, %v14199_v8  ;;  %v14205_v18 = vld [vmem:[#allocation55_spill] sm:$0xff]  ;;  %v14207_v44 = vld [vmem:[#allocation60_spill] sm:$0xff] }
 0x362   : > { %v7390_v34 = vpack.c.bf16 %v14188_v1, %v14186_v42  ;;  %v7392_v57 = vpack.c.bf16 %v14192_v21, %v14190_v20  ;;  %v14206_v58 = vand.u32 4294901760, %v14205_v18  ;;  %v14208_v19 = vand.u32 4294901760, %v14207_v44  ;;  %v14211_v1 = vld [vmem:[#allocation58_spill] sm:$0xff]  ;;  %v14215_v21 = vld [vmem:[#allocation73_spill] sm:$0xff]  ;;  %v14217_v49 = vld [vmem:[#allocation64_spill] sm:$0xff] }
 0x363   : > { %7387 = vmatpush1.bf16.msra.mxu0 %v7386_v59  ;;  %v6626_v4 = vpack.c.bf16 %v14196_v50, %v14194_v33  ;;  %v14198_v59 = vand.u32 4294901760, %v14197_v56  ;;  %v14212_v31 = vand.u32 4294901760, %v14211_v1  ;;  %v14216_v0 = vand.u32 4294901760, %v14215_v21  ;;  %v14219_v50 = vld [vmem:[#allocation66_spill] sm:$0xff]  ;;  %v14230_v44 = vld [vmem:[#allocation88_spill] sm:$0xff] }
 0x364   : > { %7389 = vmatprep.subr.bf16.mxu0 %v7388_v17  ;;  %6623 = vmatpush1.bf16.msra.mxu1 %v6622_v15  ;;  %v14202_v17 = vand.u32 4294901760, %v14201_v26  ;;  %v14204_v15 = vand.u32 4294901760, %v14203_v3  ;;  %v7396_v42 = vpack.c.bf16 %v14208_v19, %v14206_v58  ;;  %v14225_v3 = vld [vmem:[#allocation78_spill] sm:$0xff]  ;;  %v14231_v19 = vand.u32 4294901760, %v14230_v44 }
 0x365   : > { %6625 = vmatprep.subr.bf16.mxu1 %v6624_v39  ;;  %v6628_v13 = vpack.c.bf16 %v14200_v53, %v14198_v59  ;;  %v14210_v39 = vand.u32 4294901760, %v14209_v38  ;;  %v14221_v59 = vld [vmem:[#allocation70_spill] sm:$0xff] }
 0x366   : > { %v7394_v2 = vpack.c.bf16 %v14204_v15, %v14202_v17  ;;  %v14222_v8 = vand.u32 4294901760, %v14221_v59  ;;  %v14223_v53 = vld [vmem:[#allocation74_spill] sm:$0xff]  ;;  %v14227_v15 = vld [vmem:[#allocation79_spill] sm:$0xff] }
 0x367   : > { %7391 = vmatpush1.bf16.msra.mxu0 %v7390_v34  ;;  %v6630_v20 = vpack.c.bf16 %v14212_v31, %v14210_v39  ;;  %v14214_v34 = vand.u32 4294901760, %v14213_v14  ;;  %v14224_v26 = vand.u32 4294901760, %v14223_v53  ;;  %v14228_v18 = vand.u32 4294901760, %v14227_v15 }
 0x368   : > { %7393 = vmatprep.subr.bf16.mxu0 %v7392_v57  ;;  %6627 = vmatpush1.bf16.msra.mxu1 %v6626_v4  ;;  %v14218_v57 = vand.u32 4294901760, %v14217_v49  ;;  %v14220_v4 = vand.u32 4294901760, %v14219_v50  ;;  %v14233_v39 = vand.u32 4294901760, %v13977_v30  ;;  %v14234_v31 = vand.u32 4294901760, %v13978_v12  ;;  %v14240_v49 = vld [vmem:[#allocation160_spill] sm:$0xff]  ;;  %v14243_v50 = vld [vmem:[#allocation102_spill] sm:$0xff] }
 0x369   : > { %6629 = vmatprep.subr.bf16.mxu1 %v6628_v13  ;;  %v6632_v33 = vpack.c.bf16 %v14216_v0, %v14214_v34  ;;  %v7400_v17 = vpack.c.bf16 %v14224_v26, %v14222_v8  ;;  %v14226_v13 = vand.u32 4294901760, %v14225_v3  ;;  %v14236_v34 = vand.u32 4294901760, %v13980_v5  ;;  %v14238_v0 = vld [vmem:[#allocation109_spill] sm:$0xff]  ;;  %v14247_v5 = vld [vmem:[#allocation166_spill] sm:$0xff] }
 0x36a   : > { %v7398_v56 = vpack.c.bf16 %v14220_v4, %v14218_v57  ;;  %v14242_v30 = vand.u32 4294901760, %v13984_v40  ;;  %v14244_v4 = vand.u32 4294901760, %v14243_v50  ;;  %v14248_v59 = vand.u32 4294901760, %v14247_v5  ;;  %v14249_v8 = vld [vmem:[#allocation169_spill] sm:$0xff]  ;;  %v14251_v26 = vld [vmem:[#allocation170_spill] sm:$0xff] }
 0x36b   : > { %7395 = vmatpush1.bf16.msra.mxu0 %v7394_v2  ;;  %v6634_v58 = vpack.c.bf16 %v14228_v18, %v14226_v13  ;;  %v14229_v2 = vand.u32 4294901760, %v13974_v46  ;;  %v14237_v46 = vand.u32 4294901760, %v13981_v22  ;;  %v14250_v53 = vand.u32 4294901760, %v14249_v8  ;;  %v14253_v13 = vld [vmem:[#allocation177_spill] sm:$0xff]  ;;  %v14255_v18 = vld [vmem:[#allocation180_spill] sm:$0xff]  ;;  %v14279_v8 = vld [vmem:[#allocation203_spill] sm:$0xff] }
 0x36c   : > { %7397 = vmatprep.subr.bf16.mxu0 %v7396_v42  ;;  %6631 = vmatpush1.bf16.msra.mxu1 %v6630_v20  ;;  %v14232_v42 = vand.u32 4294901760, %v13976_v7  ;;  %v14235_v20 = vand.u32 4294901760, %v13979_v47  ;;  %v14241_v7 = vand.u32 4294901760, %v14240_v49  ;;  %v7406_v12 = vpack.c.bf16 %v14244_v4, %v14242_v30  ;;  %v14245_v47 = vld [vmem:[#allocation165_spill] sm:$0xff]  ;;  %v14273_v4 = vld [vmem:[#allocation192_spill] sm:$0xff] }
 0x36d   : > { %6633 = vmatprep.subr.bf16.mxu1 %v6632_v33  ;;  %v6636_v38 = vpack.c.bf16 %v14231_v19, %v14229_v2  ;;  %v6638_v21 = vpack.c.bf16 %v14237_v46, %v14236_v34  ;;  %v14239_v33 = vand.u32 4294901760, %v14238_v0  ;;  %v14254_v15 = vand.u32 4294901760, %v14253_v13  ;;  %v14257_v2 = vld [vmem:[#allocation174_spill] sm:$0xff]  ;;  %v14259_v19 = vld [vmem:[#allocation175_spill] sm:$0xff]  ;;  %v14269_v49 = vld [vmem:[#allocation197_spill] sm:$0xff] }
 0x36e   : > { %v7402_v1 = vpack.c.bf16 %v14233_v39, %v14232_v42  ;;  %v7404_v14 = vpack.c.bf16 %v14235_v20, %v14234_v31  ;;  %v14256_v40 = vand.u32 4294901760, %v14255_v18  ;;  %v14258_v44 = vand.u32 4294901760, %v14257_v2  ;;  %v14261_v39 = vld [vmem:[#allocation182_spill] sm:$0xff]  ;;  %v14263_v31 = vld [vmem:[#allocation184_spill] sm:$0xff]  ;;  %v14265_v34 = vld [vmem:[#allocation187_spill] sm:$0xff] }
 0x36f   : > { %7399 = vmatpush1.bf16.msra.mxu0 %v7398_v56  ;;  %v6640_v57 = vpack.c.bf16 %v14241_v7, %v14239_v33  ;;  %v14246_v56 = vand.u32 4294901760, %v14245_v47  ;;  %v14264_v20 = vand.u32 4294901760, %v14263_v31  ;;  %v14266_v46 = vand.u32 4294901760, %v14265_v34  ;;  %v14275_v47 = vld [vmem:[#allocation193_spill] sm:$0xff]  ;;  %v14283_v13 = vld [vmem:[#allocation15_spill] sm:$0xff] }
 0x370   : > { %7401 = vmatprep.subr.bf16.mxu0 %v7400_v17  ;;  %6635 = vmatpush1.bf16.msra.mxu1 %v6634_v58  ;;  %v14252_v17 = vand.u32 4294901760, %v14251_v26  ;;  %v6644_v58 = vpack.c.bf16 %v14256_v40, %v14254_v15  ;;  %v14270_v7 = vand.u32 4294901760, %v14269_v49  ;;  %v14284_v15 = vand.u32 4294901760, %v14283_v13 }
 0x371   : > { %6637 = vmatprep.subr.bf16.mxu1 %v6636_v38  ;;  %v7408_v22 = vpack.c.bf16 %v14248_v59, %v14246_v56  ;;  %v14260_v38 = vand.u32 4294901760, %v14259_v19  ;;  %v14276_v56 = vand.u32 4294901760, %v14275_v47  ;;  %v14277_v59 = vld [vmem:[#allocation202_spill] sm:$0xff]  ;;  %v14285_v40 = vand.u32 4294901760, %v14012_v62  ;;  %v14313_v47 = vld [vmem:[#allocation135_spill] sm:$0xff] }
 0x372   : > { %v6642_v3 = vpack.c.bf16 %v14252_v17, %v14250_v53  ;;  %v14280_v53 = vand.u32 4294901760, %v14279_v8  ;;  %v14281_v17 = vld [vmem:[#allocation206_spill] sm:$0xff]  ;;  %v14288_v19 = vand.u32 4294901760, %v14015_v6  ;;  %v14292_v31 = vand.u32 4294901760, %v14017_v11 }
 0x373   : > { %7403 = vmatpush1.bf16.msra.mxu0 %v7402_v1  ;;  %v7410_v42 = vpack.c.bf16 %v14260_v38, %v14258_v44  ;;  %v14262_v1 = vand.u32 4294901760, %v14261_v39  ;;  %v14289_v38 = vld [vmem:[#allocation211_spill] sm:$0xff]  ;;  %v14294_v62 = vand.u32 4294901760, %v14020_v60  ;;  %v14296_v6 = vand.u32 4294901760, %v14023_v27 }
 0x374   : > { %7405 = vmatprep.subr.bf16.mxu0 %v7404_v14  ;;  %6639 = vmatpush1.bf16.msra.mxu1 %v6638_v21  ;;  %v14267_v21 = vld [vmem:[#allocation189_spill] sm:$0xff]  ;;  %v14299_v11 = vand.u32 4294901760, %v14029_v32  ;;  %v14301_v49 = vand.u32 4294901760, %v13860_v28  ;;  %v14303_v27 = vand.u32 4294901760, %v13864_v29  ;;  %v14308_v28 = vand.u32 4294901760, %v13869_v43  ;;  %v14319_v43 = vld [vmem:[#allocation147_spill] sm:$0xff] }
 0x375   : > { %6641 = vmatprep.subr.bf16.mxu1 %v6640_v57  ;;  %v7412_v14 = vpack.c.bf16 %v14264_v20, %v14262_v1  ;;  %v14268_v0 = vand.u32 4294901760, %v14267_v21  ;;  %v14271_v57 = vld [vmem:[#allocation199_spill] sm:$0xff]  ;;  %v14291_v1 = vand.u32 4294901760, %v14018_v61  ;;  %v14310_v29 = vand.u32 4294901760, %v13871_v24 }
 0x376   : > { %v14272_v30 = vand.u32 4294901760, %v14271_v57  ;;  %v14320_v8 = vand.u32 4294901760, %v14319_v43  ;;  %v14377_v43 = vld [vmem:[#allocation172_spill] sm:$0xff] }
 0x377   : > { %7407 = vmatpush1.bf16.msra.mxu0 %v7406_v12  ;;  %v6646_v33 = vpack.c.bf16 %v14268_v0, %v14266_v46  ;;  %v14274_v12 = vand.u32 4294901760, %v14273_v4  ;;  %v7420_v20 = vpack.c.bf16 %v14292_v31, %v14291_v1  ;;  %v14295_v46 = vand.u32 4294901760, %v14024_v25  ;;  %v14335_v1 = vld [vmem:[#allocation142_spill] sm:$0xff]  ;;  %v14336_v31 = vld [vmem:[#allocation220_spill] sm:$0xff] }
 0x378   : > { %7409 = vmatprep.subr.bf16.mxu0 %v7408_v22  ;;  %6643 = vmatpush1.bf16.msra.mxu1 %v6642_v3  ;;  %v6648_v50 = vpack.c.bf16 %v14272_v30, %v14270_v7  ;;  %v14278_v22 = vand.u32 4294901760, %v14277_v59  ;;  %v14282_v3 = vand.u32 4294901760, %v14281_v17  ;;  %v14297_v0 = vand.u32 4294901760, %v14027_v45  ;;  %v14317_v59 = vld [vmem:[#allocation123_spill] sm:$0xff] }
 0x379   : > { %6645 = vmatprep.subr.bf16.mxu1 %v6644_v58  ;;  %v7414_v5 = vpack.c.bf16 %v14276_v56, %v14274_v12  ;;  %v14286_v58 = vld [vmem:[#allocation213_spill] sm:$0xff]  ;;  %v6656_v21 = vpack.c.bf16 %v14296_v6, %v14295_v46  ;;  %v14302_v25 = vand.u32 4294901760, %v13861_v52  ;;  %v14304_v45 = vand.u32 4294901760, %v13865_v16  ;;  %v14341_v46 = vld [vmem:[#allocation150_spill] sm:$0xff] }
 0x37a   : > { %v7416_v26 = vpack.c.bf16 %v14280_v53, %v14278_v22  ;;  %v6650_v18 = vpack.c.bf16 %v14284_v15, %v14282_v3  ;;  %v14287_v2 = vand.u32 4294901760, %v14286_v58  ;;  %v14306_v30 = vand.u32 4294901760, %v13863_v9  ;;  %v14311_v16 = vld [vmem:[#allocation125_spill] sm:$0xff]  ;;  %v14315_v9 = vld [vmem:[#allocation116_spill] sm:$0xff]  ;;  %v14325_v3 = vld [vmem:[#allocation159_spill] sm:$0xff] }
 0x37b   : > { %7411 = vmatpush1.bf16.msra.mxu0 %v7410_v42  ;;  %v14290_v42 = vand.u32 4294901760, %v14289_v38  ;;  %v6658_v7 = vpack.c.bf16 %v14302_v25, %v14301_v49  ;;  %v6660_v57 = vpack.c.bf16 %v14304_v45, %v14303_v27  ;;  %v14312_v12 = vand.u32 4294901760, %v14311_v16  ;;  %v14329_v58 = vld [vmem:[#allocation173_spill] sm:$0xff]  ;;  %v14332_v38 = vld [vmem:[#allocation140_spill] sm:$0xff]  ;;  %v14342_v6 = vld [vmem:[#allocation162_spill] sm:$0xff] }
 0x37c   : > { %7413 = vmatprep.subr.bf16.mxu0 %v7412_v14  ;;  %6647 = vmatpush1.bf16.msra.mxu1 %v6646_v33  ;;  %v6652_v44 = vpack.c.bf16 %v14287_v2, %v14285_v40  ;;  %v14293_v14 = vand.u32 4294901760, %v14021_v54  ;;  %v14298_v33 = vand.u32 4294901760, %v14026_v51  ;;  %v14300_v54 = vand.u32 4294901760, %v13859_v37  ;;  %v14350_v49 = vld [vmem:[#allocation210_spill] sm:$0xff]  ;;  %v14353_v27 = vld [vmem:[#allocation12_spill] sm:$0xff]  ;;  %v14355_v45 = vld [vmem:[#allocation27_spill] sm:$0xff] }
 0x37d   : > { %6649 = vmatprep.subr.bf16.mxu1 %v6648_v50  ;;  %v7418_v39 = vpack.c.bf16 %v14290_v42, %v14288_v19  ;;  %v14305_v51 = vand.u32 4294901760, %v13862_v41  ;;  %v14307_v37 = vand.u32 4294901760, %v13868_v55  ;;  %v14309_v50 = vand.u32 4294901760, %v13870_v23  ;;  %v14321_v23 = vld [vmem:[#allocation149_spill] sm:$0xff]  ;;  %v14331_v19 = vld [vmem:[#allocation122_spill] sm:$0xff]  ;;  %v14333_v42 = vld [vmem:[#allocation127_spill] sm:$0xff] }
 0x37e   : > { %v6654_v34 = vpack.c.bf16 %v14294_v62, %v14293_v14  ;;  %v7422_v61 = vpack.c.bf16 %v14298_v33, %v14297_v0  ;;  %v7424_v60 = vpack.c.bf16 %v14300_v54, %v14299_v11  ;;  %v14314_v41 = vand.u32 4294901760, %v14313_v47  ;;  %v14338_v14 = vld [vmem:[#allocation136_spill] sm:$0xff]  ;;  %v14339_v62 = vld [vmem:[#allocation225_spill] sm:$0xff]  ;;  %v14345_v33 = vld [vmem:[#allocation154_spill] sm:$0xff] }
 0x37f   : > { %7415 = vmatpush1.bf16.msra.mxu0 %v7414_v5  ;;  %v7426_v32 = vpack.c.bf16 %v14306_v30, %v14305_v51  ;;  %v7428_v52 = vpack.c.bf16 %v14308_v28, %v14307_v37  ;;  %v6662_v4 = vpack.c.bf16 %v14310_v29, %v14309_v50  ;;  %v14316_v5 = vand.u32 4294901760, %v14315_v9  ;;  %v14344_v0 = vld [vmem:[#allocation229_spill] sm:$0xff]  ;;  %v14347_v11 = vld [vmem:[#allocation114_spill] sm:$0xff]  ;;  %v14358_v51 = vld [vmem:[#allocation39_spill] sm:$0xff] }
 0x380   : > { %7417 = vmatprep.subr.bf16.mxu0 %v7416_v26  ;;  %6651 = vmatpush1.bf16.msra.mxu1 %v6650_v18  ;;  %v6664_v56 = vpack.c.bf16 %v14314_v41, %v14312_v12  ;;  %v14318_v22 = vand.u32 4294901760, %v14317_v59  ;;  %v14322_v53 = vand.u32 4294901760, %v14321_v23  ;;  %v14323_v26 = vld [vmem:[#allocation155_spill] sm:$0xff]  ;;  %v14326_v13 = vand.u32 4294901760, %v14325_v3  ;;  %v14348_v54 = vld [vmem:[#allocation118_spill] sm:$0xff]  ;;  %v14361_v37 = vld [vmem:[#allocation45_spill] sm:$0xff] }
 0x381   : > { %6653 = vmatprep.subr.bf16.mxu1 %v6652_v44  ;;  %v14324_v17 = vand.u32 4294901760, %v14323_v26  ;;  %v14327_v18 = vld [vmem:[#allocation167_spill] sm:$0xff]  ;;  %v14330_v2 = vand.u32 4294901760, %v14329_v58  ;;  %v14351_v25 = vld [vmem:[#allocation218_spill] sm:$0xff]  ;;  %v14362_v28 = vld [vmem:[#allocation53_spill] sm:$0xff] }
 0x382   : > { %v7430_v55 = vpack.c.bf16 %v14318_v22, %v14316_v5  ;;  %v7432_v24 = vpack.c.bf16 %v14322_v53, %v14320_v8  ;;  %v14328_v40 = vand.u32 4294901760, %v14327_v18  ;;  %v14359_v30 = vld [vmem:[#allocation43_spill] sm:$0xff]  ;;  %v14365_v29 = vld [vmem:[#allocation62_spill] sm:$0xff]  ;;  %v14367_v16 = vld [vmem:[#allocation76_spill] sm:$0xff] }
 0x383   : > { %7419 = vmatpush1.bf16.msra.mxu0 %v7418_v39  ;;  %v6666_v15 = vpack.c.bf16 %v14326_v13, %v14324_v17  ;;  %v14334_v39 = vld [vmem:[#allocation132_spill] sm:$0xff]  ;;  %v14364_v50 = vld [vmem:[#allocation67_spill] sm:$0xff]  ;;  %v14368_v12 = vld [vmem:[#allocation82_spill] sm:$0xff] }
 0x384   : > { %7421 = vmatprep.subr.bf16.mxu0 %v7420_v20  ;;  %6655 = vmatpush1.bf16.msra.mxu1 %v6654_v34  ;;  %v7434_v44 = vpack.c.bf16 %v14330_v2, %v14328_v40  ;;  %v14337_v20 = vld [vmem:[#allocation164_spill] sm:$0xff]  ;;  %v14340_v34 = vld [vmem:[#allocation145_spill] sm:$0xff]  ;;  %v14370_v41 = vld [vmem:[#allocation90_spill] sm:$0xff] }
 0x385   : > { %6657 = vmatprep.subr.bf16.mxu1 %v6656_v21  ;;  %v14343_v21 = vld [vmem:[#allocation227_spill] sm:$0xff]  ;;  %v14369_v47 = vld [vmem:[#allocation84_spill] sm:$0xff]  ;;  %v14373_v5 = vld [vmem:[#allocation98_spill] sm:$0xff] }
 0x386   : > { %v14372_v9 = vld [vmem:[#allocation103_spill] sm:$0xff]  ;;  %v14375_v22 = vld [vmem:[#allocation168_spill] sm:$0xff]  ;;  %v14378_v8 = vld [vmem:[#allocation181_spill] sm:$0xff] }
 0x387   : > { %7423 = vmatpush1.bf16.msra.mxu0 %v7422_v61  ;;  %v14346_v61 = vld [vmem:[#allocation105_spill] sm:$0xff]  ;;  %v14374_v59 = vld [vmem:[#allocation163_spill] sm:$0xff]  ;;  %v14379_v23 = vld [vmem:[#allocation186_spill] sm:$0xff] }
 0x388   : > { %7425 = vmatprep.subr.bf16.mxu0 %v7424_v60  ;;  %6659 = vmatpush1.bf16.msra.mxu1 %v6658_v7  ;;  %v14349_v60 = vld [vmem:[#allocation120_spill] sm:$0xff]  ;;  %v14352_v7 = vld [vmem:[#allocation18_spill] sm:$0xff]  ;;  %v14383_v17 = vld [vmem:[#allocation11_spill] sm:$0xff] }
 0x389   : > { %6661 = vmatprep.subr.bf16.mxu1 %v6660_v57  ;;  %v14357_v57 = vld [vmem:[#allocation29_spill] sm:$0xff]  ;;  %v14380_v53 = vld [vmem:[#allocation194_spill] sm:$0xff]  ;;  %v14382_v26 = vld [vmem:[#allocation200_spill] sm:$0xff] }
 0x38a   : > { %v14384_v3 = vld [vmem:[#allocation209_spill] sm:$0xff]  ;;  %v14385_v13 = vld [vmem:[#allocation24_spill] sm:$0xff]  ;;  %v14387_v18 = vld [vmem:[#allocation215_spill] sm:$0xff] }
 0x38b   : > { %7427 = vmatpush1.bf16.msra.mxu0 %v7426_v32  ;;  %v14360_v32 = vld [vmem:[#allocation205_spill] sm:$0xff]  ;;  %v14388_v40 = vld [vmem:[#allocation44_spill] sm:$0xff]  ;;  %v14389_v58 = vld [vmem:[#allocation38_spill] sm:$0xff] }
 0x38c   : > { %7429 = vmatprep.subr.bf16.mxu0 %v7428_v52  ;;  %6663 = vmatpush1.bf16.msra.mxu1 %v6662_v4  ;;  %v14363_v52 = vld [vmem:[#allocation61_spill] sm:$0xff]  ;;  %v14390_v2 = vld [vmem:[#allocation59_spill] sm:$0xff] }
 0x38d   : > { %6665 = vmatprep.subr.bf16.mxu1 %v6664_v56  ;;  %v14366_v4 = vld [vmem:[#allocation69_spill] sm:$0xff] }
 0x38e   : > { %v14371_v56 = vld [vmem:[#allocation97_spill] sm:$0xff] }
 0x38f   : > { %7431 = vmatpush1.bf16.msra.mxu0 %v7430_v55  ;;  %v14376_v55 = vld [vmem:[#allocation178_spill] sm:$0xff] }
 0x390   : > { %7433 = vmatprep.subr.bf16.mxu0 %v7432_v24  ;;  %6667 = vmatpush1.bf16.msra.mxu1 %v6666_v15  ;;  %v14381_v24 = vld [vmem:[#allocation190_spill] sm:$0xff] }
 0x391   : > { %6669 = vmatprep.subr.bf16.mxu1 %v14331_v19  ;;  %v14386_v15 = vld [vmem:[#allocation26_spill] sm:$0xff]  ;;  %v14392_v19 = vld [vmem:[#allocation87_spill] sm:$0xff] }
 0x393   : > { %7435 = vmatpush1.bf16.msra.mxu0 %v7434_v44  ;;  %2985 = vmatmul.mubr.f32.vlgmr.msra.gmra.mrb[0].mxu1 %v14332_v38  ;;  %v14391_v44 = vld [vmem:[#allocation71_spill] sm:$0xff] }
 0x394   : > { %7437 = vmatprep.subr.bf16.mxu0 %v14333_v42  ;;  %6671 = vmatpush1.bf16.msra.mxu1 %v14334_v39  ;;  %v14393_v42 = vld [vmem:[#allocation75_spill] sm:$0xff] }
 0x395   : > { %6673 = vmatprep.subr.bf16.mxu1 %v14335_v1  ;;  %2991 = vmatprep.mubr.f32.mxu1 %v14336_v31  ;;  %v14394_v39 = vld [vmem:[#allocation95_spill] sm:$0xff] }
 0x396   : > { %5677 = vmatmul.mubr.f32.vlgmr.msra.gmra.mrb[0].mxu0 %v14337_v20  ;;  %v14395_v1 = vld [vmem:[#allocation111_spill] sm:$0xff] }
 0x397   : > { %7439 = vmatpush1.bf16.msra.mxu0 %v14338_v14  ;;  %5683 = vmatprep.mubr.f32.mxu0 %v14339_v62  ;;  %v14396_v14 = vld [vmem:[#allocation128_spill] sm:$0xff] }
 0x398   : > { %7441 = vmatprep.subr.bf16.mxu0 %v14340_v34  ;;  %6675 = vmatpush1.bf16.msra.mxu1 %v14341_v46  ;;  %v14397_v34 = vld [vmem:[#allocation152_spill] sm:$0xff] }
 0x399   : > { %6677 = vmatprep.subr.bf16.mxu1 %v14342_v6  ;;  %2993 = vmatmul.mubr.f32.gmra.mrb[2].mxu1 %v14343_v21 }
 0x39a   : > { %5685 = vmatmul.mubr.f32.gmra.mrb[2].mxu0 %v14344_v0  ;;  %3128 = vmatprep.mubr.f32.mxu1 %v14151_v10  ;;  %v14354_v10 = vld [vmem:[#allocation23_spill] sm:$0xff] }
 0x39b   : > { %7443 = vmatpush1.bf16.msra.mxu0 %v14345_v33  ;;  %5820 = vmatprep.mubr.f32.mxu0 %v14156_v35  ;;  %v14356_v35 = vld [vmem:[#allocation37_spill] sm:$0xff] }
 0x39c   : > { %7445 = vmatprep.subr.bf16.mxu0 %v14346_v61  ;;  %6679 = vmatpush1.bf16.msra.mxu1 %v14347_v11 }
 0x39d   : > { %6681 = vmatprep.subr.bf16.mxu1 %v14348_v54 }
 0x39f   : > { %7447 = vmatpush1.bf16.msra.mxu0 %v14349_v60 }
 0x3a0   : > { %7449 = vmatprep.subr.bf16.mxu0 %v14350_v49  ;;  %6683 = vmatpush1.bf16.msra.mxu1 %v14351_v25 }
 0x3a1   : > { %6685 = vmatprep.subr.bf16.mxu1 %v14352_v7 }
 0x3a3   : > { %7451 = vmatpush1.bf16.msra.mxu0 %v14353_v27 }
 0x3a4   : > { %7453 = vmatprep.subr.bf16.mxu0 %v14354_v10  ;;  %6687 = vmatpush1.bf16.msra.mxu1 %v14355_v45 }
 0x3a5   : > { %6689 = vmatprep.subr.bf16.mxu1 %v14356_v35 }
 0x3a7   : > { %7455 = vmatpush1.bf16.msra.mxu0 %v14357_v57 }
 0x3a8   : > { %7457 = vmatprep.subr.bf16.mxu0 %v14358_v51  ;;  %6691 = vmatpush1.bf16.msra.mxu1 %v14359_v30 }
 0x3a9   : > { %6693 = vmatprep.subr.bf16.mxu1 %v14360_v32 }
 0x3ab   : > { %7459 = vmatpush1.bf16.msra.mxu0 %v14361_v37 }
 0x3ac   : > { %7461 = vmatprep.subr.bf16.mxu0 %v14362_v28  ;;  %6695 = vmatpush1.bf16.msra.mxu1 %v14363_v52 }
 0x3ad   : > { %6697 = vmatprep.subr.bf16.mxu1 %v14364_v50 }
 0x3af   : > { %7463 = vmatpush1.bf16.msra.mxu0 %v14365_v29 }
 0x3b0   : > { %7465 = vmatprep.subr.bf16.mxu0 %v14366_v4  ;;  %6699 = vmatpush1.bf16.msra.mxu1 %v14367_v16 }
 0x3b1   : > { %6701 = vmatprep.subr.bf16.mxu1 %v14368_v12 }
 0x3b3   : > { %7467 = vmatpush1.bf16.msra.mxu0 %v14369_v47 }
 0x3b4   : > { %7469 = vmatprep.subr.bf16.mxu0 %v14370_v41  ;;  %6703 = vmatpush1.bf16.msra.mxu1 %v14371_v56 }
 0x3b5   : > { %6705 = vmatprep.subr.bf16.mxu1 %v14372_v9 }
 0x3b7   : > { %7471 = vmatpush1.bf16.msra.mxu0 %v14373_v5 }
 0x3b8   : > { %7473 = vmatprep.subr.bf16.mxu0 %v14374_v59  ;;  %6707 = vmatpush1.bf16.msra.mxu1 %v14375_v22 }
 0x3b9   : > { %6709 = vmatprep.subr.bf16.mxu1 %v14376_v55 }
 0x3bb   : > { %7475 = vmatpush1.bf16.msra.mxu0 %v14377_v43 }
 0x3bc   : > { %7477 = vmatprep.subr.bf16.mxu0 %v14378_v8  ;;  %6711 = vmatpush1.bf16.msra.mxu1 %v14379_v23 }
 0x3bd   : > { %6713 = vmatprep.subr.bf16.mxu1 %v14380_v53 }
 0x3bf   : > { %7479 = vmatpush1.bf16.msra.mxu0 %v14381_v24 }
 0x3c0   : > { %7481 = vmatprep.subr.bf16.mxu0 %v14382_v26  ;;  %6715 = vmatpush1.bf16.msra.mxu1 %v14383_v17 }
 0x3c1   : > { %6717 = vmatprep.subr.bf16.mxu1 %v14384_v3 }
 0x3c3   : > { %7483 = vmatpush1.bf16.msra.mxu0 %v14385_v13 }
 0x3c4   : > { %7485 = vmatprep.subr.bf16.mxu0 %v14386_v15  ;;  %6719 = vmatpush1.bf16.msra.mxu1 %v14387_v18 }
 0x3c5   : > { %6721 = vmatprep.subr.bf16.mxu1 %v14388_v40 }
 0x3c7   : > { %7487 = vmatpush1.bf16.msra.mxu0 %v14389_v58 }
 0x3c8   : > { %7489 = vmatprep.subr.bf16.mxu0 %v14390_v2  ;;  %6723 = vmatpush1.bf16.msra.mxu1 %v14391_v44 }
 0x3c9   : > { %6725 = vmatprep.subr.bf16.mxu1 %v14392_v19 }
 0x3cb   : > { %7491 = vmatpush1.bf16.msra.mxu0 %v14393_v42 }
 0x3cc   : > { %7493 = vmatprep.subr.bf16.mxu0 %v14394_v39  ;;  %6727 = vmatpush1.bf16.msra.mxu1 %v14395_v1 }
 0x3cd   : > { %6729 = vmatprep.subr.bf16.mxu1 %v14396_v14 }
 0x3cf   : > { %7495 = vmatpush1.bf16.msra.mxu0 %v14111_v36 }
 0x3d0   : > { %7497 = vmatprep.subr.bf16.mxu0 %v14112_v48  ;;  %6731 = vmatpush1.bf16.msra.mxu1 %v14397_v34  ;;  %v7792_v48 = vmov 0.0  }
 0x3d1   : > { %5836 = vst [vmem:[%s177_s17] sm:$0xff] %v7792_v48  ;;  %5837 = vst [vmem:[%s177_s17 + $0x8] sm:$0xff] %v7792_v48 }
 0x3d2   : > { %5842 = vst [vmem:[%s177_s17 + $0x30] sm:$0xff] %v7792_v48  ;;  %5843 = vst [vmem:[%s177_s17 + $0x38] sm:$0xff] %v7792_v48 }
 0x3d3   : > { %7499 = vmatpush1.bf16.msra.mxu0 %v14120_v63  ;;  %3130 = vmatmul.mubr.f32.vlgmr.msra.gmra.mrb[0].mxu1 %v14332_v38 }
 0x3d4   : > { %3136 = vmatprep.mubr.f32.mxu1 %v14336_v31 }
 0x3d6   : > { %5822 = vmatmul.mubr.f32.vlgmr.msra.gmra.mrb[0].mxu0 %v14337_v20 }
 0x3d7   : > { %5828 = vmatprep.mubr.f32.mxu0 %v14339_v62  ;;  %3138 = vmatmul.mubr.f32.gmra.mrb[2].mxu1 %v14343_v21 }
 0x3da   : > { %5830 = vmatmul.mubr.f32.gmra.mrb[2].mxu0 %v14344_v0 }
 0x4a6   : > { %v3131_v36 = vpop.f32.mrb[0].mxu1 }
 0x4a7   : > { %v3133_v63 = vpop.f32.mrb[1].mxu1 }
 0x4a9   : > { %v5823_v38 = vpop.f32.mrb[0].mxu0 }
 0x4aa   : > { %v7500_v31 = vadd.f32 %v5823_v38, %v3131_v36  ;;  %v5825_v20 = vpop.f32.mrb[1].mxu0  ;;  %v3139_v62 = vpop.f32.mrb[2].mxu1 }
 0x4ab   : > { %v7501_v46 = vadd.f32 %v5825_v20, %v3133_v63  ;;  %v3141_v6 = vpop.f32.mrb[3].mxu1 }
 0x4ac   : > { %5838 = vst [vmem:[%s177_s17 + $0x10] sm:$0xff] %v7500_v31 }
 0x4ad   : > { %5839 = vst [vmem:[%s177_s17 + $0x18] sm:$0xff] %v7501_v46  ;;  %v5831_v21 = vpop.f32.mrb[2].mxu0 }
 0x4ae   : > { %v7502_v0 = vadd.f32 %v5831_v21, %v3139_v62  ;;  %v5833_v33 = vpop.f32.mrb[3].mxu0 }
 0x4af   : > { %v7503_v61 = vadd.f32 %v5833_v33, %v3141_v6 }
 0x4b0   : > { %5840 = vst [vmem:[%s177_s17 + $0x20] sm:$0xff] %v7502_v0 }
 0x4b1   : > { %5841 = vst [vmem:[%s177_s17 + $0x28] sm:$0xff] %v7503_v61 }
 0x4b2   : > { %7727 = shalt.err (!%p7724_p7)
}
 0x4b3   : > { %s7728_s24 = scalar_lea.hbm %s11626_s4, 1024  ;;  %s7732_s26 = scalar_lea.hbm %s11671_s2, 4096 }
 0x4b4   : > { %p7729_p9 = scmp.ne.s32.totalorder %s11626_s4, %s7728_s24  ;;  %p7733_p5 = scmp.lt.u32.totalorder %s11626_s4, %s11671_s2 }
 0x4b5   : > { %p7734_p10 = scmp.lt.u32.totalorder %s7732_s26, %s7728_s24  ;;  %p7736_p1 = scmp.lt.u32.totalorder %s7728_s24, %s11626_s4 }
 0x4b6   : > { %p7730_p11 = pnand %p7729_p9, %p7894_p12 }
 0x4b7   : > { %p7735_p2 = por %p7734_p10, %p7733_p5 }
 0x4b8   : > { %p7731_p0 = pneg %p7730_p11 }
 0x4b9   : > { %p7737_p4 = por %p7736_p1, %p7735_p2 }
 0x4bb   : > { %p7738_p6 = pnand %p7737_p4, %p7731_p0 }
 0x4bd   : > { %7741 = shalt.err (!%p7738_p6)
}
 0x4be   : > { %s7794_s3 = smov 256   ;;  %s7795_s15 = smov 16  }
 0x4bf   : > { %7598 = dma.vmem_to_hbm [thread:$0]  (%p7894_p12), %s11621_s27, 1024, %s11626_s4, %s5845_s5, %s7794_s3, %s7794_s3, %s7795_s15  }
 0x4c0 PF: > { %p7615_p8 = scmp.ge.s32.totalorder %s7784_s12, 2  ;;  %s5874_s17 = sand.u32 1, %s7772_s9  }
 0x4c1   : > { %p14398_p13 = scmp.ne.s32.totalorder %s12582_s16, 0  ;;  %s5875_s22 = scalar_lea.sflag [#allocation4], %s5874_s17 }
 0x4c3   : > { %p7609_p3 = pnand %p7615_p8, %p14398_p13 }
 0x4c5   : > { %7767 = dma.done.wait (!%p7609_p3), %s5875_s22, 1024  }
 0x4c6   : > { %7769 = vsyncadd (!%p7609_p3), %s5875_s22, 4294966272  ;;  %p16_p7 = scmp.ge.s32.totalorder %s7864_s21, 6   ;;  %s14399_s9 = smov %s7776_s10 }
 0x4c7   : > { %s14400_s10 = smov %s7780_s11  ;;  %s14401_s11 = smov %s7890_s8 }
 0x4c8   : > { %s14402_s12 = smov %s7864_s21  ;;  %18 = sbr.rel (!%p16_p7) target bundleno = 6 (0x6), region = 77 }
 0x4cf   :  { %5880 = vsyncpa [#allocation3], 1 }
 0x4d0   :  { %5882 = vsyncpa [#allocation3 + $0x1], 1 }
 0x4d1   :  { %5883 = vsyncpa [#allocation6], 1 }
 0x4d2   :  { %5884 = vsyncpa [#allocation4], 1 }
 0x4d3   :  { %5886 = vsyncpa [#allocation4 + $0x1], 1 }

</bundles_post_ra>
